<compile_context>
chip_gen: v5e
topology: v5e:2x2
jax: 0.10.0
libtpu: 0.0.40
codegen_flags: <defaults>
</compile_context>

<pallas_src>
import functools

import numpy as np
import jax
import jax.numpy as jnp
from jax.experimental import pallas as pl
from jax.experimental.pallas import tpu as pltpu


_VMEM_LIMIT = 48 * 1024 * 1024   # explicit scoped-VMEM cap; headroom on v7x's 64 MiB


def _cdiv(a, b):
    return -(-a // b)


def _row_block(n, max_block=8):
    """Images/maps per grid step: >=2 balanced blocks (feeds both v7x TCs),
    bounded static unroll."""
    if n <= 1:
        return max(n, 1)
    return min(max_block, _cdiv(n, 2))


def _pick_tm(m, cap=1024):
    """M tile for matmul_bias: single block for small M (single-TC v5e/v6e
    friendly), otherwise an even number of balanced 8-aligned blocks so the
    'parallel' grid splits evenly across v7x's two TensorCores."""
    if m <= 512:
        return m
    nblk = 2
    while _cdiv(m, nblk) > cap:
        nblk += 2
    return ((_cdiv(m, nblk) + 7) // 8) * 8


# --------------------------------------------------------------------------
# Generic (M,K)@(K,N) + bias (+ optional ReLU) kernel, tiled over M.
# Used for the fused (train+test) head 1x1 conv.
# --------------------------------------------------------------------------
def _matmul_bias_kernel(a_ref, b_ref, bias_ref, o_ref, *, relu):
    acc = jnp.dot(a_ref[...], b_ref[...], preferred_element_type=jnp.float32)
    acc = acc + bias_ref[...]
    if relu:
        acc = jnp.maximum(acc, 0.0)
    o_ref[...] = acc.astype(o_ref.dtype)


def matmul_bias(a, b, bias, *, relu=False, out_dtype=jnp.float32):
    # TODO(synk): for production K/N (D~1024, huge M) add K ('arbitrary', f32
    # accumulator scratch) and N ('parallel') grid axes instead of keeping the
    # full (K, N) weight resident; mark the weight/bias pl.Buffered(1).
    m, k = a.shape
    k2, n = b.shape
    assert k == k2
    bias2 = bias.reshape(1, n).astype(jnp.float32)
    tm = _pick_tm(m)
    grid = (_cdiv(m, tm),)
    return pl.pallas_call(
        functools.partial(_matmul_bias_kernel, relu=relu),
        out_shape=jax.ShapeDtypeStruct((m, n), out_dtype),
        grid_spec=pltpu.PrefetchScalarGridSpec(
            num_scalar_prefetch=0,
            grid=grid,
            in_specs=[
                pl.BlockSpec((tm, k), lambda i: (i, 0)),
                pl.BlockSpec((k, n), lambda i: (0, 0)),
                pl.BlockSpec((1, n), lambda i: (0, 0)),
            ],
            out_specs=pl.BlockSpec((tm, n), lambda i: (i, 0)),
        ),
        compiler_params=pltpu.CompilerParams(
            dimension_semantics=("parallel",),
            vmem_limit_bytes=_VMEM_LIMIT),
    )(a, b, bias2)


# --------------------------------------------------------------------------
# Separable bilinear resize to 18x18 (matches F.interpolate(..., size=(18,18),
# mode='bilinear', align_corners=False)).  One pallas_call over all maps; per
# map two tiny 2-D MXU matmuls:  out = L_h @ x @ L_w^T.
# --------------------------------------------------------------------------
def _bilinear_matrix(in_size, out_size):
    m = np.zeros((out_size, in_size), dtype=np.float32)
    scale = in_size / out_size
    for j in range(out_size):
        src = max((j + 0.5) * scale - 0.5, 0.0)
        i0 = min(int(np.floor(src)), in_size - 1)
        i1 = min(i0 + 1, in_size - 1)
        lam = src - i0
        m[j, i0] += 1.0 - lam
        m[j, i1] += lam
    return m


def _bilinear_kernel(x_ref, lh_ref, lwt_ref, o_ref, *, bn):
    lh = lh_ref[...]       # (18, H)
    lwt = lwt_ref[...]     # (W, 18)
    for m in range(bn):    # static unroll; plain 2-D matmuls only
        y = jnp.dot(lh, x_ref[m], preferred_element_type=jnp.float32)    # (18, W)
        o_ref[m] = jnp.dot(y, lwt, preferred_element_type=jnp.float32)   # (18, 18)


def bilinear_to_18(x):
    # x: (N, H, W) f32 -> (N, 18, 18) f32.
    n, h, w = x.shape
    lh = jnp.asarray(_bilinear_matrix(h, 18))        # (18, H)
    lwt = jnp.asarray(_bilinear_matrix(w, 18).T)     # (W, 18)
    bn = _row_block(n)
    grid = (_cdiv(n, bn),)
    return pl.pallas_call(
        functools.partial(_bilinear_kernel, bn=bn),
        out_shape=jax.ShapeDtypeStruct((n, 18, 18), jnp.float32),
        grid_spec=pltpu.PrefetchScalarGridSpec(
            num_scalar_prefetch=0,
            grid=grid,
            in_specs=[
                pl.BlockSpec((bn, h, w), lambda i: (i, 0, 0)),
                pl.BlockSpec((18, h), lambda i: (0, 0)),
                pl.BlockSpec((w, 18), lambda i: (0, 0)),
            ],
            out_specs=pl.BlockSpec((bn, 18, 18), lambda i: (i, 0, 0)),
        ),
        compiler_params=pltpu.CompilerParams(
            dimension_semantics=("parallel",),
            vmem_limit_bytes=_VMEM_LIMIT),
    )(x, lh, lwt)


# --------------------------------------------------------------------------
# Synthetic backbone: 3x3 stride-2 pad-1 conv (3 -> C) + ReLU.
# The padded NHWC input is reinterpreted (FREE reshape) as "paired rows"
#   pair_row[n, q] = [padded row 2q ; padded row 2q+1]  (flattened w, cin)
# and the conv becomes, per output row ho,
#   out[n, ho] = pair_row[n, ho] @ WA + pair_row[n, ho+1] @ WB + bias
# with block-Toeplitz WA (taps dy=0,1) / WB (tap dy=2, second half zero).
# Exact; no host-side slab concatenate, ~1x input HBM traffic.
# TODO(synk): the real feature_extractor (e.g. ResNet) is an injected module;
#             a single conv layer with the same interface is substituted.
# --------------------------------------------------------------------------
def _conv_pair_weights(w, b, cin, w_in, cout):
    wp = w_in + 2
    wo_out = w_in // 2
    k1 = wp * cin
    wo = np.arange(wo_out)
    dx = np.arange(3)
    ci = np.arange(cin)
    rows = ((2 * wo[:, None, None] + dx[None, :, None]) * cin
            + ci[None, None, :]).reshape(-1).astype(np.int32)
    cols = np.broadcast_to(wo[:, None, None],
                           (wo_out, 3, cin)).reshape(-1).astype(np.int32)
    vals = jnp.broadcast_to(w[:, None, :, :, :],
                            (3, wo_out, 3, cin, cout)).reshape(
                                3, wo_out * 3 * cin, cout)
    t = jnp.zeros((3, k1, wo_out, cout), jnp.float32)
    t = t.at[:, rows, cols, :].set(vals)      # (row, col) pairs unique -> .set OK
    t = t.reshape(3, k1, wo_out * cout)
    wa = jnp.concatenate([t[0], t[1]], axis=0)                  # (2*k1, Wo*Cout)
    wb = jnp.concatenate([t[2], jnp.zeros_like(t[2])], axis=0)  # (2*k1, Wo*Cout)
    bias = jnp.tile(b, wo_out).reshape(1, wo_out * cout)
    return wa.astype(jnp.bfloat16), wb.astype(jnp.bfloat16), bias


def _conv_pair_kernel(x_ref, wa_ref, wb_ref, bias_ref, o_ref, *, bn, ho):
    wa = wa_ref[...]
    wb = wb_ref[...]
    bias = bias_ref[...]
    for m in range(bn):   # static unroll over the images in this block
        xa = x_ref[m, 0:ho, :].astype(jnp.bfloat16)        # rows 2h, 2h+1
        xb = x_ref[m, 1:ho + 1, :].astype(jnp.bfloat16)    # rows 2h+2 (2h+3 unused)
        acc = jnp.dot(xa, wa, preferred_element_type=jnp.float32)
        acc = acc + jnp.dot(xb, wb, preferred_element_type=jnp.float32)
        acc = acc + bias
        o_ref[m] = jnp.maximum(acc, 0.0).astype(o_ref.dtype)


def conv3x3_s2_relu(x_nchw, w, b, *, out_dtype=jnp.bfloat16):
    # x: (N, Cin, H, W) NCHW (PyTorch layout); w: (3, 3, Cin, Cout) [dy,dx,ci,co].
    # Returns channels-last (N, H/2, (W/2)*Cout) in bf16.
    n, cin, h, wd = x_nchw.shape
    assert h % 2 == 0 and wd % 2 == 0
    ho, wo = h // 2, wd // 2
    cout = w.shape[-1]
    xh = jnp.transpose(x_nchw, (0, 2, 3, 1))                 # NHWC (relayout of raw imgs)
    xp = jnp.pad(xh, ((0, 0), (1, 1), (1, 1), (0, 0)))       # (N, H+2, W+2, Cin)
    hq = (h + 2) // 2
    kp = 2 * (wd + 2) * cin
    xpair = xp.reshape(n, hq, kp)                            # FREE reshape: paired rows
    wa, wb, bias = _conv_pair_weights(w, b, cin, wd, cout)
    bn = _row_block(n)
    grid = (_cdiv(n, bn),)
    return pl.pallas_call(
        functools.partial(_conv_pair_kernel, bn=bn, ho=ho),
        out_shape=jax.ShapeDtypeStruct((n, ho, wo * cout), out_dtype),
        grid_spec=pltpu.PrefetchScalarGridSpec(
            num_scalar_prefetch=0,
            grid=grid,
            in_specs=[
                pl.BlockSpec((bn, hq, kp), lambda i: (i, 0, 0)),
                pl.BlockSpec((kp, wo * cout), lambda i: (0, 0)),
                pl.BlockSpec((kp, wo * cout), lambda i: (0, 0)),
                pl.BlockSpec((1, wo * cout), lambda i: (0, 0)),
            ],
            out_specs=pl.BlockSpec((bn, ho, wo * cout), lambda i: (i, 0, 0)),
        ),
        compiler_params=pltpu.CompilerParams(
            dimension_semantics=("parallel",),
            vmem_limit_bytes=_VMEM_LIMIT),
    )(xpair, wa, wb, bias)


# --------------------------------------------------------------------------
# Synthetic ToMP-style head kernel (one grid step per sequence):
#   filter  = (1/(n_tr*P)) * sum over train frames/pixels of feat * prob
#             + bb embedding                         (single MXU matmul)
#   [scores; bbox; 0...] = [filter; W_reg; 0] @ test_feat^T   (one 8-row MXU call)
#   scores += w_prob * test_prob
# Output is ONE lane-dense, sublane-aligned (seq, 8, n_te*324) slab.
# TODO(synk): the real `head` is an injected transformer module; this kernel
#             keeps its data flow (train feat + prob + bb -> target model ->
#             scores + dense bbox) with a simplified target-model predictor.
# --------------------------------------------------------------------------
def _head_kernel(wp_ref, trf_ref, trp_ref, bbe_ref, tef_ref, tep_ref, wreg_ref,
                 o_ref, *, inv_norm):
    # target-model filter via MXU: (1, n_tr*P) @ (n_tr*P, D)
    filt = jnp.dot(trp_ref[0].astype(jnp.bfloat16), trf_ref[0],
                   preferred_element_type=jnp.float32)              # (1, D)
    filt = filt * inv_norm + bbe_ref[0]                              # (1, D) f32

    row0 = jax.lax.broadcasted_iota(jnp.int32, (8, 1), 0) == 0
    # row 0 = filter, rows 1..4 = W_reg, rows 5..7 = zero padding.
    wfull = jnp.where(row0, filt.astype(jnp.bfloat16), wreg_ref[...])   # (8, D)
    comb = jax.lax.dot_general(                                      # (8, n_te*P)
        wfull, tef_ref[0],
        dimension_numbers=(((1,), (1,)), ((), ())),
        preferred_element_type=jnp.float32)
    # scores row gets the probability prior; other rows untouched.
    o_ref[0] = comb + jnp.where(row0, wp_ref[0], 0.0) * tep_ref[0]


def tomp_head(feat_all, probs18, train_bb, params, *, n_tr, n_te, seq):
    n_img, ho, woc = feat_all.shape
    c = params["w_head"].shape[0]
    d = params["w_head"].shape[1]
    wo = woc // c
    p = ho * wo
    assert (ho, wo) == (18, 18), (
        "synthetic head assumes the backbone feature grid matches the 18x18 "
        "interpolated probability maps")
    assert n_img == seq * (n_tr + n_te)

    # Fused head feature extraction (1x1 conv + ReLU) over train AND test.
    a = feat_all.reshape(n_img * p, c)                         # free (channels-last)
    feats = matmul_bias(a, params["w_head"].astype(jnp.bfloat16),
                        params["b_head"], relu=True, out_dtype=jnp.bfloat16)

    # Sequence-major ordering upstream -> these regroupings are free reshapes.
    trf = feats[:seq * n_tr * p].reshape(seq, n_tr * p, d)
    tef = feats[seq * n_tr * p:].reshape(seq, n_te * p, d)
    trp = probs18[:seq * n_tr].reshape(seq, 1, n_tr * p)
    tep = probs18[seq * n_tr:].reshape(seq, 1, n_te * p)

    # bb embedding: tiny (seq,4)@(4,D) -> plain XLA (no dedicated kernel).
    bbe = (jnp.mean(train_bb, axis=0) @ params["w_bb"]).reshape(
        seq, 1, d).astype(jnp.float32)

    wreg8 = jnp.zeros((8, d), jnp.float32).at[1:5].set(
        params["w_reg_t"]).astype(jnp.bfloat16)
    wprob = jnp.asarray(params["w_prob"], jnp.float32).reshape(1)

    out = pl.pallas_call(
        functools.partial(_head_kernel, inv_norm=1.0 / float(n_tr * p)),
        out_shape=jax.ShapeDtypeStruct((seq, 8, n_te * p), jnp.float32),
        grid_spec=pltpu.PrefetchScalarGridSpec(
            num_scalar_prefetch=0,
            grid=(seq,),
            in_specs=[
                pl.BlockSpec(memory_space=pltpu.MemorySpace.SMEM),     # w_prob
                pl.BlockSpec((1, n_tr * p, d), lambda s: (s, 0, 0)),
                pl.BlockSpec((1, 1, n_tr * p), lambda s: (s, 0, 0)),
                pl.BlockSpec((1, 1, d), lambda s: (s, 0, 0)),
                pl.BlockSpec((1, n_te * p, d), lambda s: (s, 0, 0)),
                pl.BlockSpec((1, 1, n_te * p), lambda s: (s, 0, 0)),
                pl.BlockSpec((8, d), lambda s: (0, 0)),
            ],
            out_specs=pl.BlockSpec((1, 8, n_te * p), lambda s: (s, 0, 0)),
        ),
        compiler_params=pltpu.CompilerParams(
            dimension_semantics=("parallel",),
            vmem_limit_bytes=_VMEM_LIMIT),
    )(wprob, trf, trp, bbe, tef, tep, wreg8)

    test_scores = out[:, 0, :].reshape(seq, n_te, 18, 18).transpose(1, 0, 2, 3)
    bbox_preds = out[:, 1:5, :].reshape(seq, 4, n_te, 18, 18).transpose(
        2, 0, 1, 3, 4)
    return test_scores, bbox_preds


# --------------------------------------------------------------------------
# ProbToMPnet.forward
# --------------------------------------------------------------------------
HEAD_LAYER = ["layer3"]


def prob_tomp_forward(params, train_imgs, test_imgs, train_prob, test_prob,
                      train_bb):
    assert train_imgs.ndim == 5 and test_imgs.ndim == 5, "Expect 5 dimensional inputs"
    assert train_imgs.shape[-3:] == test_imgs.shape[-3:]
    assert train_prob.shape[-2:] == test_prob.shape[-2:]
    n_tr, seq = train_imgs.shape[:2]
    n_te = test_imgs.shape[0]
    h, w = train_prob.shape[-2:]

    # Flatten (frames, sequences) in SEQUENCE-MAJOR order (one cheap transpose
    # of the raw 5-D inputs) so later (seq, frames*P, D) regroupings are free.
    tr = jnp.transpose(train_imgs, (1, 0, 2, 3, 4)).reshape(
        seq * n_tr, *train_imgs.shape[-3:])
    te = jnp.transpose(test_imgs, (1, 0, 2, 3, 4)).reshape(
        seq * n_te, *test_imgs.shape[-3:])

    # extract_backbone_features on train+test fused into ONE pallas_call.
    imgs = jnp.concatenate([tr, te], axis=0)
    feat_all = {"layer3": conv3x3_s2_relu(imgs, params["w_conv"],
                                          params["b_conv"])}

    # get_backbone_head_feat (single head layer -> plain tensor).
    feat_head = feat_all[HEAD_LAYER[0]]

    # F.interpolate(..., size=(18,18), mode='bilinear') on train+test prob
    # maps fused into ONE separable-resize pallas_call.
    trp = jnp.transpose(train_prob, (1, 0, 2, 3, 4)).reshape(seq * n_tr, h, w)
    tep = jnp.transpose(test_prob, (1, 0, 2, 3, 4)).reshape(seq * n_te, h, w)
    probs18 = bilinear_to_18(jnp.concatenate([trp, tep], axis=0))

    return tomp_head(feat_head, probs18, train_bb, params,
                     n_tr=n_tr, n_te=n_te, seq=seq)


def init_params(key, c_backbone=32, d_head=128):
    ks = jax.random.split(key, 6)
    return {
        "w_conv": 0.1 * jax.random.normal(ks[0], (3, 3, 3, c_backbone),
                                          jnp.float32),
        "b_conv": 0.01 * jax.random.normal(ks[1], (c_backbone,), jnp.float32),
        "w_head": 0.1 * jax.random.normal(ks[2], (c_backbone, d_head),
                                          jnp.float32),
        "b_head": 0.01 * jax.random.normal(ks[3], (d_head,), jnp.float32),
        "w_bb": 0.05 * jax.random.normal(ks[4], (4, d_head), jnp.float32),
        "w_reg_t": 0.1 * jax.random.normal(ks[5], (4, d_head), jnp.float32),
        "w_prob": 0.5,
    }


if __name__ == "__main__":
    key = jax.random.PRNGKey(0)
    kp, k1, k2, k3, k4, k5 = jax.random.split(key, 6)

    params = init_params(kp)

    n_train, n_test, seq, H, W = 2, 2, 2, 36, 36
    train_imgs = jax.random.normal(k1, (n_train, seq, 3, H, W), jnp.float32)
    test_imgs = jax.random.normal(k2, (n_test, seq, 3, H, W), jnp.float32)
    train_prob = jax.random.uniform(k3, (n_train, seq, 1, H, W), jnp.float32)
    test_prob = jax.random.uniform(k4, (n_test, seq, 1, H, W), jnp.float32)
    train_bb = jax.random.uniform(k5, (n_train, seq, 4), jnp.float32) * 30.0

    forward = jax.jit(prob_tomp_forward)
    test_scores, bbox_preds = forward(params, train_imgs, test_imgs,
                                      train_prob, test_prob, train_bb)
    jax.block_until_ready((test_scores, bbox_preds))

    assert test_scores.shape == (n_test, seq, 18, 18)
    assert bbox_preds.shape == (n_test, seq, 4, 18, 18)
    print("KERNEL_OK")
</pallas_src>

<mosaic_0001>
module attributes {stable_mosaic.version = 11 : i64} {
  func.func @_conv_pair_kernel(%arg0: i32, %arg1: memref<4x19x228xf32, #tpu.memory_space<vmem>>, %arg2: memref<228x576xbf16, #tpu.memory_space<vmem>>, %arg3: memref<228x576xbf16, #tpu.memory_space<vmem>>, %arg4: memref<1x576xf32, #tpu.memory_space<vmem>>, %arg5: memref<4x18x576xbf16, #tpu.memory_space<vmem>>) attributes {dimension_semantics = [#tpu.dimension_semantics<parallel>], iteration_bounds = array<i64: 2>, scalar_prefetch = 0 : i64, scratch_operands = 0 : i64, tpu.core_type = #tpu.core_type<tc>, window_params = [{transform_indices = @transform_0, window_bounds = array<i64: 4, 19, 228>}, {pipeline_mode = #tpu.pipeline_mode<synchronous>, transform_indices = @transform_1, window_bounds = array<i64: 228, 576>}, {pipeline_mode = #tpu.pipeline_mode<synchronous>, transform_indices = @transform_2, window_bounds = array<i64: 228, 576>}, {pipeline_mode = #tpu.pipeline_mode<synchronous>, transform_indices = @transform_3, window_bounds = array<i64: 1, 576>}, {transform_indices = @transform_4, window_bounds = array<i64: 4, 18, 576>}]} {
    %c0 = arith.constant 0 : index
    %c0_0 = arith.constant 0 : index
    %0 = vector.load %arg2[%c0, %c0_0] : memref<228x576xbf16, #tpu.memory_space<vmem>>, vector<228x576xbf16>
    %c0_1 = arith.constant 0 : index
    %c0_2 = arith.constant 0 : index
    %1 = vector.load %arg3[%c0_1, %c0_2] : memref<228x576xbf16, #tpu.memory_space<vmem>>, vector<228x576xbf16>
    %c0_3 = arith.constant 0 : index
    %c0_4 = arith.constant 0 : index
    %2 = vector.load %arg4[%c0_3, %c0_4] : memref<1x576xf32, #tpu.memory_space<vmem>>, vector<1x576xf32>
    %c0_5 = arith.constant 0 : index
    %c0_6 = arith.constant 0 : index
    %c0_7 = arith.constant 0 : index
    %3 = vector.load %arg1[%c0_5, %c0_6, %c0_7] : memref<4x19x228xf32, #tpu.memory_space<vmem>>, vector<1x18x228xf32>
    %4 = vector.shape_cast %3 : vector<1x18x228xf32> to vector<18x228xf32>
    %5 = arith.truncf %4 : vector<18x228xf32> to vector<18x228xbf16>
    %c0_8 = arith.constant 0 : index
    %c1 = arith.constant 1 : index
    %c0_9 = arith.constant 0 : index
    %6 = vector.load %arg1[%c0_8, %c1, %c0_9] : memref<4x19x228xf32, #tpu.memory_space<vmem>>, vector<1x18x228xf32>
    %7 = vector.shape_cast %6 : vector<1x18x228xf32> to vector<18x228xf32>
    %8 = arith.truncf %7 : vector<18x228xf32> to vector<18x228xbf16>
    %cst = arith.constant dense<0.000000e+00> : vector<18x576xf32>
    %9 = tpu.matmul %5, %0, %cst {dimension_numbers = #tpu.dot_dimension_numbers<[1], [0], [0], [1], [0, 0, 1, 1], [], []>} : vector<18x228xbf16>, vector<228x576xbf16>, vector<18x576xf32> -> vector<18x576xf32>
    %cst_10 = arith.constant dense<0.000000e+00> : vector<18x576xf32>
    %10 = tpu.matmul %8, %1, %cst_10 {dimension_numbers = #tpu.dot_dimension_numbers<[1], [0], [0], [1], [0, 0, 1, 1], [], []>} : vector<18x228xbf16>, vector<228x576xbf16>, vector<18x576xf32> -> vector<18x576xf32>
    %11 = arith.addf %9, %10 : vector<18x576xf32>
    %12 = vector.broadcast %2 : vector<1x576xf32> to vector<18x576xf32>
    %13 = arith.addf %11, %12 : vector<18x576xf32>
    %cst_11 = arith.constant 0.000000e+00 : f32
    %14 = vector.broadcast %cst_11 : f32 to vector<18x576xf32>
    %15 = arith.maximumf %13, %14 : vector<18x576xf32>
    %16 = arith.truncf %15 : vector<18x576xf32> to vector<18x576xbf16>
    %c0_12 = arith.constant 0 : index
    %c0_13 = arith.constant 0 : index
    %c0_14 = arith.constant 0 : index
    %17 = vector.load %arg5[%c0_12, %c0_13, %c0_14] : memref<4x18x576xbf16, #tpu.memory_space<vmem>>, vector<1x18x576xbf16>
    %18 = vector.shape_cast %17 : vector<1x18x576xbf16> to vector<18x576xbf16>
    %19 = vector.shape_cast %16 : vector<18x576xbf16> to vector<1x18x576xbf16>
    tpu.vector_store %arg5[%c0_12, %c0_13, %c0_14], %19 {strides = array<i32>} : memref<4x18x576xbf16, #tpu.memory_space<vmem>>, vector<1x18x576xbf16>,
    %c1_15 = arith.constant 1 : index
    %c0_16 = arith.constant 0 : index
    %c0_17 = arith.constant 0 : index
    %20 = vector.load %arg1[%c1_15, %c0_16, %c0_17] : memref<4x19x228xf32, #tpu.memory_space<vmem>>, vector<1x18x228xf32>
    %21 = vector.shape_cast %20 : vector<1x18x228xf32> to vector<18x228xf32>
    %22 = arith.truncf %21 : vector<18x228xf32> to vector<18x228xbf16>
    %c1_18 = arith.constant 1 : index
    %c1_19 = arith.constant 1 : index
    %c0_20 = arith.constant 0 : index
    %23 = vector.load %arg1[%c1_18, %c1_19, %c0_20] : memref<4x19x228xf32, #tpu.memory_space<vmem>>, vector<1x18x228xf32>
    %24 = vector.shape_cast %23 : vector<1x18x228xf32> to vector<18x228xf32>
    %25 = arith.truncf %24 : vector<18x228xf32> to vector<18x228xbf16>
    %cst_21 = arith.constant dense<0.000000e+00> : vector<18x576xf32>
    %26 = tpu.matmul %22, %0, %cst_21 {dimension_numbers = #tpu.dot_dimension_numbers<[1], [0], [0], [1], [0, 0, 1, 1], [], []>} : vector<18x228xbf16>, vector<228x576xbf16>, vector<18x576xf32> -> vector<18x576xf32>
    %cst_22 = arith.constant dense<0.000000e+00> : vector<18x576xf32>
    %27 = tpu.matmul %25, %1, %cst_22 {dimension_numbers = #tpu.dot_dimension_numbers<[1], [0], [0], [1], [0, 0, 1, 1], [], []>} : vector<18x228xbf16>, vector<228x576xbf16>, vector<18x576xf32> -> vector<18x576xf32>
    %28 = arith.addf %26, %27 : vector<18x576xf32>
    %29 = vector.broadcast %2 : vector<1x576xf32> to vector<18x576xf32>
    %30 = arith.addf %28, %29 : vector<18x576xf32>
    %cst_23 = arith.constant 0.000000e+00 : f32
    %31 = vector.broadcast %cst_23 : f32 to vector<18x576xf32>
    %32 = arith.maximumf %30, %31 : vector<18x576xf32>
    %33 = arith.truncf %32 : vector<18x576xf32> to vector<18x576xbf16>
    %c1_24 = arith.constant 1 : index
    %c0_25 = arith.constant 0 : index
    %c0_26 = arith.constant 0 : index
    %34 = vector.load %arg5[%c1_24, %c0_25, %c0_26] : memref<4x18x576xbf16, #tpu.memory_space<vmem>>, vector<1x18x576xbf16>
    %35 = vector.shape_cast %34 : vector<1x18x576xbf16> to vector<18x576xbf16>
    %36 = vector.shape_cast %33 : vector<18x576xbf16> to vector<1x18x576xbf16>
    tpu.vector_store %arg5[%c1_24, %c0_25, %c0_26], %36 {strides = array<i32>} : memref<4x18x576xbf16, #tpu.memory_space<vmem>>, vector<1x18x576xbf16>,
    %c2 = arith.constant 2 : index
    %c0_27 = arith.constant 0 : index
    %c0_28 = arith.constant 0 : index
    %37 = vector.load %arg1[%c2, %c0_27, %c0_28] : memref<4x19x228xf32, #tpu.memory_space<vmem>>, vector<1x18x228xf32>
    %38 = vector.shape_cast %37 : vector<1x18x228xf32> to vector<18x228xf32>
    %39 = arith.truncf %38 : vector<18x228xf32> to vector<18x228xbf16>
    %c2_29 = arith.constant 2 : index
    %c1_30 = arith.constant 1 : index
    %c0_31 = arith.constant 0 : index
    %40 = vector.load %arg1[%c2_29, %c1_30, %c0_31] : memref<4x19x228xf32, #tpu.memory_space<vmem>>, vector<1x18x228xf32>
    %41 = vector.shape_cast %40 : vector<1x18x228xf32> to vector<18x228xf32>
    %42 = arith.truncf %41 : vector<18x228xf32> to vector<18x228xbf16>
    %cst_32 = arith.constant dense<0.000000e+00> : vector<18x576xf32>
    %43 = tpu.matmul %39, %0, %cst_32 {dimension_numbers = #tpu.dot_dimension_numbers<[1], [0], [0], [1], [0, 0, 1, 1], [], []>} : vector<18x228xbf16>, vector<228x576xbf16>, vector<18x576xf32> -> vector<18x576xf32>
    %cst_33 = arith.constant dense<0.000000e+00> : vector<18x576xf32>
    %44 = tpu.matmul %42, %1, %cst_33 {dimension_numbers = #tpu.dot_dimension_numbers<[1], [0], [0], [1], [0, 0, 1, 1], [], []>} : vector<18x228xbf16>, vector<228x576xbf16>, vector<18x576xf32> -> vector<18x576xf32>
    %45 = arith.addf %43, %44 : vector<18x576xf32>
    %46 = vector.broadcast %2 : vector<1x576xf32> to vector<18x576xf32>
    %47 = arith.addf %45, %46 : vector<18x576xf32>
    %cst_34 = arith.constant 0.000000e+00 : f32
    %48 = vector.broadcast %cst_34 : f32 to vector<18x576xf32>
    %49 = arith.maximumf %47, %48 : vector<18x576xf32>
    %50 = arith.truncf %49 : vector<18x576xf32> to vector<18x576xbf16>
    %c2_35 = arith.constant 2 : index
    %c0_36 = arith.constant 0 : index
    %c0_37 = arith.constant 0 : index
    %51 = vector.load %arg5[%c2_35, %c0_36, %c0_37] : memref<4x18x576xbf16, #tpu.memory_space<vmem>>, vector<1x18x576xbf16>
    %52 = vector.shape_cast %51 : vector<1x18x576xbf16> to vector<18x576xbf16>
    %53 = vector.shape_cast %50 : vector<18x576xbf16> to vector<1x18x576xbf16>
    tpu.vector_store %arg5[%c2_35, %c0_36, %c0_37], %53 {strides = array<i32>} : memref<4x18x576xbf16, #tpu.memory_space<vmem>>, vector<1x18x576xbf16>,
    %c3 = arith.constant 3 : index
    %c0_38 = arith.constant 0 : index
    %c0_39 = arith.constant 0 : index
    %54 = vector.load %arg1[%c3, %c0_38, %c0_39] : memref<4x19x228xf32, #tpu.memory_space<vmem>>, vector<1x18x228xf32>
    %55 = vector.shape_cast %54 : vector<1x18x228xf32> to vector<18x228xf32>
    %56 = arith.truncf %55 : vector<18x228xf32> to vector<18x228xbf16>
    %c3_40 = arith.constant 3 : index
    %c1_41 = arith.constant 1 : index
    %c0_42 = arith.constant 0 : index
    %57 = vector.load %arg1[%c3_40, %c1_41, %c0_42] : memref<4x19x228xf32, #tpu.memory_space<vmem>>, vector<1x18x228xf32>
    %58 = vector.shape_cast %57 : vector<1x18x228xf32> to vector<18x228xf32>
    %59 = arith.truncf %58 : vector<18x228xf32> to vector<18x228xbf16>
    %cst_43 = arith.constant dense<0.000000e+00> : vector<18x576xf32>
    %60 = tpu.matmul %56, %0, %cst_43 {dimension_numbers = #tpu.dot_dimension_numbers<[1], [0], [0], [1], [0, 0, 1, 1], [], []>} : vector<18x228xbf16>, vector<228x576xbf16>, vector<18x576xf32> -> vector<18x576xf32>
    %cst_44 = arith.constant dense<0.000000e+00> : vector<18x576xf32>
    %61 = tpu.matmul %59, %1, %cst_44 {dimension_numbers = #tpu.dot_dimension_numbers<[1], [0], [0], [1], [0, 0, 1, 1], [], []>} : vector<18x228xbf16>, vector<228x576xbf16>, vector<18x576xf32> -> vector<18x576xf32>
    %62 = arith.addf %60, %61 : vector<18x576xf32>
    %63 = vector.broadcast %2 : vector<1x576xf32> to vector<18x576xf32>
    %64 = arith.addf %62, %63 : vector<18x576xf32>
    %cst_45 = arith.constant 0.000000e+00 : f32
    %65 = vector.broadcast %cst_45 : f32 to vector<18x576xf32>
    %66 = arith.maximumf %64, %65 : vector<18x576xf32>
    %67 = arith.truncf %66 : vector<18x576xf32> to vector<18x576xbf16>
    %c3_46 = arith.constant 3 : index
    %c0_47 = arith.constant 0 : index
    %c0_48 = arith.constant 0 : index
    %68 = vector.load %arg5[%c3_46, %c0_47, %c0_48] : memref<4x18x576xbf16, #tpu.memory_space<vmem>>, vector<1x18x576xbf16>
    %69 = vector.shape_cast %68 : vector<1x18x576xbf16> to vector<18x576xbf16>
    %70 = vector.shape_cast %67 : vector<18x576xbf16> to vector<1x18x576xbf16>
    tpu.vector_store %arg5[%c3_46, %c0_47, %c0_48], %70 {strides = array<i32>} : memref<4x18x576xbf16, #tpu.memory_space<vmem>>, vector<1x18x576xbf16>,
    return
  }
  func.func @transform_0(%arg0: i32) -> (i32, i32, i32) {
    %c0_i32 = arith.constant 0 : i32
    %c0_i32_0 = arith.constant 0 : i32
    %c0_i32_1 = arith.constant 0 : i32
    return %arg0, %c0_i32, %c0_i32_0 : i32, i32, i32
  }
  func.func @transform_1(%arg0: i32) -> (i32, i32) {
    %c0_i32 = arith.constant 0 : i32
    %c0_i32_0 = arith.constant 0 : i32
    %c0_i32_1 = arith.constant 0 : i32
    return %c0_i32, %c0_i32_0 : i32, i32
  }
  func.func @transform_2(%arg0: i32) -> (i32, i32) {
    %c0_i32 = arith.constant 0 : i32
    %c0_i32_0 = arith.constant 0 : i32
    %c0_i32_1 = arith.constant 0 : i32
    return %c0_i32, %c0_i32_0 : i32, i32
  }
  func.func @transform_3(%arg0: i32) -> (i32, i32) {
    %c0_i32 = arith.constant 0 : i32
    %c0_i32_0 = arith.constant 0 : i32
    %c0_i32_1 = arith.constant 0 : i32
    return %c0_i32, %c0_i32_0 : i32, i32
  }
  func.func @transform_4(%arg0: i32) -> (i32, i32, i32) {
    %c0_i32 = arith.constant 0 : i32
    %c0_i32_0 = arith.constant 0 : i32
    %c0_i32_1 = arith.constant 0 : i32
    return %arg0, %c0_i32, %c0_i32_0 : i32, i32, i32
  }
}

module attributes {stable_mosaic.version = 11 : i64} {
  func.func @_matmul_bias_kernel(%arg0: i32, %arg1: memref<648x32xbf16, #tpu.memory_space<vmem>>, %arg2: memref<32x128xbf16, #tpu.memory_space<vmem>>, %arg3: memref<1x128xf32, #tpu.memory_space<vmem>>, %arg4: memref<648x128xbf16, #tpu.memory_space<vmem>>) attributes {dimension_semantics = [#tpu.dimension_semantics<parallel>], iteration_bounds = array<i64: 4>, scalar_prefetch = 0 : i64, scratch_operands = 0 : i64, tpu.core_type = #tpu.core_type<tc>, window_params = [{transform_indices = @transform_0, window_bounds = array<i64: 648, 32>}, {pipeline_mode = #tpu.pipeline_mode<synchronous>, transform_indices = @transform_1, window_bounds = array<i64: 32, 128>}, {pipeline_mode = #tpu.pipeline_mode<synchronous>, transform_indices = @transform_2, window_bounds = array<i64: 1, 128>}, {transform_indices = @transform_3, window_bounds = array<i64: 648, 128>}]} {
    %c0 = arith.constant 0 : index
    %c0_0 = arith.constant 0 : index
    %0 = vector.load %arg1[%c0, %c0_0] : memref<648x32xbf16, #tpu.memory_space<vmem>>, vector<648x32xbf16>
    %c0_1 = arith.constant 0 : index
    %c0_2 = arith.constant 0 : index
    %1 = vector.load %arg2[%c0_1, %c0_2] : memref<32x128xbf16, #tpu.memory_space<vmem>>, vector<32x128xbf16>
    %cst = arith.constant dense<0.000000e+00> : vector<648x128xf32>
    %2 = tpu.matmul %0, %1, %cst {dimension_numbers = #tpu.dot_dimension_numbers<[1], [0], [0], [1], [0, 0, 1, 1], [], []>} : vector<648x32xbf16>, vector<32x128xbf16>, vector<648x128xf32> -> vector<648x128xf32>
    %c0_3 = arith.constant 0 : index
    %c0_4 = arith.constant 0 : index
    %3 = vector.load %arg3[%c0_3, %c0_4] : memref<1x128xf32, #tpu.memory_space<vmem>>, vector<1x128xf32>
    %4 = vector.broadcast %3 : vector<1x128xf32> to vector<648x128xf32>
    %5 = arith.addf %2, %4 : vector<648x128xf32>
    %cst_5 = arith.constant 0.000000e+00 : f32
    %6 = vector.broadcast %cst_5 : f32 to vector<648x128xf32>
    %7 = arith.maximumf %5, %6 : vector<648x128xf32>
    %8 = arith.truncf %7 : vector<648x128xf32> to vector<648x128xbf16>
    %c0_6 = arith.constant 0 : index
    %c0_7 = arith.constant 0 : index
    %9 = vector.load %arg4[%c0_6, %c0_7] : memref<648x128xbf16, #tpu.memory_space<vmem>>, vector<648x128xbf16>
    tpu.vector_store %arg4[%c0_6, %c0_7], %8 {strides = array<i32>} : memref<648x128xbf16, #tpu.memory_space<vmem>>, vector<648x128xbf16>,
    return
  }
  func.func @transform_0(%arg0: i32) -> (i32, i32) {
    %c0_i32 = arith.constant 0 : i32
    %c0_i32_0 = arith.constant 0 : i32
    return %arg0, %c0_i32 : i32, i32
  }
  func.func @transform_1(%arg0: i32) -> (i32, i32) {
    %c0_i32 = arith.constant 0 : i32
    %c0_i32_0 = arith.constant 0 : i32
    %c0_i32_1 = arith.constant 0 : i32
    return %c0_i32, %c0_i32_0 : i32, i32
  }
  func.func @transform_2(%arg0: i32) -> (i32, i32) {
    %c0_i32 = arith.constant 0 : i32
    %c0_i32_0 = arith.constant 0 : i32
    %c0_i32_1 = arith.constant 0 : i32
    return %c0_i32, %c0_i32_0 : i32, i32
  }
  func.func @transform_3(%arg0: i32) -> (i32, i32) {
    %c0_i32 = arith.constant 0 : i32
    %c0_i32_0 = arith.constant 0 : i32
    return %arg0, %c0_i32 : i32, i32
  }
}

module attributes {stable_mosaic.version = 11 : i64} {
  func.func @_bilinear_kernel(%arg0: i32, %arg1: memref<4x36x36xf32, #tpu.memory_space<vmem>>, %arg2: memref<18x36xf32, #tpu.memory_space<vmem>>, %arg3: memref<36x18xf32, #tpu.memory_space<vmem>>, %arg4: memref<4x18x18xf32, #tpu.memory_space<vmem>>) attributes {dimension_semantics = [#tpu.dimension_semantics<parallel>], iteration_bounds = array<i64: 2>, scalar_prefetch = 0 : i64, scratch_operands = 0 : i64, tpu.core_type = #tpu.core_type<tc>, window_params = [{transform_indices = @transform_0, window_bounds = array<i64: 4, 36, 36>}, {pipeline_mode = #tpu.pipeline_mode<synchronous>, transform_indices = @transform_1, window_bounds = array<i64: 18, 36>}, {pipeline_mode = #tpu.pipeline_mode<synchronous>, transform_indices = @transform_2, window_bounds = array<i64: 36, 18>}, {transform_indices = @transform_3, window_bounds = array<i64: 4, 18, 18>}]} {
    %c0 = arith.constant 0 : index
    %c0_0 = arith.constant 0 : index
    %0 = vector.load %arg2[%c0, %c0_0] : memref<18x36xf32, #tpu.memory_space<vmem>>, vector<18x36xf32>
    %c0_1 = arith.constant 0 : index
    %c0_2 = arith.constant 0 : index
    %1 = vector.load %arg3[%c0_1, %c0_2] : memref<36x18xf32, #tpu.memory_space<vmem>>, vector<36x18xf32>
    %c0_3 = arith.constant 0 : index
    %c0_4 = arith.constant 0 : index
    %c0_5 = arith.constant 0 : index
    %2 = vector.load %arg1[%c0_3, %c0_4, %c0_5] : memref<4x36x36xf32, #tpu.memory_space<vmem>>, vector<1x36x36xf32>
    %3 = vector.shape_cast %2 : vector<1x36x36xf32> to vector<36x36xf32>
    %cst = arith.constant dense<0.000000e+00> : vector<18x36xf32>
    %4 = tpu.matmul %0, %3, %cst {dimension_numbers = #tpu.dot_dimension_numbers<[1], [0], [0], [1], [0, 0, 1, 1], [], []>} : vector<18x36xf32>, vector<36x36xf32>, vector<18x36xf32> -> vector<18x36xf32>
    %cst_6 = arith.constant dense<0.000000e+00> : vector<18x18xf32>
    %5 = tpu.matmul %4, %1, %cst_6 {dimension_numbers = #tpu.dot_dimension_numbers<[1], [0], [0], [1], [0, 0, 1, 1], [], []>} : vector<18x36xf32>, vector<36x18xf32>, vector<18x18xf32> -> vector<18x18xf32>
    %c0_7 = arith.constant 0 : index
    %c0_8 = arith.constant 0 : index
    %c0_9 = arith.constant 0 : index
    %6 = vector.load %arg4[%c0_7, %c0_8, %c0_9] : memref<4x18x18xf32, #tpu.memory_space<vmem>>, vector<1x18x18xf32>
    %7 = vector.shape_cast %6 : vector<1x18x18xf32> to vector<18x18xf32>
    %8 = vector.shape_cast %5 : vector<18x18xf32> to vector<1x18x18xf32>
    tpu.vector_store %arg4[%c0_7, %c0_8, %c0_9], %8 {strides = array<i32>} : memref<4x18x18xf32, #tpu.memory_space<vmem>>, vector<1x18x18xf32>,
    %c1 = arith.constant 1 : index
    %c0_10 = arith.constant 0 : index
    %c0_11 = arith.constant 0 : index
    %9 = vector.load %arg1[%c1, %c0_10, %c0_11] : memref<4x36x36xf32, #tpu.memory_space<vmem>>, vector<1x36x36xf32>
    %10 = vector.shape_cast %9 : vector<1x36x36xf32> to vector<36x36xf32>
    %cst_12 = arith.constant dense<0.000000e+00> : vector<18x36xf32>
    %11 = tpu.matmul %0, %10, %cst_12 {dimension_numbers = #tpu.dot_dimension_numbers<[1], [0], [0], [1], [0, 0, 1, 1], [], []>} : vector<18x36xf32>, vector<36x36xf32>, vector<18x36xf32> -> vector<18x36xf32>
    %cst_13 = arith.constant dense<0.000000e+00> : vector<18x18xf32>
    %12 = tpu.matmul %11, %1, %cst_13 {dimension_numbers = #tpu.dot_dimension_numbers<[1], [0], [0], [1], [0, 0, 1, 1], [], []>} : vector<18x36xf32>, vector<36x18xf32>, vector<18x18xf32> -> vector<18x18xf32>
    %c1_14 = arith.constant 1 : index
    %c0_15 = arith.constant 0 : index
    %c0_16 = arith.constant 0 : index
    %13 = vector.load %arg4[%c1_14, %c0_15, %c0_16] : memref<4x18x18xf32, #tpu.memory_space<vmem>>, vector<1x18x18xf32>
    %14 = vector.shape_cast %13 : vector<1x18x18xf32> to vector<18x18xf32>
    %15 = vector.shape_cast %12 : vector<18x18xf32> to vector<1x18x18xf32>
    tpu.vector_store %arg4[%c1_14, %c0_15, %c0_16], %15 {strides = array<i32>} : memref<4x18x18xf32, #tpu.memory_space<vmem>>, vector<1x18x18xf32>,
    %c2 = arith.constant 2 : index
    %c0_17 = arith.constant 0 : index
    %c0_18 = arith.constant 0 : index
    %16 = vector.load %arg1[%c2, %c0_17, %c0_18] : memref<4x36x36xf32, #tpu.memory_space<vmem>>, vector<1x36x36xf32>
    %17 = vector.shape_cast %16 : vector<1x36x36xf32> to vector<36x36xf32>
    %cst_19 = arith.constant dense<0.000000e+00> : vector<18x36xf32>
    %18 = tpu.matmul %0, %17, %cst_19 {dimension_numbers = #tpu.dot_dimension_numbers<[1], [0], [0], [1], [0, 0, 1, 1], [], []>} : vector<18x36xf32>, vector<36x36xf32>, vector<18x36xf32> -> vector<18x36xf32>
    %cst_20 = arith.constant dense<0.000000e+00> : vector<18x18xf32>
    %19 = tpu.matmul %18, %1, %cst_20 {dimension_numbers = #tpu.dot_dimension_numbers<[1], [0], [0], [1], [0, 0, 1, 1], [], []>} : vector<18x36xf32>, vector<36x18xf32>, vector<18x18xf32> -> vector<18x18xf32>
    %c2_21 = arith.constant 2 : index
    %c0_22 = arith.constant 0 : index
    %c0_23 = arith.constant 0 : index
    %20 = vector.load %arg4[%c2_21, %c0_22, %c0_23] : memref<4x18x18xf32, #tpu.memory_space<vmem>>, vector<1x18x18xf32>
    %21 = vector.shape_cast %20 : vector<1x18x18xf32> to vector<18x18xf32>
    %22 = vector.shape_cast %19 : vector<18x18xf32> to vector<1x18x18xf32>
    tpu.vector_store %arg4[%c2_21, %c0_22, %c0_23], %22 {strides = array<i32>} : memref<4x18x18xf32, #tpu.memory_space<vmem>>, vector<1x18x18xf32>,
    %c3 = arith.constant 3 : index
    %c0_24 = arith.constant 0 : index
    %c0_25 = arith.constant 0 : index
    %23 = vector.load %arg1[%c3, %c0_24, %c0_25] : memref<4x36x36xf32, #tpu.memory_space<vmem>>, vector<1x36x36xf32>
    %24 = vector.shape_cast %23 : vector<1x36x36xf32> to vector<36x36xf32>
    %cst_26 = arith.constant dense<0.000000e+00> : vector<18x36xf32>
    %25 = tpu.matmul %0, %24, %cst_26 {dimension_numbers = #tpu.dot_dimension_numbers<[1], [0], [0], [1], [0, 0, 1, 1], [], []>} : vector<18x36xf32>, vector<36x36xf32>, vector<18x36xf32> -> vector<18x36xf32>
    %cst_27 = arith.constant dense<0.000000e+00> : vector<18x18xf32>
    %26 = tpu.matmul %25, %1, %cst_27 {dimension_numbers = #tpu.dot_dimension_numbers<[1], [0], [0], [1], [0, 0, 1, 1], [], []>} : vector<18x36xf32>, vector<36x18xf32>, vector<18x18xf32> -> vector<18x18xf32>
    %c3_28 = arith.constant 3 : index
    %c0_29 = arith.constant 0 : index
    %c0_30 = arith.constant 0 : index
    %27 = vector.load %arg4[%c3_28, %c0_29, %c0_30] : memref<4x18x18xf32, #tpu.memory_space<vmem>>, vector<1x18x18xf32>
    %28 = vector.shape_cast %27 : vector<1x18x18xf32> to vector<18x18xf32>
    %29 = vector.shape_cast %26 : vector<18x18xf32> to vector<1x18x18xf32>
    tpu.vector_store %arg4[%c3_28, %c0_29, %c0_30], %29 {strides = array<i32>} : memref<4x18x18xf32, #tpu.memory_space<vmem>>, vector<1x18x18xf32>,
    return
  }
  func.func @transform_0(%arg0: i32) -> (i32, i32, i32) {
    %c0_i32 = arith.constant 0 : i32
    %c0_i32_0 = arith.constant 0 : i32
    %c0_i32_1 = arith.constant 0 : i32
    return %arg0, %c0_i32, %c0_i32_0 : i32, i32, i32
  }
  func.func @transform_1(%arg0: i32) -> (i32, i32) {
    %c0_i32 = arith.constant 0 : i32
    %c0_i32_0 = arith.constant 0 : i32
    %c0_i32_1 = arith.constant 0 : i32
    return %c0_i32, %c0_i32_0 : i32, i32
  }
  func.func @transform_2(%arg0: i32) -> (i32, i32) {
    %c0_i32 = arith.constant 0 : i32
    %c0_i32_0 = arith.constant 0 : i32
    %c0_i32_1 = arith.constant 0 : i32
    return %c0_i32, %c0_i32_0 : i32, i32
  }
  func.func @transform_3(%arg0: i32) -> (i32, i32, i32) {
    %c0_i32 = arith.constant 0 : i32
    %c0_i32_0 = arith.constant 0 : i32
    %c0_i32_1 = arith.constant 0 : i32
    return %arg0, %c0_i32, %c0_i32_0 : i32, i32, i32
  }
}

module attributes {stable_mosaic.version = 11 : i64} {
  func.func @_head_kernel(%arg0: i32, %arg1: memref<1xf32, #tpu.memory_space<smem>>, %arg2: memref<1x648x128xbf16, #tpu.memory_space<vmem>>, %arg3: memref<1x1x648xf32, #tpu.memory_space<vmem>>, %arg4: memref<1x1x128xf32, #tpu.memory_space<vmem>>, %arg5: memref<1x648x128xbf16, #tpu.memory_space<vmem>>, %arg6: memref<1x1x648xf32, #tpu.memory_space<vmem>>, %arg7: memref<8x128xbf16, #tpu.memory_space<vmem>>, %arg8: memref<1x8x648xf32, #tpu.memory_space<vmem>>) attributes {dimension_semantics = [#tpu.dimension_semantics<parallel>], iteration_bounds = array<i64: 2>, scalar_prefetch = 0 : i64, scratch_operands = 0 : i64, tpu.core_type = #tpu.core_type<tc>, window_params = [{transform_indices = @transform_0, window_bounds = array<i64: 1>}, {transform_indices = @transform_1, window_bounds = array<i64: 1, 648, 128>}, {transform_indices = @transform_2, window_bounds = array<i64: 1, 1, 648>}, {transform_indices = @transform_3, window_bounds = array<i64: 1, 1, 128>}, {transform_indices = @transform_4, window_bounds = array<i64: 1, 648, 128>}, {transform_indices = @transform_5, window_bounds = array<i64: 1, 1, 648>}, {pipeline_mode = #tpu.pipeline_mode<synchronous>, transform_indices = @transform_6, window_bounds = array<i64: 8, 128>}, {transform_indices = @transform_7, window_bounds = array<i64: 1, 8, 648>}]} {
    %c0 = arith.constant 0 : index
    %c0_0 = arith.constant 0 : index
    %c0_1 = arith.constant 0 : index
    %0 = vector.load %arg3[%c0, %c0_0, %c0_1] : memref<1x1x648xf32, #tpu.memory_space<vmem>>, vector<1x1x648xf32>
    %1 = vector.shape_cast %0 : vector<1x1x648xf32> to vector<1x648xf32>
    %2 = arith.truncf %1 : vector<1x648xf32> to vector<1x648xbf16>
    %c0_2 = arith.constant 0 : index
    %c0_3 = arith.constant 0 : index
    %c0_4 = arith.constant 0 : index
    %3 = vector.load %arg2[%c0_2, %c0_3, %c0_4] : memref<1x648x128xbf16, #tpu.memory_space<vmem>>, vector<1x648x128xbf16>
    %4 = vector.shape_cast %3 : vector<1x648x128xbf16> to vector<648x128xbf16>
    %cst = arith.constant dense<0.000000e+00> : vector<1x128xf32>
    %5 = tpu.matmul %2, %4, %cst {dimension_numbers = #tpu.dot_dimension_numbers<[1], [0], [0], [1], [0, 0, 1, 1], [], []>} : vector<1x648xbf16>, vector<648x128xbf16>, vector<1x128xf32> -> vector<1x128xf32>
    %cst_5 = arith.constant 0.00154320989 : f32
    %6 = vector.broadcast %cst_5 : f32 to vector<1x128xf32>
    %7 = arith.mulf %5, %6 : vector<1x128xf32>
    %c0_6 = arith.constant 0 : index
    %c0_7 = arith.constant 0 : index
    %c0_8 = arith.constant 0 : index
    %8 = vector.load %arg4[%c0_6, %c0_7, %c0_8] : memref<1x1x128xf32, #tpu.memory_space<vmem>>, vector<1x1x128xf32>
    %9 = vector.shape_cast %8 : vector<1x1x128xf32> to vector<1x128xf32>
    %10 = arith.addf %7, %9 : vector<1x128xf32>
    %11 = tpu.iota {dimensions = array<i32: 0>} : vector<8x1xi32>
    %c0_i32 = arith.constant 0 : i32
    %12 = vector.broadcast %c0_i32 : i32 to vector<8x1xi32>
    %13 = arith.cmpi eq, %11, %12 : vector<8x1xi32>
    %14 = arith.truncf %10 : vector<1x128xf32> to vector<1x128xbf16>
    %c0_9 = arith.constant 0 : index
    %c0_10 = arith.constant 0 : index
    %15 = vector.load %arg7[%c0_9, %c0_10] : memref<8x128xbf16, #tpu.memory_space<vmem>>, vector<8x128xbf16>
    %16 = vector.shape_cast %13 : vector<8x1xi1> to vector<8x1xi1>
    %17 = vector.broadcast %16 : vector<8x1xi1> to vector<8x128xi1>
    %18 = vector.shape_cast %14 : vector<1x128xbf16> to vector<1x128xbf16>
    %19 = vector.broadcast %18 : vector<1x128xbf16> to vector<8x128xbf16>
    %20 = arith.select %17, %19, %15 : vector<8x128xi1>, vector<8x128xbf16>
    %c0_11 = arith.constant 0 : index
    %c0_12 = arith.constant 0 : index
    %c0_13 = arith.constant 0 : index
    %21 = vector.load %arg5[%c0_11, %c0_12, %c0_13] : memref<1x648x128xbf16, #tpu.memory_space<vmem>>, vector<1x648x128xbf16>
    %22 = vector.shape_cast %21 : vector<1x648x128xbf16> to vector<648x128xbf16>
    %cst_14 = arith.constant dense<0.000000e+00> : vector<8x648xf32>
    %23 = tpu.matmul %20, %22, %cst_14 {dimension_numbers = #tpu.dot_dimension_numbers<[1], [1], [0], [0], [0, 0, 1, 0], [], []>} : vector<8x128xbf16>, vector<648x128xbf16>, vector<8x648xf32> -> vector<8x648xf32>
    %c0_15 = arith.constant 0 : index
    %24 = memref.load %arg1[%c0_15] : memref<1xf32, #tpu.memory_space<smem>>
    %cst_16 = arith.constant 0.000000e+00 : f32
    %25 = vector.broadcast %24 : f32 to vector<8x1xf32>
    %26 = vector.broadcast %cst_16 : f32 to vector<8x1xf32>
    %27 = arith.select %13, %25, %26 : vector<8x1xi1>, vector<8x1xf32>
    %c0_17 = arith.constant 0 : index
    %c0_18 = arith.constant 0 : index
    %c0_19 = arith.constant 0 : index
    %28 = vector.load %arg6[%c0_17, %c0_18, %c0_19] : memref<1x1x648xf32, #tpu.memory_space<vmem>>, vector<1x1x648xf32>
    %29 = vector.shape_cast %28 : vector<1x1x648xf32> to vector<1x648xf32>
    %30 = vector.broadcast %27 : vector<8x1xf32> to vector<8x648xf32>
    %31 = vector.broadcast %29 : vector<1x648xf32> to vector<8x648xf32>
    %32 = arith.mulf %30, %31 : vector<8x648xf32>
    %33 = arith.addf %23, %32 : vector<8x648xf32>
    %c0_20 = arith.constant 0 : index
    %c0_21 = arith.constant 0 : index
    %c0_22 = arith.constant 0 : index
    %34 = vector.load %arg8[%c0_20, %c0_21, %c0_22] : memref<1x8x648xf32, #tpu.memory_space<vmem>>, vector<1x8x648xf32>
    %35 = vector.shape_cast %34 : vector<1x8x648xf32> to vector<8x648xf32>
    %36 = vector.shape_cast %33 : vector<8x648xf32> to vector<1x8x648xf32>
    tpu.vector_store %arg8[%c0_20, %c0_21, %c0_22], %36 {strides = array<i32>} : memref<1x8x648xf32, #tpu.memory_space<vmem>>, vector<1x8x648xf32>,
    return
  }
  func.func @transform_0(%arg0: i32) -> i32 {
    %c0_i32 = arith.constant 0 : i32
    %c0_i32_0 = arith.constant 0 : i32
    return %c0_i32 : i32
  }
  func.func @transform_1(%arg0: i32) -> (i32, i32, i32) {
    %c0_i32 = arith.constant 0 : i32
    %c0_i32_0 = arith.constant 0 : i32
    %c0_i32_1 = arith.constant 0 : i32
    return %arg0, %c0_i32, %c0_i32_0 : i32, i32, i32
  }
  func.func @transform_2(%arg0: i32) -> (i32, i32, i32) {
    %c0_i32 = arith.constant 0 : i32
    %c0_i32_0 = arith.constant 0 : i32
    %c0_i32_1 = arith.constant 0 : i32
    return %arg0, %c0_i32, %c0_i32_0 : i32, i32, i32
  }
  func.func @transform_3(%arg0: i32) -> (i32, i32, i32) {
    %c0_i32 = arith.constant 0 : i32
    %c0_i32_0 = arith.constant 0 : i32
    %c0_i32_1 = arith.constant 0 : i32
    return %arg0, %c0_i32, %c0_i32_0 : i32, i32, i32
  }
  func.func @transform_4(%arg0: i32) -> (i32, i32, i32) {
    %c0_i32 = arith.constant 0 : i32
    %c0_i32_0 = arith.constant 0 : i32
    %c0_i32_1 = arith.constant 0 : i32
    return %arg0, %c0_i32, %c0_i32_0 : i32, i32, i32
  }
  func.func @transform_5(%arg0: i32) -> (i32, i32, i32) {
    %c0_i32 = arith.constant 0 : i32
    %c0_i32_0 = arith.constant 0 : i32
    %c0_i32_1 = arith.constant 0 : i32
    return %arg0, %c0_i32, %c0_i32_0 : i32, i32, i32
  }
  func.func @transform_6(%arg0: i32) -> (i32, i32) {
    %c0_i32 = arith.constant 0 : i32
    %c0_i32_0 = arith.constant 0 : i32
    %c0_i32_1 = arith.constant 0 : i32
    return %c0_i32, %c0_i32_0 : i32, i32
  }
  func.func @transform_7(%arg0: i32) -> (i32, i32, i32) {
    %c0_i32 = arith.constant 0 : i32
    %c0_i32_0 = arith.constant 0 : i32
    %c0_i32_1 = arith.constant 0 : i32
    return %arg0, %c0_i32, %c0_i32_0 : i32, i32, i32
  }
}

</mosaic_0001>

<bundles_post_ra>
// kernel: tile.8
= control target key start
LH: loop header
LB: loop body
LE: loop exit
PB: predicated region body
PF: predicated region fallthrough
CT: control target
= control target key end

     0   :  { %s34_s0 = inlined_call_operand.vmem [shape: f32[32], index: 0, kind: input, shape index: {}]   ;;  %s35_s1 = inlined_call_operand.vmem [shape: f32[18,32], index: 1, kind: output, shape index: {}]  }
   0x1   :  { %v4_v0 = vld [vmem:[%s34_s0] ss:$0 sm:$0xff] }
   0x2   :  { %5 = vst [vmem:[%s35_s1] sm:$0xff] %v4_v0 }
   0x3   :  { %10 = vst [vmem:[%s35_s1 + $0x8] sm:$0xff] %v4_v0 }
   0x4   :  { %11 = vst [vmem:[%s35_s1 + $0x10] sm:$0xff] %v4_v0 }

// kernel: tile.9
= control target key start
LH: loop header
LB: loop body
LE: loop exit
PB: predicated region body
PF: predicated region fallthrough
CT: control target
= control target key end

     0   :  { %s67_s8 = smov 96   ;;  %s68_s11 = smov 32   ;;  %vm3_vm0 = vcmask 261120   ;;  %vm11_vm1 = vcmask 1048320   ;;  %vm23_vm2 = vcmask 523520   ;;  %vm17_vm3 = vcmask 785920   ;;  %s107_s0 = inlined_call_operand.vmem [shape: f32[18,32], index: 0, kind: input, shape index: {}]   ;;  %s108_s1 = inlined_call_operand.vmem [shape: f32[1,576], index: 1, kind: output, shape index: {}]  }
   0x1   :  { %v57_v0 = vld [vmem:[%s107_s0 + $0x3] ss:$4 sm:$0xf]   ;;  %v59_v1 = vld [vmem:[%s107_s0 + $0x1] ss:$4 sm:$0x1f]  }
   0x2   :  { %9 = vrot.lane.b32.xlu0 %v57_v0, %s67_s8  ;;  %21 = vrot.lane.b32.xlu1 %v59_v1, %s68_s11  ;;  %v58_v2 = vld [vmem:[%s107_s0 + $0x2] ss:$4 sm:$0xf]   ;;  %s69_s14 = smov 64  }
   0x3   :  { %v2_v3 = vld [vmem:[%s107_s0] ss:$4 sm:$0x1f]  }
   0x4   :  { %4 = vst.msk [vmem:[#allocation0] ss:$8 sm:$0xf] %vm3_vm0, %v2_v3  }
   0x5   :  { %6 = vst.msk [vmem:[#allocation0 + $0x1c] sm:$0x10] %vm3_vm0, %v2_v3  }
   0xa   :  { %15 = vrot.lane.b32.xlu0 %v58_v2, %s69_s14 }
  0x74   :  { %v10_v4 = vpop.permute.xlu0 %9   ;;  %v22_v5 = vpop.permute.xlu1 %21  }
  0x75   :  { %12 = vst.msk [vmem:[#allocation0] ss:$8 sm:$0xf] %vm11_vm1, %v10_v4  }
  0x76   :  { %26 = vst.msk [vmem:[#allocation0 + $0x1c] sm:$0x10] %vm23_vm2, %v22_v5  }
  0x7c   :  { %v16_v6 = vpop.permute.xlu0 %15  }
  0x7d   :  { %18 = vst.msk [vmem:[#allocation0] ss:$8 sm:$0xf] %vm17_vm3, %v16_v6   ;;  %v52_v7 = vld [vmem:[#allocation0 + $0x20] sm:$0x1] }
  0x7e   :  { %24 = vst.msk [vmem:[#allocation0] ss:$8 sm:$0xf] %vm23_vm2, %v22_v5  }
  0x7f   :  { %63 = vst [vmem:[%s108_s1 + $0x4] sm:$0x1] %v52_v7 }
  0x85   :  { %v29_v8 = vld [vmem:[#allocation0] sm:$0x1]  ;;  %v34_v9 = vld [vmem:[#allocation0 + $0x8] sm:$0x1]  ;;  %v40_v10 = vld [vmem:[#allocation0 + $0x10] sm:$0x1] }
  0x86   :  { %32 = vst [vmem:[%s108_s1] sm:$0x1] %v29_v8  ;;  %v46_v11 = vld [vmem:[#allocation0 + $0x18] sm:$0x1] }
  0x87   :  { %60 = vst [vmem:[%s108_s1 + $0x1] sm:$0x1] %v34_v9 }
  0x88   :  { %61 = vst [vmem:[%s108_s1 + $0x2] sm:$0x1] %v40_v10 }
  0x89   :  { %62 = vst [vmem:[%s108_s1 + $0x3] sm:$0x1] %v46_v11 }

// kernel: prob_tomp_forward.6
= control target key start
LH: loop header
LB: loop body
LE: loop exit
PB: predicated region body
PF: predicated region fallthrough
CT: control target
= control target key end

     0   :  { %s1657_s12 = smov 0   ;;  %s1900_s0 = inlined_call_operand.vmem [shape: bf16[2592,32], index: 0, kind: input, shape index: {}]   ;;  %s1901_s1 = inlined_call_operand.vmem [shape: bf16[32,128], index: 1, kind: input, shape index: {}]   ;;  %s1902_s2 = inlined_call_operand.vmem [shape: f32[1,128], index: 2, kind: input, shape index: {}]   ;;  %s1903_s3 = inlined_call_operand.vmem [shape: bf16[2592,128], index: 3, kind: output, shape index: {}]  }
   0x1 LB: > { %s1115_s13 = sadd.s32 4294967295, %s1635_s12   ;;  %p1119_p0 = scmp.ge.s32.totalorder %s1635_s12, 1  ;;  %s1635_s12 = sphi %s1657_s12, %s13_s12  }
   0x2   : > { %p138_p1 = scmp.lt.s32.totalorder %s1635_s12, 5 }
   0x4   : > { %p139_p2 = pnand %p1119_p0, %p138_p1 }
   0x5   : > { %s162_s16 = smul.u32 (!%p139_p2), 81, %s1115_s13 }
   0x6   : > { %142 = sbr.rel (%p139_p2) target bundleno = 326 (0x146), region = 32 }
   0x7   : > { %p163_p3 = scmp.lt.s32.totalorder (!%p139_p2), %s162_s16, 323 }
   0xb   : > { %v1374_v0 = vld [vmem:[%s1901_s1 + $0x8] sm:$0xff]  ;;  %v1373_v1 = vld [vmem:[%s1901_s1] sm:$0xff]  ;;  %s1905_s16 = smov (!%p163_p3, %s162_s16), 323  ;;  %vm479_vm0 = vcmask 261120  }
   0xc   : > { %1614 = vmatpush.bf16.msra.mxu1 %v1374_v0  ;;  %1615 = vmatpush.bf16.msra.mxu2 %v1374_v0  ;;  %s1120_s19 = sshll.u32 %s1905_s16, 2  ;;  %v1752_v42 = vld [vmem:[%s1902_s2] ss:$0 sm:$0xff] }
   0xd   : > { %609 = vmatpush.bf16.msra.mxu0 %v1374_v0  ;;  %1616 = vmatpush.bf16.msra.mxu3 %v1374_v0  ;;  %s1679_s22 = scalar_lea.vmem %s1900_s0, %s1120_s19  ;;  %s1767_s27 = scalar_lea.vmem %s1903_s3, %s1120_s19 }
   0xe   : > { %v1343_v2 = vld [vmem:[%s1679_s22 + $0x50] sm:$0xff]  ;;  %v1354_v3 = vld [vmem:[%s1679_s22 + $0xa8] sm:$0xff]  ;;  %v1333_v4 = vld [vmem:[%s1679_s22] sm:$0xff] }
   0xf   : > { %v1365_v5 = vld [vmem:[%s1679_s22 + $0x100] sm:$0xff]  ;;  %v1344_v6 = vld [vmem:[%s1679_s22 + $0x58] sm:$0xff]  ;;  %v1355_v7 = vld [vmem:[%s1679_s22 + $0xb0] sm:$0xff] }
  0x10   : > { %1617 = vmatpush.bf16.msra.mxu1 %v1373_v1  ;;  %1618 = vmatpush.bf16.msra.mxu2 %v1373_v1  ;;  %v1334_v8 = vld [vmem:[%s1679_s22 + $0x8] sm:$0xff]  ;;  %v1345_v10 = vld [vmem:[%s1679_s22 + $0x60] sm:$0xff]  ;;  %v1356_v11 = vld [vmem:[%s1679_s22 + $0xb8] sm:$0xff] }
  0x11   : > { %610 = vmatpush.bf16.msra.mxu0 %v1373_v1  ;;  %1619 = vmatpush.bf16.msra.mxu3 %v1373_v1  ;;  %v1366_v9 = vld [vmem:[%s1679_s22 + $0x108] sm:$0xff]  ;;  %v1335_v12 = vld [vmem:[%s1679_s22 + $0x10] sm:$0xff]  ;;  %v1357_v15 = vld [vmem:[%s1679_s22 + $0xc0] sm:$0xff] }
  0x12   : > { %v1367_v13 = vld [vmem:[%s1679_s22 + $0x110] sm:$0xff]  ;;  %v1346_v14 = vld [vmem:[%s1679_s22 + $0x68] sm:$0xff]  ;;  %v1336_v16 = vld [vmem:[%s1679_s22 + $0x18] sm:$0xff] }
  0x13   : > { %1300 = vmatmul.msk.bf16.vlgmr.msra.gmra.mxu1 %vm479_vm0, %v1343_v2  ;;  %1311 = vmatmul.msk.bf16.vlgmr.msra.gmra.mxu2 %vm479_vm0, %v1354_v3  ;;  %v1368_v17 = vld [vmem:[%s1679_s22 + $0x118] sm:$0xff]  ;;  %v1347_v18 = vld [vmem:[%s1679_s22 + $0x70] sm:$0xff]  ;;  %v1358_v19 = vld [vmem:[%s1679_s22 + $0xc8] sm:$0xff] }
  0x14   : > { %1290 = vmatmul.msk.bf16.vlgmr.msra.gmra.mxu0 %vm479_vm0, %v1333_v4  ;;  %1322 = vmatmul.msk.bf16.vlgmr.msra.gmra.mxu3 %vm479_vm0, %v1365_v5  ;;  %v1337_v20 = vld [vmem:[%s1679_s22 + $0x20] sm:$0xff]  ;;  %v1348_v22 = vld [vmem:[%s1679_s22 + $0x78] sm:$0xff]  ;;  %v1359_v23 = vld [vmem:[%s1679_s22 + $0xd0] sm:$0xff] }
  0x15   : > { %v1369_v21 = vld [vmem:[%s1679_s22 + $0x120] sm:$0xff]  ;;  %v1338_v24 = vld [vmem:[%s1679_s22 + $0x28] sm:$0xff]  ;;  %v1360_v27 = vld [vmem:[%s1679_s22 + $0xd8] sm:$0xff] }
  0x16   : > { %v1370_v25 = vld [vmem:[%s1679_s22 + $0x128] sm:$0xff]  ;;  %v1349_v26 = vld [vmem:[%s1679_s22 + $0x80] sm:$0xff]  ;;  %v1339_v28 = vld [vmem:[%s1679_s22 + $0x30] sm:$0xff] }
  0x17   : > { %v1371_v29 = vld [vmem:[%s1679_s22 + $0x130] sm:$0xff]  ;;  %v1350_v30 = vld [vmem:[%s1679_s22 + $0x88] sm:$0xff]  ;;  %v1361_v31 = vld [vmem:[%s1679_s22 + $0xe0] sm:$0xff] }
  0x18   : > { %v1340_v32 = vld [vmem:[%s1679_s22 + $0x38] sm:$0xff]  ;;  %v255_v34 = vld [vmem:[%s1679_s22 + $0x140] sm:$0xf]  ;;  %v1351_v36 = vld [vmem:[%s1679_s22 + $0x90] sm:$0xff] }
  0x19   : > { %v1372_v33 = vld [vmem:[%s1679_s22 + $0x138] sm:$0xff]  ;;  %v425_v35 = vunpack.c.l.b16 %v255_v34  ;;  %v1362_v37 = vld [vmem:[%s1679_s22 + $0xe8] sm:$0xff]  ;;  %v1341_v39 = vld [vmem:[%s1679_s22 + $0x40] sm:$0xff] }
  0x1a   : > { %v1352_v61 = vld [vmem:[%s1679_s22 + $0x98] sm:$0xff]  ;;  %v1363_v62 = vld [vmem:[%s1679_s22 + $0xf0] sm:$0xff]  ;;  %v1342_v0 = vld [vmem:[%s1679_s22 + $0x48] sm:$0xff] }
  0x1b   : > { %v466_v41 = vpack.c.b16 %v425_v35, %v425_v35 }
  0x23   : > { %1301 = vmatmul.msk.bf16.gmra.mxu1 %vm479_vm0, %v1344_v6  ;;  %1312 = vmatmul.msk.bf16.gmra.mxu2 %vm479_vm0, %v1355_v7 }
  0x24   : > { %1291 = vmatmul.msk.bf16.gmra.mxu0 %vm479_vm0, %v1334_v8  ;;  %1323 = vmatmul.msk.bf16.gmra.mxu3 %vm479_vm0, %v1366_v9 }
  0x33   : > { %1302 = vmatmul.msk.bf16.gmra.mxu1 %vm479_vm0, %v1345_v10  ;;  %1313 = vmatmul.msk.bf16.gmra.mxu2 %vm479_vm0, %v1356_v11 }
  0x34   : > { %1292 = vmatmul.msk.bf16.gmra.mxu0 %vm479_vm0, %v1335_v12  ;;  %1324 = vmatmul.msk.bf16.gmra.mxu3 %vm479_vm0, %v1367_v13 }
  0x43   : > { %1303 = vmatmul.msk.bf16.gmra.mxu1 %vm479_vm0, %v1346_v14  ;;  %1314 = vmatmul.msk.bf16.gmra.mxu2 %vm479_vm0, %v1357_v15 }
  0x44   : > { %1293 = vmatmul.msk.bf16.gmra.mxu0 %vm479_vm0, %v1336_v16  ;;  %1325 = vmatmul.msk.bf16.gmra.mxu3 %vm479_vm0, %v1368_v17 }
  0x53   : > { %1304 = vmatmul.msk.bf16.gmra.mxu1 %vm479_vm0, %v1347_v18  ;;  %1315 = vmatmul.msk.bf16.gmra.mxu2 %vm479_vm0, %v1358_v19 }
  0x54   : > { %1294 = vmatmul.msk.bf16.gmra.mxu0 %vm479_vm0, %v1337_v20  ;;  %1326 = vmatmul.msk.bf16.gmra.mxu3 %vm479_vm0, %v1369_v21 }
  0x63   : > { %1305 = vmatmul.msk.bf16.gmra.mxu1 %vm479_vm0, %v1348_v22  ;;  %1316 = vmatmul.msk.bf16.gmra.mxu2 %vm479_vm0, %v1359_v23 }
  0x64   : > { %1295 = vmatmul.msk.bf16.gmra.mxu0 %vm479_vm0, %v1338_v24  ;;  %1327 = vmatmul.msk.bf16.gmra.mxu3 %vm479_vm0, %v1370_v25 }
  0x73   : > { %1306 = vmatmul.msk.bf16.gmra.mxu1 %vm479_vm0, %v1349_v26  ;;  %1317 = vmatmul.msk.bf16.gmra.mxu2 %vm479_vm0, %v1360_v27 }
  0x74   : > { %1296 = vmatmul.msk.bf16.gmra.mxu0 %vm479_vm0, %v1339_v28  ;;  %1328 = vmatmul.msk.bf16.gmra.mxu3 %vm479_vm0, %v1371_v29  ;;  %v1353_v28 = vld [vmem:[%s1679_s22 + $0xa0] sm:$0xff]  ;;  %v1364_v29 = vld [vmem:[%s1679_s22 + $0xf8] sm:$0xff] }
  0x83   : > { %1307 = vmatmul.msk.bf16.gmra.mxu1 %vm479_vm0, %v1350_v30  ;;  %1318 = vmatmul.msk.bf16.gmra.mxu2 %vm479_vm0, %v1361_v31 }
  0x84   : > { %1297 = vmatmul.msk.bf16.gmra.mxu0 %vm479_vm0, %v1340_v32  ;;  %1329 = vmatmul.msk.bf16.gmra.mxu3 %vm479_vm0, %v1372_v33 }
  0x90   : > { %v662_v38 = vpop.f32.mrf.mxu1 }
  0x91   : > { %v612_v40 = vpop.f32.mrf.mxu0  ;;  %v663_v45 = vadd.f32 %v1752_v42, %v662_v38 }
  0x92   : > { %v613_v44 = vadd.f32 %v1752_v42, %v612_v40 }
  0x93   : > { %1308 = vmatmul.msk.bf16.gmra.mxu1 %vm479_vm0, %v1351_v36  ;;  %1319 = vmatmul.msk.bf16.gmra.mxu2 %vm479_vm0, %v1362_v37  ;;  %v836_v52 = vmax.f32 %v663_v45, 0.0 }
  0x94   : > { %1298 = vmatmul.msk.bf16.gmra.mxu0 %vm479_vm0, %v1341_v39  ;;  %1330 = vmatmul.msk.bf16.gmra.mxu3 %vm479_vm0, %v466_v41  ;;  %v816_v50 = vmax.f32 %v613_v44, 0.0 }
  0x96   : > { %v717_v43 = vpop.f32.mrf.mxu2 }
  0x97   : > { %v772_v47 = vpop.f32.mrf.mxu3  ;;  %v718_v55 = vadd.f32 %v1752_v42, %v717_v43 }
  0x98   : > { %v664_v46 = vpop.f32.mrf.mxu1  ;;  %v773_v57 = vadd.f32 %v1752_v42, %v772_v47 }
  0x99   : > { %v665_v48 = vadd.f32 %v1752_v42, %v664_v46  ;;  %v614_v49 = vpop.f32.mrf.mxu0  ;;  %v858_v2 = vmax.f32 %v718_v55, 0.0 }
  0x9a   : > { %v615_v51 = vadd.f32 %v1752_v42, %v614_v49  ;;  %v880_v5 = vmax.f32 %v773_v57, 0.0 }
  0x9b   : > { %v837_v53 = vmax.f32 %v665_v48, 0.0 }
  0x9c   : > { %v817_v54 = vmax.f32 %v615_v51, 0.0 }
  0x9d   : > { %v1428_v56 = vpack.c.bf16 %v837_v53, %v836_v52 }
  0x9e   : > { %v719_v58 = vpop.f32.mrf.mxu2  ;;  %v1378_v59 = vpack.c.bf16 %v817_v54, %v816_v50 }
  0x9f   : > { %1584 = vst [vmem:[%s1767_s27 + $0x50] sm:$0xff] %v1428_v56   ;;  %v720_v60 = vadd.f32 %v1752_v42, %v719_v58  ;;  %v774_v1 = vpop.f32.mrf.mxu3 }
  0xa0   : > { %v667_v63 = vpop.f32.mrf.mxu1  ;;  %1379 = vst [vmem:[%s1767_s27] sm:$0xff] %v1378_v59   ;;  %v775_v6 = vadd.f32 %v1752_v42, %v774_v1 }
  0xa1   : > { %v859_v3 = vmax.f32 %v720_v60, 0.0  ;;  %v617_v4 = vpop.f32.mrf.mxu0  ;;  %v668_v12 = vadd.f32 %v1752_v42, %v667_v63 }
  0xa2   : > { %v881_v8 = vmax.f32 %v775_v6, 0.0  ;;  %v618_v11 = vadd.f32 %v1752_v42, %v617_v4 }
  0xa3   : > { %v1483_v7 = vpack.c.bf16 %v859_v3, %v858_v2  ;;  %1309 = vmatmul.msk.bf16.gmra.mxu1 %vm479_vm0, %v1352_v61  ;;  %1320 = vmatmul.msk.bf16.gmra.mxu2 %vm479_vm0, %v1363_v62  ;;  %v838_v19 = vmax.f32 %v668_v12, 0.0 }
  0xa4   : > { %1299 = vmatmul.msk.bf16.gmra.mxu0 %vm479_vm0, %v1342_v0  ;;  %v1538_v9 = vpack.c.bf16 %v881_v8, %v880_v5  ;;  %v818_v17 = vmax.f32 %v618_v11, 0.0 }
  0xa5   : > { %1595 = vst [vmem:[%s1767_s27 + $0xa8] sm:$0xff] %v1483_v7  }
  0xa6   : > { %v722_v10 = vpop.f32.mrf.mxu2  ;;  %1606 = vst [vmem:[%s1767_s27 + $0x100] sm:$0xff] %v1538_v9  }
  0xa7   : > { %v777_v14 = vpop.f32.mrf.mxu3  ;;  %v723_v22 = vadd.f32 %v1752_v42, %v722_v10 }
  0xa8   : > { %v669_v13 = vpop.f32.mrf.mxu1  ;;  %v778_v24 = vadd.f32 %v1752_v42, %v777_v14 }
  0xa9   : > { %v670_v15 = vadd.f32 %v1752_v42, %v669_v13  ;;  %v619_v16 = vpop.f32.mrf.mxu0  ;;  %v860_v32 = vmax.f32 %v723_v22, 0.0 }
  0xaa   : > { %v620_v18 = vadd.f32 %v1752_v42, %v619_v16  ;;  %v882_v35 = vmax.f32 %v778_v24, 0.0 }
  0xab   : > { %v839_v20 = vmax.f32 %v670_v15, 0.0 }
  0xac   : > { %v819_v21 = vmax.f32 %v620_v18, 0.0 }
  0xad   : > { %v1433_v23 = vpack.c.bf16 %v839_v20, %v838_v19 }
  0xae   : > { %v724_v25 = vpop.f32.mrf.mxu2  ;;  %v1383_v26 = vpack.c.bf16 %v819_v21, %v818_v17 }
  0xaf   : > { %1585 = vst [vmem:[%s1767_s27 + $0x58] sm:$0xff] %v1433_v23   ;;  %v725_v27 = vadd.f32 %v1752_v42, %v724_v25  ;;  %v779_v31 = vpop.f32.mrf.mxu3 }
  0xb0   : > { %v672_v30 = vpop.f32.mrf.mxu1  ;;  %1575 = vst [vmem:[%s1767_s27 + $0x8] sm:$0xff] %v1383_v26   ;;  %v780_v36 = vadd.f32 %v1752_v42, %v779_v31 }
  0xb1   : > { %v861_v33 = vmax.f32 %v725_v27, 0.0  ;;  %v622_v34 = vpop.f32.mrf.mxu0  ;;  %v673_v43 = vadd.f32 %v1752_v42, %v672_v30 }
  0xb2   : > { %v883_v38 = vmax.f32 %v780_v36, 0.0  ;;  %v623_v41 = vadd.f32 %v1752_v42, %v622_v34 }
  0xb3   : > { %v1488_v37 = vpack.c.bf16 %v861_v33, %v860_v32  ;;  %1310 = vmatmul.msk.bf16.gmra.mxu1 %vm479_vm0, %v1353_v28  ;;  %1321 = vmatmul.msk.bf16.gmra.mxu2 %vm479_vm0, %v1364_v29  ;;  %v840_v50 = vmax.f32 %v673_v43, 0.0 }
  0xb4   : > { %v1543_v39 = vpack.c.bf16 %v883_v38, %v882_v35  ;;  %v820_v48 = vmax.f32 %v623_v41, 0.0 }
  0xb5   : > { %1596 = vst [vmem:[%s1767_s27 + $0xb0] sm:$0xff] %v1488_v37  }
  0xb6   : > { %v727_v40 = vpop.f32.mrf.mxu2  ;;  %1607 = vst [vmem:[%s1767_s27 + $0x108] sm:$0xff] %v1543_v39  }
  0xb7   : > { %v782_v45 = vpop.f32.mrf.mxu3  ;;  %v728_v53 = vadd.f32 %v1752_v42, %v727_v40 }
  0xb8   : > { %v674_v44 = vpop.f32.mrf.mxu1  ;;  %v783_v55 = vadd.f32 %v1752_v42, %v782_v45 }
  0xb9   : > { %v675_v46 = vadd.f32 %v1752_v42, %v674_v44  ;;  %v624_v47 = vpop.f32.mrf.mxu0  ;;  %v862_v61 = vmax.f32 %v728_v53, 0.0 }
  0xba   : > { %v625_v49 = vadd.f32 %v1752_v42, %v624_v47  ;;  %v884_v0 = vmax.f32 %v783_v55, 0.0 }
  0xbb   : > { %v841_v51 = vmax.f32 %v675_v46, 0.0 }
  0xbc   : > { %v821_v52 = vmax.f32 %v625_v49, 0.0 }
  0xbd   : > { %v1438_v54 = vpack.c.bf16 %v841_v51, %v840_v50 }
  0xbe   : > { %v729_v56 = vpop.f32.mrf.mxu2  ;;  %v1388_v57 = vpack.c.bf16 %v821_v52, %v820_v48 }
  0xbf   : > { %1586 = vst [vmem:[%s1767_s27 + $0x60] sm:$0xff] %v1438_v54   ;;  %v730_v58 = vadd.f32 %v1752_v42, %v729_v56  ;;  %v784_v60 = vpop.f32.mrf.mxu3 }
  0xc0   : > { %v677_v59 = vpop.f32.mrf.mxu1  ;;  %1576 = vst [vmem:[%s1767_s27 + $0x10] sm:$0xff] %v1388_v57   ;;  %v785_v1 = vadd.f32 %v1752_v42, %v784_v60 }
  0xc1   : > { %v863_v62 = vmax.f32 %v730_v58, 0.0  ;;  %v627_v63 = vpop.f32.mrf.mxu0  ;;  %v678_v7 = vadd.f32 %v1752_v42, %v677_v59 }
  0xc2   : > { %v885_v3 = vmax.f32 %v785_v1, 0.0  ;;  %v628_v6 = vadd.f32 %v1752_v42, %v627_v63 }
  0xc3   : > { %v1493_v2 = vpack.c.bf16 %v863_v62, %v862_v61  ;;  %v842_v14 = vmax.f32 %v678_v7, 0.0 }
  0xc4   : > { %v1548_v4 = vpack.c.bf16 %v885_v3, %v884_v0  ;;  %v822_v12 = vmax.f32 %v628_v6, 0.0 }
  0xc5   : > { %1597 = vst [vmem:[%s1767_s27 + $0xb8] sm:$0xff] %v1493_v2  }
  0xc6   : > { %v732_v5 = vpop.f32.mrf.mxu2  ;;  %1608 = vst [vmem:[%s1767_s27 + $0x110] sm:$0xff] %v1548_v4  }
  0xc7   : > { %v787_v9 = vpop.f32.mrf.mxu3  ;;  %v733_v17 = vadd.f32 %v1752_v42, %v732_v5 }
  0xc8   : > { %v679_v8 = vpop.f32.mrf.mxu1  ;;  %v788_v19 = vadd.f32 %v1752_v42, %v787_v9 }
  0xc9   : > { %v680_v10 = vadd.f32 %v1752_v42, %v679_v8  ;;  %v629_v11 = vpop.f32.mrf.mxu0  ;;  %v864_v25 = vmax.f32 %v733_v17, 0.0 }
  0xca   : > { %v630_v13 = vadd.f32 %v1752_v42, %v629_v11  ;;  %v886_v28 = vmax.f32 %v788_v19, 0.0 }
  0xcb   : > { %v843_v15 = vmax.f32 %v680_v10, 0.0 }
  0xcc   : > { %v823_v16 = vmax.f32 %v630_v13, 0.0 }
  0xcd   : > { %v1443_v18 = vpack.c.bf16 %v843_v15, %v842_v14 }
  0xce   : > { %v734_v20 = vpop.f32.mrf.mxu2  ;;  %v1393_v21 = vpack.c.bf16 %v823_v16, %v822_v12 }
  0xcf   : > { %1587 = vst [vmem:[%s1767_s27 + $0x68] sm:$0xff] %v1443_v18   ;;  %v735_v22 = vadd.f32 %v1752_v42, %v734_v20  ;;  %v789_v24 = vpop.f32.mrf.mxu3 }
  0xd0   : > { %v682_v23 = vpop.f32.mrf.mxu1  ;;  %1577 = vst [vmem:[%s1767_s27 + $0x18] sm:$0xff] %v1393_v21   ;;  %v790_v29 = vadd.f32 %v1752_v42, %v789_v24 }
  0xd1   : > { %v865_v26 = vmax.f32 %v735_v22, 0.0  ;;  %v632_v27 = vpop.f32.mrf.mxu0  ;;  %v683_v35 = vadd.f32 %v1752_v42, %v682_v23 }
  0xd2   : > { %v887_v31 = vmax.f32 %v790_v29, 0.0  ;;  %v633_v34 = vadd.f32 %v1752_v42, %v632_v27 }
  0xd3   : > { %v1498_v30 = vpack.c.bf16 %v865_v26, %v864_v25  ;;  %v844_v43 = vmax.f32 %v683_v35, 0.0 }
  0xd4   : > { %v1553_v32 = vpack.c.bf16 %v887_v31, %v886_v28  ;;  %v824_v40 = vmax.f32 %v633_v34, 0.0 }
  0xd5   : > { %1598 = vst [vmem:[%s1767_s27 + $0xc0] sm:$0xff] %v1498_v30  }
  0xd6   : > { %v737_v33 = vpop.f32.mrf.mxu2  ;;  %1609 = vst [vmem:[%s1767_s27 + $0x118] sm:$0xff] %v1553_v32  }
  0xd7   : > { %v792_v37 = vpop.f32.mrf.mxu3  ;;  %v738_v46 = vadd.f32 %v1752_v42, %v737_v33 }
  0xd8   : > { %v684_v36 = vpop.f32.mrf.mxu1  ;;  %v793_v48 = vadd.f32 %v1752_v42, %v792_v37 }
  0xd9   : > { %v685_v38 = vadd.f32 %v1752_v42, %v684_v36  ;;  %v634_v39 = vpop.f32.mrf.mxu0  ;;  %v866_v54 = vmax.f32 %v738_v46, 0.0 }
  0xda   : > { %v635_v41 = vadd.f32 %v1752_v42, %v634_v39  ;;  %v888_v57 = vmax.f32 %v793_v48, 0.0 }
  0xdb   : > { %v845_v44 = vmax.f32 %v685_v38, 0.0 }
  0xdc   : > { %v825_v45 = vmax.f32 %v635_v41, 0.0 }
  0xdd   : > { %v1448_v47 = vpack.c.bf16 %v845_v44, %v844_v43 }
  0xde   : > { %v739_v49 = vpop.f32.mrf.mxu2  ;;  %v1398_v50 = vpack.c.bf16 %v825_v45, %v824_v40 }
  0xdf   : > { %1588 = vst [vmem:[%s1767_s27 + $0x70] sm:$0xff] %v1448_v47   ;;  %v740_v51 = vadd.f32 %v1752_v42, %v739_v49  ;;  %v794_v53 = vpop.f32.mrf.mxu3 }
  0xe0   : > { %v687_v52 = vpop.f32.mrf.mxu1  ;;  %1578 = vst [vmem:[%s1767_s27 + $0x20] sm:$0xff] %v1398_v50   ;;  %v795_v58 = vadd.f32 %v1752_v42, %v794_v53 }
  0xe1   : > { %v867_v55 = vmax.f32 %v740_v51, 0.0  ;;  %v637_v56 = vpop.f32.mrf.mxu0  ;;  %v688_v0 = vadd.f32 %v1752_v42, %v687_v52 }
  0xe2   : > { %v889_v60 = vmax.f32 %v795_v58, 0.0  ;;  %v638_v63 = vadd.f32 %v1752_v42, %v637_v56 }
  0xe3   : > { %v1503_v59 = vpack.c.bf16 %v867_v55, %v866_v54  ;;  %v846_v7 = vmax.f32 %v688_v0, 0.0 }
  0xe4   : > { %v1558_v61 = vpack.c.bf16 %v889_v60, %v888_v57  ;;  %v826_v5 = vmax.f32 %v638_v63, 0.0 }
  0xe5   : > { %1599 = vst [vmem:[%s1767_s27 + $0xc8] sm:$0xff] %v1503_v59  }
  0xe6   : > { %v742_v62 = vpop.f32.mrf.mxu2  ;;  %1610 = vst [vmem:[%s1767_s27 + $0x120] sm:$0xff] %v1558_v61  }
  0xe7   : > { %v797_v2 = vpop.f32.mrf.mxu3  ;;  %v743_v10 = vadd.f32 %v1752_v42, %v742_v62 }
  0xe8   : > { %v689_v1 = vpop.f32.mrf.mxu1  ;;  %v798_v12 = vadd.f32 %v1752_v42, %v797_v2 }
  0xe9   : > { %v690_v3 = vadd.f32 %v1752_v42, %v689_v1  ;;  %v639_v4 = vpop.f32.mrf.mxu0  ;;  %v868_v18 = vmax.f32 %v743_v10, 0.0 }
  0xea   : > { %v640_v6 = vadd.f32 %v1752_v42, %v639_v4  ;;  %v890_v21 = vmax.f32 %v798_v12, 0.0 }
  0xeb   : > { %v847_v8 = vmax.f32 %v690_v3, 0.0 }
  0xec   : > { %v827_v9 = vmax.f32 %v640_v6, 0.0 }
  0xed   : > { %v1453_v11 = vpack.c.bf16 %v847_v8, %v846_v7 }
  0xee   : > { %v744_v13 = vpop.f32.mrf.mxu2  ;;  %v1403_v14 = vpack.c.bf16 %v827_v9, %v826_v5 }
  0xef   : > { %1589 = vst [vmem:[%s1767_s27 + $0x78] sm:$0xff] %v1453_v11   ;;  %v745_v15 = vadd.f32 %v1752_v42, %v744_v13  ;;  %v799_v17 = vpop.f32.mrf.mxu3 }
  0xf0   : > { %v692_v16 = vpop.f32.mrf.mxu1  ;;  %1579 = vst [vmem:[%s1767_s27 + $0x28] sm:$0xff] %v1403_v14   ;;  %v800_v22 = vadd.f32 %v1752_v42, %v799_v17 }
  0xf1   : > { %v869_v19 = vmax.f32 %v745_v15, 0.0  ;;  %v642_v20 = vpop.f32.mrf.mxu0  ;;  %v693_v28 = vadd.f32 %v1752_v42, %v692_v16 }
  0xf2   : > { %v891_v24 = vmax.f32 %v800_v22, 0.0  ;;  %v643_v27 = vadd.f32 %v1752_v42, %v642_v20 }
  0xf3   : > { %v1508_v23 = vpack.c.bf16 %v869_v19, %v868_v18  ;;  %v848_v35 = vmax.f32 %v693_v28, 0.0 }
  0xf4   : > { %v1563_v25 = vpack.c.bf16 %v891_v24, %v890_v21  ;;  %v828_v33 = vmax.f32 %v643_v27, 0.0 }
  0xf5   : > { %1600 = vst [vmem:[%s1767_s27 + $0xd0] sm:$0xff] %v1508_v23  }
  0xf6   : > { %v747_v26 = vpop.f32.mrf.mxu2  ;;  %1611 = vst [vmem:[%s1767_s27 + $0x128] sm:$0xff] %v1563_v25  }
  0xf7   : > { %v802_v30 = vpop.f32.mrf.mxu3  ;;  %v748_v38 = vadd.f32 %v1752_v42, %v747_v26 }
  0xf8   : > { %v694_v29 = vpop.f32.mrf.mxu1  ;;  %v803_v40 = vadd.f32 %v1752_v42, %v802_v30 }
  0xf9   : > { %v695_v31 = vadd.f32 %v1752_v42, %v694_v29  ;;  %v644_v32 = vpop.f32.mrf.mxu0  ;;  %v870_v47 = vmax.f32 %v748_v38, 0.0 }
  0xfa   : > { %v645_v34 = vadd.f32 %v1752_v42, %v644_v32  ;;  %v892_v50 = vmax.f32 %v803_v40, 0.0 }
  0xfb   : > { %v849_v36 = vmax.f32 %v695_v31, 0.0 }
  0xfc   : > { %v829_v37 = vmax.f32 %v645_v34, 0.0 }
  0xfd   : > { %v1458_v39 = vpack.c.bf16 %v849_v36, %v848_v35 }
  0xfe   : > { %v749_v41 = vpop.f32.mrf.mxu2  ;;  %v1408_v43 = vpack.c.bf16 %v829_v37, %v828_v33 }
  0xff   : > { %1590 = vst [vmem:[%s1767_s27 + $0x80] sm:$0xff] %v1458_v39   ;;  %v750_v44 = vadd.f32 %v1752_v42, %v749_v41  ;;  %v804_v46 = vpop.f32.mrf.mxu3 }
 0x100   : > { %v697_v45 = vpop.f32.mrf.mxu1  ;;  %1580 = vst [vmem:[%s1767_s27 + $0x30] sm:$0xff] %v1408_v43   ;;  %v805_v51 = vadd.f32 %v1752_v42, %v804_v46 }
 0x101   : > { %v871_v48 = vmax.f32 %v750_v44, 0.0  ;;  %v647_v49 = vpop.f32.mrf.mxu0  ;;  %v698_v57 = vadd.f32 %v1752_v42, %v697_v45 }
 0x102   : > { %v893_v53 = vmax.f32 %v805_v51, 0.0  ;;  %v648_v56 = vadd.f32 %v1752_v42, %v647_v49 }
 0x103   : > { %v1513_v52 = vpack.c.bf16 %v871_v48, %v870_v47  ;;  %v850_v0 = vmax.f32 %v698_v57, 0.0 }
 0x104   : > { %v1568_v54 = vpack.c.bf16 %v893_v53, %v892_v50  ;;  %v830_v62 = vmax.f32 %v648_v56, 0.0 }
 0x105   : > { %1601 = vst [vmem:[%s1767_s27 + $0xd8] sm:$0xff] %v1513_v52  }
 0x106   : > { %v752_v55 = vpop.f32.mrf.mxu2  ;;  %1612 = vst [vmem:[%s1767_s27 + $0x130] sm:$0xff] %v1568_v54  }
 0x107   : > { %v807_v59 = vpop.f32.mrf.mxu3  ;;  %v753_v3 = vadd.f32 %v1752_v42, %v752_v55 }
 0x108   : > { %v699_v58 = vpop.f32.mrf.mxu1  ;;  %v808_v5 = vadd.f32 %v1752_v42, %v807_v59 }
 0x109   : > { %v700_v60 = vadd.f32 %v1752_v42, %v699_v58  ;;  %v649_v61 = vpop.f32.mrf.mxu0  ;;  %v872_v11 = vmax.f32 %v753_v3, 0.0 }
 0x10a   : > { %v650_v63 = vadd.f32 %v1752_v42, %v649_v61  ;;  %v894_v14 = vmax.f32 %v808_v5, 0.0 }
 0x10b   : > { %v851_v1 = vmax.f32 %v700_v60, 0.0 }
 0x10c   : > { %v831_v2 = vmax.f32 %v650_v63, 0.0 }
 0x10d   : > { %v1463_v4 = vpack.c.bf16 %v851_v1, %v850_v0 }
 0x10e   : > { %v754_v6 = vpop.f32.mrf.mxu2  ;;  %v1413_v7 = vpack.c.bf16 %v831_v2, %v830_v62 }
 0x10f   : > { %1591 = vst [vmem:[%s1767_s27 + $0x88] sm:$0xff] %v1463_v4   ;;  %v755_v8 = vadd.f32 %v1752_v42, %v754_v6  ;;  %v809_v10 = vpop.f32.mrf.mxu3 }
 0x110   : > { %v702_v9 = vpop.f32.mrf.mxu1  ;;  %1581 = vst [vmem:[%s1767_s27 + $0x38] sm:$0xff] %v1413_v7   ;;  %v810_v15 = vadd.f32 %v1752_v42, %v809_v10 }
 0x111   : > { %v873_v12 = vmax.f32 %v755_v8, 0.0  ;;  %v652_v13 = vpop.f32.mrf.mxu0  ;;  %v703_v21 = vadd.f32 %v1752_v42, %v702_v9 }
 0x112   : > { %v895_v17 = vmax.f32 %v810_v15, 0.0  ;;  %v653_v20 = vadd.f32 %v1752_v42, %v652_v13 }
 0x113   : > { %v1518_v16 = vpack.c.bf16 %v873_v12, %v872_v11  ;;  %v852_v29 = vmax.f32 %v703_v21, 0.0 }
 0x114   : > { %v1573_v18 = vpack.c.bf16 %v895_v17, %v894_v14  ;;  %v832_v27 = vmax.f32 %v653_v20, 0.0 }
 0x115   : > { %1602 = vst [vmem:[%s1767_s27 + $0xe0] sm:$0xff] %v1518_v16  }
 0x116   : > { %v757_v19 = vpop.f32.mrf.mxu2  ;;  %1613 = vst [vmem:[%s1767_s27 + $0x138] sm:$0xff] %v1573_v18  }
 0x117   : > { %v812_v23 = vpop.f32.mrf.mxu3  ;;  %v758_v33 = vadd.f32 %v1752_v42, %v757_v19 }
 0x118   : > { %v704_v22 = vpop.f32.mrf.mxu1  ;;  %v813_v26 = vadd.f32 %v1752_v42, %v812_v23 }
 0x119   : > { %v705_v24 = vadd.f32 %v1752_v42, %v704_v22  ;;  %v654_v25 = vpop.f32.mrf.mxu0  ;;  %v874_v41 = vmax.f32 %v758_v33, 0.0 }
 0x11a   : > { %v655_v28 = vadd.f32 %v1752_v42, %v654_v25  ;;  %v896_v31 = vmax.f32 %v813_v26, 0.0 }
 0x11b   : > { %v853_v30 = vmax.f32 %v705_v24, 0.0 }
 0x11c   : > { %v833_v32 = vmax.f32 %v655_v28, 0.0  ;;  %v977_v35 = vpack.c.bf16 %v896_v31, %v896_v31 }
 0x11d   : > { %v1468_v34 = vpack.c.bf16 %v853_v30, %v852_v29 }
 0x11e   : > { %v759_v36 = vpop.f32.mrf.mxu2  ;;  %v1418_v37 = vpack.c.bf16 %v833_v32, %v832_v27  ;;  %1058 = vst [vmem:[%s1767_s27 + $0x140] sm:$0xf] %v977_v35 }
 0x11f   : > { %1592 = vst [vmem:[%s1767_s27 + $0x90] sm:$0xff] %v1468_v34   ;;  %v760_v38 = vadd.f32 %v1752_v42, %v759_v36  ;;  %v814_v40 = vpop.f32.mrf.mxu3 }
 0x120   : > { %v707_v39 = vpop.f32.mrf.mxu1  ;;  %1582 = vst [vmem:[%s1767_s27 + $0x40] sm:$0xff] %v1418_v37  }
 0x121   : > { %v875_v43 = vmax.f32 %v760_v38, 0.0  ;;  %v657_v44 = vpop.f32.mrf.mxu0  ;;  %v708_v48 = vadd.f32 %v1752_v42, %v707_v39 }
 0x122   : > { %v658_v47 = vadd.f32 %v1752_v42, %v657_v44 }
 0x123   : > { %v1523_v45 = vpack.c.bf16 %v875_v43, %v874_v41  ;;  %v854_v54 = vmax.f32 %v708_v48, 0.0 }
 0x124   : > { %v834_v52 = vmax.f32 %v658_v47, 0.0 }
 0x125   : > { %1603 = vst [vmem:[%s1767_s27 + $0xe8] sm:$0xff] %v1523_v45  }
 0x126   : > { %v762_v46 = vpop.f32.mrf.mxu2 }
 0x127   : > { %v763_v57 = vadd.f32 %v1752_v42, %v762_v46 }
 0x128   : > { %v709_v49 = vpop.f32.mrf.mxu1 }
 0x129   : > { %v710_v50 = vadd.f32 %v1752_v42, %v709_v49  ;;  %v659_v51 = vpop.f32.mrf.mxu0  ;;  %v876_v63 = vmax.f32 %v763_v57, 0.0 }
 0x12a   : > { %v660_v53 = vadd.f32 %v1752_v42, %v659_v51 }
 0x12b   : > { %v855_v55 = vmax.f32 %v710_v50, 0.0 }
 0x12c   : > { %v835_v56 = vmax.f32 %v660_v53, 0.0 }
 0x12d   : > { %v1473_v58 = vpack.c.bf16 %v855_v55, %v854_v54 }
 0x12e   : > { %v764_v59 = vpop.f32.mrf.mxu2  ;;  %v1423_v60 = vpack.c.bf16 %v835_v56, %v834_v52 }
 0x12f   : > { %1593 = vst [vmem:[%s1767_s27 + $0x98] sm:$0xff] %v1473_v58   ;;  %v765_v61 = vadd.f32 %v1752_v42, %v764_v59 }
 0x130   : > { %v712_v62 = vpop.f32.mrf.mxu1  ;;  %1583 = vst [vmem:[%s1767_s27 + $0x48] sm:$0xff] %v1423_v60  }
 0x131   : > { %v877_v0 = vmax.f32 %v765_v61, 0.0  ;;  %v713_v3 = vadd.f32 %v1752_v42, %v712_v62 }
 0x133   : > { %v1528_v1 = vpack.c.bf16 %v877_v0, %v876_v63  ;;  %v856_v6 = vmax.f32 %v713_v3, 0.0 }
 0x135   : > { %1604 = vst [vmem:[%s1767_s27 + $0xf0] sm:$0xff] %v1528_v1  }
 0x136   : > { %v767_v2 = vpop.f32.mrf.mxu2 }
 0x137   : > { %v768_v8 = vadd.f32 %v1752_v42, %v767_v2 }
 0x138   : > { %v714_v4 = vpop.f32.mrf.mxu1 }
 0x139   : > { %v715_v5 = vadd.f32 %v1752_v42, %v714_v4  ;;  %v878_v12 = vmax.f32 %v768_v8, 0.0 }
 0x13b   : > { %v857_v7 = vmax.f32 %v715_v5, 0.0 }
 0x13d   : > { %v1478_v9 = vpack.c.bf16 %v857_v7, %v856_v6 }
 0x13e   : > { %v769_v10 = vpop.f32.mrf.mxu2 }
 0x13f   : > { %1594 = vst [vmem:[%s1767_s27 + $0xa0] sm:$0xff] %v1478_v9   ;;  %v770_v11 = vadd.f32 %v1752_v42, %v769_v10 }
 0x141   : > { %v879_v13 = vmax.f32 %v770_v11, 0.0 }
 0x143   : > { %v1533_v14 = vpack.c.bf16 %v879_v13, %v878_v12 }
 0x145   : > { %1605 = vst [vmem:[%s1767_s27 + $0xf8] sm:$0xff] %v1533_v14  }
 0x146 PF: > { %s13_s12 = sadd.s32 1, %s1635_s12  }
 0x147   : > { %p10_p4 = scmp.ge.s32.totalorder %s13_s12, 6  }
 0x149   :  { %12 = sbr.rel (!%p10_p4) target bundleno = 1 (0x1), region = 62 }

// kernel: prob_tomp_forward.4
= control target key start
LH: loop header
LB: loop body
LE: loop exit
PB: predicated region body
PF: predicated region fallthrough
CT: control target
= control target key end

     0   :  { %s4017_s15 = smov 0   ;;  %s6673_s0 = inlined_call_operand.vmem [shape: f32[8,19,228], index: 0, kind: input, shape index: {}]   ;;  %s6674_s1 = inlined_call_operand.vmem [shape: bf16[228,576], index: 1, kind: input, shape index: {}]   ;;  %s6675_s2 = inlined_call_operand.vmem [shape: bf16[228,576], index: 2, kind: input, shape index: {}]   ;;  %s6676_s3 = inlined_call_operand.vmem [shape: f32[1,576], index: 3, kind: input, shape index: {}]   ;;  %s6677_s4 = inlined_call_operand.vmem [shape: bf16[8,18,576], index: 4, kind: output, shape index: {}]  }
   0x1 LB: > { %s3126_s16 = sadd.s32 4294967295, %s3990_s15   ;;  %p3130_p0 = scmp.ge.s32.totalorder %s3990_s15, 1  ;;  %s3990_s15 = sphi %s4017_s15, %s14_s15  }
   0x2   : > { %p164_p1 = scmp.lt.s32.totalorder %s3990_s15, 3 }
   0x4   : > { %p165_p2 = pnand %p3130_p0, %p164_p1 }
   0x6   : > { %168 = sbr.rel (%p165_p2) target bundleno = 839 (0x347), region = 36 }
   0xb   : > { %v3277_v0 = vld [vmem:[%s6675_s2 + $0x118] sm:$0xf]  ;;  %v3941_v1 = vld [vmem:[%s6675_s2 + $0x128] sm:$0xf0]  ;;  %v3939_v2 = vld [vmem:[%s6675_s2 + $0x11c] sm:$0xf] }
   0xc   : > { %v4034_v3 = vor.u32 %v3941_v1, %v3277_v0  ;;  %v3279_v4 = vld [vmem:[%s6675_s2 + $0x12c] sm:$0xf0]  ;;  %vm817_vm0 = vcmask 1041408   ;;  %v3936_v10 = vld [vmem:[%s6675_s2 + $0x100] sm:$0xf0]  ;;  %s4178_s13 = sshll.u32 %s3126_s16, 2 }
   0xd   : > { %v378_v5 = vld [vmem:[%s6675_s2 + $0x230] sm:$0x33]  ;;  %v4042_v6 = vor.u32 %v3939_v2, %v3279_v4  ;;  %v3259_v12 = vld [vmem:[%s6675_s2 + $0x104] sm:$0xf0]  ;;  %v3971_v14 = vld [vmem:[%s6675_s2 + $0x218] sm:$0xf0] }
   0xe   : > { %v660_v7 = vunpack.c.l.b16 %v378_v5  ;;  %v661_v8 = vunpack.c.h.b16 %v378_v5  ;;  %v3257_v9 = vld [vmem:[%s6675_s2 + $0xf0] sm:$0xf]  ;;  %v3934_v11 = vld [vmem:[%s6675_s2 + $0xf4] sm:$0xf]  ;;  %833 = vmatpush.bf16.msra.mxu0 %v4034_v3  ;;  %v3397_v13 = vld [vmem:[%s6675_s2 + $0x208] sm:$0xf] }
   0xf   : > { %869 = vmatpush.bf16.msra.mxu2 %v4042_v6  ;;  %v4064_v17 = vor.u32 %v3936_v10, %v3257_v9  ;;  %v4066_v18 = vor.u32 %v3934_v11, %v3259_v12  ;;  %v3969_v19 = vld [vmem:[%s6675_s2 + $0x20c] sm:$0xf]  ;;  %v3399_v20 = vld [vmem:[%s6675_s2 + $0x21c] sm:$0xf0]  ;;  %v3237_v21 = vld [vmem:[%s6675_s2 + $0xc8] sm:$0xf]  ;;  %v4094_v27 = vor.u32 %v3971_v14, %v3397_v13 }
  0x10   : > { %v735_v15 = vpack.c.b16 %v660_v7, %v660_v7  ;;  %v736_v16 = vpack.c.b16 %v661_v8, %v661_v8  ;;  %v3931_v22 = vld [vmem:[%s6675_s2 + $0xd8] sm:$0xf0]  ;;  %v3929_v23 = vld [vmem:[%s6675_s2 + $0xcc] sm:$0xf]  ;;  %v3239_v24 = vld [vmem:[%s6675_s2 + $0xdc] sm:$0xf0]  ;;  %v4096_v28 = vor.u32 %v3969_v19, %v3399_v20 }
  0x11   : > { %6962 = vst [vmem:[#allocation2_spill] sm:$0xff] %v4064_v17  ;;  %v3377_v29 = vld [vmem:[%s6675_s2 + $0x1e0] sm:$0xf]  ;;  %v3966_v30 = vld [vmem:[%s6675_s2 + $0x1f0] sm:$0xf0]  ;;  %v4106_v31 = vor.u32 %v3931_v22, %v3237_v21  ;;  %v4108_v32 = vor.u32 %v3929_v23, %v3239_v24  ;;  %p193_p3 = scmp.lt.s32.totalorder %s4178_s13, 7 }
  0x12   : > { %6963 = vst [vmem:[#allocation3_spill] sm:$0xff] %v4066_v18  ;;  %v4087_v25 = vsel %vm817_vm0, %v735_v15, 0  ;;  %v4090_v26 = vsel %vm817_vm0, %v736_v16, 0  ;;  %834 = vmatpush.bf16.msra.mxu0 %v4064_v17  ;;  %v3964_v33 = vld [vmem:[%s6675_s2 + $0x1e4] sm:$0xf]  ;;  %v4130_v39 = vor.u32 %v3966_v30, %v3377_v29  ;;  %vm810_vm2 = vcmask 818176  }
  0x13   : > { %852 = vmatpush.bf16.msra.mxu1 %v4087_v25  ;;  %888 = vmatpush.bf16.msra.mxu3 %v4090_v26  ;;  %6964 = vst [vmem:[#allocation4_spill] sm:$0xff] %v4094_v27  ;;  %v3379_v34 = vld [vmem:[%s6675_s2 + $0x1f4] sm:$0xf0]  ;;  %v3217_v35 = vld [vmem:[%s6675_s2 + $0xa0] sm:$0xf]  ;;  %s7472_s13 = smov (!%p193_p3, %s4178_s13), 7 }
  0x14   : > { %6965 = vst [vmem:[#allocation5_spill] sm:$0xff] %v4096_v28  ;;  %870 = vmatpush.bf16.msra.mxu2 %v4066_v18  ;;  %v3926_v36 = vld [vmem:[%s6675_s2 + $0xb0] sm:$0xf0]  ;;  %v3924_v37 = vld [vmem:[%s6675_s2 + $0xa4] sm:$0xf]  ;;  %v4132_v40 = vor.u32 %v3964_v33, %v3379_v34  ;;  %s3974_s11 = smul.u32 48, %s7472_s13 }
  0x15   : > { %6966 = vst [vmem:[#allocation6_spill] sm:$0xff] %v4106_v31  ;;  %v3219_v38 = vld [vmem:[%s6675_s2 + $0xb4] sm:$0xf0]  ;;  %v3961_v42 = vld [vmem:[%s6675_s2 + $0x1c8] sm:$0xf0]  ;;  %v4142_v43 = vor.u32 %v3926_v36, %v3217_v35  ;;  %s3975_s12 = smul.u32 60, %s7472_s13 }
  0x16   : > { %6967 = vst [vmem:[#allocation7_spill] sm:$0xff] %v4108_v32  ;;  %v3357_v41 = vld [vmem:[%s6675_s2 + $0x1b8] sm:$0xf]  ;;  %835 = vmatpush.bf16.msra.mxu0 %v4106_v31  ;;  %v4144_v44 = vor.u32 %v3924_v37, %v3219_v38  ;;  %v3959_v45 = vld [vmem:[%s6675_s2 + $0x1bc] sm:$0xf]  ;;  %s4292_s19 = scalar_lea.vmem %s6673_s0, %s3974_s11  ;;  %vm1643_vm3 = vcmask 519168  }
  0x17   : > { %853 = vmatpush.bf16.msra.mxu1 %v4094_v27  ;;  %889 = vmatpush.bf16.msra.mxu3 %v4096_v28  ;;  %6968 = vst [vmem:[#allocation8_spill] sm:$0xff] %v4130_v39  ;;  %v3359_v46 = vld [vmem:[%s6675_s2 + $0x1cc] sm:$0xf0]  ;;  %v3197_v47 = vld [vmem:[%s6675_s2 + $0x78] sm:$0xf]  ;;  %v4166_v51 = vor.u32 %v3961_v42, %v3357_v41  ;;  %s5738_s17 = scalar_lea.vmem %s6677_s4, %s3975_s12  ;;  %vm1650_vm4 = vcmask 516096  }
  0x18   : > { %6969 = vst [vmem:[#allocation9_spill] sm:$0xff] %v4132_v40  ;;  %871 = vmatpush.bf16.msra.mxu2 %v4108_v32  ;;  %v3921_v48 = vld [vmem:[%s6675_s2 + $0x88] sm:$0xf0]  ;;  %v3919_v49 = vld [vmem:[%s6675_s2 + $0x7c] sm:$0xf]  ;;  %v4168_v52 = vor.u32 %v3959_v45, %v3359_v46 }
  0x19   : > { %6970 = vst [vmem:[#allocation10_spill] sm:$0xff] %v4142_v43  ;;  %v3199_v50 = vld [vmem:[%s6675_s2 + $0x8c] sm:$0xf0]  ;;  %v3956_v54 = vld [vmem:[%s6675_s2 + $0x1a0] sm:$0xf0]  ;;  %v4182_v55 = vor.u32 %v3921_v48, %v3197_v47  ;;  %v4310_v48 = vld [vmem:[%s4292_s19 + $0x18] sm:$0xff] }
  0x1a   : > { %6971 = vst [vmem:[#allocation11_spill] sm:$0xff] %v4144_v44  ;;  %v3337_v53 = vld [vmem:[%s6675_s2 + $0x190] sm:$0xf]  ;;  %836 = vmatpush.bf16.msra.mxu0 %v4142_v43  ;;  %v4184_v56 = vor.u32 %v3919_v49, %v3199_v50  ;;  %v3954_v57 = vld [vmem:[%s6675_s2 + $0x194] sm:$0xf] }
  0x1b   : > { %854 = vmatpush.bf16.msra.mxu1 %v4130_v39  ;;  %890 = vmatpush.bf16.msra.mxu3 %v4132_v40  ;;  %6972 = vst [vmem:[#allocation12_spill] sm:$0xff] %v4166_v51  ;;  %v3339_v58 = vld [vmem:[%s6675_s2 + $0x1a4] sm:$0xf0]  ;;  %v3177_v59 = vld [vmem:[%s6675_s2 + $0x50] sm:$0xf]  ;;  %v4218_v4 = vor.u32 %v3956_v54, %v3337_v53 }
  0x1c   : > { %6973 = vst [vmem:[#allocation13_spill] sm:$0xff] %v4168_v52  ;;  %872 = vmatpush.bf16.msra.mxu2 %v4144_v44  ;;  %v3916_v60 = vld [vmem:[%s6675_s2 + $0x60] sm:$0xf0]  ;;  %v3914_v61 = vld [vmem:[%s6675_s2 + $0x54] sm:$0xf]  ;;  %v4220_v5 = vor.u32 %v3954_v57, %v3339_v58 }
  0x1d   : > { %6974 = vst [vmem:[#allocation14_spill] sm:$0xff] %v4182_v55  ;;  %v3179_v62 = vld [vmem:[%s6675_s2 + $0x64] sm:$0xf0]  ;;  %v3951_v0 = vld [vmem:[%s6675_s2 + $0x178] sm:$0xf0]  ;;  %v4234_v10 = vor.u32 %v3916_v60, %v3177_v59  ;;  %v4320_v58 = vld [vmem:[%s4292_s19 + $0x10] sm:$0xff] }
  0x1e   : > { %6975 = vst [vmem:[#allocation15_spill] sm:$0xff] %v4184_v56  ;;  %v3317_v63 = vld [vmem:[%s6675_s2 + $0x168] sm:$0xf]  ;;  %v3949_v1 = vld [vmem:[%s6675_s2 + $0x16c] sm:$0xf]  ;;  %837 = vmatpush.bf16.msra.mxu0 %v4182_v55  ;;  %v4236_v11 = vor.u32 %v3914_v61, %v3179_v62 }
  0x1f   : > { %v3319_v2 = vld [vmem:[%s6675_s2 + $0x17c] sm:$0xf0]  ;;  %855 = vmatpush.bf16.msra.mxu1 %v4166_v51  ;;  %891 = vmatpush.bf16.msra.mxu3 %v4168_v52  ;;  %6976 = vst [vmem:[#allocation16_spill] sm:$0xff] %v4218_v4  ;;  %v3157_v7 = vld [vmem:[%s6675_s2 + $0x28] sm:$0xf]  ;;  %v4267_v23 = vor.u32 %v3951_v0, %v3317_v63 }
  0x20   : > { %6977 = vst [vmem:[#allocation17_spill] sm:$0xff] %v4220_v5  ;;  %v3911_v8 = vld [vmem:[%s6675_s2 + $0x38] sm:$0xf0]  ;;  %v3909_v9 = vld [vmem:[%s6675_s2 + $0x2c] sm:$0xf]  ;;  %873 = vmatpush.bf16.msra.mxu2 %v4184_v56  ;;  %v4269_v24 = vor.u32 %v3949_v1, %v3319_v2 }
  0x21   : > { %6978 = vst [vmem:[#allocation18_spill] sm:$0xff] %v4234_v10  ;;  %v3159_v12 = vld [vmem:[%s6675_s2 + $0x3c] sm:$0xf0]  ;;  %v3946_v14 = vld [vmem:[%s6675_s2 + $0x150] sm:$0xf0]  ;;  %v4280_v34 = vor.u32 %v3911_v8, %v3157_v7 }
  0x22   : > { %6979 = vst [vmem:[#allocation19_spill] sm:$0xff] %v4236_v11  ;;  %v3297_v13 = vld [vmem:[%s6675_s2 + $0x140] sm:$0xf]  ;;  %v3944_v15 = vld [vmem:[%s6675_s2 + $0x144] sm:$0xf]  ;;  %838 = vmatpush.bf16.msra.mxu0 %v4234_v10  ;;  %v4282_v35 = vor.u32 %v3909_v9, %v3159_v12 }
  0x23   : > { %v379_v16 = vld [vmem:[%s6675_s2 + $0x238] sm:$0x33]  ;;  %v3137_v20 = vld [vmem:[%s6675_s2] sm:$0xf]  ;;  %v3906_v21 = vld [vmem:[%s6675_s2 + $0x10] sm:$0xf0]  ;;  %856 = vmatpush.bf16.msra.mxu1 %v4218_v4  ;;  %892 = vmatpush.bf16.msra.mxu3 %v4220_v5  ;;  %v4287_v37 = vor.u32 %v3946_v14, %v3297_v13 }
  0x24   : > { %v3299_v19 = vld [vmem:[%s6675_s2 + $0x154] sm:$0xf0]  ;;  %v662_v22 = vunpack.c.l.b16 %v379_v16  ;;  %6980 = vst [vmem:[#allocation20_spill] sm:$0xff] %v4267_v23  ;;  %v3904_v29 = vld [vmem:[%s6675_s2 + $0x4] sm:$0xf]  ;;  %v663_v33 = vunpack.c.h.b16 %v379_v16  ;;  %874 = vmatpush.bf16.msra.mxu2 %v4236_v11  ;;  %v4305_v46 = vor.u32 %v3906_v21, %v3137_v20 }
  0x25   : > { %6981 = vst [vmem:[#allocation21_spill] sm:$0xff] %v4269_v24  ;;  %v3139_v30 = vld [vmem:[%s6675_s2 + $0x14] sm:$0xf0]  ;;  %v3285_v36 = vld [vmem:[%s6675_s2 + $0x120] sm:$0xf]  ;;  %v4303_v45 = vor.u32 %v3944_v15, %v3299_v19 }
  0x26   : > { %6982 = vst [vmem:[#allocation22_spill] sm:$0xff] %v4280_v34  ;;  %v3942_v38 = vld [vmem:[%s6675_s2 + $0x130] sm:$0xf0]  ;;  %v3940_v41 = vld [vmem:[%s6675_s2 + $0x124] sm:$0xf]  ;;  %v4307_v47 = vor.u32 %v3904_v29, %v3139_v30  ;;  %v737_v53 = vpack.c.b16 %v662_v22, %v662_v22  ;;  %v738_v61 = vpack.c.b16 %v663_v33, %v663_v33  ;;  %839 = vmatpush.bf16.msra.mxu0 %v4280_v34 }
  0x27   : > { %6983 = vst [vmem:[#allocation23_spill] sm:$0xff] %v4282_v35  ;;  %v3287_v42 = vld [vmem:[%s6675_s2 + $0x134] sm:$0xf0]  ;;  %v393_v49 = vld [vmem:[%s4292_s19 + $0x8] sm:$0xfe]  ;;  %857 = vmatpush.bf16.msra.mxu1 %v4267_v23  ;;  %893 = vmatpush.bf16.msra.mxu3 %v4269_v24  ;;  %v4329_v0 = vor.u32 %v3942_v38, %v3285_v36 }
  0x28   : > { %6984 = vst [vmem:[#allocation24_spill] sm:$0xff] %v4287_v37  ;;  %v395_v50 = vld [vmem:[%s4292_s19 + $0x28] sm:$0x7]  ;;  %v397_v54 = vpack.c.bf16 %v4310_v48, %v393_v49  ;;  %v392_v59 = vld [vmem:[%s4292_s19] sm:$0xfe]  ;;  %875 = vmatpush.bf16.msra.mxu2 %v4282_v35  ;;  %v4332_v8 = vor.u32 %v3940_v41, %v3287_v42  ;;  %v4348_v20 = vsel %vm817_vm0, %v737_v53, 0 }
  0x29   : > { %6985 = vst [vmem:[#allocation25_spill] sm:$0xff] %v4303_v45  ;;  %v4317_v57 = vpack.c.bf16 %v395_v50, %v395_v50  ;;  %v394_v60 = vld [vmem:[%s4292_s19 + $0x20] sm:$0x7]  ;;  %vm400_vm1 = vsmask.f32 7424  ;;  %v396_v62 = vpack.c.bf16 %v4320_v58, %v392_v59  ;;  %v4358_v30 = vsel %vm817_vm0, %v738_v61, 0 }
  0x2a   : > { %6986 = vst [vmem:[#allocation26_spill] sm:$0xff] %v4305_v46  ;;  %v4327_v63 = vpack.c.bf16 %v394_v60, %v394_v60  ;;  %v414_v1 = vshrl.u32 %v397_v54, 16  ;;  %v416_v2 = vshll.u32 %v397_v54, 16  ;;  %v3265_v9 = vld [vmem:[%s6675_s2 + $0xf8] sm:$0xf]  ;;  %840 = vmatpush.bf16.msra.mxu0 %v4305_v46 }
  0x2b   : > { %6987 = vst [vmem:[#allocation27_spill] sm:$0xff] %v4307_v47  ;;  %v421_v7 = vshll.u32 %v4317_v57, 16  ;;  %v3937_v12 = vld [vmem:[%s6675_s2 + $0x108] sm:$0xf0]  ;;  %v3405_v13 = vld [vmem:[%s6675_s2 + $0x210] sm:$0xf]  ;;  %858 = vmatpush.bf16.msra.mxu1 %v4287_v37  ;;  %894 = vmatpush.bf16.msra.mxu3 %v4303_v45 }
  0x2c   : > { %6988 = vst [vmem:[#allocation28_spill] sm:$0xff] %v4329_v0  ;;  %v3972_v14 = vld [vmem:[%s6675_s2 + $0x220] sm:$0xf0]  ;;  %v402_v15 = vshrl.u32 %v396_v62, 16  ;;  %v404_v16 = vshll.u32 %v396_v62, 16  ;;  %v409_v19 = vshll.u32 %v4327_v63, 16  ;;  %876 = vmatpush.bf16.msra.mxu2 %v4307_v47  ;;  %v4377_v53 = vor.u32 %v3937_v12, %v3265_v9 }
  0x2d   : > { %6989 = vst [vmem:[#allocation29_spill] sm:$0xff] %v4332_v8  ;;  %v3935_v21 = vld [vmem:[%s6675_s2 + $0xfc] sm:$0xf]  ;;  %v418_v22 = vrot.slane %v416_v2, 1  ;;  %v4355_v29 = vrot.slane %v421_v7, 1  ;;  %v4379_v54 = vor.u32 %v3972_v14, %v3405_v13 }
  0x2e   : > { %6990 = vst [vmem:[#allocation30_spill] sm:$0xff] %v4348_v20  ;;  %v3267_v33 = vld [vmem:[%s6675_s2 + $0x10c] sm:$0xf0]  ;;  %v406_v36 = vrot.slane %v404_v16, 1  ;;  %v4365_v38 = vrot.slane %v409_v19, 1  ;;  %941 = vmatpush.bf16.msrb.mxu0 %v4332_v8 }
  0x2f   : > { %6991 = vst [vmem:[#allocation31_spill] sm:$0xff] %v4358_v30  ;;  %v3970_v41 = vld [vmem:[%s6675_s2 + $0x214] sm:$0xf]  ;;  %v3407_v42 = vld [vmem:[%s6675_s2 + $0x224] sm:$0xf0]  ;;  %v419_v49 = vor.u32 %v418_v22, %v414_v1  ;;  %905 = vmatpush.bf16.msrb.mxu1 %v4329_v0  ;;  %924 = vmatpush.bf16.msrb.mxu3 %v4348_v20  ;;  %v4391_v62 = vor.u32 %v3935_v21, %v3267_v33 }
  0x30   : > { %v407_v50 = vor.u32 %v406_v36, %v402_v15  ;;  %960 = vmatpush.bf16.msrb.mxu2 %v4358_v30  ;;  %6992 = vst [vmem:[#allocation32_spill] sm:$0xff] %v4377_v53  ;;  %v3245_v59 = vld [vmem:[%s6675_s2 + $0xd0] sm:$0xf]  ;;  %v3932_v60 = vld [vmem:[%s6675_s2 + $0xe0] sm:$0xf0]  ;;  %v4393_v1 = vor.u32 %v3970_v41, %v3407_v42 }
  0x31   : > { %6993 = vst [vmem:[#allocation33_spill] sm:$0xff] %v4379_v54  ;;  %v4389_v61 = vsel %vm400_vm1, %v419_v49, %v4355_v29  ;;  %v3930_v2 = vld [vmem:[%s6675_s2 + $0xd4] sm:$0xf]  ;;  %v3385_v7 = vld [vmem:[%s6675_s2 + $0x1e8] sm:$0xf]  ;;  %v4425_v16 = vor.u32 %v3932_v60, %v3245_v59 }
  0x32   : > { %6994 = vst [vmem:[#allocation34_spill] sm:$0xff] %v4391_v62  ;;  %v3967_v9 = vld [vmem:[%s6675_s2 + $0x1f8] sm:$0xf0]  ;;  %3415 = vmatmul.msk.bf16.vlgmr.msra.gmra.mxu1 %vm810_vm2, %v4389_v61  ;;  %3417 = vmatmul.msk.bf16.vlgmr.msra.gmra.mxu3 %vm810_vm2, %v4389_v61  ;;  %v4410_v12 = vsel %vm400_vm1, %v407_v50, %v4365_v38  ;;  %v3247_v13 = vld [vmem:[%s6675_s2 + $0xe4] sm:$0xf0] }
  0x33   : > { %6995 = vst [vmem:[#allocation35_spill] sm:$0xff] %v4393_v1  ;;  %v3965_v14 = vld [vmem:[%s6675_s2 + $0x1ec] sm:$0xf]  ;;  %v3387_v15 = vld [vmem:[%s6675_s2 + $0x1fc] sm:$0xf0]  ;;  %841 = vmatmul.bf16.vlgmr.msra.gmra.mxu0 %v4410_v12  ;;  %877 = vmatmul.bf16.vlgmr.msra.gmra.mxu2 %v4410_v12  ;;  %v4427_v19 = vor.u32 %v3967_v9, %v3385_v7  ;;  %v4437_v33 = vor.u32 %v3930_v2, %v3247_v13  ;;  %v428_v9 = vshrl.u32 %v4317_v57, 16 }
  0x34   : > { %906 = vmatpush.bf16.msrb.mxu1 %v4377_v53  ;;  %925 = vmatpush.bf16.msrb.mxu3 %v4379_v54  ;;  %6996 = vst [vmem:[#allocation36_spill] sm:$0xff] %v4425_v16  ;;  %v3225_v21 = vld [vmem:[%s6675_s2 + $0xa8] sm:$0xf]  ;;  %v3927_v22 = vld [vmem:[%s6675_s2 + $0xb8] sm:$0xf0]  ;;  %v4439_v36 = vor.u32 %v3965_v14, %v3387_v15 }
  0x35   : > { %6997 = vst [vmem:[#allocation37_spill] sm:$0xff] %v4427_v19  ;;  %942 = vmatpush.bf16.msrb.mxu0 %v4391_v62  ;;  %961 = vmatpush.bf16.msrb.mxu2 %v4393_v1  ;;  %v3925_v41 = vld [vmem:[%s6675_s2 + $0xac] sm:$0xf]  ;;  %v3365_v42 = vld [vmem:[%s6675_s2 + $0x1c0] sm:$0xf]  ;;  %v4461_v2 = vor.u32 %v3927_v22, %v3225_v21 }
  0x36   : > { %6998 = vst [vmem:[#allocation38_spill] sm:$0xff] %v4437_v33  ;;  %v3962_v49 = vld [vmem:[%s6675_s2 + $0x1d0] sm:$0xf0]  ;;  %v3227_v50 = vld [vmem:[%s6675_s2 + $0xbc] sm:$0xf0] }
  0x37   : > { %6999 = vst [vmem:[#allocation39_spill] sm:$0xff] %v4439_v36  ;;  %v3960_v59 = vld [vmem:[%s6675_s2 + $0x1c4] sm:$0xf]  ;;  %v3367_v60 = vld [vmem:[%s6675_s2 + $0x1d4] sm:$0xf0]  ;;  %v4463_v7 = vor.u32 %v3962_v49, %v3365_v42  ;;  %v4474_v15 = vor.u32 %v3925_v41, %v3227_v50 }
  0x38   : > { %907 = vmatpush.bf16.msrb.mxu1 %v4425_v16  ;;  %926 = vmatpush.bf16.msrb.mxu3 %v4427_v19  ;;  %7000 = vst [vmem:[#allocation40_spill] sm:$0xff] %v4461_v2  ;;  %v3205_v13 = vld [vmem:[%s6675_s2 + $0x80] sm:$0xf]  ;;  %v3922_v14 = vld [vmem:[%s6675_s2 + $0x90] sm:$0xf0]  ;;  %v4476_v21 = vor.u32 %v3960_v59, %v3367_v60  ;;  %v425_v59 = vshrl.u32 %v4327_v63, 16 }
  0x39   : > { %7001 = vst [vmem:[#allocation41_spill] sm:$0xff] %v4463_v7  ;;  %943 = vmatpush.bf16.msrb.mxu0 %v4437_v33  ;;  %962 = vmatpush.bf16.msrb.mxu2 %v4439_v36  ;;  %v3920_v57 = vld [vmem:[%s6675_s2 + $0x84] sm:$0xf]  ;;  %v3345_v22 = vld [vmem:[%s6675_s2 + $0x198] sm:$0xf]  ;;  %v4502_v33 = vor.u32 %v3922_v14, %v3205_v13 }
  0x3a   : > { %7002 = vst [vmem:[#allocation42_spill] sm:$0xff] %v4474_v15  ;;  %v3957_v42 = vld [vmem:[%s6675_s2 + $0x1a8] sm:$0xf0]  ;;  %v3207_v49 = vld [vmem:[%s6675_s2 + $0x94] sm:$0xf0] }
  0x3b   : > { %7003 = vst [vmem:[#allocation43_spill] sm:$0xff] %v4476_v21  ;;  %v3955_v41 = vld [vmem:[%s6675_s2 + $0x19c] sm:$0xf]  ;;  %v3347_v50 = vld [vmem:[%s6675_s2 + $0x1ac] sm:$0xf0]  ;;  %v4504_v16 = vor.u32 %v3957_v42, %v3345_v22  ;;  %v4519_v13 = vor.u32 %v3920_v57, %v3207_v49 }
  0x3c   : > { %v3185_v60 = vld [vmem:[%s6675_s2 + $0x58] sm:$0xf]  ;;  %908 = vmatpush.bf16.msrb.mxu1 %v4461_v2  ;;  %927 = vmatpush.bf16.msrb.mxu3 %v4463_v7  ;;  %7004 = vst [vmem:[#allocation44_spill] sm:$0xff] %v4502_v33  ;;  %v3917_v62 = vld [vmem:[%s6675_s2 + $0x68] sm:$0xf0]  ;;  %v4521_v14 = vor.u32 %v3955_v41, %v3347_v50  ;;  %v4545_v50 = vor.u32 %v425_v59, %v4365_v38 }
  0x3d   : > { %7005 = vst [vmem:[#allocation45_spill] sm:$0xff] %v4504_v16  ;;  %v380_v63 = vld [vmem:[%s6675_s2 + $0x240] sm:$0x3]  ;;  %v4515_v53 = vld [vmem:[%s6674_s1 + $0x230] sm:$0x33]  ;;  %944 = vmatpush.bf16.msrb.mxu0 %v4474_v15  ;;  %963 = vmatpush.bf16.msrb.mxu2 %v4476_v21  ;;  %v4533_v15 = vor.u32 %v428_v9, %v4355_v29  ;;  %v4550_v29 = vor.u32 %v3917_v62, %v3185_v60 }
  0x3e   : > { %7006 = vst [vmem:[#allocation46_spill] sm:$0xff] %v4519_v13  ;;  %v3915_v22 = vld [vmem:[%s6675_s2 + $0x5c] sm:$0xf]  ;;  %v3325_v42 = vld [vmem:[%s6675_s2 + $0x170] sm:$0xf]  ;;  %v664_v21 = vunpack.c.l.b16 %v380_v63  ;;  %v1240_v7 = vunpack.c.l.b16 %v4515_v53 }
  0x3f   : > { %7007 = vst [vmem:[#allocation47_spill] sm:$0xff] %v4521_v14  ;;  %v3952_v2 = vld [vmem:[%s6675_s2 + $0x180] sm:$0xf0]  ;;  %v3187_v57 = vld [vmem:[%s6675_s2 + $0x6c] sm:$0xf0] }
  0x40   : > { %v3950_v49 = vld [vmem:[%s6675_s2 + $0x174] sm:$0xf]  ;;  %v3327_v41 = vld [vmem:[%s6675_s2 + $0x184] sm:$0xf0]  ;;  %909 = vmatpush.bf16.msrb.mxu1 %v4502_v33  ;;  %928 = vmatpush.bf16.msrb.mxu3 %v4504_v16  ;;  %7008 = vst [vmem:[#allocation48_spill] sm:$0xff] %v4550_v29  ;;  %v4552_v9 = vor.u32 %v3952_v2, %v3325_v42  ;;  %v4562_v59 = vor.u32 %v3915_v22, %v3187_v57 }
  0x41   : > { %v3165_v36 = vld [vmem:[%s6675_s2 + $0x30] sm:$0xf]  ;;  %v3912_v38 = vld [vmem:[%s6675_s2 + $0x40] sm:$0xf0]  ;;  %945 = vmatpush.bf16.msrb.mxu0 %v4519_v13  ;;  %964 = vmatpush.bf16.msrb.mxu2 %v4521_v14  ;;  %v4564_v63 = vor.u32 %v3950_v49, %v3327_v41  ;;  %v3910_v62 = vld [vmem:[%s6675_s2 + $0x34] sm:$0xf]  ;;  %v739_v49 = vpack.c.b16 %v664_v21, %v664_v21  ;;  %v1315_v41 = vpack.c.b16 %v1240_v7, %v1240_v7 }
  0x42   : > { %7009 = vst [vmem:[#allocation49_spill] sm:$0xff] %v4552_v9  ;;  %v3305_v2 = vld [vmem:[%s6675_s2 + $0x148] sm:$0xf]  ;;  %v3947_v60 = vld [vmem:[%s6675_s2 + $0x158] sm:$0xf0]  ;;  %3416 = vmatmul.msk.bf16.gmra.mxu1 %vm810_vm2, %v4533_v15  ;;  %3418 = vmatmul.msk.bf16.gmra.mxu3 %vm810_vm2, %v4533_v15  ;;  %v4592_v13 = vor.u32 %v3912_v38, %v3165_v36 }
  0x43   : > { %7010 = vst [vmem:[#allocation50_spill] sm:$0xff] %v4562_v59  ;;  %v3167_v22 = vld [vmem:[%s6675_s2 + $0x44] sm:$0xf0]  ;;  %v3945_v42 = vld [vmem:[%s6675_s2 + $0x14c] sm:$0xf]  ;;  %846 = vmatmul.bf16.gmra.mxu0 %v4545_v50  ;;  %882 = vmatmul.bf16.gmra.mxu2 %v4545_v50  ;;  %v4600_v16 = vor.u32 %v3947_v60, %v3305_v2 }
  0x44   : > { %7011 = vst [vmem:[#allocation51_spill] sm:$0xff] %v4564_v63  ;;  %v3307_v57 = vld [vmem:[%s6675_s2 + $0x15c] sm:$0xf0]  ;;  %910 = vmatpush.bf16.msrb.mxu1 %v4550_v29  ;;  %929 = vmatpush.bf16.msrb.mxu3 %v4552_v9  ;;  %v3145_v33 = vld [vmem:[%s6675_s2 + $0x8] sm:$0xf]  ;;  %v4604_v7 = vor.u32 %v3910_v62, %v3167_v22 }
  0x45   : > { %7012 = vst [vmem:[#allocation52_spill] sm:$0xff] %v4592_v13  ;;  %v3907_v14 = vld [vmem:[%s6675_s2 + $0x18] sm:$0xf0]  ;;  %946 = vmatpush.bf16.msrb.mxu0 %v4562_v59  ;;  %965 = vmatpush.bf16.msrb.mxu2 %v4564_v63  ;;  %v4606_v21 = vor.u32 %v3945_v42, %v3307_v57  ;;  %v3905_v36 = vld [vmem:[%s6675_s2 + $0xc] sm:$0xf]  ;;  %v4627_v42 = vsel %vm817_vm0, %v739_v49, 0 }
  0x46   : > { %7013 = vst [vmem:[#allocation53_spill] sm:$0xff] %v4600_v16  ;;  %v3147_v38 = vld [vmem:[%s6675_s2 + $0x1c] sm:$0xf0]  ;;  %v3293_v2 = vld [vmem:[%s6675_s2 + $0x128] sm:$0xf]  ;;  %v4630_v57 = vsel %vm817_vm0, %v1315_v41, 0  ;;  %v4639_v63 = vor.u32 %v3907_v14, %v3145_v33 }
  0x47   : > { %7014 = vst [vmem:[#allocation54_spill] sm:$0xff] %v4604_v7  ;;  %v3943_v60 = vld [vmem:[%s6675_s2 + $0x138] sm:$0xf0]  ;;  %v3567_v62 = vld [vmem:[%s6674_s1 + $0x118] sm:$0xf]  ;;  %v4650_v9 = vor.u32 %v3905_v36, %v3147_v38 }
  0x48   : > { %7015 = vst [vmem:[#allocation55_spill] sm:$0xff] %v4606_v21  ;;  %v3871_v22 = vld [vmem:[%s6674_s1 + $0x128] sm:$0xf0]  ;;  %v3413_v59 = vld [vmem:[%s6675_s2 + $0x218] sm:$0xf]  ;;  %911 = vmatpush.bf16.msrb.mxu1 %v4592_v13  ;;  %930 = vmatpush.bf16.msrb.mxu3 %v4600_v16  ;;  %v4652_v8 = vor.u32 %v3943_v60, %v3293_v2 }
  0x49   : > { %7016 = vst [vmem:[#allocation56_spill] sm:$0xff] %v4627_v42  ;;  %v3973_v29 = vld [vmem:[%s6675_s2 + $0x228] sm:$0xf0]  ;;  %v3687_v49 = vld [vmem:[%s6674_s1 + $0x208] sm:$0xf]  ;;  %947 = vmatpush.bf16.msrb.mxu0 %v4604_v7  ;;  %966 = vmatpush.bf16.msrb.mxu2 %v4606_v21  ;;  %v4656_v33 = vor.u32 %v3871_v22, %v3567_v62 }
  0x4a   : > { %7017 = vst [vmem:[#allocation57_spill] sm:$0xff] %v4630_v57  ;;  %v3901_v41 = vld [vmem:[%s6674_s1 + $0x218] sm:$0xf0]  ;;  %v3273_v14 = vld [vmem:[%s6675_s2 + $0x100] sm:$0xf]  ;;  %v4664_v13 = vor.u32 %v3973_v29, %v3413_v59 }
  0x4b   : > { %7018 = vst [vmem:[#allocation58_spill] sm:$0xff] %v4639_v63  ;;  %v3938_v7 = vld [vmem:[%s6675_s2 + $0x110] sm:$0xf0]  ;;  %v4666_v36 = vor.u32 %v3901_v41, %v3687_v49  ;;  %v3547_v38 = vld [vmem:[%s6674_s1 + $0xf0] sm:$0xf] }
  0x4c   : > { %7019 = vst [vmem:[#allocation59_spill] sm:$0xff] %v4650_v9  ;;  %996 = vmatpush.bf16.msra.mxu3 %v4627_v42  ;;  %912 = vmatpush.bf16.msrb.mxu1 %v4639_v63  ;;  %v3866_v2 = vld [vmem:[%s6674_s1 + $0x100] sm:$0xf0]  ;;  %v4677_v60 = vor.u32 %v3938_v7, %v3273_v14  ;;  %v3253_v29 = vld [vmem:[%s6675_s2 + $0xd8] sm:$0xf] }
  0x4d   : > { %7020 = vst [vmem:[#allocation60_spill] sm:$0xff] %v4652_v8  ;;  %1430 = vmatpush.bf16.msra.mxu2 %v4630_v57  ;;  %948 = vmatpush.bf16.msrb.mxu0 %v4650_v9  ;;  %v3393_v59 = vld [vmem:[%s6675_s2 + $0x1f0] sm:$0xf]  ;;  %v3968_v62 = vld [vmem:[%s6675_s2 + $0x200] sm:$0xf0]  ;;  %v4700_v41 = vor.u32 %v3866_v2, %v3547_v38 }
  0x4e   : > { %7021 = vst [vmem:[#allocation61_spill] sm:$0xff] %v4656_v33  ;;  %v3933_v7 = vld [vmem:[%s6675_s2 + $0xe8] sm:$0xf0]  ;;  %v3667_v22 = vld [vmem:[%s6674_s1 + $0x1e0] sm:$0xf] }
  0x4f   : > { %7022 = vst [vmem:[#allocation62_spill] sm:$0xff] %v4664_v13  ;;  %v3896_v49 = vld [vmem:[%s6674_s1 + $0x1f0] sm:$0xf0]  ;;  %v3527_v14 = vld [vmem:[%s6674_s1 + $0xc8] sm:$0xf]  ;;  %v4711_v9 = vor.u32 %v3933_v7, %v3253_v29 }
  0x50   : > { %7023 = vst [vmem:[#allocation63_spill] sm:$0xff] %v4666_v36  ;;  %977 = vmatpush.bf16.msra.mxu1 %v4652_v8  ;;  %997 = vmatpush.bf16.msra.mxu3 %v4664_v13  ;;  %v4708_v8 = vor.u32 %v3968_v62, %v3393_v59  ;;  %v4713_v63 = vor.u32 %v3896_v49, %v3667_v22  ;;  %v3233_v38 = vld [vmem:[%s6675_s2 + $0xb0] sm:$0xf]  ;;  %v3373_v2 = vld [vmem:[%s6675_s2 + $0x1c8] sm:$0xf] }
  0x51   : > { %7024 = vst [vmem:[#allocation64_spill] sm:$0xff] %v4677_v60  ;;  %1411 = vmatpush.bf16.msra.mxu0 %v4656_v33  ;;  %1431 = vmatpush.bf16.msra.mxu2 %v4666_v36  ;;  %v3861_v33 = vld [vmem:[%s6674_s1 + $0xd8] sm:$0xf0]  ;;  %v3928_v29 = vld [vmem:[%s6675_s2 + $0xc0] sm:$0xf0] }
  0x52   : > { %7025 = vst [vmem:[#allocation65_spill] sm:$0xff] %v4700_v41  ;;  %v3963_v36 = vld [vmem:[%s6675_s2 + $0x1d8] sm:$0xf0]  ;;  %913 = vmatmul.bf16.vlgmr.msrb.gmra.mxu1 %v4410_v12  ;;  %3419 = vmatmul.msk.bf16.vlgmr.msrb.gmra.mxu3 %vm810_vm2, %v4389_v61  ;;  %v3647_v59 = vld [vmem:[%s6674_s1 + $0x1b8] sm:$0xf]  ;;  %v4740_v7 = vor.u32 %v3861_v33, %v3527_v14  ;;  %v4753_v13 = vor.u32 %v3928_v29, %v3233_v38 }
  0x53   : > { %7026 = vst [vmem:[#allocation66_spill] sm:$0xff] %v4708_v8  ;;  %v3891_v62 = vld [vmem:[%s6674_s1 + $0x1c8] sm:$0xf0]  ;;  %949 = vmatmul.bf16.vlgmr.msrb.gmra.mxu0 %v4410_v12  ;;  %3421 = vmatmul.msk.bf16.vlgmr.msrb.gmra.mxu2 %vm810_vm2, %v4389_v61  ;;  %v3507_v22 = vld [vmem:[%s6674_s1 + $0xa0] sm:$0xf] }
  0x54   : > { %978 = vmatpush.bf16.msra.mxu1 %v4677_v60  ;;  %7027 = vst [vmem:[#allocation67_spill] sm:$0xff] %v4711_v9  ;;  %998 = vmatpush.bf16.msra.mxu3 %v4708_v8  ;;  %v3856_v49 = vld [vmem:[%s6674_s1 + $0xb0] sm:$0xf0]  ;;  %v4749_v60 = vor.u32 %v3963_v36, %v3373_v2  ;;  %v4755_v33 = vor.u32 %v3891_v62, %v3647_v59  ;;  %v3213_v14 = vld [vmem:[%s6675_s2 + $0x88] sm:$0xf] }
  0x55   : > { %7028 = vst [vmem:[#allocation68_spill] sm:$0xff] %v4713_v63  ;;  %1412 = vmatpush.bf16.msra.mxu0 %v4700_v41  ;;  %1432 = vmatpush.bf16.msra.mxu2 %v4713_v63  ;;  %v3353_v41 = vld [vmem:[%s6675_s2 + $0x1a0] sm:$0xf]  ;;  %v3958_v36 = vld [vmem:[%s6675_s2 + $0x1b0] sm:$0xf0]  ;;  %v4776_v59 = vor.u32 %v3856_v49, %v3507_v22 }
  0x56   : > { %7029 = vst [vmem:[#allocation69_spill] sm:$0xff] %v4740_v7  ;;  %v3923_v2 = vld [vmem:[%s6675_s2 + $0x98] sm:$0xf0]  ;;  %v3627_v38 = vld [vmem:[%s6674_s1 + $0x190] sm:$0xf]  ;;  %v4785_v63 = vor.u32 %v3958_v36, %v3353_v41 }
  0x57   : > { %7030 = vst [vmem:[#allocation70_spill] sm:$0xff] %v4749_v60  ;;  %v3886_v29 = vld [vmem:[%s6674_s1 + $0x1a0] sm:$0xf0]  ;;  %v3487_v62 = vld [vmem:[%s6674_s1 + $0x78] sm:$0xf]  ;;  %v4794_v22 = vor.u32 %v3923_v2, %v3213_v14 }
  0x58   : > { %979 = vmatpush.bf16.msra.mxu1 %v4711_v9  ;;  %7031 = vst [vmem:[#allocation71_spill] sm:$0xff] %v4753_v13  ;;  %999 = vmatpush.bf16.msra.mxu3 %v4749_v60  ;;  %v3851_v9 = vld [vmem:[%s6674_s1 + $0x88] sm:$0xf0]  ;;  %v4790_v8 = vld [vmem:[%s6674_s1 + $0x238] sm:$0x33]  ;;  %v4796_v49 = vor.u32 %v3886_v29, %v3627_v38  ;;  %v1241_v38 = vunpack.c.h.b16 %v4515_v53 }
  0x59   : > { %7032 = vst [vmem:[#allocation72_spill] sm:$0xff] %v4755_v33  ;;  %1413 = vmatpush.bf16.msra.mxu0 %v4740_v7  ;;  %1433 = vmatpush.bf16.msra.mxu2 %v4755_v33  ;;  %v3193_v7 = vld [vmem:[%s6675_s2 + $0x60] sm:$0xf]  ;;  %v3333_v41 = vld [vmem:[%s6675_s2 + $0x178] sm:$0xf]  ;;  %v1242_v29 = vunpack.c.l.b16 %v4790_v8  ;;  %v4819_v33 = vor.u32 %v3851_v9, %v3487_v62 }
  0x5a   : > { %7033 = vst [vmem:[#allocation73_spill] sm:$0xff] %v4776_v59  ;;  %v3953_v36 = vld [vmem:[%s6675_s2 + $0x188] sm:$0xf0]  ;;  %v3607_v14 = vld [vmem:[%s6674_s1 + $0x168] sm:$0xf] }
  0x5b   : > { %7034 = vst [vmem:[#allocation74_spill] sm:$0xff] %v4785_v63  ;;  %v3881_v2 = vld [vmem:[%s6674_s1 + $0x178] sm:$0xf0]  ;;  %v3467_v60 = vld [vmem:[%s6674_s1 + $0x50] sm:$0xf]  ;;  %v4828_v21 = vor.u32 %v3953_v36, %v3333_v41 }
  0x5c   : > { %980 = vmatpush.bf16.msra.mxu1 %v4753_v13  ;;  %7035 = vst [vmem:[#allocation75_spill] sm:$0xff] %v4794_v22  ;;  %v3918_v13 = vld [vmem:[%s6675_s2 + $0x70] sm:$0xf0]  ;;  %1000 = vmatpush.bf16.msra.mxu3 %v4785_v63  ;;  %v3846_v57 = vld [vmem:[%s6674_s1 + $0x60] sm:$0xf0]  ;;  %v4834_v9 = vor.u32 %v3881_v2, %v3607_v14  ;;  %v1316_v14 = vpack.c.b16 %v1241_v38, %v1241_v38 }
  0x5d   : > { %7036 = vst [vmem:[#allocation76_spill] sm:$0xff] %v4796_v49  ;;  %1414 = vmatpush.bf16.msra.mxu0 %v4776_v59  ;;  %1434 = vmatpush.bf16.msra.mxu2 %v4796_v49  ;;  %v4832_v53 = vor.u32 %v3918_v13, %v3193_v7  ;;  %v3173_v62 = vld [vmem:[%s6675_s2 + $0x38] sm:$0xf]  ;;  %v3313_v59 = vld [vmem:[%s6675_s2 + $0x150] sm:$0xf]  ;;  %v1317_v2 = vpack.c.b16 %v1242_v29, %v1242_v29 }
  0x5e   : > { %7037 = vst [vmem:[#allocation77_spill] sm:$0xff] %v4819_v33  ;;  %v3948_v41 = vld [vmem:[%s6675_s2 + $0x160] sm:$0xf0]  ;;  %v3913_v36 = vld [vmem:[%s6675_s2 + $0x48] sm:$0xf0] }
  0x5f   : > { %7038 = vst [vmem:[#allocation78_spill] sm:$0xff] %v4828_v21  ;;  %v3587_v13 = vld [vmem:[%s6674_s1 + $0x140] sm:$0xf]  ;;  %v3876_v7 = vld [vmem:[%s6674_s1 + $0x150] sm:$0xf0]  ;;  %v4858_v49 = vor.u32 %v3948_v41, %v3313_v59  ;;  %v4862_v63 = vor.u32 %v3913_v36, %v3173_v62  ;;  %v4891_v41 = vsel %vm817_vm0, %v1316_v14, 0 }
  0x60   : > { %981 = vmatpush.bf16.msra.mxu1 %v4794_v22  ;;  %7039 = vst [vmem:[#allocation79_spill] sm:$0xff] %v4832_v53  ;;  %v4855_v22 = vor.u32 %v3846_v57, %v3467_v60  ;;  %1001 = vmatpush.bf16.msra.mxu3 %v4828_v21  ;;  %v3447_v42 = vld [vmem:[%s6674_s1 + $0x28] sm:$0xf]  ;;  %v3841_v38 = vld [vmem:[%s6674_s1 + $0x38] sm:$0xf0]  ;;  %v4873_v60 = vor.u32 %v3876_v7, %v3587_v13  ;;  %v4894_v36 = vsel %vm817_vm0, %v1317_v2, 0 }
  0x61   : > { %7040 = vst [vmem:[#allocation80_spill] sm:$0xff] %v4834_v9  ;;  %1415 = vmatpush.bf16.msra.mxu0 %v4819_v33  ;;  %1435 = vmatpush.bf16.msra.mxu2 %v4834_v9  ;;  %v3153_v57 = vld [vmem:[%s6675_s2 + $0x10] sm:$0xf]  ;;  %v3908_v59 = vld [vmem:[%s6675_s2 + $0x20] sm:$0xf0] }
  0x62   : > { %7041 = vst [vmem:[#allocation81_spill] sm:$0xff] %v4855_v22  ;;  %918 = vmatmul.bf16.gmra.mxu1 %v4545_v50  ;;  %3420 = vmatmul.msk.bf16.gmra.mxu3 %vm810_vm2, %v4533_v15  ;;  %v3869_v29 = vld [vmem:[%s6674_s1 + $0x11c] sm:$0xf]  ;;  %v3569_v62 = vld [vmem:[%s6674_s1 + $0x12c] sm:$0xf0]  ;;  %v4913_v33 = vor.u32 %v3908_v59, %v3153_v57  ;;  %v382_v9 = vld [vmem:[%s4292_s19] sm:$0xff] }
  0x63   : > { %7042 = vst [vmem:[#allocation82_spill] sm:$0xff] %v4858_v49  ;;  %954 = vmatmul.bf16.gmra.mxu0 %v4545_v50  ;;  %3422 = vmatmul.msk.bf16.gmra.mxu2 %vm810_vm2, %v4533_v15  ;;  %v3899_v13 = vld [vmem:[%s6674_s1 + $0x20c] sm:$0xf]  ;;  %v3689_v7 = vld [vmem:[%s6674_s1 + $0x21c] sm:$0xf0] }
  0x64   : > { %982 = vmatpush.bf16.msra.mxu1 %v4832_v53  ;;  %7043 = vst [vmem:[#allocation83_spill] sm:$0xff] %v4862_v63  ;;  %v4903_v53 = vor.u32 %v3841_v38, %v3447_v42  ;;  %1002 = vmatpush.bf16.msra.mxu3 %v4858_v49  ;;  %v3695_v14 = vld [vmem:[%s6674_s1 + $0x210] sm:$0xf]  ;;  %v3902_v2 = vld [vmem:[%s6674_s1 + $0x220] sm:$0xf0] }
  0x65   : > { %7044 = vst [vmem:[#allocation84_spill] sm:$0xff] %v4873_v60  ;;  %1416 = vmatpush.bf16.msra.mxu0 %v4855_v22  ;;  %1436 = vmatpush.bf16.msra.mxu2 %v4873_v60  ;;  %v3427_v42 = vld [vmem:[%s6674_s1] sm:$0xf]  ;;  %v3836_v38 = vld [vmem:[%s6674_s1 + $0x10] sm:$0xf0]  ;;  %v4922_v22 = vor.u32 %v3869_v29, %v3569_v62  ;;  %v4935_v60 = vor.u32 %v3899_v13, %v3689_v7 }
  0x66   : > { %7045 = vst [vmem:[#allocation85_spill] sm:$0xff] %v4891_v41  ;;  %v3575_v57 = vld [vmem:[%s6674_s1 + $0x120] sm:$0xf]  ;;  %v3872_v59 = vld [vmem:[%s6674_s1 + $0x130] sm:$0xf0]  ;;  %v4940_v62 = vor.u32 %v3902_v2, %v3695_v14  ;;  %v4949_v13 = vor.u32 %v3836_v38, %v3427_v42 }
  0x67   : > { %7046 = vst [vmem:[#allocation86_spill] sm:$0xff] %v4894_v36  ;;  %v3549_v29 = vld [vmem:[%s6674_s1 + $0x104] sm:$0xf0]  ;;  %v3897_v14 = vld [vmem:[%s6674_s1 + $0x1f8] sm:$0xf0]  ;;  %v4958_v2 = vor.u32 %v3872_v59, %v3575_v57 }
  0x68   : > { %7047 = vst [vmem:[#allocation87_spill] sm:$0xff] %v4903_v53  ;;  %983 = vmatpush.bf16.msra.mxu1 %v4862_v63  ;;  %1466 = vmatpush.bf16.msrb.mxu3 %v4891_v41  ;;  %v3864_v63 = vld [vmem:[%s6674_s1 + $0xf4] sm:$0xf]  ;;  %v3669_v41 = vld [vmem:[%s6674_s1 + $0x1f4] sm:$0xf0] }
  0x69   : > { %7048 = vst [vmem:[#allocation88_spill] sm:$0xff] %v4913_v33  ;;  %1502 = vmatpush.bf16.msrb.mxu2 %v4894_v36  ;;  %v3894_v36 = vld [vmem:[%s6674_s1 + $0x1e4] sm:$0xf]  ;;  %1417 = vmatpush.bf16.msra.mxu0 %v4903_v53  ;;  %v3675_v7 = vld [vmem:[%s6674_s1 + $0x1e8] sm:$0xf]  ;;  %v4961_v49 = vor.u32 %v3864_v63, %v3549_v29 }
  0x6a   : > { %7049 = vst [vmem:[#allocation89_spill] sm:$0xff] %v4922_v22  ;;  %v3555_v42 = vld [vmem:[%s6674_s1 + $0xf8] sm:$0xf]  ;;  %v3867_v38 = vld [vmem:[%s6674_s1 + $0x108] sm:$0xf0]  ;;  %v4970_v53 = vor.u32 %v3894_v36, %v3669_v41  ;;  %v4974_v57 = vor.u32 %v3897_v14, %v3675_v7 }
  0x6b   : > { %7050 = vst [vmem:[#allocation90_spill] sm:$0xff] %v4935_v60  ;;  %v383_v63 = vld [vmem:[%s4292_s19 + $0x8] sm:$0xff]  ;;  %v3529_v29 = vld [vmem:[%s6674_s1 + $0xdc] sm:$0xf0]  ;;  %v4985_v41 = vor.u32 %v3867_v38, %v3555_v42  ;;  %v3535_v36 = vld [vmem:[%s6674_s1 + $0xd0] sm:$0xf] }
  0x6c   : > { %7051 = vst [vmem:[#allocation91_spill] sm:$0xff] %v4940_v62  ;;  %984 = vmatpush.bf16.msra.mxu1 %v4913_v33  ;;  %1467 = vmatpush.bf16.msrb.mxu3 %v4935_v60  ;;  %v3859_v59 = vld [vmem:[%s6674_s1 + $0xcc] sm:$0xf]  ;;  %v3889_v7 = vld [vmem:[%s6674_s1 + $0x1bc] sm:$0xf] }
  0x6d   : > { %7052 = vst [vmem:[#allocation92_spill] sm:$0xff] %v4949_v13  ;;  %1503 = vmatpush.bf16.msrb.mxu2 %v4940_v62  ;;  %1418 = vmatpush.bf16.msra.mxu0 %v4949_v13  ;;  %v3649_v14 = vld [vmem:[%s6674_s1 + $0x1cc] sm:$0xf0]  ;;  %v3655_v42 = vld [vmem:[%s6674_s1 + $0x1c0] sm:$0xf]  ;;  %v5011_v13 = vpack.c.bf16 %v4310_v48, %v383_v63 }
  0x6e   : > { %7053 = vst [vmem:[#allocation93_spill] sm:$0xff] %v4958_v2  ;;  %v3892_v38 = vld [vmem:[%s6674_s1 + $0x1d0] sm:$0xf0]  ;;  %v3854_v33 = vld [vmem:[%s6674_s1 + $0xa4] sm:$0xf]  ;;  %v5022_v62 = vor.u32 %v3889_v7, %v3649_v14 }
  0x6f   : > { %7054 = vst [vmem:[#allocation94_spill] sm:$0xff] %v4961_v49  ;;  %v3515_v48 = vld [vmem:[%s6674_s1 + $0xa8] sm:$0xf]  ;;  %v3884_v63 = vld [vmem:[%s6674_s1 + $0x194] sm:$0xf] }
  0x70   : > { %1447 = vmatpush.bf16.msrb.mxu1 %v4922_v22  ;;  %7055 = vst [vmem:[#allocation95_spill] sm:$0xff] %v4970_v53  ;;  %1468 = vmatpush.bf16.msrb.mxu3 %v4970_v53  ;;  %v5008_v22 = vpack.c.bf16 %v4320_v58, %v382_v9  ;;  %v3509_v53 = vld [vmem:[%s6674_s1 + $0xb4] sm:$0xf0]  ;;  %v5030_v9 = vor.u32 %v3892_v38, %v3655_v42  ;;  %v3489_v7 = vld [vmem:[%s6674_s1 + $0x8c] sm:$0xf0] }
  0x71   : > { %7056 = vst [vmem:[#allocation96_spill] sm:$0xff] %v4974_v57  ;;  %1483 = vmatpush.bf16.msrb.mxu0 %v4958_v2  ;;  %v3862_v2 = vld [vmem:[%s6674_s1 + $0xe0] sm:$0xf0]  ;;  %1504 = vmatpush.bf16.msrb.mxu2 %v4974_v57  ;;  %v3879_v38 = vld [vmem:[%s6674_s1 + $0x16c] sm:$0xf] }
  0x72   : > { %7057 = vst [vmem:[#allocation97_spill] sm:$0xff] %v4985_v41  ;;  %v5025_v58 = vor.u32 %v3862_v2, %v3535_v36  ;;  %985 = vmatmul.bf16.vlgmr.msra.gmra.mxu1 %v4410_v12  ;;  %3423 = vmatmul.msk.bf16.vlgmr.msra.gmra.mxu3 %vm810_vm2, %v4389_v61  ;;  %v3857_v2 = vld [vmem:[%s6674_s1 + $0xb8] sm:$0xf0]  ;;  %v3887_v36 = vld [vmem:[%s6674_s1 + $0x1a8] sm:$0xf0]  ;;  %v5054_v61 = vor.u32 %v3854_v33, %v3509_v53 }
  0x73   : > { %7059 = vst [vmem:[#allocation99_spill] sm:$0xff] %v5022_v62  ;;  %1419 = vmatmul.bf16.vlgmr.msra.gmra.mxu0 %v5008_v22  ;;  %3705 = vmatmul.msk.bf16.vlgmr.msra.gmra.mxu2 %vm810_vm2, %v5011_v13  ;;  %v3849_v12 = vld [vmem:[%s6674_s1 + $0x7c] sm:$0xf]  ;;  %v5066_v42 = vor.u32 %v3857_v2, %v3515_v48  ;;  %v3495_v33 = vld [vmem:[%s6674_s1 + $0x80] sm:$0xf] }
  0x74   : > { %1448 = vmatpush.bf16.msrb.mxu1 %v4961_v49  ;;  %v5014_v49 = vor.u32 %v3859_v59, %v3529_v29  ;;  %7060 = vst [vmem:[#allocation100_spill] sm:$0xff] %v5025_v58  ;;  %v3629_v59 = vld [vmem:[%s6674_s1 + $0x1a4] sm:$0xf0]  ;;  %v3635_v29 = vld [vmem:[%s6674_s1 + $0x198] sm:$0xf]  ;;  %1469 = vmatpush.bf16.msrb.mxu3 %v5022_v62 }
  0x75   : > { %1484 = vmatpush.bf16.msrb.mxu0 %v4985_v41  ;;  %7061 = vst [vmem:[#allocation101_spill] sm:$0xff] %v5030_v9  ;;  %v5063_v14 = vor.u32 %v3884_v63, %v3629_v59  ;;  %1505 = vmatpush.bf16.msrb.mxu2 %v5030_v9  ;;  %v5072_v53 = vor.u32 %v3887_v36, %v3635_v29  ;;  %v3609_v63 = vld [vmem:[%s6674_s1 + $0x17c] sm:$0xf0]  ;;  %v3852_v48 = vld [vmem:[%s6674_s1 + $0x90] sm:$0xf0] }
  0x76   : > { %7058 = vst [vmem:[#allocation98_spill] sm:$0xff] %v5014_v49  ;;  %v3615_v59 = vld [vmem:[%s6674_s1 + $0x170] sm:$0xf]  ;;  %v3882_v2 = vld [vmem:[%s6674_s1 + $0x180] sm:$0xf0]  ;;  %v5093_v36 = vor.u32 %v3849_v12, %v3489_v7  ;;  %v5102_v41 = vor.u32 %v3879_v38, %v3609_v63  ;;  %v5105_v9 = vor.u32 %v3852_v48, %v3495_v33  ;;  %v1243_v63 = vunpack.c.h.b16 %v4790_v8 }
  0x77   : > { %7062 = vst [vmem:[#allocation102_spill] sm:$0xff] %v5054_v61  ;;  %v293_v29 = vld [vmem:[%s6674_s1 + $0x240] sm:$0x3]  ;;  %v3475_v12 = vld [vmem:[%s6674_s1 + $0x58] sm:$0xf]  ;;  %v5111_v7 = vor.u32 %v3882_v2, %v3615_v59 }
  0x78   : > { %1449 = vmatpush.bf16.msrb.mxu1 %v5014_v49  ;;  %7063 = vst [vmem:[#allocation103_spill] sm:$0xff] %v5063_v14  ;;  %1470 = vmatpush.bf16.msrb.mxu3 %v5063_v14  ;;  %v3469_v49 = vld [vmem:[%s6674_s1 + $0x64] sm:$0xf0]  ;;  %v3589_v38 = vld [vmem:[%s6674_s1 + $0x154] sm:$0xf0]  ;;  %v1244_v2 = vunpack.c.l.b16 %v293_v29 }
  0x79   : > { %1485 = vmatpush.bf16.msrb.mxu0 %v5025_v58  ;;  %7064 = vst [vmem:[#allocation104_spill] sm:$0xff] %v5066_v42  ;;  %v3844_v58 = vld [vmem:[%s6674_s1 + $0x54] sm:$0xf]  ;;  %1506 = vmatpush.bf16.msrb.mxu2 %v5072_v53  ;;  %v3847_v33 = vld [vmem:[%s6674_s1 + $0x68] sm:$0xf0] }
  0x7a   : > { %7065 = vst [vmem:[#allocation105_spill] sm:$0xff] %v5072_v53  ;;  %v3595_v48 = vld [vmem:[%s6674_s1 + $0x148] sm:$0xf]  ;;  %v3877_v59 = vld [vmem:[%s6674_s1 + $0x158] sm:$0xf0]  ;;  %v5132_v14 = vor.u32 %v3844_v58, %v3469_v49  ;;  %v5138_v62 = vor.u32 %v3847_v33, %v3475_v12  ;;  %v1318_v58 = vpack.c.b16 %v1243_v63, %v1243_v63 }
  0x7b   : > { %7066 = vst [vmem:[#allocation106_spill] sm:$0xff] %v5093_v36  ;;  %v387_v53 = vld [vmem:[%s4292_s19 + $0x28] sm:$0x3]  ;;  %v3839_v29 = vld [vmem:[%s6674_s1 + $0x2c] sm:$0xf]  ;;  %v5147_v49 = vor.u32 %v3877_v59, %v3595_v48 }
  0x7c   : > { %1450 = vmatpush.bf16.msrb.mxu1 %v5054_v61  ;;  %7067 = vst [vmem:[#allocation107_spill] sm:$0xff] %v5102_v41  ;;  %v3874_v61 = vld [vmem:[%s6674_s1 + $0x144] sm:$0xf]  ;;  %1471 = vmatpush.bf16.msrb.mxu3 %v5102_v41  ;;  %v3429_v63 = vld [vmem:[%s6674_s1 + $0x14] sm:$0xf0] }
  0x7d   : > { %1486 = vmatpush.bf16.msrb.mxu0 %v5066_v42  ;;  %7068 = vst [vmem:[#allocation108_spill] sm:$0xff] %v5105_v9  ;;  %v386_v42 = vld [vmem:[%s4292_s19 + $0x20] sm:$0x3]  ;;  %v5135_v8 = vor.u32 %v3874_v61, %v3589_v38  ;;  %1507 = vmatpush.bf16.msrb.mxu2 %v5111_v7  ;;  %v3455_v61 = vld [vmem:[%s6674_s1 + $0x30] sm:$0xf]  ;;  %v1319_v38 = vpack.c.b16 %v1244_v2, %v1244_v2 }
  0x7e   : > { %7069 = vst [vmem:[#allocation109_spill] sm:$0xff] %v5111_v7  ;;  %v3842_v12 = vld [vmem:[%s6674_s1 + $0x40] sm:$0xf0]  ;;  %v5155_v33 = vpack.c.bf16 %v386_v42, %v386_v42  ;;  %v3435_v42 = vld [vmem:[%s6674_s1 + $0x8] sm:$0xf] }
  0x7f   : > { %7070 = vst [vmem:[#allocation110_spill] sm:$0xff] %v5132_v14  ;;  %v3834_v7 = vld [vmem:[%s6674_s1 + $0x4] sm:$0xf]  ;;  %v5179_v2 = vor.u32 %v3842_v12, %v3455_v61  ;;  %v3577_v61 = vld [vmem:[%s6674_s1 + $0x134] sm:$0xf0] }
  0x80   : > { %1451 = vmatpush.bf16.msrb.mxu1 %v5093_v36  ;;  %7071 = vst [vmem:[#allocation111_spill] sm:$0xff] %v5135_v8  ;;  %v3449_v36 = vld [vmem:[%s6674_s1 + $0x3c] sm:$0xf0]  ;;  %1472 = vmatpush.bf16.msrb.mxu3 %v5135_v8  ;;  %v3870_v59 = vld [vmem:[%s6674_s1 + $0x124] sm:$0xf] }
  0x81   : > { %1487 = vmatpush.bf16.msrb.mxu0 %v5105_v9  ;;  %7072 = vst [vmem:[#allocation112_spill] sm:$0xff] %v5138_v62  ;;  %v5157_v9 = vpack.c.bf16 %v387_v53, %v387_v53  ;;  %v5166_v48 = vor.u32 %v3839_v29, %v3449_v36  ;;  %v3837_v53 = vld [vmem:[%s6674_s1 + $0x18] sm:$0xf0]  ;;  %1508 = vmatpush.bf16.msrb.mxu2 %v5147_v49  ;;  %v5183_v36 = vsel %vm817_vm0, %v1318_v58, 0  ;;  %v3900_v29 = vld [vmem:[%s6674_s1 + $0x214] sm:$0xf] }
  0x82   : > { %7073 = vst [vmem:[#allocation113_spill] sm:$0xff] %v5147_v49  ;;  %990 = vmatmul.bf16.gmra.mxu1 %v4545_v50  ;;  %3424 = vmatmul.msk.bf16.gmra.mxu3 %vm810_vm2, %v4533_v15  ;;  %v5198_v58 = vsel %vm817_vm0, %v1319_v38, 0  ;;  %v3583_v12 = vld [vmem:[%s6674_s1 + $0x128] sm:$0xf]  ;;  %v3873_v15 = vld [vmem:[%s6674_s1 + $0x138] sm:$0xf0]  ;;  %v5222_v8 = vor.u32 %v3837_v53, %v3435_v42  ;;  %v5224_v41 = vor.u32 %v3870_v59, %v3577_v61 }
  0x83   : > { %7074 = vst [vmem:[#allocation114_spill] sm:$0xff] %v5166_v48  ;;  %1424 = vmatmul.bf16.gmra.mxu0 %v5155_v33  ;;  %3706 = vmatmul.msk.bf16.gmra.mxu2 %vm810_vm2, %v5157_v9  ;;  %v3703_v50 = vld [vmem:[%s6674_s1 + $0x218] sm:$0xf]  ;;  %v3903_v38 = vld [vmem:[%s6674_s1 + $0x228] sm:$0xf0] }
  0x84   : > { %1452 = vmatpush.bf16.msrb.mxu1 %v5132_v14  ;;  %7075 = vst [vmem:[#allocation115_spill] sm:$0xff] %v5179_v2  ;;  %v3697_v14 = vld [vmem:[%s6674_s1 + $0x224] sm:$0xf0]  ;;  %1538 = vmatpush.bf16.msra.mxu3 %v5183_v36  ;;  %v3895_v57 = vld [vmem:[%s6674_s1 + $0x1ec] sm:$0xf]  ;;  %v5244_v59 = vor.u32 %v3903_v38, %v3703_v50 }
  0x85   : > { %1488 = vmatpush.bf16.msrb.mxu0 %v5138_v62  ;;  %7076 = vst [vmem:[#allocation116_spill] sm:$0xff] %v5183_v36  ;;  %v5216_v62 = vor.u32 %v3834_v7, %v3429_v63  ;;  %v5219_v49 = vor.u32 %v3900_v29, %v3697_v14  ;;  %1574 = vmatpush.bf16.msra.mxu2 %v5198_v58  ;;  %v3677_v7 = vld [vmem:[%s6674_s1 + $0x1fc] sm:$0xf0]  ;;  %v3865_v14 = vld [vmem:[%s6674_s1 + $0xfc] sm:$0xf] }
  0x86   : > { %7077 = vst [vmem:[#allocation117_spill] sm:$0xff] %v5198_v58  ;;  %v5233_v63 = vor.u32 %v3873_v15, %v3583_v12  ;;  %v3557_v42 = vld [vmem:[%s6674_s1 + $0x10c] sm:$0xf0]  ;;  %v3563_v53 = vld [vmem:[%s6674_s1 + $0x100] sm:$0xf]  ;;  %v5257_v15 = vor.u32 %v3895_v57, %v3677_v7 }
  0x87   : > { %7078 = vst [vmem:[#allocation118_spill] sm:$0xff] %v5216_v62  ;;  %v3868_v29 = vld [vmem:[%s6674_s1 + $0x110] sm:$0xf0]  ;;  %v3683_v61 = vld [vmem:[%s6674_s1 + $0x1f0] sm:$0xf]  ;;  %v5261_v50 = vor.u32 %v3865_v14, %v3557_v42 }
  0x88   : > { %1453 = vmatpush.bf16.msrb.mxu1 %v5166_v48  ;;  %7079 = vst [vmem:[#allocation119_spill] sm:$0xff] %v5219_v49  ;;  %v3898_v12 = vld [vmem:[%s6674_s1 + $0x200] sm:$0xf0]  ;;  %1539 = vmatpush.bf16.msra.mxu3 %v5219_v49  ;;  %v3860_v57 = vld [vmem:[%s6674_s1 + $0xd4] sm:$0xf] }
  0x89   : > { %1489 = vmatpush.bf16.msrb.mxu0 %v5179_v2  ;;  %7080 = vst [vmem:[#allocation120_spill] sm:$0xff] %v5222_v8  ;;  %v3890_v38 = vld [vmem:[%s6674_s1 + $0x1c4] sm:$0xf]  ;;  %v3657_v2 = vld [vmem:[%s6674_s1 + $0x1d4] sm:$0xf0]  ;;  %1575 = vmatpush.bf16.msra.mxu2 %v5244_v59  ;;  %v5279_v14 = vor.u32 %v3898_v12, %v3683_v61 }
  0x8a   : > { %7081 = vst [vmem:[#allocation121_spill] sm:$0xff] %v5224_v41  ;;  %v3537_v7 = vld [vmem:[%s6674_s1 + $0xe4] sm:$0xf0]  ;;  %v3543_v42 = vld [vmem:[%s6674_s1 + $0xd8] sm:$0xf] }
  0x8b   : > { %7082 = vst [vmem:[#allocation122_spill] sm:$0xff] %v5233_v63  ;;  %v3855_v61 = vld [vmem:[%s6674_s1 + $0xac] sm:$0xf]  ;;  %v3663_v12 = vld [vmem:[%s6674_s1 + $0x1c8] sm:$0xf] }
  0x8c   : > { %7083 = vst [vmem:[#allocation123_spill] sm:$0xff] %v5244_v59  ;;  %1454 = vmatpush.bf16.msrb.mxu1 %v5216_v62  ;;  %v5270_v62 = vor.u32 %v3868_v29, %v3563_v53  ;;  %v3863_v53 = vld [vmem:[%s6674_s1 + $0xe8] sm:$0xf0]  ;;  %1540 = vmatpush.bf16.msra.mxu3 %v5257_v15  ;;  %v5288_v29 = vor.u32 %v3890_v38, %v3657_v2  ;;  %v3517_v2 = vld [vmem:[%s6674_s1 + $0xbc] sm:$0xf0] }
  0x8d   : > { %7084 = vst [vmem:[#allocation124_spill] sm:$0xff] %v5257_v15  ;;  %1490 = vmatpush.bf16.msrb.mxu0 %v5222_v8  ;;  %v3893_v8 = vld [vmem:[%s6674_s1 + $0x1d8] sm:$0xf0]  ;;  %1576 = vmatpush.bf16.msra.mxu2 %v5279_v14  ;;  %v3643_v15 = vld [vmem:[%s6674_s1 + $0x1a0] sm:$0xf] }
  0x8e   : > { %7085 = vst [vmem:[#allocation125_spill] sm:$0xff] %v5261_v50  ;;  %v3885_v38 = vld [vmem:[%s6674_s1 + $0x19c] sm:$0xf] }
  0x8f   : > { %7086 = vst [vmem:[#allocation126_spill] sm:$0xff] %v5270_v62 }
  0x90   : > { %1519 = vmatpush.bf16.msra.mxu1 %v5224_v41  ;;  %7087 = vst [vmem:[#allocation127_spill] sm:$0xff] %v5279_v14  ;;  %1541 = vmatpush.bf16.msra.mxu3 %v5288_v29  ;;  %v5322_v41 = vor.u32 %v3893_v8, %v3663_v12  ;;  %v5325_v14 = vor.u32 %v3855_v61, %v3517_v2  ;;  %v3497_v8 = vld [vmem:[%s6674_s1 + $0x94] sm:$0xf0]  ;;  %v3880_v61 = vld [vmem:[%s6674_s1 + $0x174] sm:$0xf] }
  0x91   : > { %1555 = vmatpush.bf16.msra.mxu0 %v5233_v63  ;;  %7088 = vst [vmem:[#allocation128_spill] sm:$0xff] %v5288_v29  ;;  %v5291_v63 = vor.u32 %v3860_v57, %v3537_v7  ;;  %v3637_v57 = vld [vmem:[%s6674_s1 + $0x1ac] sm:$0xf0]  ;;  %v5313_v7 = vor.u32 %v3863_v53, %v3543_v42  ;;  %v3850_v42 = vld [vmem:[%s6674_s1 + $0x84] sm:$0xf] }
  0x92   : > { %7091 = vst [vmem:[#allocation131_spill] sm:$0xff] %v5322_v41  ;;  %v5330_v53 = vor.u32 %v3885_v38, %v3637_v57  ;;  %v3888_v29 = vld [vmem:[%s6674_s1 + $0x1b0] sm:$0xf0]  ;;  %1455 = vmatmul.bf16.vlgmr.msrb.gmra.mxu1 %v5008_v22  ;;  %3707 = vmatmul.msk.bf16.vlgmr.msrb.gmra.mxu3 %vm810_vm2, %v5011_v13  ;;  %v3617_v12 = vld [vmem:[%s6674_s1 + $0x184] sm:$0xf0]  ;;  %v5366_v59 = vor.u32 %v3850_v42, %v3497_v8 }
  0x93   : > { %7089 = vst [vmem:[#allocation129_spill] sm:$0xff] %v5291_v63  ;;  %1491 = vmatmul.bf16.vlgmr.msrb.gmra.mxu0 %v5008_v22  ;;  %3709 = vmatmul.msk.bf16.vlgmr.msrb.gmra.mxu2 %vm810_vm2, %v5011_v13  ;;  %v3503_v38 = vld [vmem:[%s6674_s1 + $0x88] sm:$0xf]  ;;  %v3853_v57 = vld [vmem:[%s6674_s1 + $0x98] sm:$0xf0] }
  0x94   : > { %1520 = vmatpush.bf16.msra.mxu1 %v5261_v50  ;;  %7090 = vst [vmem:[#allocation130_spill] sm:$0xff] %v5313_v7  ;;  %v3858_v50 = vld [vmem:[%s6674_s1 + $0xc0] sm:$0xf0]  ;;  %1577 = vmatpush.bf16.msra.mxu2 %v5322_v41  ;;  %v3875_v42 = vld [vmem:[%s6674_s1 + $0x14c] sm:$0xf] }
  0x95   : > { %1556 = vmatpush.bf16.msra.mxu0 %v5270_v62  ;;  %v3523_v62 = vld [vmem:[%s6674_s1 + $0xb0] sm:$0xf]  ;;  %7092 = vst [vmem:[#allocation132_spill] sm:$0xff] %v5325_v14  ;;  %1542 = vmatpush.bf16.msra.mxu3 %v5330_v53  ;;  %v3597_v8 = vld [vmem:[%s6674_s1 + $0x15c] sm:$0xf0] }
  0x96   : > { %7093 = vst [vmem:[#allocation133_spill] sm:$0xff] %v5330_v53  ;;  %v5354_v2 = vor.u32 %v3858_v50, %v3523_v62  ;;  %v3845_v62 = vld [vmem:[%s6674_s1 + $0x5c] sm:$0xf]  ;;  %v5372_v50 = vor.u32 %v3880_v61, %v3617_v12  ;;  %v5390_v61 = vor.u32 %v3853_v57, %v3503_v38  ;;  %v3483_v12 = vld [vmem:[%s6674_s1 + $0x60] sm:$0xf]  ;;  %v5405_v38 = vor.u32 %v3875_v42, %v3597_v8 }
  0x97   : > { %7096 = vst [vmem:[#allocation136_spill] sm:$0xff] %v5366_v59  ;;  %v3848_v41 = vld [vmem:[%s6674_s1 + $0x70] sm:$0xf0]  ;;  %v3603_v57 = vld [vmem:[%s6674_s1 + $0x150] sm:$0xf] }
  0x98   : > { %1521 = vmatpush.bf16.msra.mxu1 %v5291_v63  ;;  %7094 = vst [vmem:[#allocation134_spill] sm:$0xff] %v5354_v2  ;;  %v5363_v63 = vor.u32 %v3888_v29, %v3643_v15  ;;  %v3883_v15 = vld [vmem:[%s6674_s1 + $0x188] sm:$0xf0]  ;;  %v3477_v29 = vld [vmem:[%s6674_s1 + $0x6c] sm:$0xf0] }
  0x99   : > { %1557 = vmatpush.bf16.msra.mxu0 %v5313_v7  ;;  %7097 = vst [vmem:[#allocation137_spill] sm:$0xff] %v5372_v50  ;;  %v3623_v7 = vld [vmem:[%s6674_s1 + $0x178] sm:$0xf]  ;;  %v5399_v53 = vor.u32 %v3845_v62, %v3477_v29  ;;  %1543 = vmatpush.bf16.msra.mxu3 %v5372_v50  ;;  %v3840_v62 = vld [vmem:[%s6674_s1 + $0x34] sm:$0xf]  ;;  %v5420_v29 = vor.u32 %v3848_v41, %v3483_v12 }
  0x9a   : > { %7095 = vst [vmem:[#allocation135_spill] sm:$0xff] %v5363_v63  ;;  %1578 = vmatpush.bf16.msra.mxu2 %v5363_v63  ;;  %v3835_v41 = vld [vmem:[%s6674_s1 + $0xc] sm:$0xf]  ;;  %v3437_v12 = vld [vmem:[%s6674_s1 + $0x1c] sm:$0xf0] }
  0x9c   : > { %1522 = vmatpush.bf16.msra.mxu1 %v5325_v14  ;;  %v5396_v14 = vor.u32 %v3883_v15, %v3623_v7  ;;  %v3878_v7 = vld [vmem:[%s6674_s1 + $0x160] sm:$0xf0]  ;;  %v3457_v15 = vld [vmem:[%s6674_s1 + $0x44] sm:$0xf0] }
  0x9d   : > { %1558 = vmatpush.bf16.msra.mxu0 %v5354_v2  ;;  %v5423_v42 = vor.u32 %v3878_v7, %v3603_v57  ;;  %v5426_v8 = vor.u32 %v3840_v62, %v3457_v15  ;;  %v3843_v2 = vld [vmem:[%s6674_s1 + $0x48] sm:$0xf0]  ;;  %1544 = vmatpush.bf16.msra.mxu3 %v5405_v38  ;;  %v5447_v7 = vor.u32 %v3835_v41, %v3437_v12  ;;  %v3443_v62 = vld [vmem:[%s6674_s1 + $0x10] sm:$0xf]  ;;  %v3838_v15 = vld [vmem:[%s6674_s1 + $0x20] sm:$0xf0] }
  0x9e   : > { %7098 = vst [vmem:[#allocation138_spill] sm:$0xff] %v5396_v14  ;;  %1579 = vmatpush.bf16.msra.mxu2 %v5396_v14 }
  0xa0   : > { %1523 = vmatpush.bf16.msra.mxu1 %v5366_v59  ;;  %v3463_v59 = vld [vmem:[%s6674_s1 + $0x38] sm:$0xf] }
  0xa1   : > { %1559 = vmatpush.bf16.msra.mxu0 %v5390_v61  ;;  %1728 = vmatpush.bf16.msrb.mxu3 %v4087_v25  ;;  %v5443_v57 = vor.u32 %v3843_v2, %v3463_v59  ;;  %v5463_v59 = vor.u32 %v3838_v15, %v3443_v62 }
  0xa2   : > { %1580 = vmatpush.bf16.msra.mxu2 %v5423_v42  ;;  %1460 = vmatmul.bf16.gmra.mxu1 %v5155_v33 }
  0xa3   : > { %3708 = vmatmul.msk.bf16.gmra.mxu3 %vm810_vm2, %v5157_v9  ;;  %1496 = vmatmul.bf16.gmra.mxu0 %v5155_v33  ;;  %7099 = vst [vmem:[#allocation139_spill] sm:$0xff] %v5463_v59 }
  0xa4   : > { %1524 = vmatpush.bf16.msra.mxu1 %v5399_v53  ;;  %3710 = vmatmul.msk.bf16.gmra.mxu2 %vm810_vm2, %v5157_v9 }
  0xa5   : > { %1560 = vmatpush.bf16.msra.mxu0 %v5420_v29  ;;  %1729 = vmatpush.bf16.msrb.mxu3 %v4094_v27 }
  0xa6   : > { %1764 = vmatpush.bf16.msrb.mxu2 %v4090_v26 }
  0xa8   : > { %1525 = vmatpush.bf16.msra.mxu1 %v5426_v8 }
  0xa9   : > { %1561 = vmatpush.bf16.msra.mxu0 %v5443_v57  ;;  %1730 = vmatpush.bf16.msrb.mxu3 %v4130_v39 }
  0xaa   : > { %1765 = vmatpush.bf16.msrb.mxu2 %v4096_v28 }
  0xac   : > { %1526 = vmatpush.bf16.msra.mxu1 %v5447_v7 }
  0xad   : > { %1562 = vmatpush.bf16.msra.mxu0 %v5463_v59  ;;  %1731 = vmatpush.bf16.msrb.mxu3 %v4166_v51  ;;  %v7172_v51 = vld [vmem:[#allocation109_spill] sm:$0xff] }
  0xae   : > { %1766 = vmatpush.bf16.msrb.mxu2 %v4132_v40 }
  0xaf   : > { %v860_v2 = vpop.f32.mrf.mxu1 }
  0xb0   : > { %1709 = vmatpush.bf16.msrb.mxu1 %v4034_v3  ;;  %v842_v41 = vpop.f32.mrf.mxu0 }
  0xb1   : > { %1745 = vmatpush.bf16.msrb.mxu0 %v4042_v6  ;;  %1732 = vmatpush.bf16.msrb.mxu3 %v4218_v4  ;;  %v5479_v12 = vadd.f32 %v860_v2, %v842_v41 }
  0xb2   : > { %1767 = vmatpush.bf16.msrb.mxu2 %v4168_v52  ;;  %1527 = vmatmul.bf16.vlgmr.msra.gmra.mxu1 %v5008_v22  ;;  %v7165_v52 = vld [vmem:[#allocation97_spill] sm:$0xff] }
  0xb3   : > { %3711 = vmatmul.msk.bf16.vlgmr.msra.gmra.mxu3 %vm810_vm2, %v5011_v13  ;;  %1563 = vmatmul.bf16.vlgmr.msra.gmra.mxu0 %v5008_v22 }
  0xb4   : > { %1710 = vmatpush.bf16.msrb.mxu1 %v4064_v17  ;;  %3713 = vmatmul.msk.bf16.vlgmr.msra.gmra.mxu2 %vm810_vm2, %v5011_v13  ;;  %v7169_v17 = vld [vmem:[#allocation100_spill] sm:$0xff] }
  0xb5   : > { %1746 = vmatpush.bf16.msrb.mxu0 %v4066_v18  ;;  %1733 = vmatpush.bf16.msrb.mxu3 %v4267_v23  ;;  %v896_v62 = vpop.f32.mrf.mxu3  ;;  %v7166_v18 = vld [vmem:[#allocation103_spill] sm:$0xff] }
  0xb6   : > { %1768 = vmatpush.bf16.msrb.mxu2 %v4220_v5  ;;  %v878_v15 = vpop.f32.mrf.mxu2 }
  0xb7   : > { %v5493_v2 = vadd.f32 %v896_v62, %v878_v15  ;;  %v862_v22 = vpop.f32.mrf.mxu1  ;;  %v3721_v62 = vld [vmem:[%s4292_s19 + $0x30] sm:$0xfe]  ;;  %v5509_v15 = vld [vmem:[%s4292_s19 + $0x48] sm:$0xff] }
  0xb8   : > { %1711 = vmatpush.bf16.msrb.mxu1 %v4106_v31  ;;  %v844_v41 = vpop.f32.mrf.mxu0 }
  0xb9   : > { %1747 = vmatpush.bf16.msrb.mxu0 %v4108_v32  ;;  %1734 = vmatpush.bf16.msrb.mxu3 %v4287_v37  ;;  %v5497_v13 = vadd.f32 %v862_v22, %v844_v41  ;;  %v3722_v37 = vld [vmem:[%s4292_s19 + $0x38] sm:$0xfe]  ;;  %v7155_v32 = vld [vmem:[#allocation96_spill] sm:$0xff] }
  0xba   : > { %1769 = vmatpush.bf16.msrb.mxu2 %v4269_v24  ;;  %v5504_v24 = vld [vmem:[%s4292_s19 + $0x40] sm:$0xff] }
  0xbc   : > { %1712 = vmatpush.bf16.msrb.mxu1 %v4142_v43 }
  0xbd   : > { %1748 = vmatpush.bf16.msrb.mxu0 %v4144_v44  ;;  %1800 = vmatpush.bf16.msra.mxu3 %v4348_v20  ;;  %v898_v22 = vpop.f32.mrf.mxu3  ;;  %v3724_v44 = vld [vmem:[%s4292_s19 + $0x58] sm:$0x7] }
  0xbe   : > { %1770 = vmatpush.bf16.msrb.mxu2 %v4303_v45  ;;  %v880_v41 = vpop.f32.mrf.mxu2  ;;  %v1667_v45 = vpack.c.bf16 %v5504_v24, %v3721_v62 }
  0xbf   : > { %v865_v20 = vpop.f32.mrf.mxu1 }
  0xc0   : > { %1713 = vmatpush.bf16.msrb.mxu1 %v4182_v55  ;;  %v1668_v55 = vpack.c.bf16 %v5509_v15, %v3722_v37  ;;  %v5533_v37 = vpack.c.bf16 %v3724_v44, %v3724_v44 }
  0xc1   : > { %1749 = vmatpush.bf16.msrb.mxu0 %v4184_v56  ;;  %1801 = vmatpush.bf16.msra.mxu3 %v4379_v54  ;;  %v3723_v56 = vld [vmem:[%s4292_s19 + $0x50] sm:$0x7]  ;;  %v7100_v54 = vld [vmem:[#allocation29_spill] sm:$0xff] }
  0xc2   : > { %1836 = vmatpush.bf16.msra.mxu2 %v4358_v30  ;;  %v5516_v30 = vadd.f32 %v898_v22, %v880_v41  ;;  %1532 = vmatmul.bf16.gmra.mxu1 %v5155_v33  ;;  %v5528_v62 = vpack.c.bf16 %v3723_v56, %v3723_v56  ;;  %v1674_v22 = vshll.u32 %v1667_v45, 16  ;;  %v1686_v41 = vshll.u32 %v1668_v55, 16 }
  0xc3   : > { %3712 = vmatmul.msk.bf16.gmra.mxu3 %vm810_vm2, %v5157_v9  ;;  %1568 = vmatmul.bf16.gmra.mxu0 %v5155_v33 }
  0xc4   : > { %1714 = vmatpush.bf16.msrb.mxu1 %v4234_v10  ;;  %v847_v10 = vpop.f32.mrf.mxu0  ;;  %3714 = vmatmul.msk.bf16.gmra.mxu2 %vm810_vm2, %v5157_v9  ;;  %v1679_v33 = vshll.u32 %v5528_v62, 16  ;;  %v7101_v9 = vld [vmem:[#allocation39_spill] sm:$0xff] }
  0xc5   : > { %1750 = vmatpush.bf16.msrb.mxu0 %v4236_v11  ;;  %v5522_v23 = vadd.f32 %v865_v20, %v847_v10  ;;  %1802 = vmatpush.bf16.msra.mxu3 %v4427_v19  ;;  %v901_v10 = vpop.f32.mrf.mxu3  ;;  %v1672_v20 = vshrl.u32 %v1667_v45, 16  ;;  %v1691_v19 = vshll.u32 %v5533_v37, 16  ;;  %v7104_v45 = vld [vmem:[#allocation34_spill] sm:$0xff] }
  0xc6   : > { %1837 = vmatpush.bf16.msra.mxu2 %v4393_v1  ;;  %v883_v56 = vpop.f32.mrf.mxu2  ;;  %v1676_v1 = vrot.slane %v1674_v22, 1  ;;  %v7105_v22 = vld [vmem:[#allocation43_spill] sm:$0xff] }
  0xc7   : > { %v5542_v44 = vadd.f32 %v901_v10, %v883_v56  ;;  %v7106_v10 = vld [vmem:[#allocation45_spill] sm:$0xff]  ;;  %v7108_v56 = vld [vmem:[#allocation38_spill] sm:$0xff] }
  0xc8   : > { %1715 = vmatpush.bf16.msrb.mxu1 %v4280_v34  ;;  %v1688_v34 = vrot.slane %v1686_v41, 1  ;;  %v1677_v43 = vor.u32 %v1676_v1, %v1672_v20  ;;  %v7114_v20 = vld [vmem:[#allocation44_spill] sm:$0xff] }
  0xc9   : > { %1751 = vmatpush.bf16.msrb.mxu0 %v4282_v35  ;;  %v867_v35 = vpop.f32.mrf.mxu1 }
  0xca   : > { %1838 = vmatpush.bf16.msra.mxu2 %v7101_v9  ;;  %v1693_v9 = vrot.slane %v1691_v19, 1  ;;  %v7113_v19 = vld [vmem:[#allocation51_spill] sm:$0xff] }
  0xcc   : > { %1716 = vmatpush.bf16.msrb.mxu1 %v4305_v46  ;;  %v1684_v46 = vshrl.u32 %v1668_v55, 16  ;;  %v849_v11 = vpop.f32.mrf.mxu0  ;;  %v7107_v55 = vld [vmem:[#allocation36_spill] sm:$0xff] }
  0xcd   : > { %1752 = vmatpush.bf16.msrb.mxu0 %v4307_v47  ;;  %v7102_v47 = vld [vmem:[#allocation41_spill] sm:$0xff]  ;;  %v903_v35 = vpop.f32.mrf.mxu3  ;;  %v7109_v11 = vld [vmem:[#allocation47_spill] sm:$0xff] }
  0xce   : > { %1803 = vmatpush.bf16.msra.mxu3 %v7102_v47  ;;  %1839 = vmatpush.bf16.msra.mxu2 %v7105_v22  ;;  %v1689_v5 = vor.u32 %v1688_v34, %v1684_v46  ;;  %v885_v41 = vpop.f32.mrf.mxu2  ;;  %v7110_v34 = vld [vmem:[#allocation49_spill] sm:$0xff]  ;;  %v7111_v46 = vld [vmem:[#allocation40_spill] sm:$0xff] }
  0xcf   : > { %v7115_v41 = vld [vmem:[#allocation56_spill] sm:$0xff] }
  0xd0   : > { %1781 = vmatpush.bf16.msra.mxu1 %v4329_v0  ;;  %v7103_v0 = vld [vmem:[#allocation32_spill] sm:$0xff]  ;;  %v5557_v22 = vsel %vm400_vm1, %v1689_v5, %v1693_v9 }
  0xd1   : > { %1817 = vmatpush.bf16.msra.mxu0 %v7100_v54  ;;  %v1681_v54 = vrot.slane %v1679_v33, 1  ;;  %v914_v47 = vpop.f32.mrf.mxu1 }
  0xd2   : > { %1804 = vmatpush.bf16.msra.mxu3 %v7106_v10  ;;  %1840 = vmatpush.bf16.msra.mxu2 %v7109_v11  ;;  %v7117_v10 = vld [vmem:[#allocation55_spill] sm:$0xff] }
  0xd3   : > { %3725 = vmatmul.msk.bf16.vlgmr.msrb.gmra.mxu3 %vm810_vm2, %v5557_v22 }
  0xd4   : > { %1782 = vmatpush.bf16.msra.mxu1 %v7103_v0  ;;  %v5554_v0 = vsel %vm400_vm1, %v1677_v43, %v1681_v54  ;;  %v950_v1 = vpop.f32.mrf.mxu0  ;;  %3727 = vmatmul.msk.bf16.vlgmr.msrb.gmra.mxu2 %vm810_vm2, %v5557_v22  ;;  %v7112_v43 = vld [vmem:[#allocation42_spill] sm:$0xff] }
  0xd5   : > { %1818 = vmatpush.bf16.msra.mxu0 %v7104_v45  ;;  %1717 = vmatmul.bf16.vlgmr.msrb.gmra.mxu1 %v5554_v0  ;;  %v932_v5 = vpop.f32.mrf.mxu3  ;;  %v7125_v45 = vld [vmem:[#allocation54_spill] sm:$0xff] }
  0xd6   : > { %1805 = vmatpush.bf16.msra.mxu3 %v7110_v34  ;;  %1753 = vmatmul.bf16.vlgmr.msrb.gmra.mxu0 %v5554_v0  ;;  %v5571_v33 = vadd.f32 %v932_v5, %v914_v47  ;;  %v968_v35 = vpop.f32.mrf.mxu2  ;;  %v1698_v47 = vshrl.u32 %v5533_v37, 16  ;;  %v7120_v5 = vld [vmem:[#allocation62_spill] sm:$0xff] }
  0xd7   : > { %1841 = vmatpush.bf16.msra.mxu2 %v7113_v19  ;;  %v5574_v34 = vadd.f32 %v968_v35, %v950_v1  ;;  %v7119_v19 = vld [vmem:[#allocation57_spill] sm:$0xff]  ;;  %v7122_v35 = vld [vmem:[#allocation52_spill] sm:$0xff] }
  0xd8   : > { %1783 = vmatpush.bf16.msra.mxu1 %v7107_v55 }
  0xd9   : > { %1819 = vmatpush.bf16.msra.mxu0 %v7108_v56  ;;  %v7116_v56 = vld [vmem:[#allocation46_spill] sm:$0xff] }
  0xda   : > { %1806 = vmatpush.bf16.msra.mxu3 %v4600_v16  ;;  %v7121_v16 = vld [vmem:[#allocation50_spill] sm:$0xff] }
  0xdb   : > { %1842 = vmatpush.bf16.msra.mxu2 %v7117_v10 }
  0xdc   : > { %1784 = vmatpush.bf16.msra.mxu1 %v7111_v46  ;;  %v916_v46 = vpop.f32.mrf.mxu1  ;;  %v952_v11 = vpop.f32.mrf.mxu0 }
  0xdd   : > { %1820 = vmatpush.bf16.msra.mxu0 %v7112_v43  ;;  %v7118_v43 = vld [vmem:[#allocation48_spill] sm:$0xff]  ;;  %v934_v1 = vpop.f32.mrf.mxu3 }
  0xde   : > { %1872 = vmatpush.bf16.msrb.mxu3 %v7115_v41  ;;  %v7123_v41 = vld [vmem:[#allocation63_spill] sm:$0xff]  ;;  %v970_v10 = vpop.f32.mrf.mxu2 }
  0xdf   : > { %1914 = vmatpush.bf16.msrb.mxu2 %v7119_v19  ;;  %v7124_v19 = vld [vmem:[#allocation66_spill] sm:$0xff] }
  0xe0   : > { %1785 = vmatpush.bf16.msra.mxu1 %v7114_v20  ;;  %v1695_v20 = vshrl.u32 %v5528_v62, 16  ;;  %v5593_v62 = vadd.f32 %v970_v10, %v952_v11  ;;  %v7130_v11 = vld [vmem:[#allocation61_spill] sm:$0xff] }
  0xe1   : > { %1821 = vmatpush.bf16.msra.mxu0 %v7116_v56  ;;  %v5586_v56 = vadd.f32 %v934_v1, %v916_v46  ;;  %v7131_v46 = vld [vmem:[#allocation70_spill] sm:$0xff]  ;;  %v7132_v1 = vld [vmem:[#allocation72_spill] sm:$0xff] }
  0xe2   : > { %1873 = vmatpush.bf16.msrb.mxu3 %v7120_v5  ;;  %v5588_v55 = vor.u32 %v1695_v20, %v1681_v54  ;;  %v7128_v54 = vld [vmem:[#allocation59_spill] sm:$0xff] }
  0xe3   : > { %1915 = vmatpush.bf16.msrb.mxu2 %v7123_v41 }
  0xe4   : > { %1786 = vmatpush.bf16.msra.mxu1 %v7118_v43  ;;  %v5590_v43 = vor.u32 %v1698_v47, %v1693_v9  ;;  %v919_v37 = vpop.f32.mrf.mxu1  ;;  %v955_v5 = vpop.f32.mrf.mxu0  ;;  %v7129_v9 = vld [vmem:[#allocation60_spill] sm:$0xff] }
  0xe5   : > { %1822 = vmatpush.bf16.msra.mxu0 %v7121_v16  ;;  %v7126_v16 = vld [vmem:[#allocation58_spill] sm:$0xff]  ;;  %1722 = vmatmul.bf16.gmra.mxu1 %v5588_v55  ;;  %v937_v10 = vpop.f32.mrf.mxu3 }
  0xe6   : > { %1874 = vmatpush.bf16.msrb.mxu3 %v7124_v19  ;;  %1758 = vmatmul.bf16.gmra.mxu0 %v5588_v55  ;;  %v5608_v20 = vadd.f32 %v937_v10, %v919_v37  ;;  %v973_v47 = vpop.f32.mrf.mxu2  ;;  %v7139_v37 = vld [vmem:[#allocation69_spill] sm:$0xff] }
  0xe7   : > { %3726 = vmatmul.msk.bf16.gmra.mxu3 %vm810_vm2, %v5590_v43  ;;  %3728 = vmatmul.msk.bf16.gmra.mxu2 %vm810_vm2, %v5590_v43 }
  0xe8   : > { %1787 = vmatpush.bf16.msra.mxu1 %v7122_v35  ;;  %v7127_v35 = vld [vmem:[#allocation68_spill] sm:$0xff] }
  0xe9   : > { %1823 = vmatpush.bf16.msra.mxu0 %v7125_v45  ;;  %1916 = vmatpush.bf16.msrb.mxu2 %v7127_v35  ;;  %v5611_v35 = vadd.f32 %v973_v47, %v955_v5  ;;  %v7135_v45 = vld [vmem:[#allocation65_spill] sm:$0xff]  ;;  %v7140_v5 = vld [vmem:[#allocation80_spill] sm:$0xff]  ;;  %v7141_v47 = vld [vmem:[#allocation71_spill] sm:$0xff] }
  0xea   : > { %1875 = vmatpush.bf16.msrb.mxu3 %v7131_v46 }
  0xeb   : > { %7133 = vst [vmem:[#allocation140_spill] sm:$0xff] %v5611_v35  ;;  %v7167_v35 = vld [vmem:[#allocation98_spill] sm:$0xff] }
  0xec   : > { %1788 = vmatpush.bf16.msra.mxu1 %v7126_v16  ;;  %v921_v19 = vpop.f32.mrf.mxu1  ;;  %v957_v41 = vpop.f32.mrf.mxu0  ;;  %v7134_v16 = vld [vmem:[#allocation64_spill] sm:$0xff] }
  0xed   : > { %1824 = vmatpush.bf16.msra.mxu0 %v7128_v54  ;;  %1917 = vmatpush.bf16.msrb.mxu2 %v7132_v1  ;;  %v7136_v54 = vld [vmem:[#allocation74_spill] sm:$0xff]  ;;  %v939_v46 = vpop.f32.mrf.mxu3  ;;  %v7142_v1 = vld [vmem:[#allocation73_spill] sm:$0xff] }
  0xee   : > { %1876 = vmatpush.bf16.msrb.mxu3 %v7136_v54  ;;  %v975_v10 = vpop.f32.mrf.mxu2  ;;  %v7143_v54 = vld [vmem:[#allocation82_spill] sm:$0xff]  ;;  %v7144_v46 = vld [vmem:[#allocation75_spill] sm:$0xff] }
  0xef   : > { %v7145_v10 = vld [vmem:[#allocation84_spill] sm:$0xff] }
  0xf0   : > { %1853 = vmatpush.bf16.msrb.mxu1 %v7129_v9  ;;  %v7137_v9 = vld [vmem:[#allocation76_spill] sm:$0xff] }
  0xf1   : > { %1895 = vmatpush.bf16.msrb.mxu0 %v7130_v11  ;;  %1918 = vmatpush.bf16.msrb.mxu2 %v7137_v9  ;;  %v7138_v11 = vld [vmem:[#allocation67_spill] sm:$0xff]  ;;  %v7147_v9 = vld [vmem:[#allocation85_spill] sm:$0xff] }
  0xf2   : > { %1877 = vmatpush.bf16.msrb.mxu3 %v4828_v21  ;;  %v7146_v21 = vld [vmem:[#allocation77_spill] sm:$0xff] }
  0xf4   : > { %1854 = vmatpush.bf16.msrb.mxu1 %v7134_v16  ;;  %v5621_v19 = vpop.f32.mrf.mxu1  ;;  %v1420_v41 = vpop.f32.mrf.mxu0  ;;  %v7154_v16 = vld [vmem:[#allocation95_spill] sm:$0xff] }
  0xf5   : > { %1896 = vmatpush.bf16.msrb.mxu0 %v7135_v45  ;;  %1919 = vmatpush.bf16.msrb.mxu2 %v7140_v5  ;;  %v5634_v5 = vpop.f32.mrf.mxu3  ;;  %v7150_v45 = vld [vmem:[#allocation81_spill] sm:$0xff] }
  0xf6   : > { %1878 = vmatpush.bf16.msrb.mxu3 %v7143_v54  ;;  %1789 = vmatmul.bf16.vlgmr.msra.gmra.mxu1 %v5554_v0  ;;  %v1438_v54 = vpop.f32.mrf.mxu2 }
  0xf7   : > { %3729 = vmatmul.msk.bf16.vlgmr.msra.gmra.mxu3 %vm810_vm2, %v5557_v22  ;;  %1825 = vmatmul.bf16.vlgmr.msra.gmra.mxu0 %v5554_v0 }
  0xf8   : > { %1855 = vmatpush.bf16.msrb.mxu1 %v7138_v11  ;;  %3731 = vmatmul.msk.bf16.vlgmr.msra.gmra.mxu2 %vm810_vm2, %v5557_v22  ;;  %v7149_v11 = vld [vmem:[#allocation79_spill] sm:$0xff] }
  0xf9   : > { %1897 = vmatpush.bf16.msrb.mxu0 %v7139_v37  ;;  %1920 = vmatpush.bf16.msrb.mxu2 %v7145_v10  ;;  %v7151_v10 = vld [vmem:[#allocation91_spill] sm:$0xff] }
  0xfa   : > { %1950 = vmatpush.bf16.msra.mxu3 %v7147_v9  ;;  %v7153_v9 = vld [vmem:[#allocation87_spill] sm:$0xff] }
  0xfc   : > { %1856 = vmatpush.bf16.msrb.mxu1 %v7141_v47  ;;  %v5639_v47 = vpop.f32.mrf.mxu1  ;;  %v5641_v37 = vpop.f32.mrf.mxu0 }
  0xfd   : > { %1898 = vmatpush.bf16.msrb.mxu0 %v7142_v1  ;;  %v7148_v1 = vld [vmem:[#allocation86_spill] sm:$0xff] }
  0xfe   : > { %1986 = vmatpush.bf16.msra.mxu2 %v7148_v1  ;;  %1951 = vmatpush.bf16.msra.mxu3 %v4935_v60  ;;  %v5652_v1 = vpop.f32.mrf.mxu2  ;;  %v7158_v60 = vld [vmem:[#allocation92_spill] sm:$0xff] }
 0x100   : > { %1857 = vmatpush.bf16.msrb.mxu1 %v7144_v46  ;;  %v7152_v46 = vld [vmem:[#allocation83_spill] sm:$0xff] }
 0x101   : > { %1899 = vmatpush.bf16.msrb.mxu0 %v7146_v21  ;;  %v5648_v21 = vpop.f32.mrf.mxu3 }
 0x102   : > { %1987 = vmatpush.bf16.msra.mxu2 %v7151_v10  ;;  %1952 = vmatpush.bf16.msra.mxu3 %v7154_v16  ;;  %v7159_v10 = vld [vmem:[#allocation89_spill] sm:$0xff]  ;;  %v7161_v16 = vld [vmem:[#allocation99_spill] sm:$0xff] }
 0x104   : > { %1858 = vmatpush.bf16.msrb.mxu1 %v7149_v11  ;;  %v5655_v4 = vpop.f32.mrf.mxu1  ;;  %v5657_v11 = vpop.f32.mrf.mxu0 }
 0x105   : > { %1900 = vmatpush.bf16.msrb.mxu0 %v7150_v45  ;;  %7156 = vst [vmem:[#allocation141_spill] sm:$0xff] %v5655_v4  ;;  %v7157_v45 = vld [vmem:[#allocation88_spill] sm:$0xff]  ;;  %v7168_v4 = vld [vmem:[#allocation105_spill] sm:$0xff] }
 0x106   : > { %1988 = vmatpush.bf16.msra.mxu2 %v7155_v32  ;;  %1794 = vmatmul.bf16.gmra.mxu1 %v5588_v55  ;;  %v7160_v32 = vld [vmem:[#allocation93_spill] sm:$0xff] }
 0x107   : > { %3730 = vmatmul.msk.bf16.gmra.mxu3 %vm810_vm2, %v5590_v43  ;;  %1830 = vmatmul.bf16.gmra.mxu0 %v5588_v55 }
 0x108   : > { %1859 = vmatpush.bf16.msrb.mxu1 %v7152_v46  ;;  %3732 = vmatmul.msk.bf16.gmra.mxu2 %vm810_vm2, %v5590_v43 }
 0x109   : > { %1901 = vmatpush.bf16.msrb.mxu0 %v7153_v9  ;;  %1953 = vmatpush.bf16.msra.mxu3 %v7161_v16  ;;  %v5674_v9 = vpop.f32.mrf.mxu2  ;;  %v3715_v16 = vld [vmem:[%s4292_s19 + $0x30] sm:$0xff] }
 0x10c   : > { %1860 = vmatpush.bf16.msrb.mxu1 %v7157_v45  ;;  %v5670_v45 = vpop.f32.mrf.mxu3  ;;  %v993_v46 = vpop.f32.mrf.mxu1 }
 0x10d   : > { %1902 = vmatpush.bf16.msrb.mxu0 %v7158_v60  ;;  %7162 = vst [vmem:[#allocation142_spill] sm:$0xff] %v5670_v45  ;;  %v7163_v60 = vld [vmem:[#allocation94_spill] sm:$0xff]  ;;  %v1427_v31 = vpop.f32.mrf.mxu0  ;;  %1954 = vmatpush.bf16.msra.mxu3 %v7166_v18  ;;  %v7170_v45 = vld [vmem:[#allocation107_spill] sm:$0xff] }
 0x10e   : > { %v5692_v18 = vld [vmem:[%s6676_s3] sm:$0x1f] }
 0x110   : > { %1931 = vmatpush.bf16.msra.mxu1 %v7159_v10  ;;  %v7164_v10 = vld [vmem:[#allocation101_spill] sm:$0xff] }
 0x111   : > { %1967 = vmatpush.bf16.msra.mxu0 %v7160_v32  ;;  %1989 = vmatpush.bf16.msra.mxu2 %v7164_v10  ;;  %v3716_v32 = vld [vmem:[%s4292_s19 + $0x38] sm:$0xff]  ;;  %v7171_v10 = vld [vmem:[#allocation102_spill] sm:$0xff]  ;;  %v1445_v31 = vpop.f32.mrf.mxu2 }
 0x112   : > { %1955 = vmatpush.bf16.msra.mxu3 %v7170_v45  ;;  %v5687_v46 = vpack.c.bf16 %v5509_v15, %v3716_v32  ;;  %v1421_v45 = vadd.f32 %v1420_v41, %v5479_v12  ;;  %v7175_v31 = vld [vmem:[#allocation106_spill] sm:$0xff]  ;;  %v7176_v32 = vld [vmem:[#allocation113_spill] sm:$0xff]  ;;  %v7177_v12 = vld [vmem:[#allocation108_spill] sm:$0xff] }
 0x114   : > { %1932 = vmatpush.bf16.msra.mxu1 %v7163_v60  ;;  %v1011_v60 = vpop.f32.mrf.mxu3  ;;  %v1439_v15 = vadd.f32 %v1438_v54, %v1421_v45  ;;  %v7178_v54 = vld [vmem:[#allocation110_spill] sm:$0xff] }
 0x115   : > { %1968 = vmatpush.bf16.msra.mxu0 %v7165_v52  ;;  %1990 = vmatpush.bf16.msra.mxu2 %v7168_v4  ;;  %v1456_v4 = vpop.f32.mrf.mxu1  ;;  %v5698_v60 = vpop.f32.mrf.mxu0 }
 0x116   : > { %1861 = vmatmul.bf16.vlgmr.msrb.gmra.mxu1 %v5554_v0 }
 0x117   : > { %3733 = vmatmul.msk.bf16.vlgmr.msrb.gmra.mxu3 %vm810_vm2, %v5557_v22 }
 0x118   : > { %1933 = vmatpush.bf16.msra.mxu1 %v7167_v35  ;;  %v5695_v35 = vpack.c.bf16 %v5504_v24, %v3715_v16  ;;  %3735 = vmatmul.msk.bf16.vlgmr.msrb.gmra.mxu2 %vm810_vm2, %v5687_v46  ;;  %v1457_v24 = vadd.f32 %v1456_v4, %v5493_v2  ;;  %v5715_v16 = vperm.slane %v5692_v18, 1  ;;  %v1423_v2 = vadd.f32 %v5641_v37, %v5497_v13 }
 0x119   : > { %1969 = vmatpush.bf16.msra.mxu0 %v7169_v17  ;;  %1991 = vmatpush.bf16.msra.mxu2 %v7172_v51  ;;  %v7174_v51 = vld [vmem:[#allocation111_spill] sm:$0xff]  ;;  %v5705_v17 = vperm.slane %v5692_v18, 0  ;;  %v5722_v41 = vpop.f32.mrf.mxu2 }
 0x11a   : > { %1956 = vmatpush.bf16.msra.mxu3 %v7174_v51  ;;  %1903 = vmatmul.bf16.vlgmr.msrb.gmra.mxu0 %v5695_v35  ;;  %v7179_v51 = vld [vmem:[#allocation112_spill] sm:$0xff] }
 0x11b   : > { %v1602_v0 = vadd.f32 %v5705_v17, %v1439_v15  ;;  %v7180_v15 = vld [vmem:[#allocation123_spill] sm:$0xff] }
 0x11c   : > { %1934 = vmatpush.bf16.msra.mxu1 %v7171_v10  ;;  %v7173_v10 = vld [vmem:[#allocation104_spill] sm:$0xff]  ;;  %v1474_v45 = vpop.f32.mrf.mxu3 }
 0x11d   : > { %1970 = vmatpush.bf16.msra.mxu0 %v7173_v10  ;;  %1992 = vmatpush.bf16.msra.mxu2 %v7176_v32  ;;  %v1475_v22 = vadd.f32 %v1474_v45, %v1457_v24  ;;  %v1458_v4 = vpop.f32.mrf.mxu1  ;;  %v1617_v24 = vmax.f32 %v1602_v0, 0.0  ;;  %v1441_v45 = vadd.f32 %v5652_v1, %v1423_v2  ;;  %v7183_v0 = vld [vmem:[#allocation118_spill] sm:$0xff]  ;;  %v7184_v1 = vld [vmem:[#allocation127_spill] sm:$0xff] }
 0x11e   : > { %2022 = vmatpush.bf16.msrb.mxu3 %v5183_v36  ;;  %v5728_v36 = vpop.f32.mrf.mxu0  ;;  %v1459_v37 = vadd.f32 %v1458_v4, %v5516_v30 }
 0x11f   : > { %v1603_v32 = vadd.f32 %v5715_v16, %v1475_v22  ;;  %v3719_v22 = vld [vmem:[%s4292_s19 + $0x50] sm:$0x3] }
 0x120   : > { %1935 = vmatpush.bf16.msra.mxu1 %v7175_v31  ;;  %v5752_v4 = vpack.c.bf16 %v3719_v22, %v3719_v22 }
 0x121   : > { %1971 = vmatpush.bf16.msra.mxu0 %v7177_v12  ;;  %2058 = vmatpush.bf16.msrb.mxu2 %v5198_v58  ;;  %v1618_v58 = vmax.f32 %v1603_v32, 0.0  ;;  %v1607_v32 = vadd.f32 %v5705_v17, %v1441_v45  ;;  %v7187_v45 = vld [vmem:[#allocation128_spill] sm:$0xff] }
 0x122   : > { %2023 = vmatpush.bf16.msrb.mxu3 %v5219_v49  ;;  %v7181_v49 = vld [vmem:[#allocation115_spill] sm:$0xff] }
 0x123   : > { %v1632_v13 = vpack.c.bf16 %v1618_v58, %v1617_v24  ;;  %v7185_v58 = vld [vmem:[#allocation121_spill] sm:$0xff] }
 0x124   : > { %1936 = vmatpush.bf16.msra.mxu1 %v7178_v54  ;;  %v5749_v54 = vpop.f32.mrf.mxu2 }
 0x125   : > { %1972 = vmatpush.bf16.msra.mxu0 %v7179_v51  ;;  %2059 = vmatpush.bf16.msrb.mxu2 %v7180_v15  ;;  %v3720_v51 = vld [vmem:[%s4292_s19 + $0x58] sm:$0x3]  ;;  %v1476_v15 = vpop.f32.mrf.mxu3  ;;  %1641 = vst [vmem:[%s5738_s17] sm:$0xff] %v1632_v13  ;;  %v1461_v30 = vpop.f32.mrf.mxu1  ;;  %v7189_v13 = vld [vmem:[#allocation131_spill] sm:$0xff] }
 0x126   : > { %v1477_v2 = vadd.f32 %v1476_v15, %v1459_v37  ;;  %v5754_v24 = vpack.c.bf16 %v3720_v51, %v3720_v51  ;;  %v7188_v15 = vld [vmem:[#allocation122_spill] sm:$0xff]  ;;  %v1622_v37 = vmax.f32 %v1607_v32, 0.0  ;;  %1866 = vmatmul.bf16.gmra.mxu1 %v5588_v55 }
 0x127   : > { %3734 = vmatmul.msk.bf16.gmra.mxu3 %vm810_vm2, %v5590_v43 }
 0x128   : > { %1937 = vmatpush.bf16.msra.mxu1 %v5166_v48  ;;  %v7182_v48 = vld [vmem:[#allocation124_spill] sm:$0xff]  ;;  %3736 = vmatmul.msk.bf16.gmra.mxu2 %vm810_vm2, %v5754_v24 }
 0x129   : > { %1973 = vmatpush.bf16.msra.mxu0 %v7181_v49  ;;  %2024 = vmatpush.bf16.msrb.mxu3 %v7182_v48  ;;  %v1426_v48 = vadd.f32 %v5657_v11, %v5522_v23  ;;  %v5759_v49 = vpop.f32.mrf.mxu0  ;;  %v1462_v11 = vadd.f32 %v1461_v30, %v5542_v44  ;;  %v7193_v30 = vld [vmem:[#allocation129_spill] sm:$0xff] }
 0x12a   : > { %2060 = vmatpush.bf16.msrb.mxu2 %v7184_v1  ;;  %v7186_v1 = vld [vmem:[#allocation120_spill] sm:$0xff]  ;;  %1908 = vmatmul.bf16.gmra.mxu0 %v5752_v4 }
 0x12b   : > { %v1444_v51 = vadd.f32 %v5674_v9, %v1426_v48  ;;  %v7192_v48 = vld [vmem:[#allocation126_spill] sm:$0xff] }
 0x12c   : > { %1938 = vmatpush.bf16.msra.mxu1 %v7183_v0  ;;  %v1608_v0 = vadd.f32 %v5715_v16, %v1477_v2  ;;  %v7190_v2 = vld [vmem:[#allocation125_spill] sm:$0xff]  ;;  %v5779_v9 = vpop.f32.mrf.mxu2 }
 0x12d   : > { %1974 = vmatpush.bf16.msra.mxu0 %v7186_v1  ;;  %2025 = vmatpush.bf16.msrb.mxu3 %v7187_v45  ;;  %v1479_v32 = vpop.f32.mrf.mxu3  ;;  %v1612_v55 = vadd.f32 %v5705_v17, %v1444_v51 }
 0x12e   : > { %2061 = vmatpush.bf16.msrb.mxu2 %v7189_v13  ;;  %v1623_v22 = vmax.f32 %v1608_v0, 0.0  ;;  %v7191_v13 = vld [vmem:[#allocation133_spill] sm:$0xff]  ;;  %v1480_v43 = vadd.f32 %v1479_v32, %v1462_v11  ;;  %v1463_v0 = vpop.f32.mrf.mxu1  ;;  %v7196_v32 = vld [vmem:[#allocation134_spill] sm:$0xff] }
 0x130   : > { %2003 = vmatpush.bf16.msrb.mxu1 %v7185_v58  ;;  %v1635_v23 = vpack.c.bf16 %v1623_v22, %v1622_v37  ;;  %v1613_v37 = vadd.f32 %v5715_v16, %v1480_v43  ;;  %v7194_v22 = vld [vmem:[#allocation130_spill] sm:$0xff] }
 0x131   : > { %2039 = vmatpush.bf16.msrb.mxu0 %v7188_v15  ;;  %2026 = vmatpush.bf16.msrb.mxu3 %v7191_v13  ;;  %v1499_v44 = vpop.f32.mrf.mxu0 }
 0x132   : > { %2062 = vmatpush.bf16.msrb.mxu2 %v5363_v63  ;;  %1645 = vst [vmem:[%s5738_s17 + $0x14] sm:$0xff] %v1635_v23  ;;  %v1627_v63 = vmax.f32 %v1612_v55, 0.0  ;;  %v1628_v13 = vmax.f32 %v1613_v37, 0.0  ;;  %v7195_v23 = vld [vmem:[#allocation132_spill] sm:$0xff]  ;;  %v1493_v44 = vadd.f32 %v5698_v60, %v5571_v33  ;;  %v1005_v55 = vadd.f32 %v5634_v5, %v5621_v19 }
 0x133   : > { %v5809_v60 = vperm.slane %v5692_v18, 3 }
 0x134   : > { %2004 = vmatpush.bf16.msrb.mxu1 %v7190_v2  ;;  %v1638_v51 = vpack.c.bf16 %v1628_v13, %v1627_v63  ;;  %v1517_v43 = vpop.f32.mrf.mxu2  ;;  %v1511_v63 = vadd.f32 %v5722_v41, %v1493_v44  ;;  %v5797_v13 = vperm.slane %v5692_v18, 2 }
 0x135   : > { %2040 = vmatpush.bf16.msrb.mxu0 %v7192_v48  ;;  %2027 = vmatpush.bf16.msrb.mxu3 %v5372_v50  ;;  %v1481_v11 = vpop.f32.mrf.mxu3  ;;  %7199 = vst [vmem:[#allocation128_spill] sm:$0xff] %v5809_v60 }
 0x136   : > { %2063 = vmatpush.bf16.msrb.mxu2 %v5396_v14  ;;  %1648 = vst [vmem:[%s5738_s17 + $0x28] sm:$0x11] %v1638_v51  ;;  %v1528_v0 = vpop.f32.mrf.mxu1  ;;  %v7197_v14 = vld [vmem:[#allocation136_spill] sm:$0xff]  ;;  %1939 = vmatmul.bf16.vlgmr.msra.gmra.mxu1 %v5695_v35  ;;  %v5814_v51 = vperm.slane %v5692_v18, 4  ;;  %v1604_v5 = vadd.f32 %v5797_v13, %v1511_v63 }
 0x137   : > { %7198 = vst [vmem:[#allocation120_spill] sm:$0xff] %v5797_v13  ;;  %3737 = vmatmul.msk.bf16.vlgmr.msra.gmra.mxu3 %vm810_vm2, %v5687_v46  ;;  %v1529_v33 = vadd.f32 %v1528_v0, %v5574_v34  ;;  %v1495_v0 = vadd.f32 %v5728_v36, %v5586_v56  ;;  %v1007_v36 = vadd.f32 %v5648_v21, %v5639_v47 }
 0x138   : > { %2005 = vmatpush.bf16.msrb.mxu1 %v7193_v30  ;;  %3739 = vmatmul.msk.bf16.vlgmr.msra.gmra.mxu2 %vm810_vm2, %v5687_v46  ;;  %7200 = vst [vmem:[#allocation125_spill] sm:$0xff] %v5814_v51  ;;  %v1619_v63 = vmax.f32 %v1604_v5, 0.0 }
 0x139   : > { %2041 = vmatpush.bf16.msrb.mxu0 %v7194_v22  ;;  %2028 = vmatpush.bf16.msrb.mxu3 %v5405_v38  ;;  %v1564_v50 = vpop.f32.mrf.mxu0 }
 0x13a   : > { %2064 = vmatpush.bf16.msrb.mxu2 %v5423_v42  ;;  %1975 = vmatmul.bf16.vlgmr.msra.gmra.mxu0 %v5695_v35  ;;  %v1565_v41 = vadd.f32 %v1564_v50, %v1005_v55  ;;  %v1513_v55 = vadd.f32 %v5749_v54, %v1495_v0 }
 0x13c   : > { %2006 = vmatpush.bf16.msrb.mxu1 %v7195_v23  ;;  %v1582_v34 = vpop.f32.mrf.mxu2  ;;  %v1609_v54 = vadd.f32 %v5797_v13, %v1513_v55 }
 0x13d   : > { %2042 = vmatpush.bf16.msrb.mxu0 %v7196_v32  ;;  %2200 = vmatpush.bf16.msra.mxu3 %v4087_v25  ;;  %v1546_v37 = vpop.f32.mrf.mxu3  ;;  %v1583_v11 = vadd.f32 %v1582_v34, %v1565_v41 }
 0x13e   : > { %2236 = vmatpush.bf16.msra.mxu2 %v4090_v26  ;;  %v1547_v19 = vadd.f32 %v1546_v37, %v1529_v33  ;;  %v1530_v43 = vpop.f32.mrf.mxu1  ;;  %v1624_v55 = vmax.f32 %v1609_v54, 0.0 }
 0x13f   : > { %v1606_v18 = vadd.f32 %v5814_v51, %v1583_v11  ;;  %v1531_v37 = vadd.f32 %v1530_v43, %v5593_v62  ;;  %v1498_v43 = vadd.f32 %v5759_v49, %v5608_v20  ;;  %v7203_v49 = vld [vmem:[#allocation141_spill] sm:$0xff]  ;;  %v7204_v20 = vld [vmem:[#allocation142_spill] sm:$0xff] }
 0x140   : > { %2007 = vmatpush.bf16.msrb.mxu1 %v7197_v14  ;;  %v1605_v44 = vadd.f32 %v5809_v60, %v1547_v19 }
 0x141   : > { %2043 = vmatpush.bf16.msrb.mxu0 %v5390_v61  ;;  %v1566_v50 = vpop.f32.mrf.mxu0  ;;  %2201 = vmatpush.bf16.msra.mxu3 %v4094_v27  ;;  %v1621_v56 = vmax.f32 %v1606_v18, 0.0 }
 0x142   : > { %2237 = vmatpush.bf16.msra.mxu2 %v4096_v28  ;;  %v1620_v33 = vmax.f32 %v1605_v44, 0.0  ;;  %v1567_v34 = vadd.f32 %v1566_v50, %v1007_v36  ;;  %v7201_v50 = vld [vmem:[#allocation12_spill] sm:$0xff] }
 0x143   : > { %v1634_v19 = vpack.c.bf16 %v1621_v56, %v1621_v56  ;;  %v1010_v56 = vadd.f32 %v7204_v20, %v7203_v49  ;;  %v7242_v28 = vld [vmem:[#allocation40_spill] sm:$0xff] }
 0x144   : > { %2008 = vmatpush.bf16.msrb.mxu1 %v5399_v53  ;;  %v1633_v41 = vpack.c.bf16 %v1620_v33, %v1619_v63  ;;  %v1584_v47 = vpop.f32.mrf.mxu2  ;;  %v7202_v63 = vld [vmem:[#allocation2_spill] sm:$0xff]  ;;  %v1516_v33 = vadd.f32 %v5779_v9, %v1498_v43  ;;  %v7209_v43 = vld [vmem:[#allocation16_spill] sm:$0xff] }
 0x145   : > { %2044 = vmatpush.bf16.msrb.mxu0 %v5420_v29  ;;  %2202 = vmatpush.bf16.msra.mxu3 %v4130_v39  ;;  %v1548_v5 = vpop.f32.mrf.mxu3  ;;  %1644 = vst.msk [vmem:[%s5738_s17 + $0x10] sm:$0xf] %vm1643_vm3, %v1634_v19  ;;  %v1585_v62 = vadd.f32 %v1584_v47, %v1567_v34  ;;  %v7205_v19 = vld [vmem:[#allocation140_spill] sm:$0xff]  ;;  %v7206_v34 = vld [vmem:[#allocation3_spill] sm:$0xff] }
 0x146   : > { %1642 = vst [vmem:[%s5738_s17 + $0x8] sm:$0xff] %v1633_v41  ;;  %v1549_v21 = vadd.f32 %v1548_v5, %v1531_v37  ;;  %2238 = vmatpush.bf16.msra.mxu2 %v4132_v40  ;;  %v1533_v11 = vpop.f32.mrf.mxu1  ;;  %1944 = vmatmul.bf16.gmra.mxu1 %v5752_v4  ;;  %v7207_v5 = vld [vmem:[#allocation13_spill] sm:$0xff] }
 0x147   : > { %v1611_v18 = vadd.f32 %v5814_v51, %v1585_v62  ;;  %3738 = vmatmul.msk.bf16.gmra.mxu3 %vm810_vm2, %v5754_v24  ;;  %v1534_v9 = vadd.f32 %v1533_v11, %v7205_v19  ;;  %v7208_v62 = vld [vmem:[#allocation6_spill] sm:$0xff]  ;;  %v7210_v19 = vld [vmem:[#allocation7_spill] sm:$0xff] }
 0x148   : > { %2009 = vmatpush.bf16.msrb.mxu1 %v5426_v8  ;;  %v1610_v0 = vadd.f32 %v5809_v60, %v1549_v21  ;;  %3740 = vmatmul.msk.bf16.gmra.mxu2 %vm810_vm2, %v5754_v24 }
 0x149   : > { %2045 = vmatpush.bf16.msrb.mxu0 %v5443_v57  ;;  %v1569_v44 = vpop.f32.mrf.mxu0  ;;  %2203 = vmatpush.bf16.msra.mxu3 %v7201_v50  ;;  %v1626_v41 = vmax.f32 %v1611_v18, 0.0 }
 0x14a   : > { %v1625_v36 = vmax.f32 %v1610_v0, 0.0  ;;  %1980 = vmatmul.bf16.gmra.mxu0 %v5752_v4  ;;  %2239 = vmatpush.bf16.msra.mxu2 %v7207_v5  ;;  %v1570_v21 = vadd.f32 %v1569_v44, %v1010_v56  ;;  %v1614_v0 = vadd.f32 %v5797_v13, %v1516_v33  ;;  %v7211_v44 = vld [vmem:[#allocation17_spill] sm:$0xff]  ;;  %v7213_v33 = vld [vmem:[#allocation20_spill] sm:$0xff]  ;;  %v3762_v5 = vld [vmem:[%s4292_s19 + $0x80] sm:$0x7] }
 0x14b   : > { %v1637_v54 = vpack.c.bf16 %v1626_v41, %v1626_v41  ;;  %v7212_v41 = vld [vmem:[#allocation10_spill] sm:$0xff] }
 0x14c   : > { %2010 = vmatpush.bf16.msrb.mxu1 %v5447_v7  ;;  %v1636_v37 = vpack.c.bf16 %v1625_v36, %v1624_v55  ;;  %v1587_v49 = vpop.f32.mrf.mxu2 }
 0x14d   : > { %2046 = vmatpush.bf16.msrb.mxu0 %v5463_v59  ;;  %v1551_v47 = vpop.f32.mrf.mxu3  ;;  %2204 = vmatpush.bf16.msra.mxu3 %v7209_v43  ;;  %1647 = vst.msk [vmem:[%s5738_s17 + $0x24] sm:$0xf] %vm1643_vm3, %v1637_v54  ;;  %v1588_v55 = vadd.f32 %v1587_v49, %v1570_v21 }
 0x14e   : > { %1646 = vst [vmem:[%s5738_s17 + $0x1c] sm:$0xff] %v1636_v37  ;;  %v1552_v18 = vadd.f32 %v1551_v47, %v1534_v9  ;;  %v1535_v11 = vpop.f32.mrf.mxu1  ;;  %2240 = vmatpush.bf16.msra.mxu2 %v7211_v44  ;;  %v1629_v37 = vmax.f32 %v1614_v0, 0.0  ;;  %v7214_v47 = vld [vmem:[#allocation11_spill] sm:$0xff]  ;;  %v7217_v44 = vld [vmem:[#allocation24_spill] sm:$0xff] }
 0x14f   : > { %v1616_v56 = vadd.f32 %v5814_v51, %v1588_v55  ;;  %v7267_v51 = vld [vmem:[#allocation70_spill] sm:$0xff] }
 0x150   : > { %2181 = vmatpush.bf16.msra.mxu1 %v4034_v3  ;;  %v1615_v36 = vadd.f32 %v5809_v60, %v1552_v18  ;;  %v7215_v18 = vld [vmem:[#allocation21_spill] sm:$0xff] }
 0x151   : > { %2217 = vmatpush.bf16.msra.mxu0 %v4042_v6  ;;  %v1571_v20 = vpop.f32.mrf.mxu0  ;;  %2205 = vmatpush.bf16.msra.mxu3 %v7213_v33  ;;  %v1631_v54 = vmax.f32 %v1616_v56, 0.0  ;;  %v7219_v56 = vld [vmem:[#allocation25_spill] sm:$0xff] }
 0x152   : > { %v1630_v9 = vmax.f32 %v1615_v36, 0.0  ;;  %2241 = vmatpush.bf16.msra.mxu2 %v7215_v18  ;;  %v7216_v20 = vld [vmem:[#allocation14_spill] sm:$0xff]  ;;  %v7218_v36 = vld [vmem:[#allocation15_spill] sm:$0xff] }
 0x153   : > { %v1640_v49 = vpack.c.bf16 %v1631_v54, %v1631_v54  ;;  %v7222_v54 = vld [vmem:[#allocation30_spill] sm:$0xff]  ;;  %v7225_v18 = vld [vmem:[#allocation23_spill] sm:$0xff] }
 0x154   : > { %2182 = vmatpush.bf16.msra.mxu1 %v7202_v63  ;;  %v1639_v21 = vpack.c.bf16 %v1630_v9, %v1629_v37  ;;  %v1589_v55 = vpop.f32.mrf.mxu2  ;;  %v7220_v37 = vld [vmem:[#allocation18_spill] sm:$0xff]  ;;  %v7221_v9 = vld [vmem:[#allocation19_spill] sm:$0xff]  ;;  %v7314_v63 = vld [vmem:[#allocation113_spill] sm:$0xff] }
 0x155   : > { %2218 = vmatpush.bf16.msra.mxu0 %v7206_v34  ;;  %v1553_v11 = vpop.f32.mrf.mxu3  ;;  %2206 = vmatpush.bf16.msra.mxu3 %v7217_v44  ;;  %1651 = vst.msk [vmem:[%s5738_s17 + $0x38] sm:$0x1] %vm1650_vm4, %v1640_v49  ;;  %v7223_v49 = vld [vmem:[#allocation22_spill] sm:$0xff] }
 0x156   : > { %1649 = vst [vmem:[%s5738_s17 + $0x30] sm:$0x11] %v1639_v21  ;;  %v1718_v33 = vpop.f32.mrf.mxu1  ;;  %2242 = vmatpush.bf16.msra.mxu2 %v7219_v56  ;;  %2011 = vmatmul.bf16.vlgmr.msrb.gmra.mxu1 %v5695_v35  ;;  %v7224_v11 = vld [vmem:[#allocation31_spill] sm:$0xff] }
 0x157   : > { %3741 = vmatmul.msk.bf16.vlgmr.msrb.gmra.mxu3 %vm810_vm2, %v5687_v46 }
 0x158   : > { %2183 = vmatpush.bf16.msra.mxu1 %v7208_v62  ;;  %3743 = vmatmul.msk.bf16.vlgmr.msrb.gmra.mxu2 %vm810_vm2, %v5687_v46 }
 0x159   : > { %2219 = vmatpush.bf16.msra.mxu0 %v7210_v19  ;;  %v1754_v0 = vpop.f32.mrf.mxu0  ;;  %2272 = vmatpush.bf16.msrb.mxu3 %v7222_v54  ;;  %v7228_v54 = vld [vmem:[#allocation35_spill] sm:$0xff]  ;;  %v7235_v19 = vld [vmem:[#allocation41_spill] sm:$0xff] }
 0x15a   : > { %2047 = vmatmul.bf16.vlgmr.msrb.gmra.mxu0 %v5695_v35  ;;  %2308 = vmatpush.bf16.msrb.mxu2 %v7224_v11  ;;  %v7231_v11 = vld [vmem:[#allocation37_spill] sm:$0xff] }
 0x15c   : > { %2184 = vmatpush.bf16.msra.mxu1 %v7212_v41  ;;  %v1772_v56 = vpop.f32.mrf.mxu2 }
 0x15d   : > { %2220 = vmatpush.bf16.msra.mxu0 %v7214_v47  ;;  %v1736_v21 = vpop.f32.mrf.mxu3  ;;  %v5893_v35 = vadd.f32 %v1772_v56, %v1754_v0  ;;  %v5906_v0 = vld [vmem:[%s4292_s19 + $0x78] sm:$0xff]  ;;  %v3761_v56 = vld [vmem:[%s4292_s19 + $0x68] sm:$0xfe] }
 0x15e   : > { %v5891_v55 = vadd.f32 %v1736_v21, %v1718_v33  ;;  %v1720_v44 = vpop.f32.mrf.mxu1  ;;  %2309 = vmatpush.bf16.msrb.mxu2 %v7228_v54  ;;  %v3760_v33 = vld [vmem:[%s4292_s19 + $0x60] sm:$0xfe]  ;;  %v7230_v21 = vld [vmem:[#allocation27_spill] sm:$0xff]  ;;  %v2140_v50 = vpack.c.bf16 %v5906_v0, %v3761_v56  ;;  %v7239_v56 = vld [vmem:[#allocation45_spill] sm:$0xff] }
 0x160   : > { %2185 = vmatpush.bf16.msra.mxu1 %v7216_v20  ;;  %v7234_v20 = vld [vmem:[#allocation32_spill] sm:$0xff]  ;;  %v2156_v62 = vshrl.u32 %v2140_v50, 16 }
 0x161   : > { %2221 = vmatpush.bf16.msra.mxu0 %v7218_v36  ;;  %v1756_v46 = vpop.f32.mrf.mxu0  ;;  %v7229_v36 = vld [vmem:[#allocation28_spill] sm:$0xff] }
 0x164   : > { %2186 = vmatpush.bf16.msra.mxu1 %v7220_v37  ;;  %v7227_v37 = vld [vmem:[#allocation26_spill] sm:$0xff] }
 0x165   : > { %2222 = vmatpush.bf16.msra.mxu0 %v7221_v9  ;;  %v7226_v9 = vld [vmem:[#allocation33_spill] sm:$0xff] }
 0x166   : > { %2273 = vmatpush.bf16.msrb.mxu3 %v7226_v9  ;;  %v7232_v9 = vld [vmem:[#allocation29_spill] sm:$0xff]  ;;  %2016 = vmatmul.bf16.gmra.mxu1 %v5752_v4 }
 0x167   : > { %3742 = vmatmul.msk.bf16.gmra.mxu3 %vm810_vm2, %v5754_v24 }
 0x168   : > { %2187 = vmatpush.bf16.msra.mxu1 %v7223_v49  ;;  %v5901_v49 = vld [vmem:[%s4292_s19 + $0x70] sm:$0xff]  ;;  %3744 = vmatmul.msk.bf16.gmra.mxu2 %vm810_vm2, %v5754_v24 }
 0x169   : > { %2223 = vmatpush.bf16.msra.mxu0 %v7225_v18  ;;  %v1738_v18 = vpop.f32.mrf.mxu3  ;;  %v2139_v43 = vpack.c.bf16 %v5901_v49, %v3760_v33  ;;  %v1759_v41 = vpop.f32.mrf.mxu0  ;;  %v7238_v33 = vld [vmem:[#allocation36_spill] sm:$0xff] }
 0x16a   : > { %2274 = vmatpush.bf16.msrb.mxu3 %v7231_v11  ;;  %v5912_v54 = vadd.f32 %v1738_v18, %v1720_v44  ;;  %v3763_v11 = vld [vmem:[%s4292_s19 + $0x88] sm:$0x7]  ;;  %v5927_v44 = vpack.c.bf16 %v3762_v5, %v3762_v5  ;;  %2052 = vmatmul.bf16.gmra.mxu0 %v5752_v4 }
 0x16b   : > { %v2146_v18 = vshll.u32 %v2139_v43, 16  ;;  %v2144_v40 = vshrl.u32 %v2139_v43, 16 }
 0x16c   : > { %2188 = vmatpush.bf16.msra.mxu1 %v7227_v37  ;;  %v7233_v37 = vld [vmem:[#allocation39_spill] sm:$0xff]  ;;  %v2151_v39 = vshll.u32 %v5927_v44, 16 }
 0x16d   : > { %2224 = vmatpush.bf16.msra.mxu0 %v7230_v21  ;;  %2310 = vmatpush.bf16.msrb.mxu2 %v7233_v37  ;;  %v1723_v21 = vpop.f32.mrf.mxu1  ;;  %v7237_v37 = vld [vmem:[#allocation43_spill] sm:$0xff]  ;;  %v2148_v4 = vrot.slane %v2146_v18, 1 }
 0x16e   : > { %2275 = vmatpush.bf16.msrb.mxu3 %v7235_v19  ;;  %v7240_v19 = vld [vmem:[#allocation38_spill] sm:$0xff] }
 0x16f   : > { %v2149_v43 = vor.u32 %v2148_v4, %v2144_v40  ;;  %v7250_v40 = vld [vmem:[#allocation48_spill] sm:$0xff] }
 0x170   : > { %2253 = vmatpush.bf16.msrb.mxu1 %v7229_v36  ;;  %v1774_v36 = vpop.f32.mrf.mxu2 }
 0x171   : > { %2289 = vmatpush.bf16.msrb.mxu0 %v7232_v9  ;;  %v5916_v47 = vadd.f32 %v1774_v36, %v1756_v46  ;;  %v7236_v9 = vld [vmem:[#allocation34_spill] sm:$0xff]  ;;  %2311 = vmatpush.bf16.msrb.mxu2 %v7237_v37  ;;  %v5932_v36 = vpack.c.bf16 %v3763_v11, %v3763_v11  ;;  %v2158_v46 = vshll.u32 %v2140_v50, 16  ;;  %v1741_v37 = vpop.f32.mrf.mxu3 }
 0x172   : > { %2276 = vmatpush.bf16.msrb.mxu3 %v7239_v56  ;;  %v5938_v5 = vadd.f32 %v1741_v37, %v1723_v21  ;;  %v1761_v56 = vpop.f32.mrf.mxu0  ;;  %v7245_v37 = vld [vmem:[#allocation51_spill] sm:$0xff]  ;;  %v2153_v21 = vrot.slane %v2151_v39, 1 }
 0x173   : > { %v2160_v34 = vrot.slane %v2158_v46, 1  ;;  %v7248_v46 = vld [vmem:[#allocation46_spill] sm:$0xff]  ;;  %v7249_v56 = vld [vmem:[#allocation55_spill] sm:$0xff] }
 0x174   : > { %2254 = vmatpush.bf16.msrb.mxu1 %v7234_v20 }
 0x175   : > { %2290 = vmatpush.bf16.msrb.mxu0 %v7236_v9  ;;  %v7241_v9 = vld [vmem:[#allocation47_spill] sm:$0xff]  ;;  %v1725_v11 = vpop.f32.mrf.mxu1  ;;  %v2161_v18 = vor.u32 %v2160_v34, %v2156_v62  ;;  %v7251_v34 = vld [vmem:[#allocation50_spill] sm:$0xff]  ;;  %v7252_v62 = vld [vmem:[#allocation52_spill] sm:$0xff] }
 0x176   : > { %2312 = vmatpush.bf16.msrb.mxu2 %v7241_v9  ;;  %v7244_v9 = vld [vmem:[#allocation42_spill] sm:$0xff] }
 0x178   : > { %2255 = vmatpush.bf16.msrb.mxu1 %v7238_v33  ;;  %v1777_v20 = vpop.f32.mrf.mxu2  ;;  %v2163_v33 = vshll.u32 %v5932_v36, 16 }
 0x179   : > { %2291 = vmatpush.bf16.msrb.mxu0 %v7240_v19  ;;  %v5941_v24 = vadd.f32 %v1777_v20, %v1759_v41  ;;  %v7243_v19 = vld [vmem:[#allocation49_spill] sm:$0xff]  ;;  %v7246_v41 = vld [vmem:[#allocation44_spill] sm:$0xff]  ;;  %v1743_v50 = vpop.f32.mrf.mxu3 }
 0x17a   : > { %2277 = vmatpush.bf16.msrb.mxu3 %v7243_v19  ;;  %2313 = vmatpush.bf16.msrb.mxu2 %v7245_v37  ;;  %v2165_v27 = vrot.slane %v2163_v33, 1  ;;  %v7247_v20 = vld [vmem:[#allocation53_spill] sm:$0xff]  ;;  %v5953_v19 = vsel %vm400_vm1, %v2149_v43, %v2153_v21  ;;  %v1826_v39 = vpop.f32.mrf.mxu0  ;;  %v7253_v33 = vld [vmem:[#allocation56_spill] sm:$0xff]  ;;  %v7254_v43 = vld [vmem:[#allocation54_spill] sm:$0xff] }
 0x17b   : > { %2189 = vmatmul.bf16.vlgmr.msra.gmra.mxu1 %v5953_v19  ;;  %2225 = vmatmul.bf16.vlgmr.msra.gmra.mxu0 %v5953_v19 }
 0x17c   : > { %2256 = vmatpush.bf16.msrb.mxu1 %v7242_v28  ;;  %v5956_v37 = vsel %vm400_vm1, %v2161_v18, %v2165_v27  ;;  %v7255_v18 = vld [vmem:[#allocation57_spill] sm:$0xff] }
 0x17d   : > { %2292 = vmatpush.bf16.msrb.mxu0 %v7244_v9  ;;  %v1790_v28 = vpop.f32.mrf.mxu1  ;;  %3764 = vmatmul.msk.bf16.vlgmr.msra.gmra.mxu3 %vm810_vm2, %v5956_v37 }
 0x17e   : > { %2278 = vmatpush.bf16.msrb.mxu3 %v7247_v20  ;;  %2314 = vmatpush.bf16.msrb.mxu2 %v7249_v56 }
 0x17f   : > { %3766 = vmatmul.msk.bf16.vlgmr.msra.gmra.mxu2 %vm810_vm2, %v5956_v37 }
 0x180   : > { %2257 = vmatpush.bf16.msrb.mxu1 %v7246_v41  ;;  %v1779_v11 = vpop.f32.mrf.mxu2  ;;  %v7258_v41 = vld [vmem:[#allocation59_spill] sm:$0xff] }
 0x181   : > { %2293 = vmatpush.bf16.msrb.mxu0 %v7248_v46  ;;  %v1808_v4 = vpop.f32.mrf.mxu3  ;;  %v7257_v46 = vld [vmem:[#allocation62_spill] sm:$0xff] }
 0x182   : > { %2344 = vmatpush.bf16.msra.mxu3 %v7253_v33  ;;  %2386 = vmatpush.bf16.msra.mxu2 %v7255_v18  ;;  %v5970_v50 = vadd.f32 %v1808_v4, %v1790_v28  ;;  %v2167_v33 = vshrl.u32 %v5927_v44, 16  ;;  %v7260_v18 = vld [vmem:[#allocation61_spill] sm:$0xff]  ;;  %v7261_v28 = vld [vmem:[#allocation63_spill] sm:$0xff]  ;;  %v7265_v44 = vld [vmem:[#allocation68_spill] sm:$0xff] }
 0x184   : > { %2258 = vmatpush.bf16.msrb.mxu1 %v7250_v40  ;;  %v7256_v40 = vld [vmem:[#allocation58_spill] sm:$0xff]  ;;  %v5986_v9 = vor.u32 %v2167_v33, %v2153_v21  ;;  %v7270_v21 = vld [vmem:[#allocation72_spill] sm:$0xff] }
 0x185   : > { %2294 = vmatpush.bf16.msrb.mxu0 %v7251_v34  ;;  %v1792_v20 = vpop.f32.mrf.mxu1  ;;  %v1828_v34 = vpop.f32.mrf.mxu0 }
 0x186   : > { %2345 = vmatpush.bf16.msra.mxu3 %v7257_v46  ;;  %2387 = vmatpush.bf16.msra.mxu2 %v7261_v28 }
 0x188   : > { %2259 = vmatpush.bf16.msrb.mxu1 %v7252_v62  ;;  %v1844_v11 = vpop.f32.mrf.mxu2  ;;  %v7259_v62 = vld [vmem:[#allocation60_spill] sm:$0xff] }
 0x189   : > { %2295 = vmatpush.bf16.msrb.mxu0 %v7254_v43  ;;  %v5972_v56 = vadd.f32 %v1844_v11, %v1826_v39  ;;  %v2170_v43 = vshrl.u32 %v5932_v36, 16  ;;  %v7262_v39 = vld [vmem:[#allocation66_spill] sm:$0xff]  ;;  %v1810_v4 = vpop.f32.mrf.mxu3  ;;  %v7263_v11 = vld [vmem:[#allocation64_spill] sm:$0xff] }
 0x18a   : > { %2346 = vmatpush.bf16.msra.mxu3 %v7262_v39  ;;  %2388 = vmatpush.bf16.msra.mxu2 %v7265_v44  ;;  %v7268_v39 = vld [vmem:[#allocation67_spill] sm:$0xff] }
 0x18b   : > { %2194 = vmatmul.bf16.gmra.mxu1 %v5986_v9  ;;  %2230 = vmatmul.bf16.gmra.mxu0 %v5986_v9 }
 0x18c   : > { %2260 = vmatpush.bf16.msrb.mxu1 %v7256_v40  ;;  %v5984_v40 = vadd.f32 %v1810_v4, %v1792_v20 }
 0x18d   : > { %2296 = vmatpush.bf16.msrb.mxu0 %v7258_v41  ;;  %v5988_v41 = vor.u32 %v2170_v43, %v2165_v27  ;;  %v1831_v28 = vpop.f32.mrf.mxu0  ;;  %v7269_v27 = vld [vmem:[#allocation69_spill] sm:$0xff] }
 0x18e   : > { %2347 = vmatpush.bf16.msra.mxu3 %v7267_v51  ;;  %2389 = vmatpush.bf16.msra.mxu2 %v7270_v21  ;;  %v7279_v21 = vld [vmem:[#allocation77_spill] sm:$0xff] }
 0x18f   : > { %3765 = vmatmul.msk.bf16.gmra.mxu3 %vm810_vm2, %v5988_v41  ;;  %3767 = vmatmul.msk.bf16.gmra.mxu2 %vm810_vm2, %v5988_v41 }
 0x190   : > { %2325 = vmatpush.bf16.msra.mxu1 %v7259_v62  ;;  %v1846_v46 = vpop.f32.mrf.mxu2  ;;  %v7264_v62 = vld [vmem:[#allocation65_spill] sm:$0xff] }
 0x191   : > { %2367 = vmatpush.bf16.msra.mxu0 %v7260_v18  ;;  %v5992_v36 = vadd.f32 %v1846_v46, %v1828_v34  ;;  %v1795_v18 = vpop.f32.mrf.mxu1  ;;  %v1813_v20 = vpop.f32.mrf.mxu3  ;;  %v7271_v46 = vld [vmem:[#allocation71_spill] sm:$0xff]  ;;  %v7272_v34 = vld [vmem:[#allocation74_spill] sm:$0xff] }
 0x192   : > { %2348 = vmatpush.bf16.msra.mxu3 %v7272_v34  ;;  %v6006_v33 = vadd.f32 %v1813_v20, %v1795_v18  ;;  %v7281_v18 = vld [vmem:[#allocation79_spill] sm:$0xff]  ;;  %v7282_v20 = vld [vmem:[#allocation82_spill] sm:$0xff] }
 0x193   : > { %7266 = vst [vmem:[#allocation126_spill] sm:$0xff] %v5992_v36  ;;  %v7300_v36 = vld [vmem:[#allocation98_spill] sm:$0xff] }
 0x194   : > { %2326 = vmatpush.bf16.msra.mxu1 %v7263_v11  ;;  %7273 = vst [vmem:[#allocation129_spill] sm:$0xff] %v6006_v33  ;;  %v7277_v11 = vld [vmem:[#allocation75_spill] sm:$0xff] }
 0x195   : > { %2368 = vmatpush.bf16.msra.mxu0 %v7264_v62  ;;  %v1833_v44 = vpop.f32.mrf.mxu0  ;;  %v7276_v62 = vld [vmem:[#allocation76_spill] sm:$0xff] }
 0x196   : > { %2390 = vmatpush.bf16.msra.mxu2 %v7276_v62  ;;  %v7284_v62 = vld [vmem:[#allocation84_spill] sm:$0xff] }
 0x198   : > { %2327 = vmatpush.bf16.msra.mxu1 %v7268_v39  ;;  %v1849_v43 = vpop.f32.mrf.mxu2  ;;  %v7275_v39 = vld [vmem:[#allocation73_spill] sm:$0xff] }
 0x199   : > { %2369 = vmatpush.bf16.msra.mxu0 %v7269_v27  ;;  %v6008_v4 = vadd.f32 %v1849_v43, %v1831_v28  ;;  %v1797_v51 = vpop.f32.mrf.mxu1  ;;  %v7278_v27 = vld [vmem:[#allocation78_spill] sm:$0xff]  ;;  %v1815_v34 = vpop.f32.mrf.mxu3  ;;  %v7283_v43 = vld [vmem:[#allocation81_spill] sm:$0xff] }
 0x19a   : > { %2349 = vmatpush.bf16.msra.mxu3 %v7278_v27  ;;  %v7286_v34 = vld [vmem:[#allocation87_spill] sm:$0xff] }
 0x19b   : > { %7274 = vst [vmem:[#allocation130_spill] sm:$0xff] %v6008_v4  ;;  %2261 = vmatmul.bf16.vlgmr.msrb.gmra.mxu1 %v5953_v19  ;;  %2297 = vmatmul.bf16.vlgmr.msrb.gmra.mxu0 %v5953_v19  ;;  %v7296_v4 = vld [vmem:[#allocation94_spill] sm:$0xff] }
 0x19c   : > { %2328 = vmatpush.bf16.msra.mxu1 %v7271_v46  ;;  %v7280_v46 = vld [vmem:[#allocation80_spill] sm:$0xff] }
 0x19d   : > { %2370 = vmatpush.bf16.msra.mxu0 %v7275_v39  ;;  %2391 = vmatpush.bf16.msra.mxu2 %v7280_v46  ;;  %v1904_v44 = vpop.f32.mrf.mxu0  ;;  %v7290_v46 = vld [vmem:[#allocation89_spill] sm:$0xff]  ;;  %v7293_v39 = vld [vmem:[#allocation90_spill] sm:$0xff] }
 0x19e   : > { %2350 = vmatpush.bf16.msra.mxu3 %v7282_v20 }
 0x19f   : > { %3768 = vmatmul.msk.bf16.vlgmr.msrb.gmra.mxu3 %vm810_vm2, %v5956_v37  ;;  %3770 = vmatmul.msk.bf16.vlgmr.msrb.gmra.mxu2 %vm810_vm2, %v5956_v37 }
 0x1a0   : > { %2329 = vmatpush.bf16.msra.mxu1 %v7277_v11  ;;  %v1851_v28 = vpop.f32.mrf.mxu2  ;;  %v7285_v11 = vld [vmem:[#allocation83_spill] sm:$0xff] }
 0x1a1   : > { %2371 = vmatpush.bf16.msra.mxu0 %v7279_v21  ;;  %v6018_v51 = vpop.f32.mrf.mxu1  ;;  %2392 = vmatpush.bf16.msra.mxu2 %v7284_v62  ;;  %v7287_v28 = vld [vmem:[#allocation85_spill] sm:$0xff]  ;;  %v6031_v20 = vpop.f32.mrf.mxu3  ;;  %v7289_v62 = vld [vmem:[#allocation86_spill] sm:$0xff]  ;;  %v7292_v21 = vld [vmem:[#allocation92_spill] sm:$0xff] }
 0x1a2   : > { %2422 = vmatpush.bf16.msrb.mxu3 %v7287_v28  ;;  %v7295_v28 = vld [vmem:[#allocation91_spill] sm:$0xff] }
 0x1a4   : > { %2330 = vmatpush.bf16.msra.mxu1 %v7281_v18 }
 0x1a5   : > { %2372 = vmatpush.bf16.msra.mxu0 %v7283_v43  ;;  %v7288_v43 = vld [vmem:[#allocation88_spill] sm:$0xff]  ;;  %2458 = vmatpush.bf16.msrb.mxu2 %v7289_v62  ;;  %v6038_v18 = vpop.f32.mrf.mxu0 }
 0x1a6   : > { %2423 = vmatpush.bf16.msrb.mxu3 %v7293_v39 }
 0x1a8   : > { %2331 = vmatpush.bf16.msra.mxu1 %v7285_v11  ;;  %v1922_v11 = vpop.f32.mrf.mxu2 }
 0x1a9   : > { %2373 = vmatpush.bf16.msra.mxu0 %v7286_v34  ;;  %v6036_v27 = vpop.f32.mrf.mxu1  ;;  %v7294_v34 = vld [vmem:[#allocation93_spill] sm:$0xff]  ;;  %2459 = vmatpush.bf16.msrb.mxu2 %v7295_v28  ;;  %v6046_v62 = vpop.f32.mrf.mxu3  ;;  %v7303_v28 = vld [vmem:[#allocation100_spill] sm:$0xff] }
 0x1aa   : > { %7291 = vst [vmem:[#allocation132_spill] sm:$0xff] %v6036_v27  ;;  %v7311_v27 = vld [vmem:[#allocation110_spill] sm:$0xff] }
 0x1ab   : > { %7298 = vst [vmem:[#allocation134_spill] sm:$0xff] %v6046_v62  ;;  %2266 = vmatmul.bf16.gmra.mxu1 %v5986_v9  ;;  %2302 = vmatmul.bf16.gmra.mxu0 %v5986_v9  ;;  %v7310_v62 = vld [vmem:[#allocation109_spill] sm:$0xff] }
 0x1ac   : > { %2332 = vmatpush.bf16.msra.mxu1 %v7288_v43  ;;  %v7297_v43 = vld [vmem:[#allocation95_spill] sm:$0xff] }
 0x1ad   : > { %2374 = vmatpush.bf16.msra.mxu0 %v7292_v21  ;;  %2424 = vmatpush.bf16.msrb.mxu3 %v7297_v43  ;;  %v6053_v39 = vpop.f32.mrf.mxu0  ;;  %v7306_v43 = vld [vmem:[#allocation103_spill] sm:$0xff] }
 0x1af   : > { %3769 = vmatmul.msk.bf16.gmra.mxu3 %vm810_vm2, %v5988_v41  ;;  %3771 = vmatmul.msk.bf16.gmra.mxu2 %vm810_vm2, %v5988_v41 }
 0x1b0   : > { %2403 = vmatpush.bf16.msrb.mxu1 %v7290_v46  ;;  %v7299_v46 = vld [vmem:[#allocation96_spill] sm:$0xff]  ;;  %v1924_v33 = vpop.f32.mrf.mxu2 }
 0x1b1   : > { %2439 = vmatpush.bf16.msrb.mxu0 %v7294_v34  ;;  %2460 = vmatpush.bf16.msrb.mxu2 %v7299_v46  ;;  %v6051_v21 = vpop.f32.mrf.mxu1  ;;  %v7302_v34 = vld [vmem:[#allocation99_spill] sm:$0xff]  ;;  %v7305_v46 = vld [vmem:[#allocation102_spill] sm:$0xff] }
 0x1b2   : > { %7301 = vst [vmem:[#allocation136_spill] sm:$0xff] %v6051_v21  ;;  %2425 = vmatpush.bf16.msrb.mxu3 %v7302_v34  ;;  %v6066_v34 = vpop.f32.mrf.mxu3  ;;  %v7309_v21 = vld [vmem:[#allocation107_spill] sm:$0xff] }
 0x1b3   : > { %7307 = vst [vmem:[#allocation141_spill] sm:$0xff] %v6066_v34  ;;  %v7312_v34 = vld [vmem:[#allocation111_spill] sm:$0xff] }
 0x1b4   : > { %2404 = vmatpush.bf16.msrb.mxu1 %v7296_v4  ;;  %v7304_v4 = vld [vmem:[#allocation101_spill] sm:$0xff] }
 0x1b5   : > { %2440 = vmatpush.bf16.msrb.mxu0 %v7165_v52  ;;  %2461 = vmatpush.bf16.msrb.mxu2 %v7304_v4  ;;  %v7308_v4 = vld [vmem:[#allocation105_spill] sm:$0xff]  ;;  %v1911_v52 = vpop.f32.mrf.mxu0 }
 0x1b6   : > { %2426 = vmatpush.bf16.msrb.mxu3 %v7306_v43  ;;  %v3755_v43 = vld [vmem:[%s4292_s19 + $0x68] sm:$0xff] }
 0x1b8   : > { %2405 = vmatpush.bf16.msrb.mxu1 %v7300_v36 }
 0x1b9   : > { %2441 = vmatpush.bf16.msrb.mxu0 %v7303_v28  ;;  %2462 = vmatpush.bf16.msrb.mxu2 %v7308_v4  ;;  %v6070_v28 = vpop.f32.mrf.mxu2  ;;  %v1869_v36 = vpop.f32.mrf.mxu1  ;;  %v7313_v4 = vld [vmem:[#allocation112_spill] sm:$0xff] }
 0x1ba   : > { %2427 = vmatpush.bf16.msrb.mxu3 %v7309_v21  ;;  %v6086_v21 = vpack.c.bf16 %v5906_v0, %v3755_v43  ;;  %v7318_v0 = vld [vmem:[#allocation116_spill] sm:$0xff] }
 0x1bb   : > { %2333 = vmatmul.bf16.vlgmr.msra.gmra.mxu1 %v5953_v19 }
 0x1bc   : > { %2406 = vmatpush.bf16.msrb.mxu1 %v7305_v46  ;;  %v3754_v46 = vld [vmem:[%s4292_s19 + $0x60] sm:$0xff] }
 0x1bd   : > { %2442 = vmatpush.bf16.msrb.mxu0 %v7173_v10  ;;  %2463 = vmatpush.bf16.msrb.mxu2 %v7310_v62  ;;  %v1887_v10 = vpop.f32.mrf.mxu3  ;;  %v1905_v62 = vadd.f32 %v1904_v44, %v5891_v55  ;;  %v7317_v55 = vld [vmem:[#allocation118_spill] sm:$0xff]  ;;  %v1907_v44 = vadd.f32 %v6038_v18, %v5912_v54  ;;  %v3759_v18 = vld [vmem:[%s4292_s19 + $0x88] sm:$0x3] }
 0x1be   : > { %2428 = vmatpush.bf16.msrb.mxu3 %v7312_v34  ;;  %v7316_v34 = vld [vmem:[#allocation115_spill] sm:$0xff]  ;;  %v3758_v54 = vld [vmem:[%s4292_s19 + $0x80] sm:$0x3] }
 0x1bf   : > { %v1923_v10 = vadd.f32 %v1922_v11, %v1905_v62  ;;  %3772 = vmatmul.msk.bf16.vlgmr.msra.gmra.mxu3 %vm810_vm2, %v5956_v37  ;;  %3774 = vmatmul.msk.bf16.vlgmr.msra.gmra.mxu2 %vm810_vm2, %v6086_v21  ;;  %v7319_v11 = vld [vmem:[#allocation117_spill] sm:$0xff] }
 0x1c0   : > { %2407 = vmatpush.bf16.msrb.mxu1 %v7175_v31  ;;  %v6083_v31 = vpack.c.bf16 %v5901_v49, %v3754_v46 }
 0x1c1   : > { %2443 = vmatpush.bf16.msrb.mxu0 %v7177_v12  ;;  %2464 = vmatpush.bf16.msrb.mxu2 %v7314_v63  ;;  %v1929_v52 = vpop.f32.mrf.mxu2  ;;  %v1940_v36 = vpop.f32.mrf.mxu1  ;;  %v2075_v19 = vadd.f32 %v1923_v10, %v5705_v17 }
 0x1c2   : > { %v6089_v12 = vpop.f32.mrf.mxu0  ;;  %2375 = vmatmul.bf16.vlgmr.msra.gmra.mxu0 %v6083_v31  ;;  %v1941_v49 = vadd.f32 %v1940_v36, %v5893_v35  ;;  %2494 = vmatpush.bf16.msra.mxu3 %v7318_v0  ;;  %v7320_v36 = vld [vmem:[#allocation119_spill] sm:$0xff] }
 0x1c3   : > { %v2090_v10 = vmax.f32 %v2075_v19, 0.0 }
 0x1c4   : > { %2408 = vmatpush.bf16.msrb.mxu1 %v7311_v27  ;;  %v7315_v27 = vld [vmem:[#allocation114_spill] sm:$0xff] }
 0x1c5   : > { %2444 = vmatpush.bf16.msrb.mxu0 %v7313_v4  ;;  %v1958_v46 = vpop.f32.mrf.mxu3  ;;  %2530 = vmatpush.bf16.msra.mxu2 %v7319_v11  ;;  %v7321_v11 = vld [vmem:[#allocation123_spill] sm:$0xff] }
 0x1c6   : > { %v1959_v62 = vadd.f32 %v1958_v46, %v1941_v49  ;;  %2495 = vmatpush.bf16.msra.mxu3 %v7320_v36  ;;  %v1925_v49 = vadd.f32 %v1924_v33, %v1907_v44  ;;  %v7323_v44 = vld [vmem:[#allocation127_spill] sm:$0xff] }
 0x1c8   : > { %2409 = vmatpush.bf16.msrb.mxu1 %v7315_v27  ;;  %v2076_v43 = vadd.f32 %v1959_v62, %v5715_v16  ;;  %v7322_v62 = vld [vmem:[#allocation124_spill] sm:$0xff]  ;;  %v2080_v36 = vadd.f32 %v1925_v49, %v5705_v17  ;;  %v7324_v49 = vld [vmem:[#allocation131_spill] sm:$0xff] }
 0x1c9   : > { %2445 = vmatpush.bf16.msrb.mxu0 %v7316_v34  ;;  %v6105_v37 = vpop.f32.mrf.mxu2  ;;  %v1942_v35 = vpop.f32.mrf.mxu1  ;;  %2531 = vmatpush.bf16.msra.mxu2 %v7321_v11 }
 0x1ca   : > { %v6112_v52 = vpop.f32.mrf.mxu0  ;;  %v2091_v46 = vmax.f32 %v2076_v43, 0.0  ;;  %v1943_v0 = vadd.f32 %v1942_v35, %v5916_v47  ;;  %2496 = vmatpush.bf16.msra.mxu3 %v7322_v62  ;;  %v6131_v47 = vpack.c.bf16 %v3759_v18, %v3759_v18  ;;  %v1910_v35 = vadd.f32 %v6053_v39, %v5938_v5 }
 0x1cb   : > { %2338 = vmatmul.bf16.gmra.mxu1 %v5986_v9 }
 0x1cc   : > { %2410 = vmatpush.bf16.msrb.mxu1 %v7317_v55 }
 0x1cd   : > { %2446 = vmatpush.bf16.msrb.mxu0 %v7186_v1  ;;  %2532 = vmatpush.bf16.msra.mxu2 %v7323_v44 }
 0x1ce   : > { %2497 = vmatpush.bf16.msra.mxu3 %v7187_v45 }
 0x1cf   : > { %3773 = vmatmul.msk.bf16.gmra.mxu3 %vm810_vm2, %v5988_v41  ;;  %3775 = vmatmul.msk.bf16.gmra.mxu2 %vm810_vm2, %v6131_v47 }
 0x1d0   : > { %2475 = vmatpush.bf16.msra.mxu1 %v7185_v58  ;;  %v1960_v58 = vpop.f32.mrf.mxu3 }
 0x1d1   : > { %2511 = vmatpush.bf16.msra.mxu0 %v7188_v15  ;;  %v2105_v15 = vpack.c.bf16 %v2091_v46, %v2090_v10  ;;  %v1961_v19 = vadd.f32 %v1960_v58, %v1943_v0  ;;  %v6125_v33 = vpop.f32.mrf.mxu2  ;;  %v1945_v43 = vpop.f32.mrf.mxu1  ;;  %v6129_v10 = vpack.c.bf16 %v3758_v54, %v3758_v54  ;;  %v2095_v58 = vmax.f32 %v2080_v36, 0.0  ;;  %2533 = vmatpush.bf16.msra.mxu2 %v7324_v49 }
 0x1d2   : > { %v6136_v62 = vpop.f32.mrf.mxu0  ;;  %v1946_v39 = vadd.f32 %v1945_v43, %v5941_v24  ;;  %v7326_v43 = vld [vmem:[#allocation135_spill] sm:$0xff] }
 0x1d3   : > { %3745 = vst [vmem:[%s5738_s17 + $0x3c] sm:$0xff] %v2105_v15  ;;  %v2081_v46 = vadd.f32 %v1961_v19, %v5715_v16  ;;  %v1928_v15 = vadd.f32 %v6070_v28, %v1910_v35  ;;  %2380 = vmatmul.bf16.gmra.mxu0 %v6129_v10  ;;  %v7325_v28 = vld [vmem:[#allocation133_spill] sm:$0xff] }
 0x1d4   : > { %2476 = vmatpush.bf16.msra.mxu1 %v7190_v2  ;;  %2498 = vmatpush.bf16.msra.mxu3 %v7325_v28  ;;  %v7327_v35 = vld [vmem:[#allocation137_spill] sm:$0xff] }
 0x1d5   : > { %2512 = vmatpush.bf16.msra.mxu0 %v7192_v48  ;;  %v2096_v0 = vmax.f32 %v2081_v46, 0.0  ;;  %v2085_v9 = vadd.f32 %v1928_v15, %v5705_v17  ;;  %2534 = vmatpush.bf16.msra.mxu2 %v7326_v43 }
 0x1d7   : > { %v2108_v5 = vpack.c.bf16 %v2096_v0, %v2095_v58  ;;  %v2100_v46 = vmax.f32 %v2085_v9, 0.0  ;;  %v7328_v0 = vld [vmem:[#allocation138_spill] sm:$0xff] }
 0x1d8   : > { %2477 = vmatpush.bf16.msra.mxu1 %v7193_v30  ;;  %v1963_v36 = vpop.f32.mrf.mxu3  ;;  %2499 = vmatpush.bf16.msra.mxu3 %v7327_v35 }
 0x1d9   : > { %2513 = vmatpush.bf16.msra.mxu0 %v7194_v22  ;;  %3748 = vst [vmem:[%s5738_s17 + $0x50] sm:$0xff] %v2108_v5  ;;  %v1964_v41 = vadd.f32 %v1963_v36, %v1946_v39  ;;  %v6154_v54 = vpop.f32.mrf.mxu2  ;;  %v1947_v18 = vpop.f32.mrf.mxu1  ;;  %2535 = vmatpush.bf16.msra.mxu2 %v7328_v0 }
 0x1da   : > { %v1983_v24 = vpop.f32.mrf.mxu0 }
 0x1db   : > { %v2086_v19 = vadd.f32 %v1964_v41, %v5715_v16  ;;  %v1977_v41 = vadd.f32 %v6089_v12, %v5970_v50  ;;  %2411 = vmatmul.bf16.vlgmr.msrb.gmra.mxu1 %v6083_v31 }
 0x1dc   : > { %2478 = vmatpush.bf16.msra.mxu1 %v7195_v23  ;;  %2500 = vmatpush.bf16.msra.mxu3 %v5405_v38 }
 0x1dd   : > { %2514 = vmatpush.bf16.msra.mxu0 %v7196_v32  ;;  %v2101_v58 = vmax.f32 %v2086_v19, 0.0  ;;  %2536 = vmatpush.bf16.msra.mxu2 %v5423_v42  ;;  %v1995_v9 = vadd.f32 %v6105_v37, %v1977_v41  ;;  %v1881_v19 = vadd.f32 %v6031_v20, %v6018_v51 }
 0x1df   : > { %v2111_v15 = vpack.c.bf16 %v2101_v58, %v2100_v46  ;;  %3776 = vmatmul.msk.bf16.vlgmr.msrb.gmra.mxu3 %vm810_vm2, %v6086_v21  ;;  %3778 = vmatmul.msk.bf16.vlgmr.msrb.gmra.mxu2 %vm810_vm2, %v6086_v21  ;;  %v2077_v24 = vadd.f32 %v1995_v9, %v5797_v13  ;;  %v7333_v9 = vld [vmem:[#allocation3_spill] sm:$0xff] }
 0x1e0   : > { %2479 = vmatpush.bf16.msra.mxu1 %v7197_v14  ;;  %v1965_v5 = vpop.f32.mrf.mxu3  ;;  %2672 = vmatpush.bf16.msrb.mxu3 %v4087_v25 }
 0x1e1   : > { %2515 = vmatpush.bf16.msra.mxu0 %v5390_v61  ;;  %3751 = vst [vmem:[%s5738_s17 + $0x64] sm:$0x11] %v2111_v15  ;;  %v2001_v39 = vpop.f32.mrf.mxu2  ;;  %v2012_v36 = vpop.f32.mrf.mxu1  ;;  %2708 = vmatpush.bf16.msrb.mxu2 %v4090_v26  ;;  %v7329_v5 = vld [vmem:[#allocation2_spill] sm:$0xff]  ;;  %v7332_v26 = vld [vmem:[#allocation5_spill] sm:$0xff]  ;;  %v2092_v41 = vmax.f32 %v2077_v24, 0.0 }
 0x1e2   : > { %v2048_v18 = vpop.f32.mrf.mxu0  ;;  %v2013_v12 = vadd.f32 %v2012_v36, %v5972_v56  ;;  %v1979_v56 = vadd.f32 %v6112_v52, %v5984_v40  ;;  %v7330_v39 = vld [vmem:[#allocation125_spill] sm:$0xff]  ;;  %v7331_v36 = vld [vmem:[#allocation4_spill] sm:$0xff]  ;;  %v7335_v40 = vld [vmem:[#allocation134_spill] sm:$0xff] }
 0x1e3   : > { %2447 = vmatmul.bf16.vlgmr.msrb.gmra.mxu0 %v6083_v31  ;;  %v2049_v50 = vadd.f32 %v2048_v18, %v1881_v19  ;;  %v7334_v19 = vld [vmem:[#allocation132_spill] sm:$0xff]  ;;  %v7339_v24 = vld [vmem:[#allocation9_spill] sm:$0xff] }
 0x1e4   : > { %2480 = vmatpush.bf16.msra.mxu1 %v5399_v53  ;;  %2673 = vmatpush.bf16.msrb.mxu3 %v7331_v36  ;;  %v1883_v52 = vadd.f32 %v7335_v40, %v7334_v19  ;;  %v7342_v40 = vld [vmem:[#allocation10_spill] sm:$0xff] }
 0x1e5   : > { %2516 = vmatpush.bf16.msra.mxu0 %v5420_v29  ;;  %2709 = vmatpush.bf16.msrb.mxu2 %v7332_v26  ;;  %v7338_v26 = vld [vmem:[#allocation8_spill] sm:$0xff] }
 0x1e8   : > { %2481 = vmatpush.bf16.msra.mxu1 %v5426_v8  ;;  %v2030_v37 = vpop.f32.mrf.mxu3  ;;  %2674 = vmatpush.bf16.msrb.mxu3 %v7338_v26  ;;  %v7347_v26 = vld [vmem:[#allocation130_spill] sm:$0xff] }
 0x1e9   : > { %2517 = vmatpush.bf16.msra.mxu0 %v5443_v57  ;;  %v2031_v20 = vadd.f32 %v2030_v37, %v2013_v12  ;;  %v2066_v51 = vpop.f32.mrf.mxu2  ;;  %v2014_v58 = vpop.f32.mrf.mxu1  ;;  %v7336_v37 = vld [vmem:[#allocation126_spill] sm:$0xff]  ;;  %2710 = vmatpush.bf16.msrb.mxu2 %v7339_v24  ;;  %v7348_v24 = vld [vmem:[#allocation11_spill] sm:$0xff] }
 0x1ea   : > { %v2067_v46 = vadd.f32 %v2066_v51, %v2049_v50  ;;  %v7337_v51 = vld [vmem:[#allocation6_spill] sm:$0xff] }
 0x1eb   : > { %v2078_v15 = vadd.f32 %v2031_v20, %v5809_v60  ;;  %v2015_v20 = vadd.f32 %v2014_v58, %v7336_v37  ;;  %2416 = vmatmul.bf16.gmra.mxu1 %v6129_v10 }
 0x1ec   : > { %2482 = vmatpush.bf16.msra.mxu1 %v5447_v7  ;;  %v2079_v25 = vadd.f32 %v2067_v46, %v7330_v39 }
 0x1ed   : > { %2518 = vmatpush.bf16.msra.mxu0 %v5463_v59  ;;  %v2093_v18 = vmax.f32 %v2078_v15, 0.0  ;;  %v7452_v59 = vld [vmem:[#allocation109_spill] sm:$0xff] }
 0x1ee   : > { %v2094_v12 = vmax.f32 %v2079_v25, 0.0 }
 0x1ef   : > { %v2106_v50 = vpack.c.bf16 %v2093_v18, %v2092_v41  ;;  %v7341_v41 = vld [vmem:[#allocation129_spill] sm:$0xff]  ;;  %3777 = vmatmul.msk.bf16.gmra.mxu3 %vm810_vm2, %v6131_v47  ;;  %3779 = vmatmul.msk.bf16.gmra.mxu2 %vm810_vm2, %v6131_v47 }
 0x1f0   : > { %2653 = vmatpush.bf16.msrb.mxu1 %v4034_v3  ;;  %v2050_v3 = vpop.f32.mrf.mxu0  ;;  %v2107_v46 = vpack.c.bf16 %v2094_v12, %v2094_v12  ;;  %v2032_v36 = vpop.f32.mrf.mxu3  ;;  %v1982_v18 = vadd.f32 %v6136_v62, %v7341_v41  ;;  %v7344_v12 = vld [vmem:[#allocation13_spill] sm:$0xff]  ;;  %v7345_v62 = vld [vmem:[#allocation136_spill] sm:$0xff] }
 0x1f1   : > { %2689 = vmatpush.bf16.msrb.mxu0 %v4042_v6  ;;  %v1997_v6 = vadd.f32 %v6125_v33, %v1979_v56  ;;  %3746 = vst [vmem:[%s5738_s17 + $0x44] sm:$0xff] %v2106_v50  ;;  %v2033_v56 = vadd.f32 %v2032_v36, %v2015_v20  ;;  %v2068_v15 = vpop.f32.mrf.mxu2  ;;  %v2017_v58 = vpop.f32.mrf.mxu1  ;;  %2711 = vmatpush.bf16.msrb.mxu2 %v7344_v12  ;;  %v7351_v41 = vld [vmem:[#allocation17_spill] sm:$0xff] }
 0x1f2   : > { %3747 = vst.msk [vmem:[%s5738_s17 + $0x4c] sm:$0xf] %vm1643_vm3, %v2107_v46  ;;  %v2000_v37 = vadd.f32 %v6154_v54, %v1982_v18  ;;  %v2018_v54 = vadd.f32 %v2017_v58, %v7347_v26  ;;  %v7356_v26 = vld [vmem:[#allocation19_spill] sm:$0xff] }
 0x1f3   : > { %v2082_v33 = vadd.f32 %v1997_v6, %v5797_v13  ;;  %v7343_v6 = vld [vmem:[#allocation12_spill] sm:$0xff]  ;;  %2452 = vmatmul.bf16.gmra.mxu0 %v6129_v10 }
 0x1f4   : > { %2654 = vmatpush.bf16.msrb.mxu1 %v7329_v5  ;;  %v2051_v5 = vadd.f32 %v2050_v3, %v1883_v52  ;;  %v2083_v3 = vadd.f32 %v2033_v56, %v5809_v60  ;;  %2675 = vmatpush.bf16.msrb.mxu3 %v7343_v6  ;;  %v2087_v18 = vadd.f32 %v2000_v37, %v5797_v13  ;;  %v7355_v37 = vld [vmem:[#allocation21_spill] sm:$0xff]  ;;  %v7451_v13 = vld [vmem:[#allocation107_spill] sm:$0xff] }
 0x1f5   : > { %2690 = vmatpush.bf16.msrb.mxu0 %v7333_v9  ;;  %v7340_v9 = vld [vmem:[#allocation7_spill] sm:$0xff]  ;;  %v2097_v50 = vmax.f32 %v2082_v33, 0.0  ;;  %v7349_v33 = vld [vmem:[#allocation14_spill] sm:$0xff]  ;;  %2712 = vmatpush.bf16.msrb.mxu2 %v7351_v41 }
 0x1f6   : > { %v2069_v25 = vadd.f32 %v2068_v15, %v2051_v5  ;;  %v2098_v20 = vmax.f32 %v2083_v3, 0.0 }
 0x1f8   : > { %2655 = vmatpush.bf16.msrb.mxu1 %v7337_v51  ;;  %v2053_v19 = vpop.f32.mrf.mxu0  ;;  %v2084_v52 = vadd.f32 %v2069_v25, %v7330_v39  ;;  %v7346_v51 = vld [vmem:[#allocation141_spill] sm:$0xff]  ;;  %v2109_v36 = vpack.c.bf16 %v2098_v20, %v2097_v50  ;;  %v7350_v25 = vld [vmem:[#allocation16_spill] sm:$0xff]  ;;  %v7352_v50 = vld [vmem:[#allocation15_spill] sm:$0xff] }
 0x1f9   : > { %2691 = vmatpush.bf16.msrb.mxu0 %v7340_v9  ;;  %v1886_v46 = vadd.f32 %v7346_v51, %v7345_v62  ;;  %v2035_v9 = vpop.f32.mrf.mxu3  ;;  %2676 = vmatpush.bf16.msrb.mxu3 %v7350_v25  ;;  %v2019_v58 = vpop.f32.mrf.mxu1  ;;  %v7354_v62 = vld [vmem:[#allocation20_spill] sm:$0xff]  ;;  %v2102_v51 = vmax.f32 %v2087_v18, 0.0  ;;  %v7360_v18 = vld [vmem:[#allocation23_spill] sm:$0xff] }
 0x1fa   : > { %v2099_v5 = vmax.f32 %v2084_v52, 0.0  ;;  %3749 = vst [vmem:[%s5738_s17 + $0x58] sm:$0xff] %v2109_v36  ;;  %v2036_v3 = vadd.f32 %v2035_v9, %v2018_v54  ;;  %2713 = vmatpush.bf16.msrb.mxu2 %v7355_v37  ;;  %v7357_v54 = vld [vmem:[#allocation22_spill] sm:$0xff]  ;;  %v7367_v37 = vld [vmem:[#allocation32_spill] sm:$0xff] }
 0x1fb   : > { %v2054_v15 = vadd.f32 %v2053_v19, %v1886_v46  ;;  %v7353_v19 = vld [vmem:[#allocation18_spill] sm:$0xff]  ;;  %2483 = vmatmul.bf16.vlgmr.msra.gmra.mxu1 %v6083_v31 }
 0x1fc   : > { %2656 = vmatpush.bf16.msrb.mxu1 %v7342_v40  ;;  %v2110_v56 = vpack.c.bf16 %v2099_v5, %v2099_v5  ;;  %v2071_v40 = vpop.f32.mrf.mxu2  ;;  %v2088_v6 = vadd.f32 %v2036_v3, %v5809_v60  ;;  %v7361_v3 = vld [vmem:[#allocation26_spill] sm:$0xff]  ;;  %v7407_v60 = vld [vmem:[#allocation71_spill] sm:$0xff] }
 0x1fd   : > { %2692 = vmatpush.bf16.msrb.mxu0 %v7348_v24  ;;  %v2072_v52 = vadd.f32 %v2071_v40, %v2054_v15  ;;  %2677 = vmatpush.bf16.msrb.mxu3 %v7354_v62  ;;  %v7359_v15 = vld [vmem:[#allocation25_spill] sm:$0xff]  ;;  %v7362_v40 = vld [vmem:[#allocation27_spill] sm:$0xff] }
 0x1fe   : > { %3750 = vst.msk [vmem:[%s5738_s17 + $0x60] sm:$0xf] %vm1643_vm3, %v2110_v56  ;;  %v2103_v46 = vmax.f32 %v2088_v6, 0.0  ;;  %v7358_v56 = vld [vmem:[#allocation24_spill] sm:$0xff]  ;;  %2714 = vmatpush.bf16.msrb.mxu2 %v7359_v15  ;;  %v7364_v6 = vld [vmem:[#allocation30_spill] sm:$0xff]  ;;  %v7372_v15 = vld [vmem:[#allocation37_spill] sm:$0xff] }
 0x1ff   : > { %v2089_v20 = vadd.f32 %v2072_v52, %v7330_v39  ;;  %3780 = vmatmul.msk.bf16.vlgmr.msra.gmra.mxu3 %vm810_vm2, %v6086_v21  ;;  %3782 = vmatmul.msk.bf16.vlgmr.msra.gmra.mxu2 %vm810_vm2, %v6086_v21  ;;  %v7363_v52 = vld [vmem:[#allocation28_spill] sm:$0xff] }
 0x200   : > { %2657 = vmatpush.bf16.msrb.mxu1 %v7349_v33  ;;  %v2055_v12 = vpop.f32.mrf.mxu0  ;;  %v2112_v36 = vpack.c.bf16 %v2103_v46, %v2102_v51  ;;  %v7368_v51 = vld [vmem:[#allocation33_spill] sm:$0xff]  ;;  %v7369_v46 = vld [vmem:[#allocation35_spill] sm:$0xff] }
 0x201   : > { %2693 = vmatpush.bf16.msrb.mxu0 %v7352_v50  ;;  %v2104_v5 = vmax.f32 %v2089_v20, 0.0  ;;  %v2037_v33 = vpop.f32.mrf.mxu3  ;;  %2678 = vmatpush.bf16.msrb.mxu3 %v7358_v56  ;;  %v2190_v25 = vpop.f32.mrf.mxu1  ;;  %v7365_v12 = vld [vmem:[#allocation31_spill] sm:$0xff] }
 0x202   : > { %3752 = vst [vmem:[%s5738_s17 + $0x6c] sm:$0x11] %v2112_v36  ;;  %2780 = vmatpush.bf16.msra.mxu2 %v7365_v12  ;;  %v6267_v36 = vld [vmem:[%s4292_s19 + $0xa0] sm:$0xff]  ;;  %v7371_v33 = vld [vmem:[#allocation36_spill] sm:$0xff] }
 0x203   : > { %v2113_v24 = vpack.c.bf16 %v2104_v5, %v2104_v5  ;;  %2519 = vmatmul.bf16.vlgmr.msra.gmra.mxu0 %v6083_v31  ;;  %v7366_v31 = vld [vmem:[#allocation29_spill] sm:$0xff]  ;;  %v7370_v5 = vld [vmem:[#allocation34_spill] sm:$0xff] }
 0x204   : > { %2658 = vmatpush.bf16.msrb.mxu1 %v7353_v19  ;;  %v2073_v9 = vpop.f32.mrf.mxu2 }
 0x205   : > { %2694 = vmatpush.bf16.msrb.mxu0 %v7356_v26  ;;  %3753 = vst.msk [vmem:[%s5738_s17 + $0x74] sm:$0x1] %vm1650_vm4, %v2113_v24  ;;  %2744 = vmatpush.bf16.msra.mxu3 %v7364_v6  ;;  %v3799_v26 = vld [vmem:[%s4292_s19 + $0x90] sm:$0xfe]  ;;  %v3800_v24 = vld [vmem:[%s4292_s19 + $0x98] sm:$0xfe] }
 0x206   : > { %2781 = vmatpush.bf16.msra.mxu2 %v7369_v46  ;;  %v7373_v9 = vld [vmem:[#allocation39_spill] sm:$0xff] }
 0x208   : > { %2659 = vmatpush.bf16.msrb.mxu1 %v7357_v54  ;;  %v2226_v41 = vpop.f32.mrf.mxu0  ;;  %v6271_v54 = vld [vmem:[%s4292_s19 + $0xa8] sm:$0xff] }
 0x209   : > { %2695 = vmatpush.bf16.msrb.mxu0 %v7360_v18  ;;  %v2208_v58 = vpop.f32.mrf.mxu3  ;;  %v2192_v21 = vpop.f32.mrf.mxu1  ;;  %2745 = vmatpush.bf16.msra.mxu3 %v7368_v51  ;;  %v2611_v18 = vpack.c.bf16 %v6267_v36, %v3799_v26  ;;  %v2612_v6 = vpack.c.bf16 %v6271_v54, %v3800_v24  ;;  %v7377_v51 = vld [vmem:[#allocation43_spill] sm:$0xff]  ;;  %v7378_v26 = vld [vmem:[#allocation42_spill] sm:$0xff]  ;;  %v7379_v24 = vld [vmem:[#allocation44_spill] sm:$0xff] }
 0x20a   : > { %v6257_v50 = vadd.f32 %v2208_v58, %v2190_v25  ;;  %2782 = vmatpush.bf16.msra.mxu2 %v7373_v9  ;;  %v3801_v58 = vld [vmem:[%s4292_s19 + $0xb0] sm:$0x7] }
 0x20b   : > { %2488 = vmatmul.bf16.gmra.mxu1 %v6129_v10 }
 0x20c   : > { %2660 = vmatpush.bf16.msrb.mxu1 %v7361_v3  ;;  %v2244_v19 = vpop.f32.mrf.mxu2  ;;  %v7374_v3 = vld [vmem:[#allocation38_spill] sm:$0xff] }
 0x20d   : > { %2696 = vmatpush.bf16.msrb.mxu0 %v7362_v40  ;;  %v6260_v20 = vadd.f32 %v2244_v19, %v2226_v41  ;;  %2746 = vmatpush.bf16.msra.mxu3 %v7372_v15  ;;  %v3802_v19 = vld [vmem:[%s4292_s19 + $0xb8] sm:$0x7]  ;;  %v7381_v15 = vld [vmem:[#allocation47_spill] sm:$0xff] }
 0x20e   : > { %2783 = vmatpush.bf16.msra.mxu2 %v7377_v51  ;;  %v6297_v46 = vpack.c.bf16 %v3802_v19, %v3802_v19 }
 0x20f   : > { %3781 = vmatmul.msk.bf16.gmra.mxu3 %vm810_vm2, %v6131_v47  ;;  %3783 = vmatmul.msk.bf16.gmra.mxu2 %vm810_vm2, %v6131_v47 }
 0x210   : > { %2725 = vmatpush.bf16.msra.mxu1 %v7363_v52  ;;  %v2228_v62 = vpop.f32.mrf.mxu0  ;;  %v2635_v51 = vshll.u32 %v6297_v46, 16 }
 0x211   : > { %2761 = vmatpush.bf16.msra.mxu0 %v7366_v31  ;;  %v2210_v56 = vpop.f32.mrf.mxu3  ;;  %v2195_v52 = vpop.f32.mrf.mxu1  ;;  %v7375_v31 = vld [vmem:[#allocation40_spill] sm:$0xff] }
 0x212   : > { %v6277_v25 = vadd.f32 %v2210_v56, %v2192_v21  ;;  %v6292_v21 = vpack.c.bf16 %v3801_v58, %v3801_v58  ;;  %v7380_v56 = vld [vmem:[#allocation45_spill] sm:$0xff]  ;;  %2784 = vmatpush.bf16.msra.mxu2 %v7381_v15  ;;  %v2637_v39 = vrot.slane %v2635_v51, 1 }
 0x213   : > { %2524 = vmatmul.bf16.gmra.mxu0 %v6129_v10  ;;  %v7384_v15 = vld [vmem:[#allocation49_spill] sm:$0xff] }
 0x214   : > { %2726 = vmatpush.bf16.msra.mxu1 %v7367_v37  ;;  %v2246_v41 = vpop.f32.mrf.mxu2  ;;  %v7376_v37 = vld [vmem:[#allocation41_spill] sm:$0xff]  ;;  %v2623_v58 = vshll.u32 %v6292_v21, 16 }
 0x215   : > { %2762 = vmatpush.bf16.msra.mxu0 %v7370_v5  ;;  %v6281_v40 = vadd.f32 %v2246_v41, %v2228_v62  ;;  %2747 = vmatpush.bf16.msra.mxu3 %v7376_v37  ;;  %v2618_v62 = vshll.u32 %v2611_v18, 16  ;;  %v2630_v5 = vshll.u32 %v2612_v6, 16 }
 0x217   : > { %v2620_v10 = vrot.slane %v2618_v62, 1  ;;  %v2632_v37 = vrot.slane %v2630_v5, 1  ;;  %v2625_v62 = vrot.slane %v2623_v58, 1  ;;  %v7388_v5 = vld [vmem:[#allocation53_spill] sm:$0xff]  ;;  %v7391_v58 = vld [vmem:[#allocation58_spill] sm:$0xff] }
 0x218   : > { %2727 = vmatpush.bf16.msra.mxu1 %v7371_v33  ;;  %v2231_v12 = vpop.f32.mrf.mxu0 }
 0x219   : > { %2763 = vmatpush.bf16.msra.mxu0 %v7374_v3  ;;  %v2213_v33 = vpop.f32.mrf.mxu3  ;;  %2748 = vmatpush.bf16.msra.mxu3 %v7380_v56  ;;  %v2616_v3 = vshrl.u32 %v2611_v18, 16  ;;  %v2197_v19 = vpop.f32.mrf.mxu1  ;;  %v7383_v56 = vld [vmem:[#allocation48_spill] sm:$0xff] }
 0x21a   : > { %v6303_v9 = vadd.f32 %v2213_v33, %v2195_v52  ;;  %v7385_v52 = vld [vmem:[#allocation51_spill] sm:$0xff] }
 0x21b   : > { %2785 = vmatpush.bf16.msra.mxu2 %v7385_v52  ;;  %v2621_v18 = vor.u32 %v2620_v10, %v2616_v3  ;;  %v7389_v19 = vld [vmem:[#allocation55_spill] sm:$0xff]  ;;  %v7390_v10 = vld [vmem:[#allocation54_spill] sm:$0xff]  ;;  %v7394_v52 = vld [vmem:[#allocation56_spill] sm:$0xff] }
 0x21c   : > { %2728 = vmatpush.bf16.msra.mxu1 %v7375_v31  ;;  %v2249_v41 = vpop.f32.mrf.mxu2  ;;  %v2628_v31 = vshrl.u32 %v2612_v6, 16 }
 0x21d   : > { %2764 = vmatpush.bf16.msra.mxu0 %v7378_v26  ;;  %v6306_v47 = vadd.f32 %v2249_v41, %v2231_v12  ;;  %2749 = vmatpush.bf16.msra.mxu3 %v7384_v15  ;;  %v7386_v12 = vld [vmem:[#allocation50_spill] sm:$0xff]  ;;  %v7387_v41 = vld [vmem:[#allocation52_spill] sm:$0xff] }
 0x21e   : > { %v2633_v33 = vor.u32 %v2632_v37, %v2628_v31  ;;  %v7392_v31 = vld [vmem:[#allocation59_spill] sm:$0xff]  ;;  %v7393_v37 = vld [vmem:[#allocation60_spill] sm:$0xff] }
 0x21f   : > { %2786 = vmatpush.bf16.msra.mxu2 %v7389_v19 }
 0x220   : > { %2729 = vmatpush.bf16.msra.mxu1 %v7379_v24  ;;  %v2233_v26 = vpop.f32.mrf.mxu0  ;;  %v7382_v24 = vld [vmem:[#allocation46_spill] sm:$0xff]  ;;  %v6321_v15 = vsel %vm400_vm1, %v2633_v33, %v2637_v39 }
 0x221   : > { %2765 = vmatpush.bf16.msra.mxu0 %v7382_v24  ;;  %v2215_v6 = vpop.f32.mrf.mxu3  ;;  %2750 = vmatpush.bf16.msra.mxu3 %v7388_v5  ;;  %v2262_v24 = vpop.f32.mrf.mxu1 }
 0x222   : > { %3803 = vmatmul.msk.bf16.vlgmr.msrb.gmra.mxu3 %vm810_vm2, %v6321_v15  ;;  %3805 = vmatmul.msk.bf16.vlgmr.msrb.gmra.mxu2 %vm810_vm2, %v6321_v15 }
 0x224   : > { %2730 = vmatpush.bf16.msra.mxu1 %v7383_v56  ;;  %v2251_v26 = vpop.f32.mrf.mxu2  ;;  %v6318_v56 = vsel %vm400_vm1, %v2621_v18, %v2625_v62  ;;  %v7395_v18 = vld [vmem:[#allocation57_spill] sm:$0xff] }
 0x225   : > { %2766 = vmatpush.bf16.msra.mxu0 %v7386_v12  ;;  %2661 = vmatmul.bf16.vlgmr.msrb.gmra.mxu1 %v6318_v56  ;;  %v7397_v26 = vld [vmem:[#allocation64_spill] sm:$0xff] }
 0x226   : > { %2697 = vmatmul.bf16.vlgmr.msrb.gmra.mxu0 %v6318_v56  ;;  %2816 = vmatpush.bf16.msrb.mxu3 %v7394_v52  ;;  %v7400_v52 = vld [vmem:[#allocation65_spill] sm:$0xff] }
 0x227   : > { %2858 = vmatpush.bf16.msrb.mxu2 %v7395_v18  ;;  %v7402_v18 = vld [vmem:[#allocation66_spill] sm:$0xff] }
 0x228   : > { %2731 = vmatpush.bf16.msra.mxu1 %v7387_v41  ;;  %v2298_v3 = vpop.f32.mrf.mxu0  ;;  %v7396_v41 = vld [vmem:[#allocation61_spill] sm:$0xff] }
 0x229   : > { %2767 = vmatpush.bf16.msra.mxu0 %v7390_v10  ;;  %v2280_v51 = vpop.f32.mrf.mxu3  ;;  %v2264_v5 = vpop.f32.mrf.mxu1  ;;  %v7398_v10 = vld [vmem:[#allocation62_spill] sm:$0xff] }
 0x22a   : > { %v6335_v33 = vadd.f32 %v2280_v51, %v2262_v24  ;;  %2817 = vmatpush.bf16.msrb.mxu3 %v7398_v10  ;;  %v7401_v24 = vld [vmem:[#allocation67_spill] sm:$0xff] }
 0x22c   : > { %2732 = vmatpush.bf16.msra.mxu1 %v7391_v58  ;;  %v2316_v12 = vpop.f32.mrf.mxu2  ;;  %v7399_v58 = vld [vmem:[#allocation63_spill] sm:$0xff] }
 0x22d   : > { %2768 = vmatpush.bf16.msra.mxu0 %v7392_v31  ;;  %v6338_v6 = vadd.f32 %v2316_v12, %v2298_v3  ;;  %2859 = vmatpush.bf16.msrb.mxu2 %v7399_v58  ;;  %v2639_v31 = vshrl.u32 %v6292_v21, 16  ;;  %v7403_v3 = vld [vmem:[#allocation68_spill] sm:$0xff]  ;;  %v7405_v58 = vld [vmem:[#allocation69_spill] sm:$0xff] }
 0x22e   : > { %2818 = vmatpush.bf16.msrb.mxu3 %v7402_v18  ;;  %v7409_v18 = vld [vmem:[#allocation72_spill] sm:$0xff] }
 0x230   : > { %2797 = vmatpush.bf16.msrb.mxu1 %v7393_v37  ;;  %v2300_v19 = vpop.f32.mrf.mxu0  ;;  %v2642_v37 = vshrl.u32 %v6297_v46, 16 }
 0x231   : > { %2839 = vmatpush.bf16.msrb.mxu0 %v7396_v41  ;;  %v2282_v51 = vpop.f32.mrf.mxu3  ;;  %2860 = vmatpush.bf16.msrb.mxu2 %v7403_v3  ;;  %v2267_v46 = vpop.f32.mrf.mxu1 }
 0x232   : > { %v6349_v12 = vadd.f32 %v2282_v51, %v2264_v5  ;;  %v6353_v10 = vor.u32 %v2642_v37, %v2637_v39  ;;  %v7410_v39 = vld [vmem:[#allocation73_spill] sm:$0xff] }
 0x234   : > { %2798 = vmatpush.bf16.msrb.mxu1 %v7397_v26  ;;  %7404 = vst [vmem:[#allocation142_spill] sm:$0xff] %v6349_v12  ;;  %v2318_v41 = vpop.f32.mrf.mxu2  ;;  %v6351_v26 = vor.u32 %v2639_v31, %v2625_v62  ;;  %3804 = vmatmul.msk.bf16.gmra.mxu3 %vm810_vm2, %v6353_v10  ;;  %v7411_v62 = vld [vmem:[#allocation75_spill] sm:$0xff]  ;;  %v7450_v12 = vld [vmem:[#allocation110_spill] sm:$0xff] }
 0x235   : > { %2840 = vmatpush.bf16.msrb.mxu0 %v7400_v52  ;;  %v6356_v21 = vadd.f32 %v2318_v41, %v2300_v19  ;;  %2861 = vmatpush.bf16.msrb.mxu2 %v7409_v18  ;;  %v7413_v19 = vld [vmem:[#allocation76_spill] sm:$0xff]  ;;  %v7418_v18 = vld [vmem:[#allocation78_spill] sm:$0xff] }
 0x236   : > { %2666 = vmatmul.bf16.gmra.mxu1 %v6351_v26  ;;  %2702 = vmatmul.bf16.gmra.mxu0 %v6351_v26 }
 0x237   : > { %7406 = vst [vmem:[#allocation140_spill] sm:$0xff] %v6356_v21  ;;  %3806 = vmatmul.msk.bf16.gmra.mxu2 %vm810_vm2, %v6353_v10  ;;  %v7440_v21 = vld [vmem:[#allocation100_spill] sm:$0xff] }
 0x238   : > { %2799 = vmatpush.bf16.msrb.mxu1 %v7401_v24  ;;  %v2303_v52 = vpop.f32.mrf.mxu0  ;;  %v7408_v24 = vld [vmem:[#allocation70_spill] sm:$0xff] }
 0x239   : > { %2841 = vmatpush.bf16.msrb.mxu0 %v7405_v58  ;;  %2819 = vmatpush.bf16.msrb.mxu3 %v7408_v24  ;;  %v2285_v5 = vpop.f32.mrf.mxu3  ;;  %v2269_v3 = vpop.f32.mrf.mxu1  ;;  %v7416_v58 = vld [vmem:[#allocation77_spill] sm:$0xff]  ;;  %v7417_v24 = vld [vmem:[#allocation79_spill] sm:$0xff] }
 0x23a   : > { %2862 = vmatpush.bf16.msrb.mxu2 %v7413_v19  ;;  %v6371_v31 = vadd.f32 %v2285_v5, %v2267_v46  ;;  %v7422_v46 = vld [vmem:[#allocation82_spill] sm:$0xff]  ;;  %v7423_v5 = vld [vmem:[#allocation84_spill] sm:$0xff] }
 0x23c   : > { %2800 = vmatpush.bf16.msrb.mxu1 %v7407_v60  ;;  %v7412_v60 = vld [vmem:[#allocation74_spill] sm:$0xff]  ;;  %7414 = vst [vmem:[#allocation112_spill] sm:$0xff] %v6371_v31  ;;  %v2321_v37 = vpop.f32.mrf.mxu2  ;;  %v7439_v31 = vld [vmem:[#allocation96_spill] sm:$0xff] }
 0x23d   : > { %2842 = vmatpush.bf16.msrb.mxu0 %v7410_v39  ;;  %2820 = vmatpush.bf16.msrb.mxu3 %v7412_v60  ;;  %v6373_v51 = vadd.f32 %v2321_v37, %v2303_v52  ;;  %v7419_v39 = vld [vmem:[#allocation80_spill] sm:$0xff]  ;;  %v7421_v60 = vld [vmem:[#allocation83_spill] sm:$0xff] }
 0x23e   : > { %2863 = vmatpush.bf16.msrb.mxu2 %v7419_v39 }
 0x23f   : > { %7415 = vst [vmem:[#allocation113_spill] sm:$0xff] %v6373_v51  ;;  %v7436_v51 = vld [vmem:[#allocation98_spill] sm:$0xff] }
 0x240   : > { %2801 = vmatpush.bf16.msrb.mxu1 %v7411_v62  ;;  %v2305_v41 = vpop.f32.mrf.mxu0  ;;  %v7420_v62 = vld [vmem:[#allocation81_spill] sm:$0xff] }
 0x241   : > { %2843 = vmatpush.bf16.msrb.mxu0 %v7416_v58  ;;  %2821 = vmatpush.bf16.msrb.mxu3 %v7418_v18  ;;  %v2287_v19 = vpop.f32.mrf.mxu3  ;;  %v6383_v37 = vpop.f32.mrf.mxu1  ;;  %v7424_v41 = vld [vmem:[#allocation87_spill] sm:$0xff]  ;;  %v7425_v58 = vld [vmem:[#allocation88_spill] sm:$0xff]  ;;  %v7427_v18 = vld [vmem:[#allocation89_spill] sm:$0xff] }
 0x242   : > { %2864 = vmatpush.bf16.msrb.mxu2 %v7423_v5 }
 0x244   : > { %2802 = vmatpush.bf16.msrb.mxu1 %v7417_v24  ;;  %v2323_v52 = vpop.f32.mrf.mxu2  ;;  %3807 = vmatmul.msk.bf16.vlgmr.msra.gmra.mxu3 %vm810_vm2, %v6321_v15  ;;  %v7426_v24 = vld [vmem:[#allocation92_spill] sm:$0xff] }
 0x245   : > { %2844 = vmatpush.bf16.msrb.mxu0 %v7420_v62  ;;  %2822 = vmatpush.bf16.msrb.mxu3 %v7422_v46  ;;  %v7428_v62 = vld [vmem:[#allocation85_spill] sm:$0xff] }
 0x246   : > { %2733 = vmatmul.bf16.vlgmr.msra.gmra.mxu1 %v6318_v56  ;;  %2769 = vmatmul.bf16.vlgmr.msra.gmra.mxu0 %v6318_v56  ;;  %v7430_v46 = vld [vmem:[#allocation93_spill] sm:$0xff] }
 0x247   : > { %3809 = vmatmul.msk.bf16.vlgmr.msra.gmra.mxu2 %vm810_vm2, %v6321_v15 }
 0x248   : > { %2803 = vmatpush.bf16.msrb.mxu1 %v7421_v60  ;;  %v2376_v3 = vpop.f32.mrf.mxu0  ;;  %v7429_v60 = vld [vmem:[#allocation86_spill] sm:$0xff] }
 0x249   : > { %2845 = vmatpush.bf16.msrb.mxu0 %v7424_v41  ;;  %v6395_v39 = vpop.f32.mrf.mxu3  ;;  %2894 = vmatpush.bf16.msra.mxu3 %v7428_v62  ;;  %v6400_v5 = vpop.f32.mrf.mxu1  ;;  %v7432_v41 = vld [vmem:[#allocation94_spill] sm:$0xff] }
 0x24a   : > { %2930 = vmatpush.bf16.msra.mxu2 %v7429_v60  ;;  %7431 = vst [vmem:[#allocation114_spill] sm:$0xff] %v6400_v5  ;;  %v7438_v60 = vld [vmem:[#allocation95_spill] sm:$0xff] }
 0x24c   : > { %2804 = vmatpush.bf16.msrb.mxu1 %v7425_v58  ;;  %v2394_v19 = vpop.f32.mrf.mxu2  ;;  %v7433_v58 = vld [vmem:[#allocation90_spill] sm:$0xff] }
 0x24d   : > { %2846 = vmatpush.bf16.msrb.mxu0 %v7426_v24  ;;  %2895 = vmatpush.bf16.msra.mxu3 %v7433_v58  ;;  %v7434_v24 = vld [vmem:[#allocation91_spill] sm:$0xff]  ;;  %v7442_v58 = vld [vmem:[#allocation102_spill] sm:$0xff] }
 0x24e   : > { %2931 = vmatpush.bf16.msra.mxu2 %v7434_v24  ;;  %v7443_v24 = vld [vmem:[#allocation99_spill] sm:$0xff] }
 0x250   : > { %2875 = vmatpush.bf16.msra.mxu1 %v7427_v18  ;;  %v6402_v52 = vpop.f32.mrf.mxu0  ;;  %v7435_v18 = vld [vmem:[#allocation97_spill] sm:$0xff] }
 0x251   : > { %2911 = vmatpush.bf16.msra.mxu0 %v7430_v46  ;;  %v6409_v62 = vpop.f32.mrf.mxu3  ;;  %2896 = vmatpush.bf16.msra.mxu3 %v7438_v60  ;;  %v6414_v5 = vpop.f32.mrf.mxu1  ;;  %v7447_v60 = vld [vmem:[#allocation103_spill] sm:$0xff] }
 0x252   : > { %7437 = vst [vmem:[#allocation115_spill] sm:$0xff] %v6409_v62  ;;  %2932 = vmatpush.bf16.msra.mxu2 %v7439_v31  ;;  %v7446_v31 = vld [vmem:[#allocation106_spill] sm:$0xff]  ;;  %v7449_v62 = vld [vmem:[#allocation108_spill] sm:$0xff] }
 0x253   : > { %7441 = vst [vmem:[#allocation118_spill] sm:$0xff] %v6414_v5 }
 0x254   : > { %2876 = vmatpush.bf16.msra.mxu1 %v7432_v41  ;;  %v2396_v46 = vpop.f32.mrf.mxu2  ;;  %3808 = vmatmul.msk.bf16.gmra.mxu3 %vm810_vm2, %v6353_v10 }
 0x255   : > { %2912 = vmatpush.bf16.msra.mxu0 %v7435_v18  ;;  %2897 = vmatpush.bf16.msra.mxu3 %v7443_v24  ;;  %v7444_v18 = vld [vmem:[#allocation101_spill] sm:$0xff] }
 0x256   : > { %2933 = vmatpush.bf16.msra.mxu2 %v7444_v18  ;;  %2738 = vmatmul.bf16.gmra.mxu1 %v6351_v26 }
 0x257   : > { %2774 = vmatmul.bf16.gmra.mxu0 %v6351_v26  ;;  %3810 = vmatmul.msk.bf16.gmra.mxu2 %vm810_vm2, %v6353_v10 }
 0x258   : > { %2877 = vmatpush.bf16.msra.mxu1 %v7436_v51  ;;  %v6416_v41 = vpop.f32.mrf.mxu0 }
 0x259   : > { %2913 = vmatpush.bf16.msra.mxu0 %v7440_v21  ;;  %v7445_v21 = vld [vmem:[#allocation104_spill] sm:$0xff]  ;;  %v6429_v51 = vpop.f32.mrf.mxu3  ;;  %2898 = vmatpush.bf16.msra.mxu3 %v7447_v60  ;;  %v2341_v18 = vpop.f32.mrf.mxu1 }
 0x25c   : > { %2878 = vmatpush.bf16.msra.mxu1 %v7442_v58  ;;  %v7448_v58 = vld [vmem:[#allocation105_spill] sm:$0xff]  ;;  %v6433_v24 = vpop.f32.mrf.mxu2 }
 0x25d   : > { %2914 = vmatpush.bf16.msra.mxu0 %v7445_v21  ;;  %2934 = vmatpush.bf16.msra.mxu2 %v7448_v58  ;;  %v3793_v21 = vld [vmem:[%s4292_s19 + $0x90] sm:$0xff]  ;;  %v7453_v58 = vld [vmem:[#allocation111_spill] sm:$0xff] }
 0x25e   : > { %2899 = vmatpush.bf16.msra.mxu3 %v7451_v13 }
 0x260   : > { %2879 = vmatpush.bf16.msra.mxu1 %v7446_v31  ;;  %v2383_v5 = vpop.f32.mrf.mxu0  ;;  %v3794_v31 = vld [vmem:[%s4292_s19 + $0x98] sm:$0xff] }
 0x261   : > { %2915 = vmatpush.bf16.msra.mxu0 %v7449_v62  ;;  %2935 = vmatpush.bf16.msra.mxu2 %v7452_v59  ;;  %v2359_v60 = vpop.f32.mrf.mxu3  ;;  %v2412_v18 = vpop.f32.mrf.mxu1  ;;  %v6446_v62 = vpack.c.bf16 %v6267_v36, %v3793_v21  ;;  %v6449_v13 = vpack.c.bf16 %v6271_v54, %v3794_v31  ;;  %v2377_v59 = vadd.f32 %v2376_v3, %v6257_v50  ;;  %v7455_v50 = vld [vmem:[#allocation116_spill] sm:$0xff]  ;;  %v7458_v21 = vld [vmem:[#allocation119_spill] sm:$0xff] }
 0x262   : > { %2900 = vmatpush.bf16.msra.mxu3 %v7453_v58 }
 0x264   : > { %2880 = vmatpush.bf16.msra.mxu1 %v7450_v12  ;;  %v2401_v5 = vpop.f32.mrf.mxu2  ;;  %3811 = vmatmul.msk.bf16.vlgmr.msrb.gmra.mxu3 %vm810_vm2, %v6321_v15  ;;  %v7457_v15 = vld [vmem:[#allocation122_spill] sm:$0xff] }
 0x265   : > { %2916 = vmatpush.bf16.msra.mxu0 %v7313_v4  ;;  %2936 = vmatpush.bf16.msra.mxu2 %v7314_v63  ;;  %v2413_v63 = vadd.f32 %v2412_v18, %v6260_v20  ;;  %v7454_v4 = vld [vmem:[#allocation121_spill] sm:$0xff] }
 0x266   : > { %2805 = vmatmul.bf16.vlgmr.msrb.gmra.mxu1 %v6318_v56  ;;  %2966 = vmatpush.bf16.msrb.mxu3 %v7455_v50 }
 0x267   : > { %2847 = vmatmul.bf16.vlgmr.msrb.gmra.mxu0 %v6446_v62  ;;  %3813 = vmatmul.msk.bf16.vlgmr.msrb.gmra.mxu2 %vm810_vm2, %v6449_v13 }
 0x268   : > { %2881 = vmatpush.bf16.msra.mxu1 %v7315_v27  ;;  %v6452_v12 = vpop.f32.mrf.mxu0  ;;  %v2395_v27 = vadd.f32 %v2394_v19, %v2377_v59 }
 0x269   : > { %2917 = vmatpush.bf16.msra.mxu0 %v7316_v34  ;;  %v2430_v34 = vpop.f32.mrf.mxu3  ;;  %v2414_v3 = vpop.f32.mrf.mxu1 }
 0x26a   : > { %v2547_v36 = vadd.f32 %v2395_v27, %v5705_v17  ;;  %v2431_v54 = vadd.f32 %v2430_v34, %v2413_v63  ;;  %2967 = vmatpush.bf16.msrb.mxu3 %v7458_v21  ;;  %v2415_v18 = vadd.f32 %v2414_v3, %v6281_v40  ;;  %v7459_v27 = vld [vmem:[#allocation124_spill] sm:$0xff] }
 0x26c   : > { %2882 = vmatpush.bf16.msra.mxu1 %v7317_v55  ;;  %v7456_v55 = vld [vmem:[#allocation117_spill] sm:$0xff]  ;;  %v6468_v56 = vpop.f32.mrf.mxu2  ;;  %v2548_v20 = vadd.f32 %v2431_v54, %v5715_v16  ;;  %v2562_v31 = vmax.f32 %v2547_v36, 0.0 }
 0x26d   : > { %2918 = vmatpush.bf16.msra.mxu0 %v7186_v1  ;;  %3002 = vmatpush.bf16.msrb.mxu2 %v7456_v55  ;;  %v2379_v1 = vadd.f32 %v6402_v52, %v6277_v25  ;;  %v3797_v25 = vld [vmem:[%s4292_s19 + $0xb0] sm:$0x3]  ;;  %v3798_v52 = vld [vmem:[%s4292_s19 + $0xb8] sm:$0x3] }
 0x26e   : > { %v2563_v58 = vmax.f32 %v2548_v20, 0.0  ;;  %2968 = vmatpush.bf16.msrb.mxu3 %v7459_v27  ;;  %v6491_v63 = vpack.c.bf16 %v3797_v25, %v3797_v25  ;;  %v6493_v40 = vpack.c.bf16 %v3798_v52, %v3798_v52  ;;  %v7464_v20 = vld [vmem:[#allocation125_spill] sm:$0xff] }
 0x26f   : > { %v2397_v60 = vadd.f32 %v2396_v46, %v2379_v1 }
 0x270   : > { %2947 = vmatpush.bf16.msrb.mxu1 %v7454_v4  ;;  %v6474_v19 = vpop.f32.mrf.mxu0  ;;  %v2577_v5 = vpack.c.bf16 %v2563_v58, %v2562_v31  ;;  %v7465_v58 = vld [vmem:[#allocation114_spill] sm:$0xff] }
 0x271   : > { %2983 = vmatpush.bf16.msrb.mxu0 %v7457_v15  ;;  %3003 = vmatpush.bf16.msrb.mxu2 %v7321_v11  ;;  %v2432_v59 = vpop.f32.mrf.mxu3  ;;  %v7462_v15 = vld [vmem:[#allocation142_spill] sm:$0xff] }
 0x272   : > { %3784 = vst [vmem:[%s5738_s17 + $0x78] sm:$0xff] %v2577_v5  ;;  %v2433_v11 = vadd.f32 %v2432_v59, %v2415_v18  ;;  %2969 = vmatpush.bf16.msrb.mxu3 %v7187_v45  ;;  %v7466_v5 = vld [vmem:[#allocation115_spill] sm:$0xff]  ;;  %v7467_v59 = vld [vmem:[#allocation140_spill] sm:$0xff] }
 0x273   : > { %v2355_v18 = vadd.f32 %v7466_v5, %v7465_v58 }
 0x274   : > { %2948 = vmatpush.bf16.msrb.mxu1 %v7190_v2  ;;  %v2552_v2 = vadd.f32 %v2397_v60, %v5705_v17  ;;  %v6488_v46 = vpop.f32.mrf.mxu2  ;;  %v2553_v4 = vadd.f32 %v2433_v11, %v5715_v16  ;;  %3812 = vmatmul.msk.bf16.gmra.mxu3 %vm810_vm2, %v6353_v10 }
 0x275   : > { %2984 = vmatpush.bf16.msrb.mxu0 %v7192_v48  ;;  %3004 = vmatpush.bf16.msrb.mxu2 %v7323_v44  ;;  %v2417_v48 = vpop.f32.mrf.mxu1 }
 0x276   : > { %v2568_v50 = vmax.f32 %v2553_v4, 0.0  ;;  %2810 = vmatmul.bf16.gmra.mxu1 %v6351_v26  ;;  %v2418_v45 = vadd.f32 %v2417_v48, %v6306_v47  ;;  %2970 = vmatpush.bf16.msrb.mxu3 %v7325_v28 }
 0x277   : > { %2852 = vmatmul.bf16.gmra.mxu0 %v6491_v63  ;;  %3814 = vmatmul.msk.bf16.gmra.mxu2 %vm810_vm2, %v6493_v40 }
 0x278   : > { %2949 = vmatpush.bf16.msrb.mxu1 %v7193_v30  ;;  %v2382_v30 = vadd.f32 %v6416_v41, %v6303_v9  ;;  %v6498_v34 = vpop.f32.mrf.mxu0 }
 0x279   : > { %2985 = vmatpush.bf16.msrb.mxu0 %v7194_v22  ;;  %3005 = vmatpush.bf16.msrb.mxu2 %v7324_v49  ;;  %v2567_v22 = vmax.f32 %v2552_v2, 0.0  ;;  %v2435_v49 = vpop.f32.mrf.mxu3 }
 0x27a   : > { %v2400_v44 = vadd.f32 %v6433_v24, %v2382_v30  ;;  %v2436_v26 = vadd.f32 %v2435_v49, %v2418_v45  ;;  %2971 = vmatpush.bf16.msrb.mxu3 %v7327_v35 }
 0x27c   : > { %2950 = vmatpush.bf16.msrb.mxu1 %v7195_v23  ;;  %v2580_v23 = vpack.c.bf16 %v2568_v50, %v2567_v22  ;;  %v2557_v9 = vadd.f32 %v2400_v44, %v5705_v17  ;;  %v6517_v10 = vpop.f32.mrf.mxu2  ;;  %v2558_v24 = vadd.f32 %v2436_v26, %v5715_v16  ;;  %v7468_v44 = vld [vmem:[#allocation112_spill] sm:$0xff] }
 0x27d   : > { %2986 = vmatpush.bf16.msrb.mxu0 %v7196_v32  ;;  %3006 = vmatpush.bf16.msrb.mxu2 %v7326_v43  ;;  %v2419_v41 = vpop.f32.mrf.mxu1  ;;  %v2454_v50 = vadd.f32 %v6498_v34, %v7468_v44 }
 0x27e   : > { %3787 = vst [vmem:[%s5738_s17 + $0x8c] sm:$0xff] %v2580_v23  ;;  %v2573_v32 = vmax.f32 %v2558_v24, 0.0  ;;  %2972 = vmatpush.bf16.msrb.mxu3 %v5405_v38  ;;  %v2353_v38 = vadd.f32 %v6395_v39, %v6383_v37  ;;  %v2451_v37 = vadd.f32 %v6474_v19, %v7462_v15  ;;  %v7463_v39 = vld [vmem:[#allocation128_spill] sm:$0xff]  ;;  %v7469_v24 = vld [vmem:[#allocation118_spill] sm:$0xff] }
 0x27f   : > { %v2472_v26 = vadd.f32 %v6517_v10, %v2454_v50 }
 0x280   : > { %2951 = vmatpush.bf16.msrb.mxu1 %v7197_v14  ;;  %v2455_v47 = vpop.f32.mrf.mxu0  ;;  %v2572_v14 = vmax.f32 %v2557_v9, 0.0  ;;  %v2469_v31 = vadd.f32 %v6488_v46, %v2451_v37 }
 0x281   : > { %2987 = vmatpush.bf16.msrb.mxu0 %v5390_v61  ;;  %3007 = vmatpush.bf16.msrb.mxu2 %v7328_v0  ;;  %v2437_v43 = vpop.f32.mrf.mxu3  ;;  %v7461_v0 = vld [vmem:[#allocation120_spill] sm:$0xff]  ;;  %v2358_v47 = vadd.f32 %v6429_v51, %v7469_v24 }
 0x282   : > { %v2583_v28 = vpack.c.bf16 %v2573_v32, %v2572_v14  ;;  %v2554_v48 = vadd.f32 %v2469_v31, %v7461_v0  ;;  %v7470_v32 = vld [vmem:[#allocation113_spill] sm:$0xff] }
 0x284   : > { %2952 = vmatpush.bf16.msrb.mxu1 %v5399_v53  ;;  %3790 = vst [vmem:[%s5738_s17 + $0xa0] sm:$0x11] %v2583_v28  ;;  %v2473_v61 = vpop.f32.mrf.mxu2  ;;  %v2449_v53 = vadd.f32 %v6452_v12, %v6335_v33  ;;  %3815 = vmatmul.msk.bf16.vlgmr.msra.gmra.mxu3 %vm810_vm2, %v6449_v13  ;;  %v2569_v9 = vmax.f32 %v2554_v48, 0.0 }
 0x285   : > { %2988 = vmatpush.bf16.msrb.mxu0 %v5420_v29  ;;  %3008 = vmatpush.bf16.msrb.mxu2 %v5423_v42  ;;  %v2484_v55 = vpop.f32.mrf.mxu1 }
 0x286   : > { %v2467_v29 = vadd.f32 %v6468_v56, %v2449_v53  ;;  %2883 = vmatmul.bf16.vlgmr.msra.gmra.mxu1 %v6446_v62  ;;  %v2485_v42 = vadd.f32 %v2484_v55, %v6338_v6  ;;  %v2559_v55 = vadd.f32 %v2472_v26, %v7461_v0 }
 0x287   : > { %2919 = vmatmul.bf16.vlgmr.msra.gmra.mxu0 %v6446_v62  ;;  %3817 = vmatmul.msk.bf16.vlgmr.msra.gmra.mxu2 %vm810_vm2, %v6449_v13 }
 0x288   : > { %2953 = vmatpush.bf16.msrb.mxu1 %v5426_v8  ;;  %v2520_v35 = vpop.f32.mrf.mxu0  ;;  %v7460_v8 = vld [vmem:[#allocation139_spill] sm:$0xff]  ;;  %v2549_v33 = vadd.f32 %v2467_v29, %v7461_v0 }
 0x289   : > { %2989 = vmatpush.bf16.msrb.mxu0 %v5443_v57  ;;  %v2521_v57 = vadd.f32 %v2520_v35, %v2353_v38 }
 0x28a   : > { %v2564_v21 = vmax.f32 %v2549_v33, 0.0 }
 0x28c   : > { %2954 = vmatpush.bf16.msrb.mxu1 %v5447_v7  ;;  %v2502_v7 = vpop.f32.mrf.mxu3  ;;  %v2538_v36 = vpop.f32.mrf.mxu2 }
 0x28d   : > { %2990 = vmatpush.bf16.msrb.mxu0 %v7460_v8  ;;  %v2503_v12 = vadd.f32 %v2502_v7, %v2485_v42  ;;  %v2539_v54 = vadd.f32 %v2538_v36, %v2521_v57  ;;  %v2486_v56 = vpop.f32.mrf.mxu1  ;;  %v2574_v57 = vmax.f32 %v2559_v55, 0.0 }
 0x28e   : > { %v2487_v27 = vadd.f32 %v2486_v56, %v7467_v59 }
 0x28f   : > { %v2550_v3 = vadd.f32 %v2503_v12, %v7463_v39  ;;  %v2551_v6 = vadd.f32 %v2539_v54, %v7464_v20 }
 0x290   : > { %v2522_v1 = vpop.f32.mrf.mxu0 }
 0x291   : > { %v2565_v60 = vmax.f32 %v2550_v3, 0.0  ;;  %v2566_v25 = vmax.f32 %v2551_v6, 0.0  ;;  %v2523_v11 = vadd.f32 %v2522_v1, %v2355_v18 }
 0x293   : > { %v2578_v52 = vpack.c.bf16 %v2565_v60, %v2564_v21  ;;  %v2579_v2 = vpack.c.bf16 %v2566_v25, %v2566_v25 }
 0x294   : > { %v2504_v19 = vpop.f32.mrf.mxu3  ;;  %v2540_v4 = vpop.f32.mrf.mxu2  ;;  %3816 = vmatmul.msk.bf16.gmra.mxu3 %vm810_vm2, %v6493_v40 }
 0x295   : > { %3785 = vst [vmem:[%s5738_s17 + $0x80] sm:$0xff] %v2578_v52  ;;  %v2505_v30 = vadd.f32 %v2504_v19, %v2487_v27  ;;  %v2541_v22 = vadd.f32 %v2540_v4, %v2523_v11  ;;  %v2489_v46 = vpop.f32.mrf.mxu1 }
 0x296   : > { %3786 = vst.msk [vmem:[%s5738_s17 + $0x88] sm:$0xf] %vm1643_vm3, %v2579_v2  ;;  %2888 = vmatmul.bf16.gmra.mxu1 %v6491_v63  ;;  %v2490_v28 = vadd.f32 %v2489_v46, %v7470_v32 }
 0x297   : > { %v2555_v23 = vadd.f32 %v2505_v30, %v7463_v39  ;;  %v2556_v49 = vadd.f32 %v2541_v22, %v7464_v20  ;;  %2924 = vmatmul.bf16.gmra.mxu0 %v6491_v63  ;;  %3818 = vmatmul.msk.bf16.gmra.mxu2 %vm810_vm2, %v6493_v40 }
 0x298   : > { %v2525_v45 = vpop.f32.mrf.mxu0 }
 0x299   : > { %v2570_v41 = vmax.f32 %v2555_v23, 0.0  ;;  %v2571_v34 = vmax.f32 %v2556_v49, 0.0  ;;  %v2526_v43 = vadd.f32 %v2525_v45, %v2358_v47 }
 0x29b   : > { %v2581_v14 = vpack.c.bf16 %v2570_v41, %v2569_v9  ;;  %v2582_v10 = vpack.c.bf16 %v2571_v34, %v2571_v34 }
 0x29c   : > { %v2507_v61 = vpop.f32.mrf.mxu3  ;;  %v2543_v35 = vpop.f32.mrf.mxu2 }
 0x29d   : > { %3788 = vst [vmem:[%s5738_s17 + $0x94] sm:$0xff] %v2581_v14  ;;  %v2508_v53 = vadd.f32 %v2507_v61, %v2490_v28  ;;  %v2544_v51 = vadd.f32 %v2543_v35, %v2526_v43  ;;  %v2491_v29 = vpop.f32.mrf.mxu1 }
 0x29e   : > { %3789 = vst.msk [vmem:[%s5738_s17 + $0x9c] sm:$0xf] %vm1643_vm3, %v2582_v10 }
 0x29f   : > { %v2560_v38 = vadd.f32 %v2508_v53, %v7463_v39  ;;  %v2561_v8 = vadd.f32 %v2544_v51, %v7464_v20 }
 0x2a0   : > { %v2527_v42 = vpop.f32.mrf.mxu0 }
 0x2a1   : > { %v2575_v7 = vmax.f32 %v2560_v38, 0.0  ;;  %v2576_v33 = vmax.f32 %v2561_v8, 0.0 }
 0x2a3   : > { %v2584_v12 = vpack.c.bf16 %v2575_v7, %v2574_v57  ;;  %v2585_v36 = vpack.c.bf16 %v2576_v33, %v2576_v33 }
 0x2a4   : > { %v2509_v54 = vpop.f32.mrf.mxu3  ;;  %v2545_v56 = vpop.f32.mrf.mxu2  ;;  %3819 = vmatmul.msk.bf16.vlgmr.msrb.gmra.mxu3 %vm810_vm2, %v6449_v13 }
 0x2a5   : > { %3791 = vst [vmem:[%s5738_s17 + $0xa8] sm:$0x11] %v2584_v12  ;;  %v2662_v15 = vpop.f32.mrf.mxu1 }
 0x2a6   : > { %3792 = vst.msk [vmem:[%s5738_s17 + $0xb0] sm:$0x1] %vm1650_vm4, %v2585_v36  ;;  %2955 = vmatmul.bf16.vlgmr.msrb.gmra.mxu1 %v6446_v62 }
 0x2a7   : > { %2991 = vmatmul.bf16.vlgmr.msrb.gmra.mxu0 %v6446_v62  ;;  %3821 = vmatmul.msk.bf16.vlgmr.msrb.gmra.mxu2 %vm810_vm2, %v6449_v13 }
 0x2a8   : > { %v2698_v37 = vpop.f32.mrf.mxu0 }
 0x2ac   : > { %v2680_v3 = vpop.f32.mrf.mxu3  ;;  %v2716_v6 = vpop.f32.mrf.mxu2 }
 0x2ad   : > { %v2681_v1 = vadd.f32 %v2680_v3, %v2662_v15  ;;  %v6586_v21 = vadd.f32 %v2716_v6, %v2698_v37  ;;  %v2664_v31 = vpop.f32.mrf.mxu1 }
 0x2b0   : > { %v2700_v60 = vpop.f32.mrf.mxu0 }
 0x2b4   : > { %v2682_v58 = vpop.f32.mrf.mxu3  ;;  %v2718_v18 = vpop.f32.mrf.mxu2  ;;  %3820 = vmatmul.msk.bf16.gmra.mxu3 %vm810_vm2, %v6493_v40 }
 0x2b5   : > { %v6588_v5 = vadd.f32 %v2682_v58, %v2664_v31  ;;  %v6590_v25 = vadd.f32 %v2718_v18, %v2700_v60  ;;  %v2667_v52 = vpop.f32.mrf.mxu1 }
 0x2b6   : > { %2960 = vmatmul.bf16.gmra.mxu1 %v6491_v63 }
 0x2b7   : > { %2996 = vmatmul.bf16.gmra.mxu0 %v6491_v63  ;;  %3822 = vmatmul.msk.bf16.gmra.mxu2 %vm810_vm2, %v6493_v40 }
 0x2b8   : > { %v2703_v59 = vpop.f32.mrf.mxu0 }
 0x2bc   : > { %v2685_v62 = vpop.f32.mrf.mxu3  ;;  %v2721_v27 = vpop.f32.mrf.mxu2 }
 0x2bd   : > { %v6598_v13 = vadd.f32 %v2685_v62, %v2667_v52  ;;  %v6600_v2 = vadd.f32 %v2721_v27, %v2703_v59  ;;  %v2669_v11 = vpop.f32.mrf.mxu1 }
 0x2c0   : > { %v2705_v19 = vpop.f32.mrf.mxu0 }
 0x2c4   : > { %v2687_v48 = vpop.f32.mrf.mxu3  ;;  %v2723_v30 = vpop.f32.mrf.mxu2 }
 0x2c5   : > { %v2734_v4 = vpop.f32.mrf.mxu1 }
 0x2c8   : > { %v2770_v22 = vpop.f32.mrf.mxu0 }
 0x2cc   : > { %v2752_v46 = vpop.f32.mrf.mxu3  ;;  %v2788_v50 = vpop.f32.mrf.mxu2 }
 0x2cd   : > { %v6602_v44 = vadd.f32 %v2752_v46, %v2734_v4  ;;  %v6604_v63 = vadd.f32 %v2788_v50, %v2770_v22  ;;  %v2736_v23 = vpop.f32.mrf.mxu1 }
 0x2d0   : > { %v2772_v40 = vpop.f32.mrf.mxu0 }
 0x2d4   : > { %v2754_v45 = vpop.f32.mrf.mxu3  ;;  %v2790_v9 = vpop.f32.mrf.mxu2 }
 0x2d5   : > { %v6606_v49 = vadd.f32 %v2754_v45, %v2736_v23  ;;  %v6608_v26 = vadd.f32 %v2790_v9, %v2772_v40  ;;  %v2739_v41 = vpop.f32.mrf.mxu1 }
 0x2d8   : > { %v2775_v24 = vpop.f32.mrf.mxu0 }
 0x2dc   : > { %v2757_v47 = vpop.f32.mrf.mxu3  ;;  %v2793_v14 = vpop.f32.mrf.mxu2 }
 0x2dd   : > { %v6610_v34 = vadd.f32 %v2757_v47, %v2739_v41  ;;  %v6612_v32 = vadd.f32 %v2793_v14, %v2775_v24  ;;  %v2741_v28 = vpop.f32.mrf.mxu1 }
 0x2e0   : > { %v2777_v10 = vpop.f32.mrf.mxu0 }
 0x2e4   : > { %v2759_v43 = vpop.f32.mrf.mxu3  ;;  %v2795_v61 = vpop.f32.mrf.mxu2 }
 0x2e5   : > { %v6614_v55 = vpop.f32.mrf.mxu1 }
 0x2e8   : > { %v2848_v53 = vpop.f32.mrf.mxu0 }
 0x2e9   : > { %v2849_v3 = vadd.f32 %v2848_v53, %v2681_v1 }
 0x2ec   : > { %v6616_v35 = vpop.f32.mrf.mxu3  ;;  %v2866_v51 = vpop.f32.mrf.mxu2 }
 0x2ed   : > { %v6618_v29 = vpop.f32.mrf.mxu1  ;;  %v2867_v31 = vadd.f32 %v2866_v51, %v2849_v3 }
 0x2ef   : > { %v3019_v18 = vadd.f32 %v2867_v31, %v5705_v17 }
 0x2f0   : > { %v2850_v38 = vpop.f32.mrf.mxu0 }
 0x2f1   : > { %v2851_v27 = vadd.f32 %v2850_v38, %v6588_v5  ;;  %v3034_v48 = vmax.f32 %v3019_v18, 0.0 }
 0x2f4   : > { %v6620_v42 = vpop.f32.mrf.mxu3  ;;  %v2868_v8 = vpop.f32.mrf.mxu2 }
 0x2f5   : > { %v6622_v57 = vpop.f32.mrf.mxu1  ;;  %v2869_v30 = vadd.f32 %v2868_v8, %v2851_v27  ;;  %v2827_v27 = vadd.f32 %v6620_v42, %v6618_v29 }
 0x2f8   : > { %v2853_v7 = vpop.f32.mrf.mxu0 }
 0x2f9   : > { %v2854_v45 = vadd.f32 %v2853_v7, %v6598_v13 }
 0x2fc   : > { %v6624_v33 = vpop.f32.mrf.mxu3  ;;  %v2871_v12 = vpop.f32.mrf.mxu2 }
 0x2fd   : > { %v2813_v36 = vpop.f32.mrf.mxu1  ;;  %v2872_v24 = vadd.f32 %v2871_v12, %v2854_v45 }
 0x2ff   : > { %v3029_v10 = vadd.f32 %v2872_v24, %v5705_v17 }
 0x300   : > { %v2855_v54 = vpop.f32.mrf.mxu0 }
 0x301   : > { %v3044_v38 = vmax.f32 %v3029_v10, 0.0 }
 0x304   : > { %v2831_v56 = vpop.f32.mrf.mxu3  ;;  %v2873_v15 = vpop.f32.mrf.mxu2 }
 0x305   : > { %v2884_v37 = vpop.f32.mrf.mxu1 }
 0x306   : > { %v2885_v60 = vadd.f32 %v2884_v37, %v6586_v21  ;;  %v3024_v21 = vadd.f32 %v2869_v30, %v5705_v17  ;;  %v2825_v17 = vadd.f32 %v6616_v35, %v6614_v55 }
 0x308   : > { %v2920_v6 = vpop.f32.mrf.mxu0  ;;  %v3039_v41 = vmax.f32 %v3024_v21, 0.0 }
 0x309   : > { %v2921_v56 = vadd.f32 %v2920_v6, %v6602_v44 }
 0x30c   : > { %v2902_v58 = vpop.f32.mrf.mxu3  ;;  %v2938_v59 = vpop.f32.mrf.mxu2 }
 0x30d   : > { %v2903_v52 = vadd.f32 %v2902_v58, %v2885_v60  ;;  %v2886_v62 = vpop.f32.mrf.mxu1  ;;  %v2939_v15 = vadd.f32 %v2938_v59, %v2921_v56 }
 0x30e   : > { %v2887_v22 = vadd.f32 %v2886_v62, %v6590_v25 }
 0x30f   : > { %v3020_v11 = vadd.f32 %v2903_v52, %v5715_v16 }
 0x310   : > { %v2922_v19 = vpop.f32.mrf.mxu0 }
 0x311   : > { %v3035_v4 = vmax.f32 %v3020_v11, 0.0  ;;  %v2923_v62 = vadd.f32 %v2922_v19, %v6606_v49 }
 0x313   : > { %v3049_v1 = vpack.c.bf16 %v3035_v4, %v3034_v48 }
 0x314   : > { %v2904_v46 = vpop.f32.mrf.mxu3  ;;  %v2940_v23 = vpop.f32.mrf.mxu2 }
 0x315   : > { %3823 = vst [vmem:[%s5738_s17 + $0xb4] sm:$0xff] %v3049_v1  ;;  %v2905_v50 = vadd.f32 %v2904_v46, %v2887_v22  ;;  %v2889_v40 = vpop.f32.mrf.mxu1  ;;  %v2941_v35 = vadd.f32 %v2940_v23, %v2923_v62 }
 0x316   : > { %v2890_v25 = vadd.f32 %v2889_v40, %v6600_v2 }
 0x317   : > { %v3025_v5 = vadd.f32 %v2905_v50, %v5715_v16  ;;  %v3026_v49 = vadd.f32 %v2941_v35, %v7461_v0 }
 0x318   : > { %v2925_v9 = vpop.f32.mrf.mxu0 }
 0x319   : > { %v3040_v47 = vmax.f32 %v3025_v5, 0.0  ;;  %v2926_v23 = vadd.f32 %v2925_v9, %v6610_v34  ;;  %v3041_v40 = vmax.f32 %v3026_v49, 0.0 }
 0x31b   : > { %v3052_v14 = vpack.c.bf16 %v3040_v47, %v3039_v41  ;;  %v2830_v41 = vadd.f32 %v6624_v33, %v6622_v57 }
 0x31c   : > { %v2907_v28 = vpop.f32.mrf.mxu3  ;;  %v2943_v61 = vpop.f32.mrf.mxu2 }
 0x31d   : > { %3826 = vst [vmem:[%s5738_s17 + $0xc8] sm:$0xff] %v3052_v14  ;;  %v2908_v43 = vadd.f32 %v2907_v28, %v2890_v25  ;;  %v2891_v53 = vpop.f32.mrf.mxu1  ;;  %v2944_v45 = vadd.f32 %v2943_v61, %v2926_v23 }
 0x31f   : > { %v3030_v51 = vadd.f32 %v2908_v43, %v5715_v16  ;;  %v3021_v16 = vadd.f32 %v2939_v15, %v7461_v0  ;;  %v3031_v34 = vadd.f32 %v2944_v45, %v7461_v0 }
 0x320   : > { %v2927_v13 = vpop.f32.mrf.mxu0 }
 0x321   : > { %v3045_v8 = vmax.f32 %v3030_v51, 0.0  ;;  %v3036_v55 = vmax.f32 %v3021_v16, 0.0 }
 0x323   : > { %v3055_v7 = vpack.c.bf16 %v3045_v8, %v3044_v38 }
 0x324   : > { %v2909_v36 = vpop.f32.mrf.mxu3  ;;  %v2945_v12 = vpop.f32.mrf.mxu2 }
 0x325   : > { %3829 = vst [vmem:[%s5738_s17 + $0xdc] sm:$0x11] %v3055_v7  ;;  %v2956_v54 = vpop.f32.mrf.mxu1 }
 0x326   : > { %v2957_v37 = vadd.f32 %v2956_v54, %v6604_v63 }
 0x328   : > { %v2992_v2 = vpop.f32.mrf.mxu0 }
 0x329   : > { %v2993_v3 = vadd.f32 %v2992_v2, %v2825_v17 }
 0x32c   : > { %v2974_v31 = vpop.f32.mrf.mxu3  ;;  %v3010_v58 = vpop.f32.mrf.mxu2 }
 0x32d   : > { %v2975_v60 = vadd.f32 %v2974_v31, %v2957_v37  ;;  %v3011_v18 = vadd.f32 %v3010_v58, %v2993_v3  ;;  %v2958_v52 = vpop.f32.mrf.mxu1 }
 0x32e   : > { %v2959_v30 = vadd.f32 %v2958_v52, %v6608_v26 }
 0x32f   : > { %v3022_v44 = vadd.f32 %v2975_v60, %v7463_v39  ;;  %v3023_v59 = vadd.f32 %v3011_v18, %v7464_v20 }
 0x330   : > { %v2994_v6 = vpop.f32.mrf.mxu0 }
 0x331   : > { %v3037_v63 = vmax.f32 %v3022_v44, 0.0  ;;  %v3038_v11 = vmax.f32 %v3023_v59, 0.0  ;;  %v2995_v1 = vadd.f32 %v2994_v6, %v2827_v27 }
 0x333   : > { %v3050_v48 = vpack.c.bf16 %v3037_v63, %v3036_v55  ;;  %v3051_v4 = vpack.c.bf16 %v3038_v11, %v3038_v11 }
 0x334   : > { %v2976_v22 = vpop.f32.mrf.mxu3  ;;  %v3012_v46 = vpop.f32.mrf.mxu2 }
 0x335   : > { %3824 = vst [vmem:[%s5738_s17 + $0xbc] sm:$0xff] %v3050_v48  ;;  %v2977_v19 = vadd.f32 %v2976_v22, %v2959_v30  ;;  %v3013_v21 = vadd.f32 %v3012_v46, %v2995_v1  ;;  %v2961_v50 = vpop.f32.mrf.mxu1 }
 0x336   : > { %3825 = vst.msk [vmem:[%s5738_s17 + $0xc4] sm:$0xf] %vm1643_vm3, %v3051_v4  ;;  %v2962_v14 = vadd.f32 %v2961_v50, %v6612_v32  ;;  %v3046_v32 = vmax.f32 %v3031_v34, 0.0 }
 0x337   : > { %v3027_v29 = vadd.f32 %v2977_v19, %v7463_v39  ;;  %v3028_v26 = vadd.f32 %v3013_v21, %v7464_v20 }
 0x338   : > { %v2997_v42 = vpop.f32.mrf.mxu0 }
 0x339   : > { %v3042_v5 = vmax.f32 %v3027_v29, 0.0  ;;  %v3043_v24 = vmax.f32 %v3028_v26, 0.0  ;;  %v2998_v28 = vadd.f32 %v2997_v42, %v2830_v41 }
 0x33b   : > { %v3053_v47 = vpack.c.bf16 %v3042_v5, %v3041_v40  ;;  %v3054_v25 = vpack.c.bf16 %v3043_v24, %v3043_v24 }
 0x33c   : > { %v2979_v10 = vpop.f32.mrf.mxu3  ;;  %v3015_v43 = vpop.f32.mrf.mxu2 }
 0x33d   : > { %3827 = vst [vmem:[%s5738_s17 + $0xd0] sm:$0xff] %v3053_v47  ;;  %v2980_v9 = vadd.f32 %v2979_v10, %v2962_v14  ;;  %v3016_v61 = vadd.f32 %v3015_v43, %v2998_v28  ;;  %v2963_v53 = vpop.f32.mrf.mxu1 }
 0x33e   : > { %3828 = vst.msk [vmem:[%s5738_s17 + $0xd8] sm:$0xf] %vm1643_vm3, %v3054_v25 }
 0x33f   : > { %v3032_v57 = vadd.f32 %v2980_v9, %v7463_v39  ;;  %v3033_v51 = vadd.f32 %v3016_v61, %v7464_v20 }
 0x340   : > { %v2999_v33 = vpop.f32.mrf.mxu0 }
 0x341   : > { %v3047_v13 = vmax.f32 %v3032_v57, 0.0  ;;  %v3048_v38 = vmax.f32 %v3033_v51, 0.0 }
 0x343   : > { %v3056_v8 = vpack.c.bf16 %v3047_v13, %v3046_v32  ;;  %v3057_v7 = vpack.c.bf16 %v3048_v38, %v3048_v38 }
 0x344   : > { %v2981_v0 = vpop.f32.mrf.mxu3  ;;  %v3017_v36 = vpop.f32.mrf.mxu2 }
 0x345   : > { %3830 = vst [vmem:[%s5738_s17 + $0xe4] sm:$0x11] %v3056_v8 }
 0x346   : > { %3831 = vst.msk [vmem:[%s5738_s17 + $0xec] sm:$0x1] %vm1650_vm4, %v3057_v7 }
 0x347 PF: > { %s14_s15 = sadd.s32 1, %s3990_s15  }
 0x348   : > { %p11_p4 = scmp.ge.s32.totalorder %s14_s15, 4  }
 0x34a   :  { %13 = sbr.rel (!%p11_p4) target bundleno = 1 (0x1), region = 72 }

// kernel: prob_tomp_forward.5
= control target key start
LH: loop header
LB: loop body
LE: loop exit
PB: predicated region body
PF: predicated region fallthrough
CT: control target
= control target key end

     0   :  { %s660_s12 = smov 0   ;;  %s771_s0 = inlined_call_operand.vmem [shape: f32[8,36,36], index: 0, kind: input, shape index: {}]   ;;  %s772_s1 = inlined_call_operand.vmem [shape: f32[18,36], index: 1, kind: input, shape index: {}]   ;;  %s773_s2 = inlined_call_operand.vmem [shape: f32[36,18], index: 2, kind: input, shape index: {}]   ;;  %s774_s3 = inlined_call_operand.vmem [shape: f32[8,18,18], index: 3, kind: output, shape index: {}]  }
   0x1 LB: > { %s555_s13 = sadd.s32 4294967295, %s638_s12   ;;  %p559_p0 = scmp.ge.s32.totalorder %s638_s12, 1  ;;  %s638_s12 = sphi %s660_s12, %s13_s12  }
   0x2   : > { %p139_p1 = scmp.lt.s32.totalorder %s638_s12, 3 }
   0x4   : > { %p140_p2 = pnand %p559_p0, %p139_p1 }
   0x5   : > { %s560_s14 = sshll.u32 (!%p140_p2), %s555_s13, 2 }
   0x6   : > { %143 = sbr.rel (%p140_p2) target bundleno = 330 (0x14a), region = 32  ;;  %p166_p3 = scmp.lt.s32.totalorder (!%p140_p2), %s560_s14, 7 }
   0xb   : > { %s776_s14 = smov (!%p166_p3, %s560_s14), 7  ;;  %vm202_vm0 = vcmask 1043456   ;;  %v179_v9 = vld [vmem:[%s772_s1] sm:$0xff]  ;;  %vm192_vm1 = vcmask 293888   ;;  %v180_v18 = vld [vmem:[%s772_s1 + $0x8] sm:$0xff]  ;;  %v185_v23 = vld [vmem:[%s773_s2 + $0x18] sm:$0xff] }
   0xc   : > { %s622_s15 = smul.u32 40, %s776_s14  ;;  %v186_v22 = vld [vmem:[%s773_s2 + $0x20] sm:$0xf]  ;;  %v184_v24 = vld [vmem:[%s773_s2 + $0x10] sm:$0xff]  ;;  %v183_v26 = vld [vmem:[%s773_s2 + $0x8] sm:$0xff]  ;;  %vm270_vm2 = vcmask 146432  }
   0xd   : > { %581 = vmatpush.msk.msra.mxu3 %vm202_vm0, %v186_v22  ;;  %568 = vmatpush.msk.msra.mxu1 %vm202_vm0, %v186_v22  ;;  %v181_v25 = vld [vmem:[%s772_s1 + $0x10] sm:$0x3]  ;;  %v182_v27 = vld [vmem:[%s773_s2] sm:$0xff]  ;;  %s623_s8 = smul.u32 24, %s776_s14  ;;  %vm273_vm3 = vcmask 140288  }
   0xe   : > { %s674_s18 = scalar_lea.vmem %s771_s0, %s622_s15 }
   0xf   : > { %v576_v0 = vld [vmem:[%s674_s18 + $0x48] sm:$0xf]  ;;  %v575_v1 = vld [vmem:[%s674_s18 + $0x40] sm:$0xff]  ;;  %v574_v2 = vld [vmem:[%s674_s18 + $0x38] sm:$0xff]  ;;  %331 = vmatpush.msra.mxu3 %v185_v23  ;;  %256 = vmatpush.msra.mxu1 %v185_v23  ;;  %s177_s11 = scalar_lea.vmem %s774_s3, %s623_s8 }
  0x10   : > { %577 = vmatpush.msk.msra.mxu2 %vm202_vm0, %v576_v0  ;;  %v191_v3 = vld [vmem:[%s674_s18 + $0x20] sm:$0xf]  ;;  %v190_v4 = vld [vmem:[%s674_s18 + $0x18] sm:$0xff]  ;;  %v573_v5 = vld [vmem:[%s674_s18 + $0x30] sm:$0xff] }
  0x11   : > { %564 = vmatpush.msk.msra.mxu0 %vm202_vm0, %v191_v3  ;;  %v189_v6 = vld [vmem:[%s674_s18 + $0x10] sm:$0xff]  ;;  %v572_v7 = vld [vmem:[%s674_s18 + $0x28] sm:$0xff]  ;;  %v608_v10 = vld [vmem:[%s674_s18 + $0x98] sm:$0xf]  ;;  %332 = vmatpush.msra.mxu3 %v184_v24 }
  0x12   : > { %296 = vmatpush.msra.mxu2 %v575_v1  ;;  %v188_v8 = vld [vmem:[%s674_s18 + $0x8] sm:$0xff]  ;;  %v187_v11 = vld [vmem:[%s674_s18] sm:$0xff]  ;;  %v607_v12 = vld [vmem:[%s674_s18 + $0x90] sm:$0xff]  ;;  %257 = vmatpush.msra.mxu1 %v184_v24 }
  0x13   : > { %218 = vmatpush.msra.mxu0 %v190_v4  ;;  %v592_v13 = vld [vmem:[%s674_s18 + $0x70] sm:$0xf]  ;;  %v606_v14 = vld [vmem:[%s674_s18 + $0x88] sm:$0xff]  ;;  %v605_v16 = vld [vmem:[%s674_s18 + $0x80] sm:$0xff]  ;;  %333 = vmatpush.msra.mxu3 %v183_v26 }
  0x14   : > { %297 = vmatpush.msra.mxu2 %v574_v2  ;;  %v591_v15 = vld [vmem:[%s674_s18 + $0x68] sm:$0xff]  ;;  %v590_v17 = vld [vmem:[%s674_s18 + $0x60] sm:$0xff]  ;;  %v604_v19 = vld [vmem:[%s674_s18 + $0x78] sm:$0xff]  ;;  %258 = vmatpush.msra.mxu1 %v183_v26 }
  0x15   : > { %219 = vmatpush.msra.mxu0 %v189_v6  ;;  %v589_v20 = vld [vmem:[%s674_s18 + $0x58] sm:$0xff]  ;;  %v588_v21 = vld [vmem:[%s674_s18 + $0x50] sm:$0xff]  ;;  %334 = vmatpush.msra.mxu3 %v182_v27 }
  0x16   : > { %298 = vmatpush.msra.mxu2 %v573_v5  ;;  %259 = vmatpush.msra.mxu1 %v182_v27 }
  0x17   : > { %220 = vmatpush.msra.mxu0 %v188_v8  ;;  %613 = vmatpush.msk.msrb.mxu3 %vm202_vm0, %v186_v22 }
  0x18   : > { %299 = vmatpush.msra.mxu2 %v572_v7  ;;  %597 = vmatpush.msk.msrb.mxu1 %vm202_vm0, %v186_v22 }
  0x19   : > { %578 = vmatmul.msk.f32.vlgmr.msra.gmra.mxu2 %vm192_vm1, %v179_v9  ;;  %221 = vmatpush.msra.mxu0 %v187_v11 }
  0x1a   : > { %609 = vmatpush.msk.msrb.mxu2 %vm202_vm0, %v608_v10  ;;  %565 = vmatmul.msk.f32.vlgmr.msra.gmra.mxu0 %vm192_vm1, %v179_v9 }
  0x1b   : > { %593 = vmatpush.msk.msrb.mxu0 %vm202_vm0, %v592_v13  ;;  %479 = vmatpush.msrb.mxu3 %v185_v23 }
  0x1c   : > { %444 = vmatpush.msrb.mxu2 %v607_v12  ;;  %405 = vmatpush.msrb.mxu1 %v185_v23 }
  0x1d   : > { %370 = vmatpush.msrb.mxu0 %v591_v15  ;;  %480 = vmatpush.msrb.mxu3 %v184_v24 }
  0x1e   : > { %445 = vmatpush.msrb.mxu2 %v606_v14  ;;  %406 = vmatpush.msrb.mxu1 %v184_v24 }
  0x1f   : > { %371 = vmatpush.msrb.mxu0 %v590_v17  ;;  %481 = vmatpush.msrb.mxu3 %v183_v26 }
  0x20   : > { %446 = vmatpush.msrb.mxu2 %v605_v16  ;;  %407 = vmatpush.msrb.mxu1 %v183_v26 }
  0x21   : > { %579 = vmatmul.msk.f32.gmra.mxu2 %vm192_vm1, %v180_v18  ;;  %372 = vmatpush.msrb.mxu0 %v589_v20 }
  0x22   : > { %447 = vmatpush.msrb.mxu2 %v604_v19  ;;  %566 = vmatmul.msk.f32.gmra.mxu0 %vm192_vm1, %v180_v18 }
  0x23   : > { %373 = vmatpush.msrb.mxu0 %v588_v21  ;;  %482 = vmatpush.msrb.mxu3 %v182_v27 }
  0x24   : > { %408 = vmatpush.msrb.mxu1 %v182_v27 }
  0x29   : > { %580 = vmatmul.msk.f32.gmra.mxu2 %vm192_vm1, %v181_v25 }
  0x2a   : > { %567 = vmatmul.msk.f32.gmra.mxu0 %vm192_vm1, %v181_v25 }
  0x31   : > { %610 = vmatmul.msk.f32.vlgmr.msrb.gmra.mxu2 %vm192_vm1, %v179_v9 }
  0x32   : > { %594 = vmatmul.msk.f32.vlgmr.msrb.gmra.mxu0 %vm192_vm1, %v179_v9 }
  0x39   : > { %611 = vmatmul.msk.f32.gmra.mxu2 %vm192_vm1, %v180_v18 }
  0x3a   : > { %595 = vmatmul.msk.f32.gmra.mxu0 %vm192_vm1, %v180_v18 }
  0x41   : > { %612 = vmatmul.msk.f32.gmra.mxu2 %vm192_vm1, %v181_v25 }
  0x42   : > { %596 = vmatmul.msk.f32.gmra.mxu0 %vm192_vm1, %v181_v25 }
  0x97   : > { %v223_v28 = vpop.f32.mrf.mxu0 }
  0x98   : > { %569 = vmatmul.msk.f32.vlgmr.msra.gmra.mxu1 %vm192_vm1, %v223_v28 }
  0x9c   : > { %v301_v29 = vpop.f32.mrf.mxu2 }
  0x9d   : > { %582 = vmatmul.msk.f32.vlgmr.msra.gmra.mxu3 %vm192_vm1, %v301_v29 }
  0x9f   : > { %v226_v30 = vpop.f32.mrf.mxu0 }
  0xa0   : > { %570 = vmatmul.msk.f32.gmra.mxu1 %vm192_vm1, %v226_v30 }
  0xa4   : > { %v304_v31 = vpop.f32.mrf.mxu2 }
  0xa5   : > { %583 = vmatmul.msk.f32.gmra.mxu3 %vm192_vm1, %v304_v31 }
  0xa7   : > { %v229_v32 = vpop.f32.mrf.mxu0 }
  0xa8   : > { %571 = vmatmul.msk.f32.gmra.mxu1 %vm192_vm1, %v229_v32 }
  0xac   : > { %v307_v33 = vpop.f32.mrf.mxu2 }
  0xad   : > { %584 = vmatmul.msk.f32.gmra.mxu3 %vm192_vm1, %v307_v33 }
  0xaf   : > { %v375_v34 = vpop.f32.mrf.mxu0 }
  0xb0   : > { %598 = vmatmul.msk.f32.vlgmr.msrb.gmra.mxu1 %vm192_vm1, %v375_v34 }
  0xb4   : > { %v449_v35 = vpop.f32.mrf.mxu2 }
  0xb5   : > { %614 = vmatmul.msk.f32.vlgmr.msrb.gmra.mxu3 %vm192_vm1, %v449_v35 }
  0xb7   : > { %v378_v36 = vpop.f32.mrf.mxu0 }
  0xb8   : > { %599 = vmatmul.msk.f32.gmra.mxu1 %vm192_vm1, %v378_v36 }
  0xbc   : > { %v452_v37 = vpop.f32.mrf.mxu2 }
  0xbd   : > { %615 = vmatmul.msk.f32.gmra.mxu3 %vm192_vm1, %v452_v37 }
  0xbf   : > { %v381_v38 = vpop.f32.mrf.mxu0 }
  0xc0   : > { %600 = vmatmul.msk.f32.gmra.mxu1 %vm192_vm1, %v381_v38 }
  0xc4   : > { %v455_v39 = vpop.f32.mrf.mxu2 }
  0xc5   : > { %616 = vmatmul.msk.f32.gmra.mxu3 %vm192_vm1, %v455_v39 }
 0x115   : > { %v261_v40 = vpop.f32.mrf.mxu1 }
 0x116   : > { %271 = vst.msk [vmem:[%s177_s11] sm:$0xff] %vm270_vm2, %v261_v40 }
 0x11d   : > { %v264_v41 = vpop.f32.mrf.mxu1 }
 0x11e   : > { %272 = vst.msk [vmem:[%s177_s11 + $0x8] sm:$0xff] %vm270_vm2, %v264_v41 }
 0x120   : > { %v336_v42 = vpop.f32.mrf.mxu3 }
 0x121   : > { %585 = vst.msk [vmem:[%s177_s11 + $0x18] sm:$0xff] %vm270_vm2, %v336_v42 }
 0x125   : > { %v267_v43 = vpop.f32.mrf.mxu1 }
 0x126   : > { %274 = vst.msk [vmem:[%s177_s11 + $0x10] sm:$0x3] %vm273_vm3, %v267_v43 }
 0x128   : > { %v339_v44 = vpop.f32.mrf.mxu3 }
 0x129   : > { %586 = vst.msk [vmem:[%s177_s11 + $0x20] sm:$0xff] %vm270_vm2, %v339_v44 }
 0x12d   : > { %v410_v45 = vpop.f32.mrf.mxu1 }
 0x12e   : > { %601 = vst.msk [vmem:[%s177_s11 + $0x30] sm:$0xff] %vm270_vm2, %v410_v45 }
 0x130   : > { %v342_v46 = vpop.f32.mrf.mxu3 }
 0x131   : > { %587 = vst.msk [vmem:[%s177_s11 + $0x28] sm:$0x3] %vm273_vm3, %v342_v46 }
 0x135   : > { %v413_v47 = vpop.f32.mrf.mxu1 }
 0x136   : > { %602 = vst.msk [vmem:[%s177_s11 + $0x38] sm:$0xff] %vm270_vm2, %v413_v47 }
 0x138   : > { %v484_v48 = vpop.f32.mrf.mxu3 }
 0x139   : > { %617 = vst.msk [vmem:[%s177_s11 + $0x48] sm:$0xff] %vm270_vm2, %v484_v48 }
 0x13d   : > { %v416_v49 = vpop.f32.mrf.mxu1 }
 0x13e   : > { %603 = vst.msk [vmem:[%s177_s11 + $0x40] sm:$0x3] %vm273_vm3, %v416_v49 }
 0x140   : > { %v487_v50 = vpop.f32.mrf.mxu3 }
 0x141   : > { %618 = vst.msk [vmem:[%s177_s11 + $0x50] sm:$0xff] %vm270_vm2, %v487_v50 }
 0x148   : > { %v490_v51 = vpop.f32.mrf.mxu3 }
 0x149   : > { %619 = vst.msk [vmem:[%s177_s11 + $0x58] sm:$0x3] %vm273_vm3, %v490_v51 }
 0x14a PF: > { %s13_s12 = sadd.s32 1, %s638_s12  }
 0x14b   : > { %p10_p4 = scmp.ge.s32.totalorder %s13_s12, 4  }
 0x14d   :  { %12 = sbr.rel (!%p10_p4) target bundleno = 1 (0x1), region = 68 }

// kernel: squeeze.7
= control target key start
LH: loop header
LB: loop body
LE: loop exit
PB: predicated region body
PF: predicated region fallthrough
CT: control target
= control target key end

     0   :  { %s393_s16 = smov 114   ;;  %s394_s17 = smov 118   ;;  %vm27_vm0 = vcmask 146432   ;;  %vm246_vm1 = vcmask 965632   ;;  %vm260_vm2 = vcmask 982016   ;;  %vm290_vm3 = vcmask 1014784   ;;  %s610_s0 = inlined_call_operand.vmem [shape: f32[2,648], index: 0, kind: input, shape index: {}]   ;;  %s611_s1 = inlined_call_operand.vmem [shape: f32[2,2,18,18], index: 1, kind: output, shape index: {}]  }
   0x1   :  { %v316_v0 = vld [vmem:[%s610_s0 + $0x4] sm:$0x3]  ;;  %v314_v1 = vld [vmem:[%s610_s0 + $0x8] sm:$0x3]  ;;  %v317_v2 = vld [vmem:[%s610_s0 + $0x2] sm:$0x3] }
   0x2   :  { %19 = vst [vmem:[#allocation0 + $0x10] sm:$0x3] %v316_v0  ;;  %v315_v3 = vld [vmem:[%s610_s0 + $0x6] sm:$0x3]  ;;  %v24_v4 = vld [vmem:[%s610_s0] sm:$0x3] }
   0x3   :  { %11 = vst [vmem:[#allocation0 + $0x20] sm:$0x3] %v314_v1  ;;  %s37_s18 = smov 3  ;;  %s395_s19 = smov 110   ;;  %v313_v14 = vld [vmem:[%s610_s0 + $0xa] sm:$0x3] }
   0x4   :  { %23 = vst [vmem:[#allocation0 + $0x8] sm:$0x3] %v317_v2  ;;  %s396_s22 = smov 112   ;;  %s397_s23 = smov 116   ;;  %vm276_vm4 = vcmask 998400   ;;  %vm303_vm5 = vcmask 1031168  }
   0x5   :  { %15 = vst [vmem:[#allocation0 + $0x18] sm:$0x3] %v315_v3  ;;  %s80_s24 = smov 3  ;;  %s72_s25 = smov 3  ;;  %vm264_vm6 = vcmask 64512   ;;  %vm267_vm7 = vcmask 146496  }
   0x6   :  { %25 = vst [vmem:[#allocation0] sm:$0x3] %v24_v4  ;;  %s398_s26 = smov 100   ;;  %s399_s0 = smov 96   ;;  %vm307_vm8 = vcmask 15360   ;;  %vm310_vm9 = vcmask 146448  }
   0x7   :  { %7 = vst [vmem:[#allocation0 + $0x28] sm:$0x3] %v313_v14  ;;  %s400_s29 = smov 98   ;;  %s401_s30 = smov 94   ;;  %vm250_vm10 = vcmask 80896   ;;  %vm253_vm11 = vcmask 146512  }
   0x8   :  { %s108_s2 = smov 3  ;;  %s402_s3 = smov 82   ;;  %vm294_vm12 = vcmask 31744   ;;  %vm280_vm13 = vcmask 48128   ;;  %vm283_vm14 = vcmask 146480   ;;  %vm297_vm15 = vcmask 146464  }
   0x9   :  { %v45_v5 = vld [vmem:[#allocation0 + $0x10] sm:$0x3]   ;;  %s403_s4 = smov 92   ;;  %s116_s5 = smov 3 }
   0xa   :  { %46 = vrot.lane.b32.xlu1 %v45_v5, %s393_s16  ;;  %v30_v6 = vld [vmem:[#allocation0 + $0x20] sm:$0x3]   ;;  %v81_v12 = vld [vmem:[#allocation0 + $0x11] ss:$-1 sm:%s80_s24]   ;;  %s404_s6 = smov 80   ;;  %s405_s7 = smov 76  }
   0xb   :  { %31 = vrot.lane.b32.xlu0 %v30_v6, %s394_s17  ;;  %v52_v9 = vld [vmem:[#allocation0 + $0x8] sm:$0x3]   ;;  %v65_v11 = vld [vmem:[#allocation0 + $0x20] sm:$0x3]   ;;  %v117_v20 = vld [vmem:[#allocation0 + $0x11] ss:$-1 sm:%s116_s5]  }
   0xc   :  { %v38_v10 = vld [vmem:[#allocation0 + $0x19] ss:$-1 sm:%s37_s18]   ;;  %v88_v15 = vld [vmem:[#allocation0 + $0x8] sm:$0x3]   ;;  %v101_v16 = vld [vmem:[#allocation0 + $0x20] sm:$0x3]  }
   0xd   :  { %v58_v7 = vld [vmem:[#allocation0] sm:$0x3]   ;;  %v73_v13 = vld [vmem:[#allocation0 + $0x19] ss:$-1 sm:%s72_s25]   ;;  %v124_v19 = vld [vmem:[#allocation0 + $0x8] sm:$0x3]  }
   0xe   :  { %v26_v8 = vld [vmem:[#allocation0] sm:$0x3]   ;;  %59 = vrot.lane.b32.xlu2 %v58_v7, %s395_s19  ;;  %v109_v18 = vld [vmem:[#allocation0 + $0x19] ss:$-1 sm:%s108_s2]   ;;  %s406_s8 = smov 78   ;;  %s144_s9 = smov 3 }
   0xf   :  { %28 = vst.msk [vmem:[%s611_s1] ss:$48 sm:$0x3] %vm27_vm0, %v26_v8   ;;  %v94_v17 = vld [vmem:[#allocation0] sm:$0x3]   ;;  %s407_s10 = smov 74  }
  0x10   :  { %v130_v21 = vld [vmem:[#allocation0] sm:$0x3]   ;;  %v145_v22 = vld [vmem:[#allocation0 + $0x19] ss:$-1 sm:%s144_s9]   ;;  %s152_s11 = smov 3  ;;  %s408_s12 = smov 62  }
  0x11   :  { %v137_v23 = vld [vmem:[#allocation0 + $0x20] sm:$0x3]   ;;  %s409_s13 = smov 64   ;;  %v153_v24 = vld [vmem:[#allocation0 + $0x11] ss:$-1 sm:%s152_s11]   ;;  %s410_s14 = smov 60  }
  0x12   :  { %53 = vrot.lane.b32.xlu1 %v52_v9, %s396_s22  ;;  %v166_v25 = vld [vmem:[#allocation0] sm:$0x3]   ;;  %v160_v26 = vld [vmem:[#allocation0 + $0x8] sm:$0x3]   ;;  %s411_s15 = smov 56   ;;  %s412_s16 = smov 58  }
  0x13   :  { %39 = vrot.lane.b32.xlu0 %v38_v10, %s397_s23  ;;  %v173_v27 = vld [vmem:[#allocation0 + $0x20] sm:$0x3]   ;;  %v245_v29 = vld [vmem:[#allocation0 + $0x28] sm:$0x3]   ;;  %s413_s17 = smov 46   ;;  %s414_s18 = smov 10  }
  0x14   :  { %v243_v28 = vld [vmem:[#allocation0 + $0x20] sm:$0x3]   ;;  %v180_v30 = vld [vmem:[#allocation0 + $0x18] sm:$0x3]   ;;  %s271_s19 = smov 3  ;;  %s274_s20 = smov 3 }
  0x15   :  { %v247_v31 = vsel %vm246_vm1, %v245_v29, %v243_v28  ;;  %v257_v32 = vld [vmem:[#allocation0 + $0x18] sm:$0x3]   ;;  %v259_v33 = vld [vmem:[#allocation0 + $0x20] sm:$0x3]   ;;  %s415_s21 = smov 44   ;;  %s416_s22 = smov 8  }
  0x16   :  { %66 = vrot.lane.b32.xlu2 %v65_v11, %s398_s26  ;;  %v261_v34 = vsel %vm260_vm2, %v259_v33, %v257_v32  ;;  %v287_v35 = vld [vmem:[#allocation0 + $0x8] sm:$0x3]   ;;  %v289_v36 = vld [vmem:[#allocation0 + $0x10] sm:$0x3]   ;;  %v275_v38 = vld [vmem:[#allocation0 + $0x19] ss:$-1 sm:%s274_s20]  }
  0x17   :  { %v272_v37 = vld [vmem:[#allocation0 + $0x11] ss:$-1 sm:%s271_s19]   ;;  %v291_v39 = vsel %vm290_vm3, %v289_v36, %v287_v35  ;;  %v300_v41 = vld [vmem:[#allocation0] sm:$0x3]   ;;  %v302_v42 = vld [vmem:[#allocation0 + $0x8] sm:$0x3]  }
  0x18   :  { %v277_v40 = vsel %vm276_vm4, %v275_v38, %v272_v37  ;;  %s417_s23 = smov 4   ;;  %s418_s24 = smov 6   ;;  %v304_v43 = vsel %vm303_vm5, %v302_v42, %v300_v41  ;;  %v195_v44 = vld [vmem:[#allocation0 + $0x8] sm:$0x3]   ;;  %v201_v46 = vld [vmem:[#allocation0] sm:$0x3]  }
  0x19   :  { %s187_s25 = smov 3  ;;  %s419_s26 = smov 2   ;;  %v215_v47 = vld [vmem:[#allocation0 + $0x18] sm:$0x3]   ;;  %v208_v48 = vld [vmem:[#allocation0 + $0x20] sm:$0x3]  }
  0x1a   :  { %82 = vrot.lane.b32.xlu1 %v81_v12, %s399_s0  ;;  %v188_v45 = vld [vmem:[#allocation0 + $0x11] ss:$-1 sm:%s187_s25]   ;;  %s420_s27 = smov 40   ;;  %s421_s28 = smov 42   ;;  %v236_v50 = vld [vmem:[#allocation0] sm:$0x3]  }
  0x1b   :  { %74 = vrot.lane.b32.xlu0 %v73_v13, %s400_s29  ;;  %s422_s0 = smov 38   ;;  %s222_s29 = smov 3  ;;  %v230_v51 = vld [vmem:[#allocation0 + $0x8] sm:$0x3]  }
  0x1c   :  { %s424_s2 = smov 28   ;;  %v223_v49 = vld [vmem:[#allocation0 + $0x11] ss:$-1 sm:%s222_s29]   ;;  %s427_s5 = smov 22  }
  0x1e   :  { %89 = vrot.lane.b32.xlu2 %v88_v15, %s401_s30  ;;  %s423_s30 = smov 26  }
  0x22   :  { %102 = vrot.lane.b32.xlu1 %v101_v16, %s402_s3  ;;  %s425_s3 = smov 24  }
  0x23   :  { %95 = vrot.lane.b32.xlu0 %v94_v17, %s403_s4  ;;  %s426_s4 = smov 20  }
  0x26   :  { %110 = vrot.lane.b32.xlu2 %v109_v18, %s404_s6 }
  0x2a   :  { %125 = vrot.lane.b32.xlu1 %v124_v19, %s405_s7 }
  0x2b   :  { %118 = vrot.lane.b32.xlu0 %v117_v20, %s406_s8 }
  0x2e   :  { %131 = vrot.lane.b32.xlu2 %v130_v21, %s407_s10 }
  0x32   :  { %146 = vrot.lane.b32.xlu1 %v145_v22, %s408_s12 }
  0x33   :  { %138 = vrot.lane.b32.xlu0 %v137_v23, %s409_s13 }
  0x36   :  { %154 = vrot.lane.b32.xlu2 %v153_v24, %s410_s14 }
  0x3a   :  { %167 = vrot.lane.b32.xlu1 %v166_v25, %s411_s15 }
  0x3b   :  { %161 = vrot.lane.b32.xlu0 %v160_v26, %s412_s16 }
  0x3e   :  { %174 = vrot.lane.b32.xlu2 %v173_v27, %s413_s17 }
  0x42   :  { %248 = vrot.lane.b32.xlu1 %v247_v31, %s414_s18 }
  0x43   :  { %181 = vrot.lane.b32.xlu0 %v180_v30, %s415_s21 }
  0x46   :  { %262 = vrot.lane.b32.xlu2 %v261_v34, %s416_s22 }
  0x4a   :  { %292 = vrot.lane.b32.xlu1 %v291_v39, %s417_s23 }
  0x4b   :  { %278 = vrot.lane.b32.xlu0 %v277_v40, %s418_s24 }
  0x4e   :  { %305 = vrot.lane.b32.xlu2 %v304_v43, %s419_s26 }
  0x52   :  { %196 = vrot.lane.b32.xlu1 %v195_v44, %s420_s27 }
  0x53   :  { %189 = vrot.lane.b32.xlu0 %v188_v45, %s421_s28 }
  0x56   :  { %202 = vrot.lane.b32.xlu2 %v201_v46, %s422_s0 }
  0x5a   :  { %216 = vrot.lane.b32.xlu1 %v215_v47, %s423_s30 }
  0x5b   :  { %209 = vrot.lane.b32.xlu0 %v208_v48, %s424_s2 }
  0x5e   :  { %224 = vrot.lane.b32.xlu2 %v223_v49, %s425_s3 }
  0x62   :  { %237 = vrot.lane.b32.xlu1 %v236_v50, %s426_s4 }
  0x63   :  { %231 = vrot.lane.b32.xlu0 %v230_v51, %s427_s5 }
  0x68   :  { %v60_v52 = vpop.permute.xlu2 %59  }
  0x69   :  { %322 = vst.msk [vmem:[%s611_s1 + $0x1] ss:$48 sm:$0x3] %vm27_vm0, %v60_v52  }
  0x70   :  { %v67_v53 = vpop.permute.xlu2 %66  }
  0x71   :  { %323 = vst.msk [vmem:[%s611_s1 + $0x24] ss:$48 sm:$0x3] %vm27_vm0, %v67_v53  }
  0x78   :  { %v90_v54 = vpop.permute.xlu2 %89  }
  0x79   :  { %326 = vst.msk [vmem:[%s611_s1 + $0x9] ss:$48 sm:$0x3] %vm27_vm0, %v90_v54  }
  0x7c   :  { %v47_v55 = vpop.permute.xlu1 %46  }
  0x7d   :  { %320 = vst.msk [vmem:[%s611_s1 + $0xf] ss:$48 sm:$0x3] %vm27_vm0, %v47_v55   ;;  %v32_v56 = vpop.permute.xlu0 %31  }
  0x7e   :  { %318 = vst.msk [vmem:[%s611_s1 + $0x23] ss:$48 sm:$0x3] %vm27_vm0, %v32_v56  }
  0x80   :  { %v111_v57 = vpop.permute.xlu2 %110  }
  0x81   :  { %329 = vst.msk [vmem:[%s611_s1 + $0x4e] ss:$-48 sm:$0x3] %vm27_vm0, %v111_v57  }
  0x84   :  { %v54_v58 = vpop.permute.xlu1 %53  }
  0x85   :  { %321 = vst.msk [vmem:[%s611_s1 + $0x8] ss:$48 sm:$0x3] %vm27_vm0, %v54_v58   ;;  %v40_v59 = vpop.permute.xlu0 %39  }
  0x86   :  { %319 = vst.msk [vmem:[%s611_s1 + $0x4c] ss:$-48 sm:$0x3] %vm27_vm0, %v40_v59  }
  0x88   :  { %v132_v60 = vpop.permute.xlu2 %131  }
  0x89   :  { %332 = vst.msk [vmem:[%s611_s1 + $0x3] ss:$48 sm:$0x3] %vm27_vm0, %v132_v60  }
  0x8c   :  { %v83_v61 = vpop.permute.xlu1 %82  }
  0x8d   :  { %325 = vst.msk [vmem:[%s611_s1 + $0x40] ss:$-48 sm:$0x3] %vm27_vm0, %v83_v61   ;;  %v75_v62 = vpop.permute.xlu0 %74  }
  0x8e   :  { %324 = vst.msk [vmem:[%s611_s1 + $0x4d] ss:$-48 sm:$0x3] %vm27_vm0, %v75_v62  }
  0x90   :  { %v155_v63 = vpop.permute.xlu2 %154  }
  0x91   :  { %335 = vst.msk [vmem:[%s611_s1 + $0x48] ss:$-48 sm:$0x3] %vm27_vm0, %v155_v63  }
  0x94   :  { %v103_v0 = vpop.permute.xlu1 %102  }
  0x95   :  { %328 = vst.msk [vmem:[%s611_s1 + $0x25] ss:$48 sm:$0x3] %vm27_vm0, %v103_v0   ;;  %v96_v1 = vpop.permute.xlu0 %95  }
  0x96   :  { %327 = vst.msk [vmem:[%s611_s1 + $0x2] ss:$48 sm:$0x3] %vm27_vm0, %v96_v1  }
  0x98   :  { %v175_v2 = vpop.permute.xlu2 %174  }
  0x99   :  { %338 = vst.msk [vmem:[%s611_s1 + $0x27] ss:$48 sm:$0x3] %vm27_vm0, %v175_v2  }
  0x9c   :  { %v126_v3 = vpop.permute.xlu1 %125  }
  0x9d   :  { %331 = vst.msk [vmem:[%s611_s1 + $0xa] ss:$48 sm:$0x3] %vm27_vm0, %v126_v3   ;;  %v119_v4 = vpop.permute.xlu0 %118  }
  0x9e   :  { %330 = vst.msk [vmem:[%s611_s1 + $0x41] ss:$-48 sm:$0x3] %vm27_vm0, %v119_v4  }
  0xa0   :  { %v263_v5 = vpop.permute.xlu2 %262  }
  0xa1   :  { %350 = vst.msk [vmem:[%s611_s1 + $0x22] ss:$48 sm:$0x3] %vm264_vm6, %v263_v5  }
  0xa2   :  { %351 = vst.msk [vmem:[%s611_s1 + $0x22] ss:$48 sm:$0x3] %vm267_vm7, %v263_v5  }
  0xa4   :  { %v147_v6 = vpop.permute.xlu1 %146  }
  0xa5   :  { %334 = vst.msk [vmem:[%s611_s1 + $0x4f] ss:$-48 sm:$0x3] %vm27_vm0, %v147_v6   ;;  %v139_v7 = vpop.permute.xlu0 %138  }
  0xa6   :  { %333 = vst.msk [vmem:[%s611_s1 + $0x26] ss:$48 sm:$0x3] %vm27_vm0, %v139_v7  }
  0xa8   :  { %v306_v8 = vpop.permute.xlu2 %305  }
  0xa9   :  { %356 = vst.msk [vmem:[%s611_s1 + $0x7] ss:$48 sm:$0x3] %vm307_vm8, %v306_v8  }
  0xaa   :  { %357 = vst.msk [vmem:[%s611_s1 + $0x7] ss:$48 sm:$0x3] %vm310_vm9, %v306_v8  }
  0xac   :  { %v168_v9 = vpop.permute.xlu1 %167  }
  0xad   :  { %337 = vst.msk [vmem:[%s611_s1 + $0x4] ss:$48 sm:$0x3] %vm27_vm0, %v168_v9   ;;  %v162_v10 = vpop.permute.xlu0 %161  }
  0xae   :  { %336 = vst.msk [vmem:[%s611_s1 + $0xb] ss:$48 sm:$0x3] %vm27_vm0, %v162_v10  }
  0xb0   :  { %v203_v11 = vpop.permute.xlu2 %202  }
  0xb1   :  { %342 = vst.msk [vmem:[%s611_s1 + $0x5] ss:$48 sm:$0x3] %vm27_vm0, %v203_v11  }
  0xb4   :  { %v249_v12 = vpop.permute.xlu1 %248  }
  0xb5   :  { %v182_v13 = vpop.permute.xlu0 %181   ;;  %348 = vst.msk [vmem:[%s611_s1 + $0x29] ss:$48 sm:$0x3] %vm250_vm10, %v249_v12  }
  0xb6   :  { %339 = vst.msk [vmem:[%s611_s1 + $0x20] ss:$48 sm:$0x3] %vm27_vm0, %v182_v13  }
  0xb7   :  { %349 = vst.msk [vmem:[%s611_s1 + $0x29] ss:$48 sm:$0x3] %vm253_vm11, %v249_v12  }
  0xb8   :  { %v225_v14 = vpop.permute.xlu2 %224  }
  0xb9   :  { %345 = vst.msk [vmem:[%s611_s1 + $0x4a] ss:$-48 sm:$0x3] %vm27_vm0, %v225_v14  }
  0xbc   :  { %v293_v15 = vpop.permute.xlu1 %292  }
  0xbd   :  { %v279_v16 = vpop.permute.xlu0 %278   ;;  %354 = vst.msk [vmem:[%s611_s1 + $0xe] ss:$48 sm:$0x3] %vm294_vm12, %v293_v15  }
  0xbe   :  { %352 = vst.msk [vmem:[%s611_s1 + $0x4b] ss:$-48 sm:$0x3] %vm280_vm13, %v279_v16  }
  0xbf   :  { %353 = vst.msk [vmem:[%s611_s1 + $0x4b] ss:$-48 sm:$0x3] %vm283_vm14, %v279_v16  }
  0xc0   :  { %355 = vst.msk [vmem:[%s611_s1 + $0xe] ss:$48 sm:$0x3] %vm297_vm15, %v293_v15  }
  0xc4   :  { %v197_v17 = vpop.permute.xlu1 %196  }
  0xc5   :  { %v190_v18 = vpop.permute.xlu0 %189   ;;  %341 = vst.msk [vmem:[%s611_s1 + $0xc] ss:$48 sm:$0x3] %vm27_vm0, %v197_v17  }
  0xc6   :  { %340 = vst.msk [vmem:[%s611_s1 + $0x49] ss:$-48 sm:$0x3] %vm27_vm0, %v190_v18  }
  0xcc   :  { %v217_v19 = vpop.permute.xlu1 %216  }
  0xcd   :  { %v210_v20 = vpop.permute.xlu0 %209   ;;  %344 = vst.msk [vmem:[%s611_s1 + $0x21] ss:$48 sm:$0x3] %vm27_vm0, %v217_v19  }
  0xce   :  { %343 = vst.msk [vmem:[%s611_s1 + $0x28] ss:$48 sm:$0x3] %vm27_vm0, %v210_v20  }
  0xd4   :  { %v238_v21 = vpop.permute.xlu1 %237  }
  0xd5   :  { %v232_v22 = vpop.permute.xlu0 %231   ;;  %347 = vst.msk [vmem:[%s611_s1 + $0x6] ss:$48 sm:$0x3] %vm27_vm0, %v238_v21  }
  0xd6   :  { %346 = vst.msk [vmem:[%s611_s1 + $0xd] ss:$48 sm:$0x3] %vm27_vm0, %v232_v22  }

// kernel: prob_tomp_forward.7
= control target key start
LH: loop header
LB: loop body
LE: loop exit
PB: predicated region body
PF: predicated region fallthrough
CT: control target
= control target key end

     0   :  { %s1800_s26 = smov 0   ;;  %s1945_s0 = inlined_call_operand.<no memory space> [shape: f32[1], index: 0, kind: input, shape index: {}]   ;;  %s1946_s1 = inlined_call_operand.vmem [shape: bf16[2,648,128], index: 1, kind: input, shape index: {}]   ;;  %s1947_s2 = inlined_call_operand.vmem [shape: f32[2,1,648], index: 2, kind: input, shape index: {}]   ;;  %s1948_s3 = inlined_call_operand.vmem [shape: f32[2,1,128], index: 3, kind: input, shape index: {}]   ;;  %s1949_s4 = inlined_call_operand.vmem [shape: bf16[2,648,128], index: 4, kind: input, shape index: {}]   ;;  %s1950_s5 = inlined_call_operand.vmem [shape: f32[2,1,648], index: 5, kind: input, shape index: {}]   ;;  %s1951_s6 = inlined_call_operand.vmem [shape: bf16[8,128], index: 6, kind: input, shape index: {}]   ;;  %s1952_s7 = inlined_call_operand.vmem [shape: f32[2,8,648], index: 7, kind: output, shape index: {}]  }
   0x1   :  { %12 = sst [smem:[#allocation2]] %s1945_s0 }
   0x2 LB: > { %s1327_s27 = sadd.s32 4294967295, %s1755_s26   ;;  %p1331_p0 = scmp.ge.s32.totalorder %s1755_s26, 1  ;;  %s1755_s26 = sphi %s1800_s26, %s18_s26  }
   0x3   : > { %p274_p1 = scmp.lt.s32.totalorder %s1755_s26, 3 }
   0x5   : > { %p275_p2 = pnand %p1331_p0, %p274_p1 }
   0x6   : > { %p322_p3 = scmp.lt.s32.totalorder (!%p275_p2), %s1327_s27, 1  ;;  %s876_s20 = sld [smem:[#allocation2]] (!%p275_p2) }
   0x7   : > { %278 = sbr.rel (%p275_p2) target bundleno = 382 (0x17e), region = 48 }
   0xc   : > { %s1954_s27 = smov (!%p322_p3, %s1327_s27), 1  ;;  %vm697_vm0 = vcmask 1043456   ;;  %vm693_vm1 = vcmask 64512  }
   0xd   : > { %s1738_s0 = smul.u32 324, %s1954_s27  ;;  %s333_s17 = scalar_lea.vmem %s1948_s3, %s1954_s27 }
   0xe   : > { %s1739_s8 = smul.u32 6, %s1954_s27 }
   0xf   : > { %s1816_s30 = scalar_lea.vmem %s1946_s1, %s1738_s0  ;;  %s1859_s14 = scalar_lea.vmem %s1949_s4, %s1738_s0 }
  0x10   : > { %v1665_v0 = vld [vmem:[%s1816_s30 + $0x38] sm:$0xff]  ;;  %v1664_v3 = vld [vmem:[%s1816_s30 + $0x30] sm:$0xff]  ;;  %v1663_v6 = vld [vmem:[%s1816_s30 + $0x28] sm:$0xff]  ;;  %s330_s11 = scalar_lea.vmem %s1947_s2, %s1739_s8  ;;  %s342_s23 = scalar_lea.vmem %s1950_s5, %s1739_s8 }
  0x11   : > { %v1673_v1 = vld [vmem:[%s1816_s30 + $0x78] sm:$0xff]  ;;  %701 = vmatpush.bf16.msra.mxu0 %v1665_v0  ;;  %v1672_v4 = vld [vmem:[%s1816_s30 + $0x70] sm:$0xff]  ;;  %v1671_v7 = vld [vmem:[%s1816_s30 + $0x68] sm:$0xff]  ;;  %s1740_s24 = smul.u32 48, %s1954_s27 }
  0x12   : > { %v1689_v2 = vld [vmem:[%s1816_s30 + $0xf8] sm:$0xff]  ;;  %714 = vmatpush.bf16.msra.mxu1 %v1673_v1  ;;  %v1688_v5 = vld [vmem:[%s1816_s30 + $0xf0] sm:$0xff]  ;;  %v1687_v8 = vld [vmem:[%s1816_s30 + $0xe8] sm:$0xff] }
  0x13   : > { %740 = vmatpush.bf16.msra.mxu3 %v1689_v2  ;;  %v1662_v9 = vld [vmem:[%s1816_s30 + $0x20] sm:$0xff]  ;;  %v1661_v12 = vld [vmem:[%s1816_s30 + $0x18] sm:$0xff]  ;;  %v1660_v15 = vld [vmem:[%s1816_s30 + $0x10] sm:$0xff]  ;;  %s347_s28 = scalar_lea.vmem %s1952_s7, %s1740_s24 }
  0x14   : > { %v1670_v10 = vld [vmem:[%s1816_s30 + $0x60] sm:$0xff]  ;;  %v1669_v13 = vld [vmem:[%s1816_s30 + $0x58] sm:$0xff]  ;;  %v1668_v16 = vld [vmem:[%s1816_s30 + $0x50] sm:$0xff] }
  0x15   : > { %702 = vmatpush.bf16.msra.mxu0 %v1664_v3  ;;  %v1686_v11 = vld [vmem:[%s1816_s30 + $0xe0] sm:$0xff]  ;;  %v1685_v14 = vld [vmem:[%s1816_s30 + $0xd8] sm:$0xff]  ;;  %v1684_v17 = vld [vmem:[%s1816_s30 + $0xd0] sm:$0xff] }
  0x16   : > { %715 = vmatpush.bf16.msra.mxu1 %v1672_v4  ;;  %v449_v18 = vld [vmem:[%s1816_s30 + $0x140] sm:$0xf]  ;;  %v1659_v19 = vld [vmem:[%s1816_s30 + $0x8] sm:$0xff]  ;;  %v1681_v28 = vld [vmem:[%s1816_s30 + $0xb8] sm:$0xff] }
  0x17   : > { %741 = vmatpush.bf16.msra.mxu3 %v1688_v5  ;;  %v1667_v20 = vld [vmem:[%s1816_s30 + $0x48] sm:$0xff]  ;;  %v1845_v21 = vld [vmem:[%s330_s11] sm:$0x3f]  ;;  %v611_v23 = vunpack.c.l.b16 %v449_v18  ;;  %v1697_v29 = vld [vmem:[%s1816_s30 + $0x138] sm:$0xff] }
  0x18   : > { %v1683_v22 = vld [vmem:[%s1816_s30 + $0xc8] sm:$0xff]  ;;  %v352_v24 = vperm.slane %v1845_v21, 1  ;;  %v351_v25 = vperm.slane %v1845_v21, 0  ;;  %v1658_v26 = vld [vmem:[%s1816_s30] sm:$0xff]  ;;  %v354_v32 = vperm.slane %v1845_v21, 3  ;;  %v1705_v35 = vld [vmem:[%s1859_s14 + $0x38] sm:$0xff] }
  0x19   : > { %703 = vmatpush.bf16.msra.mxu0 %v1663_v6  ;;  %v1666_v27 = vld [vmem:[%s1816_s30 + $0x40] sm:$0xff]  ;;  %v652_v30 = vpack.c.b16 %v611_v23, %v611_v23  ;;  %v1680_v36 = vld [vmem:[%s1816_s30 + $0xb0] sm:$0xff]  ;;  %1143 = vmatpush.bf16.xpose.msra.mxu2 %v1705_v35  ;;  %v1679_v40 = vld [vmem:[%s1816_s30 + $0xa8] sm:$0xff]  ;;  %v356_v48 = vperm.slane %v1845_v21, 5  ;;  %v353_v57 = vperm.slane %v1845_v21, 2  ;;  %v355_v58 = vperm.slane %v1845_v21, 4 }
  0x1a   : > { %716 = vmatpush.bf16.msra.mxu1 %v1671_v7  ;;  %v1682_v31 = vld [vmem:[%s1816_s30 + $0xc0] sm:$0xff]  ;;  %v364_v33 = vpack.c.bf16 %v352_v24, %v352_v24  ;;  %v363_v34 = vpack.c.bf16 %v351_v25, %v351_v25  ;;  %v1696_v37 = vld [vmem:[%s1816_s30 + $0x130] sm:$0xff]  ;;  %v366_v39 = vpack.c.bf16 %v354_v32, %v354_v32  ;;  %v1695_v41 = vld [vmem:[%s1816_s30 + $0x128] sm:$0xff] }
  0x1b   : > { %742 = vmatpush.bf16.msra.mxu3 %v1687_v8  ;;  %v699_v38 = vsel %vm697_vm0, %v652_v30, 0  ;;  %v1704_v42 = vld [vmem:[%s1859_s14 + $0x30] sm:$0xff]  ;;  %v1678_v43 = vld [vmem:[%s1816_s30 + $0xa0] sm:$0xff]  ;;  %v1713_v45 = vld [vmem:[%s1859_s14 + $0x78] sm:$0xff]  ;;  %v368_v52 = vpack.c.bf16 %v356_v48, %v356_v48  ;;  %v365_v0 = vpack.c.bf16 %v353_v57, %v353_v57  ;;  %v367_v1 = vpack.c.bf16 %v355_v58, %v355_v58 }
  0x1c   : > { %v1694_v44 = vld [vmem:[%s1816_s30 + $0x120] sm:$0xff]  ;;  %v1677_v46 = vld [vmem:[%s1816_s30 + $0x98] sm:$0xff]  ;;  %v1703_v49 = vld [vmem:[%s1859_s14 + $0x28] sm:$0xff] }
  0x1d   : > { %704 = vmatpush.bf16.msra.mxu0 %v1662_v9  ;;  %v1693_v47 = vld [vmem:[%s1816_s30 + $0x118] sm:$0xff]  ;;  %v1676_v50 = vld [vmem:[%s1816_s30 + $0x90] sm:$0xff]  ;;  %v1675_v54 = vld [vmem:[%s1816_s30 + $0x88] sm:$0xff] }
  0x1e   : > { %717 = vmatpush.bf16.msra.mxu1 %v1670_v10  ;;  %v1692_v51 = vld [vmem:[%s1816_s30 + $0x110] sm:$0xff]  ;;  %v1691_v55 = vld [vmem:[%s1816_s30 + $0x108] sm:$0xff]  ;;  %v1702_v56 = vld [vmem:[%s1859_s14 + $0x20] sm:$0xff] }
  0x1f   : > { %743 = vmatpush.bf16.msra.mxu3 %v1686_v11  ;;  %v1712_v53 = vld [vmem:[%s1859_s14 + $0x70] sm:$0xff]  ;;  %v1674_v59 = vld [vmem:[%s1816_s30 + $0x80] sm:$0xff]  ;;  %v1721_v61 = vld [vmem:[%s1859_s14 + $0xb8] sm:$0xff] }
  0x20   : > { %v1690_v60 = vld [vmem:[%s1816_s30 + $0x100] sm:$0xff]  ;;  %v1729_v62 = vld [vmem:[%s1859_s14 + $0xf8] sm:$0xff]  ;;  %v1711_v63 = vld [vmem:[%s1859_s14 + $0x68] sm:$0xff] }
  0x21   : > { %705 = vmatpush.bf16.msra.mxu0 %v1661_v12  ;;  %1144 = vmatpush.bf16.xpose.msra.mxu2 %v1704_v42  ;;  %v1701_v2 = vld [vmem:[%s1859_s14 + $0x18] sm:$0xff]  ;;  %v1720_v3 = vld [vmem:[%s1859_s14 + $0xb0] sm:$0xff]  ;;  %v1719_v6 = vld [vmem:[%s1859_s14 + $0xa8] sm:$0xff] }
  0x22   : > { %718 = vmatpush.bf16.msra.mxu1 %v1669_v13  ;;  %v1728_v4 = vld [vmem:[%s1859_s14 + $0xf0] sm:$0xff]  ;;  %v1727_v7 = vld [vmem:[%s1859_s14 + $0xe8] sm:$0xff]  ;;  %v1698_v9 = vld [vmem:[%s1859_s14] sm:$0xff] }
  0x23   : > { %744 = vmatpush.bf16.msra.mxu3 %v1685_v14  ;;  %v1700_v5 = vld [vmem:[%s1859_s14 + $0x10] sm:$0xff]  ;;  %v1699_v8 = vld [vmem:[%s1859_s14 + $0x8] sm:$0xff]  ;;  %v1737_v10 = vld [vmem:[%s1859_s14 + $0x138] sm:$0xff] }
  0x24   : > { %v1710_v11 = vld [vmem:[%s1859_s14 + $0x60] sm:$0xff]  ;;  %v1736_v14 = vld [vmem:[%s1859_s14 + $0x130] sm:$0xff]  ;;  %v1735_v18 = vld [vmem:[%s1859_s14 + $0x128] sm:$0xff] }
  0x25   : > { %706 = vmatpush.bf16.msra.mxu0 %v1660_v15  ;;  %v1718_v12 = vld [vmem:[%s1859_s14 + $0xa0] sm:$0xff]  ;;  %v1709_v15 = vld [vmem:[%s1859_s14 + $0x58] sm:$0xff]  ;;  %v1724_v21 = vld [vmem:[%s1859_s14 + $0xd0] sm:$0xff] }
  0x26   : > { %719 = vmatpush.bf16.msra.mxu1 %v1668_v16  ;;  %v1726_v13 = vld [vmem:[%s1859_s14 + $0xe0] sm:$0xff]  ;;  %v1717_v16 = vld [vmem:[%s1859_s14 + $0x98] sm:$0xff]  ;;  %v1707_v25 = vld [vmem:[%s1859_s14 + $0x48] sm:$0xff] }
  0x27   : > { %745 = vmatpush.bf16.msra.mxu3 %v1684_v17  ;;  %v1725_v17 = vld [vmem:[%s1859_s14 + $0xd8] sm:$0xff]  ;;  %v1714_v32 = vld [vmem:[%s1859_s14 + $0x80] sm:$0xff]  ;;  %v1732_v35 = vld [vmem:[%s1859_s14 + $0x110] sm:$0xff] }
  0x29   : > { %707 = vmatpush.bf16.msra.mxu0 %v1659_v19  ;;  %1145 = vmatpush.bf16.xpose.msra.mxu2 %v1703_v49  ;;  %v1708_v19 = vld [vmem:[%s1859_s14 + $0x50] sm:$0xff] }
  0x2a   : > { %720 = vmatpush.bf16.msra.mxu1 %v1667_v20  ;;  %v1716_v20 = vld [vmem:[%s1859_s14 + $0x90] sm:$0xff] }
  0x2b   : > { %746 = vmatpush.bf16.msra.mxu3 %v1683_v22  ;;  %v1734_v22 = vld [vmem:[%s1859_s14 + $0x120] sm:$0xff] }
  0x2d   : > { %708 = vmatpush.bf16.msra.mxu0 %v1658_v26  ;;  %v1715_v26 = vld [vmem:[%s1859_s14 + $0x88] sm:$0xff] }
  0x2e   : > { %721 = vmatpush.bf16.msra.mxu1 %v1666_v27  ;;  %v1723_v27 = vld [vmem:[%s1859_s14 + $0xc8] sm:$0xff] }
  0x2f   : > { %747 = vmatpush.bf16.msra.mxu3 %v1682_v31  ;;  %v1706_v31 = vld [vmem:[%s1859_s14 + $0x40] sm:$0xff] }
  0x30   : > { %709 = vmatmul.bf16.vlgmr.msra.gmra.mxu0 %v363_v34 }
  0x31   : > { %753 = vmatpush.bf16.msrb.mxu0 %v1697_v29  ;;  %722 = vmatmul.bf16.vlgmr.msra.gmra.mxu1 %v364_v33  ;;  %v1722_v33 = vld [vmem:[%s1859_s14 + $0xc0] sm:$0xff] }
  0x32   : > { %727 = vmatpush.bf16.msrb.mxu1 %v1681_v28  ;;  %748 = vmatmul.bf16.vlgmr.msra.gmra.mxu3 %v366_v39  ;;  %v1733_v28 = vld [vmem:[%s1859_s14 + $0x118] sm:$0xff] }
  0x33   : > { %773 = vmatpush.bf16.msrb.mxu3 %v699_v38  ;;  %1146 = vmatpush.bf16.xpose.msra.mxu2 %v1702_v56  ;;  %v875_v38 = vld [vmem:[%s1859_s14 + $0x140] sm:$0xf] }
  0x34   : > { %v1060_v39 = vunpack.c.l.b16 %v875_v38 }
  0x35   : > { %754 = vmatpush.bf16.msrb.mxu0 %v1696_v37  ;;  %v1731_v37 = vld [vmem:[%s1859_s14 + $0x108] sm:$0xff] }
  0x36   : > { %728 = vmatpush.bf16.msrb.mxu1 %v1680_v36 }
  0x37   : > { %1156 = vmatpush.bf16.xpose.msra.mxu3 %v1713_v45 }
  0x39   : > { %755 = vmatpush.bf16.msrb.mxu0 %v1695_v41  ;;  %v1730_v41 = vld [vmem:[%s1859_s14 + $0x100] sm:$0xff] }
  0x3a   : > { %729 = vmatpush.bf16.msrb.mxu1 %v1679_v40  ;;  %v1101_v40 = vpack.c.b16 %v1060_v39, %v1060_v39 }
  0x3b   : > { %1147 = vmatpush.bf16.xpose.msra.mxu2 %v1701_v2 }
  0x3d   : > { %756 = vmatpush.bf16.msrb.mxu0 %v1694_v44 }
  0x3e   : > { %730 = vmatpush.bf16.msrb.mxu1 %v1678_v43 }
  0x3f   : > { %1157 = vmatpush.bf16.xpose.msra.mxu3 %v1712_v53 }
  0x41   : > { %757 = vmatpush.bf16.msrb.mxu0 %v1693_v47 }
  0x42   : > { %731 = vmatpush.bf16.msrb.mxu1 %v1677_v46  ;;  %1495 = vmatmul.msk.bf16.vlgmr.msrb.gmra.mxu3 %vm693_vm1, %v368_v52  ;;  %v780_v52 = vld [vmem:[%s333_s17] sm:$0x1] }
  0x43   : > { %1148 = vmatpush.bf16.xpose.msra.mxu2 %v1700_v5 }
  0x45   : > { %758 = vmatpush.bf16.msrb.mxu0 %v1692_v51 }
  0x46   : > { %732 = vmatpush.bf16.msrb.mxu1 %v1676_v50  ;;  %v782_v50 = vlaneseq }
  0x47   : > { %1158 = vmatpush.bf16.xpose.msra.mxu3 %v1711_v63  ;;  %v879_v63 = vld [vmem:[%s342_s23] sm:$0x3f] }
  0x48   : > { %v783_v56 = vshrl.u32 %v782_v50, 7  ;;  %v884_v2 = vperm.slane %v879_v63, 3 }
  0x49   : > { %759 = vmatpush.bf16.msrb.mxu0 %v1691_v55 }
  0x4a   : > { %733 = vmatpush.bf16.msrb.mxu1 %v1675_v54  ;;  %vm784_vm2 = vcmp.eq.s32.totalorder %v783_v56, 0 }
  0x4b   : > { %1149 = vmatpush.bf16.xpose.msra.mxu2 %v1699_v8  ;;  %vm793_vm3 = vmpackc.low %vm784_vm2, %vm784_vm2 }
  0x4d   : > { %760 = vmatpush.bf16.msrb.mxu0 %v1690_v60  ;;  %v786_v60 = vld [vmem:[%s1951_s6] sm:$0xf] }
  0x4e   : > { %734 = vmatpush.bf16.msrb.mxu1 %v1674_v59 }
  0x4f   : > { %1159 = vmatpush.bf16.xpose.msra.mxu3 %v1710_v11 }
  0x50   : > { %761 = vmatmul.bf16.vlgmr.msrb.gmra.mxu0 %v367_v1  ;;  %v883_v1 = vperm.slane %v879_v63, 2 }
  0x51   : > { %1182 = vmatpush.bf16.xpose.msra.mxu0 %v1729_v62  ;;  %735 = vmatmul.bf16.vlgmr.msrb.gmra.mxu1 %v365_v0  ;;  %v877_v0 = vstv %s876_s20 }
  0x52   : > { %1169 = vmatpush.bf16.xpose.msra.mxu1 %v1721_v61 }
  0x53   : > { %1150 = vmatpush.bf16.xpose.msra.mxu2 %v1698_v9 }
  0x57   : > { %1160 = vmatpush.bf16.xpose.msra.mxu3 %v1709_v15 }
  0x59   : > { %1183 = vmatpush.bf16.xpose.msra.mxu0 %v1728_v4 }
  0x5a   : > { %1170 = vmatpush.bf16.xpose.msra.mxu1 %v1720_v3  ;;  %v878_v3 = vsel %vm784_vm2, %v877_v0, 0.0 }
  0x5b   : > { %1195 = vmatpush.bf16.xpose.msrb.mxu2 %v1737_v10  ;;  %v895_v4 = vmul.f32 %v883_v1, %v878_v3  ;;  %v896_v5 = vmul.f32 %v884_v2, %v878_v3 }
  0x5f   : > { %1161 = vmatpush.bf16.xpose.msra.mxu3 %v1708_v19 }
  0x61   : > { %1184 = vmatpush.bf16.xpose.msra.mxu0 %v1727_v7  ;;  %v882_v7 = vperm.slane %v879_v63, 1 }
  0x62   : > { %1171 = vmatpush.bf16.xpose.msra.mxu1 %v1719_v6  ;;  %v881_v6 = vperm.slane %v879_v63, 0 }
  0x63   : > { %1196 = vmatpush.bf16.xpose.msrb.mxu2 %v1736_v14 }
  0x67   : > { %1162 = vmatpush.bf16.xpose.msra.mxu3 %v1707_v25 }
  0x69   : > { %1185 = vmatpush.bf16.xpose.msra.mxu0 %v1726_v13  ;;  %v894_v13 = vmul.f32 %v882_v7, %v878_v3 }
  0x6a   : > { %1172 = vmatpush.bf16.xpose.msra.mxu1 %v1718_v12  ;;  %v893_v12 = vmul.f32 %v881_v6, %v878_v3 }
  0x6b   : > { %1197 = vmatpush.bf16.xpose.msrb.mxu2 %v1735_v18 }
  0x6f   : > { %1163 = vmatpush.bf16.xpose.msra.mxu3 %v1706_v31 }
  0x71   : > { %1186 = vmatpush.bf16.xpose.msra.mxu0 %v1725_v17 }
  0x72   : > { %1173 = vmatpush.bf16.xpose.msra.mxu1 %v1717_v16 }
  0x73   : > { %1198 = vmatpush.bf16.xpose.msrb.mxu2 %v1734_v22  ;;  %v885_v22 = vperm.slane %v879_v63, 4 }
  0x77   : > { %1215 = vmatpush.bf16.xpose.msrb.mxu3 %v1101_v40 }
  0x79   : > { %1187 = vmatpush.bf16.xpose.msra.mxu0 %v1724_v21 }
  0x7a   : > { %1174 = vmatpush.bf16.xpose.msra.mxu1 %v1716_v20 }
  0x7b   : > { %1199 = vmatpush.bf16.xpose.msrb.mxu2 %v1733_v28 }
  0x81   : > { %1188 = vmatpush.bf16.xpose.msra.mxu0 %v1723_v27 }
  0x82   : > { %1175 = vmatpush.bf16.xpose.msra.mxu1 %v1715_v26 }
  0x83   : > { %1200 = vmatpush.bf16.xpose.msrb.mxu2 %v1732_v35 }
  0x89   : > { %1189 = vmatpush.bf16.xpose.msra.mxu0 %v1722_v33 }
  0x8a   : > { %1176 = vmatpush.bf16.xpose.msra.mxu1 %v1714_v32 }
  0x8b   : > { %1201 = vmatpush.bf16.xpose.msrb.mxu2 %v1731_v37 }
  0x93   : > { %1202 = vmatpush.bf16.xpose.msrb.mxu2 %v1730_v41 }
  0xad   : > { %v710_v24 = vpop.f32.mrf.mxu0 }
  0xae   : > { %v723_v23 = vpop.f32.mrf.mxu1 }
  0xaf   : > { %v724_v43 = vadd.f32 %v723_v23, %v710_v24  ;;  %v886_v23 = vperm.slane %v879_v63, 5  ;;  %v897_v24 = vmul.f32 %v885_v22, %v878_v3 }
  0xb1   : > { %v898_v25 = vmul.f32 %v886_v23, %v878_v3 }
  0xb5   : > { %v712_v30 = vpop.f32.mrf.mxu0  ;;  %v749_v34 = vpop.f32.mrf.mxu3 }
  0xb6   : > { %v725_v29 = vpop.f32.mrf.mxu1 }
  0xbd   : > { %v751_v36 = vpop.f32.mrf.mxu3 }
  0xc5   : > { %v775_v42 = vpop.f32.mrf.mxu3 }
  0xcd   : > { %v762_v45 = vpop.f32.mrf.mxu0  ;;  %v777_v48 = vpop.f32.mrf.mxu3 }
  0xce   : > { %v736_v44 = vpop.f32.mrf.mxu1 }
  0xcf   : > { %v737_v46 = vadd.f32 %v736_v44, %v724_v43 }
  0xd1   : > { %v750_v47 = vadd.f32 %v749_v34, %v737_v46 }
  0xd3   : > { %v763_v49 = vadd.f32 %v762_v45, %v750_v47 }
  0xd5   : > { %v776_v51 = vadd.f32 %v775_v42, %v763_v49  ;;  %v764_v54 = vpop.f32.mrf.mxu0 }
  0xd6   : > { %v738_v53 = vpop.f32.mrf.mxu1 }
  0xd7   : > { %v779_v55 = vmul.f32 0.0015432099, %v776_v51 }
  0xd9   : > { %v781_v57 = vadd.f32 %v780_v52, %v779_v55 }
  0xdb   : > { %v785_v58 = vpack.c.bf16 %v781_v57, %v781_v57 }
  0xdd   : > { %v790_v59 = vpack.i.b16 %v785_v58, %v785_v58 }
  0xdf   : > { %v792_v61 = vperm.slane %v790_v59, 0 }
  0xe1   : > { %v794_v62 = vsel %vm793_vm3, %v792_v61, %v786_v60 }
  0xe2   : > { %1151 = vmatmul.bf16.vlgmr.msra.gmra.mxu2 %v794_v62  ;;  %1164 = vmatmul.bf16.vlgmr.msra.gmra.mxu3 %v794_v62 }
  0xe3   : > { %1177 = vmatmul.bf16.vlgmr.msra.gmra.mxu1 %v794_v62  ;;  %1190 = vmatmul.bf16.vlgmr.msra.gmra.mxu0 %v794_v62 }
  0xf2   : > { %1203 = vmatmul.bf16.vlgmr.msrb.gmra.mxu2 %v794_v62  ;;  %1216 = vmatmul.bf16.vlgmr.msrb.gmra.mxu3 %v794_v62 }
 0x160   : > { %v1178_v8 = vpop.f32.mrf.mxu1  ;;  %v1191_v9 = vpop.f32.mrf.mxu0 }
 0x161   : > { %v1179_v10 = vadd.f32 %v1178_v8, %v895_v4  ;;  %v1192_v11 = vadd.f32 %v1191_v9, %v896_v5 }
 0x163   : > { %1223 = vst [vmem:[%s347_s28 + $0x10] sm:$0xff] %v1179_v10 }
 0x164   : > { %1224 = vst [vmem:[%s347_s28 + $0x18] sm:$0xff] %v1192_v11 }
 0x165   : > { %v1152_v14 = vpop.f32.mrf.mxu2  ;;  %v1165_v15 = vpop.f32.mrf.mxu3 }
 0x166   : > { %v1153_v16 = vadd.f32 %v1152_v14, %v893_v12  ;;  %v1166_v17 = vadd.f32 %v1165_v15, %v894_v13 }
 0x168   : > { %1221 = vst [vmem:[%s347_s28] sm:$0xff] %v1153_v16  ;;  %v1180_v18 = vpop.f32.mrf.mxu1  ;;  %v1193_v19 = vpop.f32.mrf.mxu0 }
 0x169   : > { %1222 = vst [vmem:[%s347_s28 + $0x8] sm:$0xff] %v1166_v17 }
 0x16d   : > { %v1154_v20 = vpop.f32.mrf.mxu2  ;;  %v1167_v21 = vpop.f32.mrf.mxu3 }
 0x175   : > { %v1204_v26 = vpop.f32.mrf.mxu2  ;;  %v1217_v27 = vpop.f32.mrf.mxu3 }
 0x176   : > { %v1205_v28 = vadd.f32 %v1204_v26, %v897_v24  ;;  %v1218_v29 = vadd.f32 %v1217_v27, %v898_v25 }
 0x178   : > { %1225 = vst [vmem:[%s347_s28 + $0x20] sm:$0xff] %v1205_v28 }
 0x179   : > { %1226 = vst.msk [vmem:[%s347_s28 + $0x28] sm:$0xff] %vm693_vm1, %v1218_v29 }
 0x17d   : > { %v1206_v30 = vpop.f32.mrf.mxu2  ;;  %v1219_v31 = vpop.f32.mrf.mxu3 }
 0x17e PF: > { %s18_s26 = sadd.s32 1, %s1755_s26  }
 0x17f   : > { %p15_p4 = scmp.ge.s32.totalorder %s18_s26, 4  }
 0x181   :  { %17 = sbr.rel (!%p15_p4) target bundleno = 2 (0x2), region = 90 }

</bundles_post_ra>
